<compile_context>
chip_gen: v7x
topology: tpu7x:2x2x1
jax: 0.10.0
libtpu: 0.0.40
codegen_flags: <defaults>
</compile_context>

<pallas_src>
import functools

import jax
import jax.numpy as jnp
from jax import lax
from jax.experimental import pallas as pl
from jax.experimental.pallas import tpu as pltpu


# ---------------------------------------------------------------------------
# Exact GELU via an erf approximation (only mul/add/exp -> safe to lower).
# ---------------------------------------------------------------------------
def _gelu_exact(x):
    a1, a2, a3, a4, a5 = (0.254829592, -0.284496736, 1.421413741,
                          -1.453152027, 1.061405429)
    z = x * 0.7071067811865476                      # x / sqrt(2)
    az = jnp.abs(z)
    t = 1.0 / (1.0 + 0.3275911 * az)
    poly = ((((a5 * t + a4) * t + a3) * t + a2) * t + a1) * t
    erf_abs = 1.0 - poly * jnp.exp(-az * az)        # |abs err| <= 1.5e-7
    erf = jnp.where(z >= 0.0, erf_abs, -erf_abs)
    return 0.5 * x * (1.0 + erf)


# ---------------------------------------------------------------------------
# Fused kernel: GroupNorm + proj_in + (attn1 + attn2 + GEGLU-FF) + proj_out
# One block of `bp` batch elements per grid step; all weights stay in VMEM.
# ---------------------------------------------------------------------------
def spatial_transformer_kernel(
    x_ref,        # (bp, C, N)   input in native channel-major layout
    mat16_ref,    # (C, C+2D)    [gavg | w_in | w_out]
    mat32_ref,    # (D, 8D+2mlp) [wqkv1 | wo1 | wqkv2 | wo2 | w1]
    w2_ref,       # (mlp, D)
    bias_ref,     # (1, 10D+2mlp) row-vector parameters (see offsets below)
    colc_ref,     # (C, 3)       [gn_gamma | gn_beta | b_out] as columns
    o_ref,        # (bp, C, N)   output, channel-major
    *tok_refs,    # optional (bp*N, D) post-block tokens (test/debug only)
    bp, num_heads, head_dim, gn_eps, ln_eps):
    f32 = jnp.float32
    C = x_ref.shape[1]
    N = x_ref.shape[2]
    D = num_heads * head_dim
    mlp = w2_ref.shape[0]

    # ---- static lane offsets into the packed slabs -------------------------
    gavg = mat16_ref[:, 0:C]                         # (C, C) group-avg matrix
    w_in = mat16_ref[:, C:C + D]                     # (C, D)  x@W form
    w_out = mat16_ref[:, C + D:C + 2 * D]            # (C, D)  torch (out,in)

    OFF_QKV1, OFF_WO1 = 0, 3 * D
    OFF_QKV2, OFF_WO2 = 4 * D, 7 * D
    OFF_W1 = 8 * D

    OFF_BIN = 0
    OFF_LN1G, OFF_LN1B, OFF_BO1 = D, 2 * D, 3 * D
    OFF_LN2G, OFF_LN2B, OFF_BO2 = 4 * D, 5 * D, 6 * D
    OFF_LN3G, OFF_LN3B = 7 * D, 8 * D
    OFF_B1 = 9 * D
    OFF_B2 = 9 * D + 2 * mlp

    def bvec(off, width):
        return bias_ref[:, off:off + width]          # (1, width)

    gn_g = colc_ref[:, 0:1]                          # (C, 1)
    gn_b = colc_ref[:, 1:2]
    b_out = colc_ref[:, 2:3]

    # ---- GroupNorm (two-pass stats, per batch element) + proj_in -----------
    # x stays channel-major (C, N); the channel<->token transpose is folded
    # into the proj_in dot_general (contraction over dim 0 of both operands).
    h_parts = []
    for i in range(bp):
        x_cn = x_ref[i]                                               # (C, N)
        gx = jnp.dot(gavg, x_cn, preferred_element_type=f32)          # group-avg over C
        gmean = jnp.mean(gx, axis=1, keepdims=True)                   # (C, 1)
        cen = x_cn - gmean
        gsq = jnp.dot(gavg, cen * cen, preferred_element_type=f32)
        gvar = jnp.mean(gsq, axis=1, keepdims=True)                   # biased (PyTorch)
        xn = cen * lax.rsqrt(gvar + gn_eps) * gn_g + gn_b             # (C, N)
        h_parts.append(
            lax.dot_general(xn, w_in, (((0,), (0,)), ((), ())),
                            preferred_element_type=f32))              # (N, D)
    h = h_parts[0] if bp == 1 else jnp.concatenate(h_parts, axis=0)   # (bp*N, D)
    h = h + bvec(OFF_BIN, D)

    # ---- transformer block --------------------------------------------------
    def layer_norm(z, off_g, off_b):
        mu = jnp.mean(z, axis=-1, keepdims=True)
        var = jnp.mean((z - mu) * (z - mu), axis=-1, keepdims=True)
        return (z - mu) * lax.rsqrt(var + ln_eps) * bvec(off_g, D) + bvec(off_b, D)

    def self_attention(z, off_lng, off_lnb, off_qkv, off_wo, off_bo):
        hn = layer_norm(z, off_lng, off_lnb)
        wqkv = mat32_ref[:, off_qkv:off_qkv + 3 * D]                  # (D, 3D)
        # Fused Q/K/V: one (bp*N, D)@(D, 3D) matmul; 1/sqrt(hd) folded into Wq.
        qkv = jnp.dot(hn, wqkv, preferred_element_type=f32)           # (bp*N, 3D)
        batch_outs = []
        for b in range(bp):                                           # static unroll
            r0 = b * N
            head_outs = []
            for hh in range(num_heads):                               # static unroll
                c0 = hh * head_dim
                q = qkv[r0:r0 + N, c0:c0 + head_dim]
                k = qkv[r0:r0 + N, D + c0:D + c0 + head_dim]
                v = qkv[r0:r0 + N, 2 * D + c0:2 * D + c0 + head_dim]
                s = lax.dot_general(q, k, (((1,), (1,)), ((), ())),
                                    preferred_element_type=f32)       # (N, N)
                s = s - jnp.max(s, axis=-1, keepdims=True)
                p = jnp.exp(s)
                denom = jnp.sum(p, axis=-1, keepdims=True)
                r = pl.reciprocal(denom, approx=True)                 # EUP slot
                r = r * (2.0 - denom * r)                             # Newton -> f32 accuracy
                head_outs.append(jnp.dot(p * r, v, preferred_element_type=f32))
            a_b = (head_outs[0] if num_heads == 1
                   else jnp.concatenate(head_outs, axis=1))           # (N, D)
            batch_outs.append(a_b)
        a = batch_outs[0] if bp == 1 else jnp.concatenate(batch_outs, axis=0)
        wo = mat32_ref[:, off_wo:off_wo + D]                          # (D, D)
        return z + jnp.dot(a, wo, preferred_element_type=f32) + bvec(off_bo, D)

    h = self_attention(h, OFF_LN1G, OFF_LN1B, OFF_QKV1, OFF_WO1, OFF_BO1)
    # attn2: cross-attention with context=None -> plain self-attention
    h = self_attention(h, OFF_LN2G, OFF_LN2B, OFF_QKV2, OFF_WO2, OFF_BO2)

    # ---- ff: LN -> Linear(D->2*mlp) -> GEGLU -> Linear(mlp->D) -> +residual -
    hn = layer_norm(h, OFF_LN3G, OFF_LN3B)
    w1 = mat32_ref[:, OFF_W1:OFF_W1 + 2 * mlp]                        # (D, 2*mlp)
    u = jnp.dot(hn, w1, preferred_element_type=f32) + bvec(OFF_B1, 2 * mlp)
    val, gate = u[:, :mlp], u[:, mlp:]                                # tile-aligned split
    u = val * _gelu_exact(gate)
    h = jnp.dot(u, w2_ref[...], preferred_element_type=f32) + bvec(OFF_B2, D) + h

    if tok_refs:                                                      # test/debug only
        tok_refs[0][...] = h

    # ---- proj_out (zero_module'd at init) + outer residual, channel-major --
    for i in range(bp):
        h_i = h[i * N:(i + 1) * N, :]                                 # (N, D)
        y_cn = lax.dot_general(w_out, h_i, (((1,), (1,)), ((), ())),
                               preferred_element_type=f32)            # (C, N)
        o_ref[i] = y_cn + b_out + x_ref[i]


# ---------------------------------------------------------------------------
# One-time host-side weight packing (NOT on the per-call path).
# ---------------------------------------------------------------------------
def pack_params(p, *, num_heads, head_dim, num_groups):
    """Transpose to x@W form, fold the 1/sqrt(head_dim) scale into Wq (exact
    for power-of-two head dims), fuse QKV / GEGLU weights and concatenate
    everything into 5 slabs (6 input DMAs per call instead of ~30)."""
    f32 = jnp.float32
    D = num_heads * head_dim
    C = p["w_in"].shape[1]
    gs = C // num_groups
    gidx = jnp.arange(C) // gs
    gavg = (gidx[:, None] == gidx[None, :]).astype(f32) / gs          # (C, C)

    scale = 1.0 / (head_dim ** 0.5)

    def qkv_pack(i):   # torch (out,in) -> x@W (in,out), columns [Q | K | V]
        return jnp.concatenate(
            [p[f"wq{i}"].T * scale, p[f"wk{i}"].T, p[f"wv{i}"].T], axis=1)

    mat16 = jnp.concatenate([gavg, p["w_in"].T, p["w_out"]], axis=1)  # (C, C+2D)
    mat32 = jnp.concatenate(
        [qkv_pack(1), p["wo1"].T, qkv_pack(2), p["wo2"].T, p["w1"].T],
        axis=1)                                                       # (D, 8D+2mlp)
    w2 = p["w2"].T                                                    # (mlp, D)
    bias = jnp.concatenate(
        [p["b_in"], p["ln1_g"], p["ln1_b"], p["bo1"],
         p["ln2_g"], p["ln2_b"], p["bo2"],
         p["ln3_g"], p["ln3_b"], p["b1"], p["b2"]])[None, :]          # (1, 10D+2mlp)
    colc = jnp.stack([p["gn_gamma"], p["gn_beta"], p["b_out"]], axis=1)  # (C, 3)
    return {"mat16": mat16, "mat32": mat32, "w2": w2, "bias": bias, "colc": colc}


def _const_index_map(nd):
    return lambda i, _nd=nd: (0,) * _nd


def default_batch_per_block(batch_size):
    """v7x (2 TensorCores/chip): keep grid=(B,) 'parallel' so batch elements
    shard across cores.  v5e/v6e (1 TC): fold the batch into the matmul M
    dimension -> one grid step, bigger matmuls."""
    try:
        kind = jax.devices()[0].device_kind.lower()
    except Exception:
        kind = ""
    if "v7" in kind or "7x" in kind:
        return 1
    return batch_size


# ---------------------------------------------------------------------------
# Wrapper (jitted; only free reshapes outside the kernel).
# ---------------------------------------------------------------------------
def spatial_transformer_forward(x_nchw, packed, *, num_heads, head_dim,
                                gn_eps, batch_per_block, return_tokens=False):
    B, C, H, W = x_nchw.shape
    N = H * W
    D = num_heads * head_dim
    bp = batch_per_block
    assert B % bp == 0, "batch_per_block must divide the batch size"

    # (B,C,H,W) -> (B,C,N) is a free contiguous reshape; the channel<->token
    # transpose happens inside the kernel (folded into dot_generals).
    x_cn = x_nchw.reshape(B, C, N)

    kernel = functools.partial(
        spatial_transformer_kernel, bp=bp, num_heads=num_heads,
        head_dim=head_dim, gn_eps=gn_eps, ln_eps=1e-5)

    weights = (packed["mat16"], packed["mat32"], packed["w2"],
               packed["bias"], packed["colc"])

    out_shape = [jax.ShapeDtypeStruct((B, C, N), jnp.float32)]
    out_specs = [pl.BlockSpec((bp, C, N), lambda i: (i, 0, 0))]
    if return_tokens:
        # Test/debug-only output (last-dim D=32 is a sub-128-lane store).
        out_shape.append(jax.ShapeDtypeStruct((B * N, D), jnp.float32))
        out_specs.append(pl.BlockSpec((bp * N, D), lambda i: (i, 0)))

    res = pl.pallas_call(
        kernel,
        out_shape=tuple(out_shape),
        grid=(B // bp,),
        in_specs=[pl.BlockSpec((bp, C, N), lambda i: (i, 0, 0))]
                 + [pl.BlockSpec(w.shape, _const_index_map(w.ndim)) for w in weights],
        out_specs=tuple(out_specs),
        compiler_params=pltpu.CompilerParams(
            dimension_semantics=("parallel",)),   # v7x: batch blocks -> 2 TCs
    )(x_cn, *weights)

    y = res[0].reshape(B, C, H, W)                # free reshape back to NCHW
    return (y, res[1]) if return_tokens else y


forward = jax.jit(
    spatial_transformer_forward,
    static_argnames=("num_heads", "head_dim", "gn_eps", "batch_per_block",
                     "return_tokens"))


# ---------------------------------------------------------------------------
# Deterministic parameter init (PyTorch-convention shapes).
# ---------------------------------------------------------------------------
def init_params(key, C, D, mlp):
    f32 = jnp.float32
    s = 0.1
    keys = iter(jax.random.split(key, 32))

    def rnd(shape, scale=s):
        return scale * jax.random.normal(next(keys), shape, f32)

    p = {}
    # Norm affines randomized ("trained" values) so the kernel's affine paths
    # are actually exercised (PyTorch inits them to 1/0).
    p["gn_gamma"] = 1.0 + rnd((C,)); p["gn_beta"] = rnd((C,))
    p["w_in"] = rnd((D, C)); p["b_in"] = rnd((D,))
    for i in (1, 2):
        p[f"ln{i}_g"] = 1.0 + rnd((D,)); p[f"ln{i}_b"] = rnd((D,))
        p[f"wq{i}"] = rnd((D, D)); p[f"wk{i}"] = rnd((D, D)); p[f"wv{i}"] = rnd((D, D))
        p[f"wo{i}"] = rnd((D, D)); p[f"bo{i}"] = rnd((D,))
    p["ln3_g"] = 1.0 + rnd((D,)); p["ln3_b"] = rnd((D,))
    p["w1"] = rnd((2 * mlp, D)); p["b1"] = rnd((2 * mlp,))
    p["w2"] = rnd((D, mlp)); p["b2"] = rnd((D,))
    # proj_out is zero_module'd at init; small non-zero "trained" values are
    # used here so the proj_out matmul path is validated (zeros would hide it).
    p["w_out"] = rnd((C, D)); p["b_out"] = rnd((C,))
    return p


# ---------------------------------------------------------------------------
# Pure-JAX reference (mirrors PyTorch semantics) for the correctness check.
# ---------------------------------------------------------------------------
def reference_forward(x_nchw, p, *, num_heads, head_dim, num_groups, norm_eps):
    B, C, H, W = x_nchw.shape
    N, D = H * W, num_heads * head_dim

    xg = x_nchw.reshape(B, num_groups, C // num_groups, H, W)
    mu = xg.mean(axis=(2, 3, 4), keepdims=True)
    var = ((xg - mu) ** 2).mean(axis=(2, 3, 4), keepdims=True)
    xn = ((xg - mu) / jnp.sqrt(var + norm_eps)).reshape(B, C, H, W)
    xn = xn * p["gn_gamma"][None, :, None, None] + p["gn_beta"][None, :, None, None]
    h = jnp.einsum("bchw,dc->bdhw", xn, p["w_in"]) + p["b_in"][None, :, None, None]
    h = h.transpose(0, 2, 3, 1).reshape(B, N, D)

    def ln(z, g, b):
        m = z.mean(-1, keepdims=True)
        v = ((z - m) ** 2).mean(-1, keepdims=True)
        return (z - m) / jnp.sqrt(v + 1e-5) * g + b

    def attn(z, g, b, wq, wk, wv, wo, bo):
        hh = ln(z, g, b)
        q = (hh @ wq.T).reshape(B, N, num_heads, head_dim).transpose(0, 2, 1, 3)
        k = (hh @ wk.T).reshape(B, N, num_heads, head_dim).transpose(0, 2, 1, 3)
        v = (hh @ wv.T).reshape(B, N, num_heads, head_dim).transpose(0, 2, 1, 3)
        s = jnp.einsum("bhnd,bhmd->bhnm", q, k) / jnp.sqrt(head_dim)
        pr = jax.nn.softmax(s, axis=-1)
        o = jnp.einsum("bhnm,bhmd->bhnd", pr, v).transpose(0, 2, 1, 3).reshape(B, N, D)
        return o @ wo.T + bo + z

    h = attn(h, p["ln1_g"], p["ln1_b"], p["wq1"], p["wk1"], p["wv1"], p["wo1"], p["bo1"])
    h = attn(h, p["ln2_g"], p["ln2_b"], p["wq2"], p["wk2"], p["wv2"], p["wo2"], p["bo2"])
    hh = ln(h, p["ln3_g"], p["ln3_b"])
    u = hh @ p["w1"].T + p["b1"]
    a, gate = jnp.split(u, 2, axis=-1)
    h = (a * jax.nn.gelu(gate, approximate=False)) @ p["w2"].T + p["b2"] + h
    tok = h

    himg = h.reshape(B, H, W, D).transpose(0, 3, 1, 2)
    y = jnp.einsum("bdhw,cd->bchw", himg, p["w_out"]) + p["b_out"][None, :, None, None]
    return y + x_nchw, tok


# ---------------------------------------------------------------------------
if __name__ == "__main__":
    # SpatialTransformer(spatial_dims=2, in_channels=16, num_attention_heads=2,
    #                    num_head_channels=16, num_layers=1, norm_num_groups=4,
    #                    norm_eps=1e-6), context=None, dropout=0.0
    B, C, H, W = 2, 16, 8, 8
    num_heads, head_dim = 2, 16
    D = num_heads * head_dim
    mlp = 4 * D
    num_groups, norm_eps = 4, 1e-6

    key = jax.random.PRNGKey(0)
    kx, kp = jax.random.split(key)
    x = jax.random.normal(kx, (B, C, H, W), jnp.float32)
    params = init_params(kp, C, D, mlp)

    packed = pack_params(params, num_heads=num_heads, head_dim=head_dim,
                         num_groups=num_groups)          # once, off the hot path
    bp = default_batch_per_block(B)                      # 1 on v7x, B on v5e/v6e

    out, tok = forward(x, packed, num_heads=num_heads, head_dim=head_dim,
                       gn_eps=norm_eps, batch_per_block=bp, return_tokens=True)
    jax.block_until_ready(out)

    ref_out, ref_tok = reference_forward(
        x, params, num_heads=num_heads, head_dim=head_dim,
        num_groups=num_groups, norm_eps=norm_eps)

    assert out.shape == (B, C, H, W)
    # 5e-4 tolerance: structural bugs show up at >=1e-2; headroom for the
    # MXU-vs-XLA f32 accumulation-order differences.
    assert jnp.allclose(tok.reshape(B, H * W, D), ref_tok, atol=5e-4, rtol=5e-4), \
        "transformer tokens mismatch"
    assert jnp.allclose(out, ref_out, atol=5e-4, rtol=5e-4), "final output mismatch"

    # Production path: no token writeback, single fused dispatch.
    out2 = forward(x, packed, num_heads=num_heads, head_dim=head_dim,
                   gn_eps=norm_eps, batch_per_block=bp, return_tokens=False)
    jax.block_until_ready(out2)
    assert jnp.allclose(out2, ref_out, atol=5e-4, rtol=5e-4)

    print("KERNEL_OK")
</pallas_src>

<mosaic_0001>
module attributes {stable_mosaic.version = 11 : i64} {
  func.func @spatial_transformer_kernel(%arg0: i32, %arg1: memref<2x16x64xf32, #tpu.memory_space<vmem>>, %arg2: memref<16x80xf32, #tpu.memory_space<vmem>>, %arg3: memref<32x512xf32, #tpu.memory_space<vmem>>, %arg4: memref<128x32xf32, #tpu.memory_space<vmem>>, %arg5: memref<1x576xf32, #tpu.memory_space<vmem>>, %arg6: memref<16x3xf32, #tpu.memory_space<vmem>>, %arg7: memref<2x16x64xf32, #tpu.memory_space<vmem>>, %arg8: memref<128x32xf32, #tpu.memory_space<vmem>>) attributes {dimension_semantics = [#tpu.dimension_semantics<parallel>], iteration_bounds = array<i64: 1>, scalar_prefetch = 0 : i64, scratch_operands = 0 : i64, tpu.core_type = #tpu.core_type<tc>, window_params = [{transform_indices = @transform_0, window_bounds = array<i64: 2, 16, 64>}, {pipeline_mode = #tpu.pipeline_mode<synchronous>, transform_indices = @transform_1, window_bounds = array<i64: 16, 80>}, {pipeline_mode = #tpu.pipeline_mode<synchronous>, transform_indices = @transform_2, window_bounds = array<i64: 32, 512>}, {pipeline_mode = #tpu.pipeline_mode<synchronous>, transform_indices = @transform_3, window_bounds = array<i64: 128, 32>}, {pipeline_mode = #tpu.pipeline_mode<synchronous>, transform_indices = @transform_4, window_bounds = array<i64: 1, 576>}, {pipeline_mode = #tpu.pipeline_mode<synchronous>, transform_indices = @transform_5, window_bounds = array<i64: 16, 3>}, {transform_indices = @transform_6, window_bounds = array<i64: 2, 16, 64>}, {transform_indices = @transform_7, window_bounds = array<i64: 128, 32>}]} {
    %c0 = arith.constant 0 : index
    %c0_0 = arith.constant 0 : index
    %0 = vector.load %arg2[%c0, %c0_0] : memref<16x80xf32, #tpu.memory_space<vmem>>, vector<16x16xf32>
    %c0_1 = arith.constant 0 : index
    %c16 = arith.constant 16 : index
    %1 = vector.load %arg2[%c0_1, %c16] : memref<16x80xf32, #tpu.memory_space<vmem>>, vector<16x32xf32>
    %c0_2 = arith.constant 0 : index
    %c48 = arith.constant 48 : index
    %2 = vector.load %arg2[%c0_2, %c48] : memref<16x80xf32, #tpu.memory_space<vmem>>, vector<16x32xf32>
    %c0_3 = arith.constant 0 : index
    %c0_4 = arith.constant 0 : index
    %3 = vector.load %arg6[%c0_3, %c0_4] : memref<16x3xf32, #tpu.memory_space<vmem>>, vector<16x1xf32>
    %c0_5 = arith.constant 0 : index
    %c1 = arith.constant 1 : index
    %4 = vector.load %arg6[%c0_5, %c1] : memref<16x3xf32, #tpu.memory_space<vmem>>, vector<16x1xf32>
    %c0_6 = arith.constant 0 : index
    %c2 = arith.constant 2 : index
    %5 = vector.load %arg6[%c0_6, %c2] : memref<16x3xf32, #tpu.memory_space<vmem>>, vector<16x1xf32>
    %c0_7 = arith.constant 0 : index
    %c0_8 = arith.constant 0 : index
    %c0_9 = arith.constant 0 : index
    %6 = vector.load %arg1[%c0_7, %c0_8, %c0_9] : memref<2x16x64xf32, #tpu.memory_space<vmem>>, vector<1x16x64xf32>
    %7 = vector.shape_cast %6 : vector<1x16x64xf32> to vector<16x64xf32>
    %cst = arith.constant dense<0.000000e+00> : vector<16x64xf32>
    %8 = tpu.matmul %0, %7, %cst {dimension_numbers = #tpu.dot_dimension_numbers<[1], [0], [0], [1], [0, 0, 1, 1], [], []>} : vector<16x16xf32>, vector<16x64xf32>, vector<16x64xf32> -> vector<16x64xf32>
    %cst_10 = arith.constant dense<0.000000e+00> : vector<16xf32>
    %9 = vector.multi_reduction <add>, %8, %cst_10 [1] : vector<16x64xf32> to vector<16xf32>
    %10 = vector.shape_cast %9 : vector<16xf32> to vector<16x1xf32>
    %cst_11 = arith.constant 6.400000e+01 : f32
    %11 = vector.broadcast %cst_11 : f32 to vector<16x1xf32>
    %12 = arith.divf %10, %11 : vector<16x1xf32>
    %13 = vector.broadcast %12 : vector<16x1xf32> to vector<16x64xf32>
    %14 = arith.subf %7, %13 : vector<16x64xf32>
    %15 = arith.mulf %14, %14 : vector<16x64xf32>
    %cst_12 = arith.constant dense<0.000000e+00> : vector<16x64xf32>
    %16 = tpu.matmul %0, %15, %cst_12 {dimension_numbers = #tpu.dot_dimension_numbers<[1], [0], [0], [1], [0, 0, 1, 1], [], []>} : vector<16x16xf32>, vector<16x64xf32>, vector<16x64xf32> -> vector<16x64xf32>
    %cst_13 = arith.constant dense<0.000000e+00> : vector<16xf32>
    %17 = vector.multi_reduction <add>, %16, %cst_13 [1] : vector<16x64xf32> to vector<16xf32>
    %18 = vector.shape_cast %17 : vector<16xf32> to vector<16x1xf32>
    %cst_14 = arith.constant 6.400000e+01 : f32
    %19 = vector.broadcast %cst_14 : f32 to vector<16x1xf32>
    %20 = arith.divf %18, %19 : vector<16x1xf32>
    %cst_15 = arith.constant 9.99999997E-7 : f32
    %21 = vector.broadcast %cst_15 : f32 to vector<16x1xf32>
    %22 = arith.addf %20, %21 : vector<16x1xf32>
    %23 = math.rsqrt %22 : vector<16x1xf32>
    %24 = vector.broadcast %23 : vector<16x1xf32> to vector<16x64xf32>
    %25 = arith.mulf %14, %24 : vector<16x64xf32>
    %26 = vector.broadcast %3 : vector<16x1xf32> to vector<16x64xf32>
    %27 = arith.mulf %25, %26 : vector<16x64xf32>
    %28 = vector.broadcast %4 : vector<16x1xf32> to vector<16x64xf32>
    %29 = arith.addf %27, %28 : vector<16x64xf32>
    %cst_16 = arith.constant dense<0.000000e+00> : vector<64x32xf32>
    %30 = tpu.matmul %29, %1, %cst_16 {dimension_numbers = #tpu.dot_dimension_numbers<[0], [0], [1], [1], [0, 1, 1, 1], [], []>} : vector<16x64xf32>, vector<16x32xf32>, vector<64x32xf32> -> vector<64x32xf32>
    %c1_17 = arith.constant 1 : index
    %c0_18 = arith.constant 0 : index
    %c0_19 = arith.constant 0 : index
    %31 = vector.load %arg1[%c1_17, %c0_18, %c0_19] : memref<2x16x64xf32, #tpu.memory_space<vmem>>, vector<1x16x64xf32>
    %32 = vector.shape_cast %31 : vector<1x16x64xf32> to vector<16x64xf32>
    %cst_20 = arith.constant dense<0.000000e+00> : vector<16x64xf32>
    %33 = tpu.matmul %0, %32, %cst_20 {dimension_numbers = #tpu.dot_dimension_numbers<[1], [0], [0], [1], [0, 0, 1, 1], [], []>} : vector<16x16xf32>, vector<16x64xf32>, vector<16x64xf32> -> vector<16x64xf32>
    %cst_21 = arith.constant dense<0.000000e+00> : vector<16xf32>
    %34 = vector.multi_reduction <add>, %33, %cst_21 [1] : vector<16x64xf32> to vector<16xf32>
    %35 = vector.shape_cast %34 : vector<16xf32> to vector<16x1xf32>
    %cst_22 = arith.constant 6.400000e+01 : f32
    %36 = vector.broadcast %cst_22 : f32 to vector<16x1xf32>
    %37 = arith.divf %35, %36 : vector<16x1xf32>
    %38 = vector.broadcast %37 : vector<16x1xf32> to vector<16x64xf32>
    %39 = arith.subf %32, %38 : vector<16x64xf32>
    %40 = arith.mulf %39, %39 : vector<16x64xf32>
    %cst_23 = arith.constant dense<0.000000e+00> : vector<16x64xf32>
    %41 = tpu.matmul %0, %40, %cst_23 {dimension_numbers = #tpu.dot_dimension_numbers<[1], [0], [0], [1], [0, 0, 1, 1], [], []>} : vector<16x16xf32>, vector<16x64xf32>, vector<16x64xf32> -> vector<16x64xf32>
    %cst_24 = arith.constant dense<0.000000e+00> : vector<16xf32>
    %42 = vector.multi_reduction <add>, %41, %cst_24 [1] : vector<16x64xf32> to vector<16xf32>
    %43 = vector.shape_cast %42 : vector<16xf32> to vector<16x1xf32>
    %cst_25 = arith.constant 6.400000e+01 : f32
    %44 = vector.broadcast %cst_25 : f32 to vector<16x1xf32>
    %45 = arith.divf %43, %44 : vector<16x1xf32>
    %cst_26 = arith.constant 9.99999997E-7 : f32
    %46 = vector.broadcast %cst_26 : f32 to vector<16x1xf32>
    %47 = arith.addf %45, %46 : vector<16x1xf32>
    %48 = math.rsqrt %47 : vector<16x1xf32>
    %49 = vector.broadcast %48 : vector<16x1xf32> to vector<16x64xf32>
    %50 = arith.mulf %39, %49 : vector<16x64xf32>
    %51 = vector.broadcast %3 : vector<16x1xf32> to vector<16x64xf32>
    %52 = arith.mulf %50, %51 : vector<16x64xf32>
    %53 = vector.broadcast %4 : vector<16x1xf32> to vector<16x64xf32>
    %54 = arith.addf %52, %53 : vector<16x64xf32>
    %cst_27 = arith.constant dense<0.000000e+00> : vector<64x32xf32>
    %55 = tpu.matmul %54, %1, %cst_27 {dimension_numbers = #tpu.dot_dimension_numbers<[0], [0], [1], [1], [0, 1, 1, 1], [], []>} : vector<16x64xf32>, vector<16x32xf32>, vector<64x32xf32> -> vector<64x32xf32>
    %56 = tpu.concatenate %30, %55 in 0 : vector<64x32xf32>, vector<64x32xf32> -> vector<128x32xf32>
    %c0_28 = arith.constant 0 : index
    %c0_29 = arith.constant 0 : index
    %57 = vector.load %arg5[%c0_28, %c0_29] : memref<1x576xf32, #tpu.memory_space<vmem>>, vector<1x32xf32>
    %58 = vector.broadcast %57 : vector<1x32xf32> to vector<128x32xf32>
    %59 = arith.addf %56, %58 : vector<128x32xf32>
    %cst_30 = arith.constant dense<0.000000e+00> : vector<128xf32>
    %60 = vector.multi_reduction <add>, %59, %cst_30 [1] : vector<128x32xf32> to vector<128xf32>
    %61 = vector.shape_cast %60 : vector<128xf32> to vector<128x1xf32>
    %cst_31 = arith.constant 3.200000e+01 : f32
    %62 = vector.broadcast %cst_31 : f32 to vector<128x1xf32>
    %63 = arith.divf %61, %62 : vector<128x1xf32>
    %64 = vector.broadcast %63 : vector<128x1xf32> to vector<128x32xf32>
    %65 = arith.subf %59, %64 : vector<128x32xf32>
    %66 = vector.broadcast %63 : vector<128x1xf32> to vector<128x32xf32>
    %67 = arith.subf %59, %66 : vector<128x32xf32>
    %68 = arith.mulf %65, %67 : vector<128x32xf32>
    %cst_32 = arith.constant dense<0.000000e+00> : vector<128xf32>
    %69 = vector.multi_reduction <add>, %68, %cst_32 [1] : vector<128x32xf32> to vector<128xf32>
    %70 = vector.shape_cast %69 : vector<128xf32> to vector<128x1xf32>
    %cst_33 = arith.constant 3.200000e+01 : f32
    %71 = vector.broadcast %cst_33 : f32 to vector<128x1xf32>
    %72 = arith.divf %70, %71 : vector<128x1xf32>
    %73 = vector.broadcast %63 : vector<128x1xf32> to vector<128x32xf32>
    %74 = arith.subf %59, %73 : vector<128x32xf32>
    %cst_34 = arith.constant 9.99999974E-6 : f32
    %75 = vector.broadcast %cst_34 : f32 to vector<128x1xf32>
    %76 = arith.addf %72, %75 : vector<128x1xf32>
    %77 = math.rsqrt %76 : vector<128x1xf32>
    %78 = vector.broadcast %77 : vector<128x1xf32> to vector<128x32xf32>
    %79 = arith.mulf %74, %78 : vector<128x32xf32>
    %c0_35 = arith.constant 0 : index
    %c32 = arith.constant 32 : index
    %80 = vector.load %arg5[%c0_35, %c32] : memref<1x576xf32, #tpu.memory_space<vmem>>, vector<1x32xf32>
    %81 = vector.broadcast %80 : vector<1x32xf32> to vector<128x32xf32>
    %82 = arith.mulf %79, %81 : vector<128x32xf32>
    %c0_36 = arith.constant 0 : index
    %c64 = arith.constant 64 : index
    %83 = vector.load %arg5[%c0_36, %c64] : memref<1x576xf32, #tpu.memory_space<vmem>>, vector<1x32xf32>
    %84 = vector.broadcast %83 : vector<1x32xf32> to vector<128x32xf32>
    %85 = arith.addf %82, %84 : vector<128x32xf32>
    %c0_37 = arith.constant 0 : index
    %c0_38 = arith.constant 0 : index
    %86 = vector.load %arg3[%c0_37, %c0_38] : memref<32x512xf32, #tpu.memory_space<vmem>>, vector<32x96xf32>
    %cst_39 = arith.constant dense<0.000000e+00> : vector<128x96xf32>
    %87 = tpu.matmul %85, %86, %cst_39 {dimension_numbers = #tpu.dot_dimension_numbers<[1], [0], [0], [1], [0, 0, 1, 1], [], []>} : vector<128x32xf32>, vector<32x96xf32>, vector<128x96xf32> -> vector<128x96xf32>
    %88 = vector.extract_strided_slice %87 {offsets = [0, 0], sizes = [64, 16], strides = [1, 1]} : vector<128x96xf32> to vector<64x16xf32>
    %89 = vector.extract_strided_slice %87 {offsets = [0, 32], sizes = [64, 16], strides = [1, 1]} : vector<128x96xf32> to vector<64x16xf32>
    %90 = vector.extract_strided_slice %87 {offsets = [0, 64], sizes = [64, 16], strides = [1, 1]} : vector<128x96xf32> to vector<64x16xf32>
    %cst_40 = arith.constant dense<0.000000e+00> : vector<64x64xf32>
    %91 = tpu.matmul %88, %89, %cst_40 {dimension_numbers = #tpu.dot_dimension_numbers<[1], [1], [0], [0], [0, 0, 1, 0], [], []>} : vector<64x16xf32>, vector<64x16xf32>, vector<64x64xf32> -> vector<64x64xf32>
    %cst_41 = arith.constant dense<0xFF800000> : vector<64xf32>
    %92 = vector.multi_reduction <maximumf>, %91, %cst_41 [1] : vector<64x64xf32> to vector<64xf32>
    %93 = vector.shape_cast %92 : vector<64xf32> to vector<64x1xf32>
    %94 = vector.broadcast %93 : vector<64x1xf32> to vector<64x64xf32>
    %95 = arith.subf %91, %94 : vector<64x64xf32>
    %96 = math.exp %95 : vector<64x64xf32>
    %cst_42 = arith.constant dense<0.000000e+00> : vector<64xf32>
    %97 = vector.multi_reduction <add>, %96, %cst_42 [1] : vector<64x64xf32> to vector<64xf32>
    %98 = vector.shape_cast %97 : vector<64xf32> to vector<64x1xf32>
    %99 = tpu.reciprocal %98 {approx = true} : vector<64x1xf32> -> vector<64x1xf32>
    %100 = arith.mulf %98, %99 : vector<64x1xf32>
    %cst_43 = arith.constant 2.000000e+00 : f32
    %101 = vector.broadcast %cst_43 : f32 to vector<64x1xf32>
    %102 = arith.subf %101, %100 : vector<64x1xf32>
    %103 = arith.mulf %99, %102 : vector<64x1xf32>
    %104 = vector.broadcast %103 : vector<64x1xf32> to vector<64x64xf32>
    %105 = arith.mulf %96, %104 : vector<64x64xf32>
    %cst_44 = arith.constant dense<0.000000e+00> : vector<64x16xf32>
    %106 = tpu.matmul %105, %90, %cst_44 {dimension_numbers = #tpu.dot_dimension_numbers<[1], [0], [0], [1], [0, 0, 1, 1], [], []>} : vector<64x64xf32>, vector<64x16xf32>, vector<64x16xf32> -> vector<64x16xf32>
    %107 = vector.extract_strided_slice %87 {offsets = [0, 16], sizes = [64, 16], strides = [1, 1]} : vector<128x96xf32> to vector<64x16xf32>
    %108 = vector.extract_strided_slice %87 {offsets = [0, 48], sizes = [64, 16], strides = [1, 1]} : vector<128x96xf32> to vector<64x16xf32>
    %109 = vector.extract_strided_slice %87 {offsets = [0, 80], sizes = [64, 16], strides = [1, 1]} : vector<128x96xf32> to vector<64x16xf32>
    %cst_45 = arith.constant dense<0.000000e+00> : vector<64x64xf32>
    %110 = tpu.matmul %107, %108, %cst_45 {dimension_numbers = #tpu.dot_dimension_numbers<[1], [1], [0], [0], [0, 0, 1, 0], [], []>} : vector<64x16xf32>, vector<64x16xf32>, vector<64x64xf32> -> vector<64x64xf32>
    %cst_46 = arith.constant dense<0xFF800000> : vector<64xf32>
    %111 = vector.multi_reduction <maximumf>, %110, %cst_46 [1] : vector<64x64xf32> to vector<64xf32>
    %112 = vector.shape_cast %111 : vector<64xf32> to vector<64x1xf32>
    %113 = vector.broadcast %112 : vector<64x1xf32> to vector<64x64xf32>
    %114 = arith.subf %110, %113 : vector<64x64xf32>
    %115 = math.exp %114 : vector<64x64xf32>
    %cst_47 = arith.constant dense<0.000000e+00> : vector<64xf32>
    %116 = vector.multi_reduction <add>, %115, %cst_47 [1] : vector<64x64xf32> to vector<64xf32>
    %117 = vector.shape_cast %116 : vector<64xf32> to vector<64x1xf32>
    %118 = tpu.reciprocal %117 {approx = true} : vector<64x1xf32> -> vector<64x1xf32>
    %119 = arith.mulf %117, %118 : vector<64x1xf32>
    %cst_48 = arith.constant 2.000000e+00 : f32
    %120 = vector.broadcast %cst_48 : f32 to vector<64x1xf32>
    %121 = arith.subf %120, %119 : vector<64x1xf32>
    %122 = arith.mulf %118, %121 : vector<64x1xf32>
    %123 = vector.broadcast %122 : vector<64x1xf32> to vector<64x64xf32>
    %124 = arith.mulf %115, %123 : vector<64x64xf32>
    %cst_49 = arith.constant dense<0.000000e+00> : vector<64x16xf32>
    %125 = tpu.matmul %124, %109, %cst_49 {dimension_numbers = #tpu.dot_dimension_numbers<[1], [0], [0], [1], [0, 0, 1, 1], [], []>} : vector<64x64xf32>, vector<64x16xf32>, vector<64x16xf32> -> vector<64x16xf32>
    %126 = tpu.concatenate %106, %125 in 1 : vector<64x16xf32>, vector<64x16xf32> -> vector<64x32xf32>
    %127 = vector.extract_strided_slice %87 {offsets = [64, 0], sizes = [64, 16], strides = [1, 1]} : vector<128x96xf32> to vector<64x16xf32>
    %128 = vector.extract_strided_slice %87 {offsets = [64, 32], sizes = [64, 16], strides = [1, 1]} : vector<128x96xf32> to vector<64x16xf32>
    %129 = vector.extract_strided_slice %87 {offsets = [64, 64], sizes = [64, 16], strides = [1, 1]} : vector<128x96xf32> to vector<64x16xf32>
    %cst_50 = arith.constant dense<0.000000e+00> : vector<64x64xf32>
    %130 = tpu.matmul %127, %128, %cst_50 {dimension_numbers = #tpu.dot_dimension_numbers<[1], [1], [0], [0], [0, 0, 1, 0], [], []>} : vector<64x16xf32>, vector<64x16xf32>, vector<64x64xf32> -> vector<64x64xf32>
    %cst_51 = arith.constant dense<0xFF800000> : vector<64xf32>
    %131 = vector.multi_reduction <maximumf>, %130, %cst_51 [1] : vector<64x64xf32> to vector<64xf32>
    %132 = vector.shape_cast %131 : vector<64xf32> to vector<64x1xf32>
    %133 = vector.broadcast %132 : vector<64x1xf32> to vector<64x64xf32>
    %134 = arith.subf %130, %133 : vector<64x64xf32>
    %135 = math.exp %134 : vector<64x64xf32>
    %cst_52 = arith.constant dense<0.000000e+00> : vector<64xf32>
    %136 = vector.multi_reduction <add>, %135, %cst_52 [1] : vector<64x64xf32> to vector<64xf32>
    %137 = vector.shape_cast %136 : vector<64xf32> to vector<64x1xf32>
    %138 = tpu.reciprocal %137 {approx = true} : vector<64x1xf32> -> vector<64x1xf32>
    %139 = arith.mulf %137, %138 : vector<64x1xf32>
    %cst_53 = arith.constant 2.000000e+00 : f32
    %140 = vector.broadcast %cst_53 : f32 to vector<64x1xf32>
    %141 = arith.subf %140, %139 : vector<64x1xf32>
    %142 = arith.mulf %138, %141 : vector<64x1xf32>
    %143 = vector.broadcast %142 : vector<64x1xf32> to vector<64x64xf32>
    %144 = arith.mulf %135, %143 : vector<64x64xf32>
    %cst_54 = arith.constant dense<0.000000e+00> : vector<64x16xf32>
    %145 = tpu.matmul %144, %129, %cst_54 {dimension_numbers = #tpu.dot_dimension_numbers<[1], [0], [0], [1], [0, 0, 1, 1], [], []>} : vector<64x64xf32>, vector<64x16xf32>, vector<64x16xf32> -> vector<64x16xf32>
    %146 = vector.extract_strided_slice %87 {offsets = [64, 16], sizes = [64, 16], strides = [1, 1]} : vector<128x96xf32> to vector<64x16xf32>
    %147 = vector.extract_strided_slice %87 {offsets = [64, 48], sizes = [64, 16], strides = [1, 1]} : vector<128x96xf32> to vector<64x16xf32>
    %148 = vector.extract_strided_slice %87 {offsets = [64, 80], sizes = [64, 16], strides = [1, 1]} : vector<128x96xf32> to vector<64x16xf32>
    %cst_55 = arith.constant dense<0.000000e+00> : vector<64x64xf32>
    %149 = tpu.matmul %146, %147, %cst_55 {dimension_numbers = #tpu.dot_dimension_numbers<[1], [1], [0], [0], [0, 0, 1, 0], [], []>} : vector<64x16xf32>, vector<64x16xf32>, vector<64x64xf32> -> vector<64x64xf32>
    %cst_56 = arith.constant dense<0xFF800000> : vector<64xf32>
    %150 = vector.multi_reduction <maximumf>, %149, %cst_56 [1] : vector<64x64xf32> to vector<64xf32>
    %151 = vector.shape_cast %150 : vector<64xf32> to vector<64x1xf32>
    %152 = vector.broadcast %151 : vector<64x1xf32> to vector<64x64xf32>
    %153 = arith.subf %149, %152 : vector<64x64xf32>
    %154 = math.exp %153 : vector<64x64xf32>
    %cst_57 = arith.constant dense<0.000000e+00> : vector<64xf32>
    %155 = vector.multi_reduction <add>, %154, %cst_57 [1] : vector<64x64xf32> to vector<64xf32>
    %156 = vector.shape_cast %155 : vector<64xf32> to vector<64x1xf32>
    %157 = tpu.reciprocal %156 {approx = true} : vector<64x1xf32> -> vector<64x1xf32>
    %158 = arith.mulf %156, %157 : vector<64x1xf32>
    %cst_58 = arith.constant 2.000000e+00 : f32
    %159 = vector.broadcast %cst_58 : f32 to vector<64x1xf32>
    %160 = arith.subf %159, %158 : vector<64x1xf32>
    %161 = arith.mulf %157, %160 : vector<64x1xf32>
    %162 = vector.broadcast %161 : vector<64x1xf32> to vector<64x64xf32>
    %163 = arith.mulf %154, %162 : vector<64x64xf32>
    %cst_59 = arith.constant dense<0.000000e+00> : vector<64x16xf32>
    %164 = tpu.matmul %163, %148, %cst_59 {dimension_numbers = #tpu.dot_dimension_numbers<[1], [0], [0], [1], [0, 0, 1, 1], [], []>} : vector<64x64xf32>, vector<64x16xf32>, vector<64x16xf32> -> vector<64x16xf32>
    %165 = tpu.concatenate %145, %164 in 1 : vector<64x16xf32>, vector<64x16xf32> -> vector<64x32xf32>
    %166 = tpu.concatenate %126, %165 in 0 : vector<64x32xf32>, vector<64x32xf32> -> vector<128x32xf32>
    %c0_60 = arith.constant 0 : index
    %c96 = arith.constant 96 : index
    %167 = vector.load %arg3[%c0_60, %c96] : memref<32x512xf32, #tpu.memory_space<vmem>>, vector<32x32xf32>
    %cst_61 = arith.constant dense<0.000000e+00> : vector<128x32xf32>
    %168 = tpu.matmul %166, %167, %cst_61 {dimension_numbers = #tpu.dot_dimension_numbers<[1], [0], [0], [1], [0, 0, 1, 1], [], []>} : vector<128x32xf32>, vector<32x32xf32>, vector<128x32xf32> -> vector<128x32xf32>
    %169 = arith.addf %59, %168 : vector<128x32xf32>
    %c0_62 = arith.constant 0 : index
    %c96_63 = arith.constant 96 : index
    %170 = vector.load %arg5[%c0_62, %c96_63] : memref<1x576xf32, #tpu.memory_space<vmem>>, vector<1x32xf32>
    %171 = vector.broadcast %170 : vector<1x32xf32> to vector<128x32xf32>
    %172 = arith.addf %169, %171 : vector<128x32xf32>
    %cst_64 = arith.constant dense<0.000000e+00> : vector<128xf32>
    %173 = vector.multi_reduction <add>, %172, %cst_64 [1] : vector<128x32xf32> to vector<128xf32>
    %174 = vector.shape_cast %173 : vector<128xf32> to vector<128x1xf32>
    %cst_65 = arith.constant 3.200000e+01 : f32
    %175 = vector.broadcast %cst_65 : f32 to vector<128x1xf32>
    %176 = arith.divf %174, %175 : vector<128x1xf32>
    %177 = vector.broadcast %176 : vector<128x1xf32> to vector<128x32xf32>
    %178 = arith.subf %172, %177 : vector<128x32xf32>
    %179 = vector.broadcast %176 : vector<128x1xf32> to vector<128x32xf32>
    %180 = arith.subf %172, %179 : vector<128x32xf32>
    %181 = arith.mulf %178, %180 : vector<128x32xf32>
    %cst_66 = arith.constant dense<0.000000e+00> : vector<128xf32>
    %182 = vector.multi_reduction <add>, %181, %cst_66 [1] : vector<128x32xf32> to vector<128xf32>
    %183 = vector.shape_cast %182 : vector<128xf32> to vector<128x1xf32>
    %cst_67 = arith.constant 3.200000e+01 : f32
    %184 = vector.broadcast %cst_67 : f32 to vector<128x1xf32>
    %185 = arith.divf %183, %184 : vector<128x1xf32>
    %186 = vector.broadcast %176 : vector<128x1xf32> to vector<128x32xf32>
    %187 = arith.subf %172, %186 : vector<128x32xf32>
    %cst_68 = arith.constant 9.99999974E-6 : f32
    %188 = vector.broadcast %cst_68 : f32 to vector<128x1xf32>
    %189 = arith.addf %185, %188 : vector<128x1xf32>
    %190 = math.rsqrt %189 : vector<128x1xf32>
    %191 = vector.broadcast %190 : vector<128x1xf32> to vector<128x32xf32>
    %192 = arith.mulf %187, %191 : vector<128x32xf32>
    %c0_69 = arith.constant 0 : index
    %c128 = arith.constant 128 : index
    %193 = vector.load %arg5[%c0_69, %c128] : memref<1x576xf32, #tpu.memory_space<vmem>>, vector<1x32xf32>
    %194 = vector.broadcast %193 : vector<1x32xf32> to vector<128x32xf32>
    %195 = arith.mulf %192, %194 : vector<128x32xf32>
    %c0_70 = arith.constant 0 : index
    %c160 = arith.constant 160 : index
    %196 = vector.load %arg5[%c0_70, %c160] : memref<1x576xf32, #tpu.memory_space<vmem>>, vector<1x32xf32>
    %197 = vector.broadcast %196 : vector<1x32xf32> to vector<128x32xf32>
    %198 = arith.addf %195, %197 : vector<128x32xf32>
    %c0_71 = arith.constant 0 : index
    %c128_72 = arith.constant 128 : index
    %199 = vector.load %arg3[%c0_71, %c128_72] : memref<32x512xf32, #tpu.memory_space<vmem>>, vector<32x96xf32>
    %cst_73 = arith.constant dense<0.000000e+00> : vector<128x96xf32>
    %200 = tpu.matmul %198, %199, %cst_73 {dimension_numbers = #tpu.dot_dimension_numbers<[1], [0], [0], [1], [0, 0, 1, 1], [], []>} : vector<128x32xf32>, vector<32x96xf32>, vector<128x96xf32> -> vector<128x96xf32>
    %201 = vector.extract_strided_slice %200 {offsets = [0, 0], sizes = [64, 16], strides = [1, 1]} : vector<128x96xf32> to vector<64x16xf32>
    %202 = vector.extract_strided_slice %200 {offsets = [0, 32], sizes = [64, 16], strides = [1, 1]} : vector<128x96xf32> to vector<64x16xf32>
    %203 = vector.extract_strided_slice %200 {offsets = [0, 64], sizes = [64, 16], strides = [1, 1]} : vector<128x96xf32> to vector<64x16xf32>
    %cst_74 = arith.constant dense<0.000000e+00> : vector<64x64xf32>
    %204 = tpu.matmul %201, %202, %cst_74 {dimension_numbers = #tpu.dot_dimension_numbers<[1], [1], [0], [0], [0, 0, 1, 0], [], []>} : vector<64x16xf32>, vector<64x16xf32>, vector<64x64xf32> -> vector<64x64xf32>
    %cst_75 = arith.constant dense<0xFF800000> : vector<64xf32>
    %205 = vector.multi_reduction <maximumf>, %204, %cst_75 [1] : vector<64x64xf32> to vector<64xf32>
    %206 = vector.shape_cast %205 : vector<64xf32> to vector<64x1xf32>
    %207 = vector.broadcast %206 : vector<64x1xf32> to vector<64x64xf32>
    %208 = arith.subf %204, %207 : vector<64x64xf32>
    %209 = math.exp %208 : vector<64x64xf32>
    %cst_76 = arith.constant dense<0.000000e+00> : vector<64xf32>
    %210 = vector.multi_reduction <add>, %209, %cst_76 [1] : vector<64x64xf32> to vector<64xf32>
    %211 = vector.shape_cast %210 : vector<64xf32> to vector<64x1xf32>
    %212 = tpu.reciprocal %211 {approx = true} : vector<64x1xf32> -> vector<64x1xf32>
    %213 = arith.mulf %211, %212 : vector<64x1xf32>
    %cst_77 = arith.constant 2.000000e+00 : f32
    %214 = vector.broadcast %cst_77 : f32 to vector<64x1xf32>
    %215 = arith.subf %214, %213 : vector<64x1xf32>
    %216 = arith.mulf %212, %215 : vector<64x1xf32>
    %217 = vector.broadcast %216 : vector<64x1xf32> to vector<64x64xf32>
    %218 = arith.mulf %209, %217 : vector<64x64xf32>
    %cst_78 = arith.constant dense<0.000000e+00> : vector<64x16xf32>
    %219 = tpu.matmul %218, %203, %cst_78 {dimension_numbers = #tpu.dot_dimension_numbers<[1], [0], [0], [1], [0, 0, 1, 1], [], []>} : vector<64x64xf32>, vector<64x16xf32>, vector<64x16xf32> -> vector<64x16xf32>
    %220 = vector.extract_strided_slice %200 {offsets = [0, 16], sizes = [64, 16], strides = [1, 1]} : vector<128x96xf32> to vector<64x16xf32>
    %221 = vector.extract_strided_slice %200 {offsets = [0, 48], sizes = [64, 16], strides = [1, 1]} : vector<128x96xf32> to vector<64x16xf32>
    %222 = vector.extract_strided_slice %200 {offsets = [0, 80], sizes = [64, 16], strides = [1, 1]} : vector<128x96xf32> to vector<64x16xf32>
    %cst_79 = arith.constant dense<0.000000e+00> : vector<64x64xf32>
    %223 = tpu.matmul %220, %221, %cst_79 {dimension_numbers = #tpu.dot_dimension_numbers<[1], [1], [0], [0], [0, 0, 1, 0], [], []>} : vector<64x16xf32>, vector<64x16xf32>, vector<64x64xf32> -> vector<64x64xf32>
    %cst_80 = arith.constant dense<0xFF800000> : vector<64xf32>
    %224 = vector.multi_reduction <maximumf>, %223, %cst_80 [1] : vector<64x64xf32> to vector<64xf32>
    %225 = vector.shape_cast %224 : vector<64xf32> to vector<64x1xf32>
    %226 = vector.broadcast %225 : vector<64x1xf32> to vector<64x64xf32>
    %227 = arith.subf %223, %226 : vector<64x64xf32>
    %228 = math.exp %227 : vector<64x64xf32>
    %cst_81 = arith.constant dense<0.000000e+00> : vector<64xf32>
    %229 = vector.multi_reduction <add>, %228, %cst_81 [1] : vector<64x64xf32> to vector<64xf32>
    %230 = vector.shape_cast %229 : vector<64xf32> to vector<64x1xf32>
    %231 = tpu.reciprocal %230 {approx = true} : vector<64x1xf32> -> vector<64x1xf32>
    %232 = arith.mulf %230, %231 : vector<64x1xf32>
    %cst_82 = arith.constant 2.000000e+00 : f32
    %233 = vector.broadcast %cst_82 : f32 to vector<64x1xf32>
    %234 = arith.subf %233, %232 : vector<64x1xf32>
    %235 = arith.mulf %231, %234 : vector<64x1xf32>
    %236 = vector.broadcast %235 : vector<64x1xf32> to vector<64x64xf32>
    %237 = arith.mulf %228, %236 : vector<64x64xf32>
    %cst_83 = arith.constant dense<0.000000e+00> : vector<64x16xf32>
    %238 = tpu.matmul %237, %222, %cst_83 {dimension_numbers = #tpu.dot_dimension_numbers<[1], [0], [0], [1], [0, 0, 1, 1], [], []>} : vector<64x64xf32>, vector<64x16xf32>, vector<64x16xf32> -> vector<64x16xf32>
    %239 = tpu.concatenate %219, %238 in 1 : vector<64x16xf32>, vector<64x16xf32> -> vector<64x32xf32>
    %240 = vector.extract_strided_slice %200 {offsets = [64, 0], sizes = [64, 16], strides = [1, 1]} : vector<128x96xf32> to vector<64x16xf32>
    %241 = vector.extract_strided_slice %200 {offsets = [64, 32], sizes = [64, 16], strides = [1, 1]} : vector<128x96xf32> to vector<64x16xf32>
    %242 = vector.extract_strided_slice %200 {offsets = [64, 64], sizes = [64, 16], strides = [1, 1]} : vector<128x96xf32> to vector<64x16xf32>
    %cst_84 = arith.constant dense<0.000000e+00> : vector<64x64xf32>
    %243 = tpu.matmul %240, %241, %cst_84 {dimension_numbers = #tpu.dot_dimension_numbers<[1], [1], [0], [0], [0, 0, 1, 0], [], []>} : vector<64x16xf32>, vector<64x16xf32>, vector<64x64xf32> -> vector<64x64xf32>
    %cst_85 = arith.constant dense<0xFF800000> : vector<64xf32>
    %244 = vector.multi_reduction <maximumf>, %243, %cst_85 [1] : vector<64x64xf32> to vector<64xf32>
    %245 = vector.shape_cast %244 : vector<64xf32> to vector<64x1xf32>
    %246 = vector.broadcast %245 : vector<64x1xf32> to vector<64x64xf32>
    %247 = arith.subf %243, %246 : vector<64x64xf32>
    %248 = math.exp %247 : vector<64x64xf32>
    %cst_86 = arith.constant dense<0.000000e+00> : vector<64xf32>
    %249 = vector.multi_reduction <add>, %248, %cst_86 [1] : vector<64x64xf32> to vector<64xf32>
    %250 = vector.shape_cast %249 : vector<64xf32> to vector<64x1xf32>
    %251 = tpu.reciprocal %250 {approx = true} : vector<64x1xf32> -> vector<64x1xf32>
    %252 = arith.mulf %250, %251 : vector<64x1xf32>
    %cst_87 = arith.constant 2.000000e+00 : f32
    %253 = vector.broadcast %cst_87 : f32 to vector<64x1xf32>
    %254 = arith.subf %253, %252 : vector<64x1xf32>
    %255 = arith.mulf %251, %254 : vector<64x1xf32>
    %256 = vector.broadcast %255 : vector<64x1xf32> to vector<64x64xf32>
    %257 = arith.mulf %248, %256 : vector<64x64xf32>
    %cst_88 = arith.constant dense<0.000000e+00> : vector<64x16xf32>
    %258 = tpu.matmul %257, %242, %cst_88 {dimension_numbers = #tpu.dot_dimension_numbers<[1], [0], [0], [1], [0, 0, 1, 1], [], []>} : vector<64x64xf32>, vector<64x16xf32>, vector<64x16xf32> -> vector<64x16xf32>
    %259 = vector.extract_strided_slice %200 {offsets = [64, 16], sizes = [64, 16], strides = [1, 1]} : vector<128x96xf32> to vector<64x16xf32>
    %260 = vector.extract_strided_slice %200 {offsets = [64, 48], sizes = [64, 16], strides = [1, 1]} : vector<128x96xf32> to vector<64x16xf32>
    %261 = vector.extract_strided_slice %200 {offsets = [64, 80], sizes = [64, 16], strides = [1, 1]} : vector<128x96xf32> to vector<64x16xf32>
    %cst_89 = arith.constant dense<0.000000e+00> : vector<64x64xf32>
    %262 = tpu.matmul %259, %260, %cst_89 {dimension_numbers = #tpu.dot_dimension_numbers<[1], [1], [0], [0], [0, 0, 1, 0], [], []>} : vector<64x16xf32>, vector<64x16xf32>, vector<64x64xf32> -> vector<64x64xf32>
    %cst_90 = arith.constant dense<0xFF800000> : vector<64xf32>
    %263 = vector.multi_reduction <maximumf>, %262, %cst_90 [1] : vector<64x64xf32> to vector<64xf32>
    %264 = vector.shape_cast %263 : vector<64xf32> to vector<64x1xf32>
    %265 = vector.broadcast %264 : vector<64x1xf32> to vector<64x64xf32>
    %266 = arith.subf %262, %265 : vector<64x64xf32>
    %267 = math.exp %266 : vector<64x64xf32>
    %cst_91 = arith.constant dense<0.000000e+00> : vector<64xf32>
    %268 = vector.multi_reduction <add>, %267, %cst_91 [1] : vector<64x64xf32> to vector<64xf32>
    %269 = vector.shape_cast %268 : vector<64xf32> to vector<64x1xf32>
    %270 = tpu.reciprocal %269 {approx = true} : vector<64x1xf32> -> vector<64x1xf32>
    %271 = arith.mulf %269, %270 : vector<64x1xf32>
    %cst_92 = arith.constant 2.000000e+00 : f32
    %272 = vector.broadcast %cst_92 : f32 to vector<64x1xf32>
    %273 = arith.subf %272, %271 : vector<64x1xf32>
    %274 = arith.mulf %270, %273 : vector<64x1xf32>
    %275 = vector.broadcast %274 : vector<64x1xf32> to vector<64x64xf32>
    %276 = arith.mulf %267, %275 : vector<64x64xf32>
    %cst_93 = arith.constant dense<0.000000e+00> : vector<64x16xf32>
    %277 = tpu.matmul %276, %261, %cst_93 {dimension_numbers = #tpu.dot_dimension_numbers<[1], [0], [0], [1], [0, 0, 1, 1], [], []>} : vector<64x64xf32>, vector<64x16xf32>, vector<64x16xf32> -> vector<64x16xf32>
    %278 = tpu.concatenate %258, %277 in 1 : vector<64x16xf32>, vector<64x16xf32> -> vector<64x32xf32>
    %279 = tpu.concatenate %239, %278 in 0 : vector<64x32xf32>, vector<64x32xf32> -> vector<128x32xf32>
    %c0_94 = arith.constant 0 : index
    %c224 = arith.constant 224 : index
    %280 = vector.load %arg3[%c0_94, %c224] : memref<32x512xf32, #tpu.memory_space<vmem>>, vector<32x32xf32>
    %cst_95 = arith.constant dense<0.000000e+00> : vector<128x32xf32>
    %281 = tpu.matmul %279, %280, %cst_95 {dimension_numbers = #tpu.dot_dimension_numbers<[1], [0], [0], [1], [0, 0, 1, 1], [], []>} : vector<128x32xf32>, vector<32x32xf32>, vector<128x32xf32> -> vector<128x32xf32>
    %282 = arith.addf %172, %281 : vector<128x32xf32>
    %c0_96 = arith.constant 0 : index
    %c192 = arith.constant 192 : index
    %283 = vector.load %arg5[%c0_96, %c192] : memref<1x576xf32, #tpu.memory_space<vmem>>, vector<1x32xf32>
    %284 = vector.broadcast %283 : vector<1x32xf32> to vector<128x32xf32>
    %285 = arith.addf %282, %284 : vector<128x32xf32>
    %cst_97 = arith.constant dense<0.000000e+00> : vector<128xf32>
    %286 = vector.multi_reduction <add>, %285, %cst_97 [1] : vector<128x32xf32> to vector<128xf32>
    %287 = vector.shape_cast %286 : vector<128xf32> to vector<128x1xf32>
    %cst_98 = arith.constant 3.200000e+01 : f32
    %288 = vector.broadcast %cst_98 : f32 to vector<128x1xf32>
    %289 = arith.divf %287, %288 : vector<128x1xf32>
    %290 = vector.broadcast %289 : vector<128x1xf32> to vector<128x32xf32>
    %291 = arith.subf %285, %290 : vector<128x32xf32>
    %292 = vector.broadcast %289 : vector<128x1xf32> to vector<128x32xf32>
    %293 = arith.subf %285, %292 : vector<128x32xf32>
    %294 = arith.mulf %291, %293 : vector<128x32xf32>
    %cst_99 = arith.constant dense<0.000000e+00> : vector<128xf32>
    %295 = vector.multi_reduction <add>, %294, %cst_99 [1] : vector<128x32xf32> to vector<128xf32>
    %296 = vector.shape_cast %295 : vector<128xf32> to vector<128x1xf32>
    %cst_100 = arith.constant 3.200000e+01 : f32
    %297 = vector.broadcast %cst_100 : f32 to vector<128x1xf32>
    %298 = arith.divf %296, %297 : vector<128x1xf32>
    %299 = vector.broadcast %289 : vector<128x1xf32> to vector<128x32xf32>
    %300 = arith.subf %285, %299 : vector<128x32xf32>
    %cst_101 = arith.constant 9.99999974E-6 : f32
    %301 = vector.broadcast %cst_101 : f32 to vector<128x1xf32>
    %302 = arith.addf %298, %301 : vector<128x1xf32>
    %303 = math.rsqrt %302 : vector<128x1xf32>
    %304 = vector.broadcast %303 : vector<128x1xf32> to vector<128x32xf32>
    %305 = arith.mulf %300, %304 : vector<128x32xf32>
    %c0_102 = arith.constant 0 : index
    %c224_103 = arith.constant 224 : index
    %306 = vector.load %arg5[%c0_102, %c224_103] : memref<1x576xf32, #tpu.memory_space<vmem>>, vector<1x32xf32>
    %307 = vector.broadcast %306 : vector<1x32xf32> to vector<128x32xf32>
    %308 = arith.mulf %305, %307 : vector<128x32xf32>
    %c0_104 = arith.constant 0 : index
    %c256 = arith.constant 256 : index
    %309 = vector.load %arg5[%c0_104, %c256] : memref<1x576xf32, #tpu.memory_space<vmem>>, vector<1x32xf32>
    %310 = vector.broadcast %309 : vector<1x32xf32> to vector<128x32xf32>
    %311 = arith.addf %308, %310 : vector<128x32xf32>
    %c0_105 = arith.constant 0 : index
    %c256_106 = arith.constant 256 : index
    %312 = vector.load %arg3[%c0_105, %c256_106] : memref<32x512xf32, #tpu.memory_space<vmem>>, vector<32x256xf32>
    %cst_107 = arith.constant dense<0.000000e+00> : vector<128x256xf32>
    %313 = tpu.matmul %311, %312, %cst_107 {dimension_numbers = #tpu.dot_dimension_numbers<[1], [0], [0], [1], [0, 0, 1, 1], [], []>} : vector<128x32xf32>, vector<32x256xf32>, vector<128x256xf32> -> vector<128x256xf32>
    %c0_108 = arith.constant 0 : index
    %c288 = arith.constant 288 : index
    %314 = vector.load %arg5[%c0_108, %c288] : memref<1x576xf32, #tpu.memory_space<vmem>>, vector<1x256xf32>
    %315 = vector.broadcast %314 : vector<1x256xf32> to vector<128x256xf32>
    %316 = arith.addf %313, %315 : vector<128x256xf32>
    %317 = vector.extract_strided_slice %316 {offsets = [0, 0], sizes = [128, 128], strides = [1, 1]} : vector<128x256xf32> to vector<128x128xf32>
    %318 = vector.extract_strided_slice %316 {offsets = [0, 128], sizes = [128, 128], strides = [1, 1]} : vector<128x256xf32> to vector<128x128xf32>
    %cst_109 = arith.constant 0.707106769 : f32
    %319 = vector.broadcast %cst_109 : f32 to vector<128x128xf32>
    %320 = arith.mulf %318, %319 : vector<128x128xf32>
    %321 = math.absf %320 : vector<128x128xf32>
    %cst_110 = arith.constant 0.327591091 : f32
    %322 = vector.broadcast %cst_110 : f32 to vector<128x128xf32>
    %323 = arith.mulf %322, %321 : vector<128x128xf32>
    %cst_111 = arith.constant 1.000000e+00 : f32
    %324 = vector.broadcast %cst_111 : f32 to vector<128x128xf32>
    %325 = arith.addf %324, %323 : vector<128x128xf32>
    %cst_112 = arith.constant 1.000000e+00 : f32
    %326 = vector.broadcast %cst_112 : f32 to vector<128x128xf32>
    %327 = arith.divf %326, %325 : vector<128x128xf32>
    %cst_113 = arith.constant 1.06140542 : f32
    %328 = vector.broadcast %cst_113 : f32 to vector<128x128xf32>
    %329 = arith.mulf %328, %327 : vector<128x128xf32>
    %cst_114 = arith.constant -1.45315206 : f32
    %330 = vector.broadcast %cst_114 : f32 to vector<128x128xf32>
    %331 = arith.addf %329, %330 : vector<128x128xf32>
    %332 = arith.mulf %331, %327 : vector<128x128xf32>
    %cst_115 = arith.constant 1.42141378 : f32
    %333 = vector.broadcast %cst_115 : f32 to vector<128x128xf32>
    %334 = arith.addf %332, %333 : vector<128x128xf32>
    %335 = arith.mulf %334, %327 : vector<128x128xf32>
    %cst_116 = arith.constant -0.284496725 : f32
    %336 = vector.broadcast %cst_116 : f32 to vector<128x128xf32>
    %337 = arith.addf %335, %336 : vector<128x128xf32>
    %338 = arith.mulf %337, %327 : vector<128x128xf32>
    %cst_117 = arith.constant 0.254829586 : f32
    %339 = vector.broadcast %cst_117 : f32 to vector<128x128xf32>
    %340 = arith.addf %338, %339 : vector<128x128xf32>
    %341 = arith.mulf %340, %327 : vector<128x128xf32>
    %cst_118 = arith.constant 0.000000e+00 : f32
    %342 = vector.broadcast %cst_118 : f32 to vector<128x128xf32>
    %343 = arith.subf %342, %321 : vector<128x128xf32>
    %344 = arith.mulf %343, %321 : vector<128x128xf32>
    %345 = math.exp %344 : vector<128x128xf32>
    %346 = arith.mulf %341, %345 : vector<128x128xf32>
    %cst_119 = arith.constant 1.000000e+00 : f32
    %347 = vector.broadcast %cst_119 : f32 to vector<128x128xf32>
    %348 = arith.subf %347, %346 : vector<128x128xf32>
    %cst_120 = arith.constant 0.000000e+00 : f32
    %349 = vector.broadcast %cst_120 : f32 to vector<128x128xf32>
    %350 = arith.cmpf oge, %320, %349 : vector<128x128xf32>
    %cst_121 = arith.constant 0.000000e+00 : f32
    %351 = vector.broadcast %cst_121 : f32 to vector<128x128xf32>
    %352 = arith.subf %351, %348 : vector<128x128xf32>
    %353 = arith.select %350, %348, %352 : vector<128x128xi1>, vector<128x128xf32>
    %cst_122 = arith.constant 5.000000e-01 : f32
    %354 = vector.broadcast %cst_122 : f32 to vector<128x128xf32>
    %355 = arith.mulf %354, %318 : vector<128x128xf32>
    %cst_123 = arith.constant 1.000000e+00 : f32
    %356 = vector.broadcast %cst_123 : f32 to vector<128x128xf32>
    %357 = arith.addf %356, %353 : vector<128x128xf32>
    %358 = arith.mulf %355, %357 : vector<128x128xf32>
    %359 = arith.mulf %317, %358 : vector<128x128xf32>
    %c0_124 = arith.constant 0 : index
    %c0_125 = arith.constant 0 : index
    %360 = vector.load %arg4[%c0_124, %c0_125] : memref<128x32xf32, #tpu.memory_space<vmem>>, vector<128x32xf32>
    %cst_126 = arith.constant dense<0.000000e+00> : vector<128x32xf32>
    %361 = tpu.matmul %359, %360, %cst_126 {dimension_numbers = #tpu.dot_dimension_numbers<[1], [0], [0], [1], [0, 0, 1, 1], [], []>} : vector<128x128xf32>, vector<128x32xf32>, vector<128x32xf32> -> vector<128x32xf32>
    %c0_127 = arith.constant 0 : index
    %c544 = arith.constant 544 : index
    %362 = vector.load %arg5[%c0_127, %c544] : memref<1x576xf32, #tpu.memory_space<vmem>>, vector<1x32xf32>
    %363 = vector.broadcast %362 : vector<1x32xf32> to vector<128x32xf32>
    %364 = arith.addf %361, %363 : vector<128x32xf32>
    %365 = arith.addf %364, %285 : vector<128x32xf32>
    %c0_128 = arith.constant 0 : index
    %c0_129 = arith.constant 0 : index
    %366 = vector.load %arg8[%c0_128, %c0_129] : memref<128x32xf32, #tpu.memory_space<vmem>>, vector<128x32xf32>
    tpu.vector_store %arg8[%c0_128, %c0_129], %365 {strides = array<i32>} : memref<128x32xf32, #tpu.memory_space<vmem>>, vector<128x32xf32>,
    %367 = vector.extract_strided_slice %365 {offsets = [0, 0], sizes = [64, 32], strides = [1, 1]} : vector<128x32xf32> to vector<64x32xf32>
    %cst_130 = arith.constant dense<0.000000e+00> : vector<16x64xf32>
    %368 = tpu.matmul %2, %367, %cst_130 {dimension_numbers = #tpu.dot_dimension_numbers<[1], [1], [0], [0], [0, 0, 1, 0], [], []>} : vector<16x32xf32>, vector<64x32xf32>, vector<16x64xf32> -> vector<16x64xf32>
    %369 = vector.broadcast %5 : vector<16x1xf32> to vector<16x64xf32>
    %370 = arith.addf %368, %369 : vector<16x64xf32>
    %c0_131 = arith.constant 0 : index
    %c0_132 = arith.constant 0 : index
    %c0_133 = arith.constant 0 : index
    %371 = vector.load %arg1[%c0_131, %c0_132, %c0_133] : memref<2x16x64xf32, #tpu.memory_space<vmem>>, vector<1x16x64xf32>
    %372 = vector.shape_cast %371 : vector<1x16x64xf32> to vector<16x64xf32>
    %373 = arith.addf %370, %372 : vector<16x64xf32>
    %c0_134 = arith.constant 0 : index
    %c0_135 = arith.constant 0 : index
    %c0_136 = arith.constant 0 : index
    %374 = vector.load %arg7[%c0_134, %c0_135, %c0_136] : memref<2x16x64xf32, #tpu.memory_space<vmem>>, vector<1x16x64xf32>
    %375 = vector.shape_cast %374 : vector<1x16x64xf32> to vector<16x64xf32>
    %376 = vector.shape_cast %373 : vector<16x64xf32> to vector<1x16x64xf32>
    tpu.vector_store %arg7[%c0_134, %c0_135, %c0_136], %376 {strides = array<i32>} : memref<2x16x64xf32, #tpu.memory_space<vmem>>, vector<1x16x64xf32>,
    %377 = vector.extract_strided_slice %365 {offsets = [64, 0], sizes = [64, 32], strides = [1, 1]} : vector<128x32xf32> to vector<64x32xf32>
    %cst_137 = arith.constant dense<0.000000e+00> : vector<16x64xf32>
    %378 = tpu.matmul %2, %377, %cst_137 {dimension_numbers = #tpu.dot_dimension_numbers<[1], [1], [0], [0], [0, 0, 1, 0], [], []>} : vector<16x32xf32>, vector<64x32xf32>, vector<16x64xf32> -> vector<16x64xf32>
    %379 = vector.broadcast %5 : vector<16x1xf32> to vector<16x64xf32>
    %380 = arith.addf %378, %379 : vector<16x64xf32>
    %c1_138 = arith.constant 1 : index
    %c0_139 = arith.constant 0 : index
    %c0_140 = arith.constant 0 : index
    %381 = vector.load %arg1[%c1_138, %c0_139, %c0_140] : memref<2x16x64xf32, #tpu.memory_space<vmem>>, vector<1x16x64xf32>
    %382 = vector.shape_cast %381 : vector<1x16x64xf32> to vector<16x64xf32>
    %383 = arith.addf %380, %382 : vector<16x64xf32>
    %c1_141 = arith.constant 1 : index
    %c0_142 = arith.constant 0 : index
    %c0_143 = arith.constant 0 : index
    %384 = vector.load %arg7[%c1_141, %c0_142, %c0_143] : memref<2x16x64xf32, #tpu.memory_space<vmem>>, vector<1x16x64xf32>
    %385 = vector.shape_cast %384 : vector<1x16x64xf32> to vector<16x64xf32>
    %386 = vector.shape_cast %383 : vector<16x64xf32> to vector<1x16x64xf32>
    tpu.vector_store %arg7[%c1_141, %c0_142, %c0_143], %386 {strides = array<i32>} : memref<2x16x64xf32, #tpu.memory_space<vmem>>, vector<1x16x64xf32>,
    return
  }
  func.func @transform_0(%arg0: i32) -> (i32, i32, i32) {
    %c0_i32 = arith.constant 0 : i32
    %c0_i32_0 = arith.constant 0 : i32
    %c0_i32_1 = arith.constant 0 : i32
    return %arg0, %c0_i32, %c0_i32_0 : i32, i32, i32
  }
  func.func @transform_1(%arg0: i32) -> (i32, i32) {
    %c0_i32 = arith.constant 0 : i32
    %c0_i32_0 = arith.constant 0 : i32
    %c0_i32_1 = arith.constant 0 : i32
    return %c0_i32, %c0_i32_0 : i32, i32
  }
  func.func @transform_2(%arg0: i32) -> (i32, i32) {
    %c0_i32 = arith.constant 0 : i32
    %c0_i32_0 = arith.constant 0 : i32
    %c0_i32_1 = arith.constant 0 : i32
    return %c0_i32, %c0_i32_0 : i32, i32
  }
  func.func @transform_3(%arg0: i32) -> (i32, i32) {
    %c0_i32 = arith.constant 0 : i32
    %c0_i32_0 = arith.constant 0 : i32
    %c0_i32_1 = arith.constant 0 : i32
    return %c0_i32, %c0_i32_0 : i32, i32
  }
  func.func @transform_4(%arg0: i32) -> (i32, i32) {
    %c0_i32 = arith.constant 0 : i32
    %c0_i32_0 = arith.constant 0 : i32
    %c0_i32_1 = arith.constant 0 : i32
    return %c0_i32, %c0_i32_0 : i32, i32
  }
  func.func @transform_5(%arg0: i32) -> (i32, i32) {
    %c0_i32 = arith.constant 0 : i32
    %c0_i32_0 = arith.constant 0 : i32
    %c0_i32_1 = arith.constant 0 : i32
    return %c0_i32, %c0_i32_0 : i32, i32
  }
  func.func @transform_6(%arg0: i32) -> (i32, i32, i32) {
    %c0_i32 = arith.constant 0 : i32
    %c0_i32_0 = arith.constant 0 : i32
    %c0_i32_1 = arith.constant 0 : i32
    return %arg0, %c0_i32, %c0_i32_0 : i32, i32, i32
  }
  func.func @transform_7(%arg0: i32) -> (i32, i32) {
    %c0_i32 = arith.constant 0 : i32
    %c0_i32_0 = arith.constant 0 : i32
    return %arg0, %c0_i32 : i32, i32
  }
}

</mosaic_0001>

<bundles_post_ra>
// kernel: spatial_transformer_forward.1
= control target key start
LH: loop header
LB: loop body
LE: loop exit
PB: predicated region body
PF: predicated region fallthrough
CT: control target
= control target key end

     0   :  { %vm31_vm0 = vcmask 130048   ;;  %vm113_vm1 = vcmask 523264   ;;  %v9864_v9 = vmov 0   ;;  %v9865_v12 = vmov 1   ;;  %s9866_s17 = smov 112   ;;  %s9867_s20 = smov 64   ;;  %s12946_s0 = inlined_call_operand.vmem [shape: f32[2,16,64], index: 0, kind: input, shape index: {}]   ;;  %s12947_s1 = inlined_call_operand.vmem [shape: f32[16,80], index: 1, kind: input, shape index: {}]   ;;  %s12948_s5 = inlined_call_operand.vmem [shape: f32[16,3], index: 5, kind: input, shape index: {}]   ;;  %s12949_s4 = inlined_call_operand.vmem [shape: f32[1,576], index: 4, kind: input, shape index: {}]   ;;  %s12950_s2 = inlined_call_operand.vmem [shape: f32[32,512], index: 2, kind: input, shape index: {}]   ;;  %s12951_s3 = inlined_call_operand.vmem [shape: f32[128,32], index: 3, kind: input, shape index: {}]   ;;  %s12952_s7 = inlined_call_operand.vmem [shape: f32[128,32], index: 7, kind: output, shape index: {1}]   ;;  %s12953_s6 = inlined_call_operand.vmem [shape: f32[2,16,64], index: 6, kind: output, shape index: {0}]  }
   0x1   :  { %v29_v0 = vld [vmem:[%s12946_s0] sm:$0xff]  ;;  %v30_v1 = vld [vmem:[%s12946_s0 + $0x8] sm:$0xff]  ;;  %9085 = vset.pattern.permute.xlu1 %v9864_v9  ;;  %9084 = vset.pattern.permute.xlu0 %v9864_v9  ;;  %v9947_v22 = vld [vmem:[%s12946_s0 + $0x10] sm:$0xff]  ;;  %vm772_vm2 = vcmask 261120   ;;  %s9868_s29 = smov 96   ;;  %s9869_s30 = smov 80  }
   0x2   :  { %v25_v2 = vld [vmem:[%s12947_s1] sm:$0xff]  ;;  %v8609_v3 = vpack.c.bf16 %v30_v1, %v29_v0  ;;  %v9928_v4 = vld [vmem:[%s12947_s1 + $0x8] sm:$0xff]  ;;  %v9952_v23 = vld [vmem:[%s12946_s0 + $0x18] sm:$0xff]  ;;  %s9870_s8 = smov 48   ;;  %s9871_s9 = smov 32   ;;  %vm6030_vm4 = vcmask 785408  }
   0x3   :  { %7883 = vmatprep.mubr.msk.f32.mxu1 %vm31_vm0, %v25_v2  ;;  %v28_v10 = vld [vmem:[%s12948_s5 + $0x8] sm:$0xff]  ;;  %v27_v11 = vld [vmem:[%s12948_s5] sm:$0xff]  ;;  %v8621_v24 = vpack.c.bf16 %v9952_v23, %v9947_v22  ;;  %v9087_v29 = vpack.i.bf16 %v9928_v4, %v25_v2  ;;  %vm10303_vm3 = vmpackc.low %vm31_vm0, %vm31_vm0  ;;  %s9872_s10 = smov 16  }
   0x4   :  { %8610 = vmatprep.subr.bf16.mxu1 %v8609_v3  ;;  %223 = vperm.xlu1 %9085, %v28_v10  }
   0x5   :  { %8612 = vmatpush3.bf16.msra.mxu1 %v8609_v3 }
   0x8   :  { %7884 = vmatmul.mubr.msk.f32.vlgmr.msra.gmra.mrb[0].mxu1 %vm31_vm0, %v9928_v4  ;;  %9086 = vset.pattern.permute.xlu1 %v9865_v12 }
   0x9   :  { %7890 = vmatprep.mubr.msk.f32.mxu1 %vm31_vm0, %v25_v2  ;;  %229 = vperm.xlu1 %9086, %v27_v11  }
  0x83   :  { %v9964_v33 = vpop.permute.xlu1 %223 }
  0x88   :  { %v9966_v34 = vpop.permute.xlu1 %229 }
  0xdb   :  { %v7885_v5 = vpop.f32.mrb[0].mxu1 }
  0xdc   :  { %v104_v6 = vpop.f32.mrb[1].mxu1  ;;  %v117_v8 = vsel %vm113_vm1, %v7885_v5, 0.0 }
  0xdd   :  { %v114_v7 = vsel %vm113_vm1, %v104_v6, 0.0 }
  0xde   :  { %115 = vadd.xlane.f32.xlu0 %v114_v7 }
  0xe2   :  { %118 = vadd.xlane.f32.xlu0 %v117_v8 }
  0xf8   :  { %218 = vperm.xlu0 %9084, %v27_v11  }
 0x16b   :  { %v116_v13 = vpop.xlane.xlu0 %115 }
 0x16c   :  { %v121_v14 = vmul.f32 0.015625, %v116_v13 }
 0x16e   :  { %v123_v16 = vsub.f32 %v29_v0, %v121_v14 }
 0x16f   :  { %v119_v15 = vpop.xlane.xlu0 %118 }
 0x170   :  { %v122_v17 = vmul.f32 0.015625, %v119_v15  ;;  %v125_v19 = vmul.f32 %v123_v16, %v123_v16 }
 0x172   :  { %v124_v18 = vsub.f32 %v30_v1, %v122_v17 }
 0x174   :  { %v126_v20 = vmul.f32 %v124_v18, %v124_v18 }
 0x176   :  { %v8613_v21 = vpack.c.bf16 %v126_v20, %v125_v19 }
 0x177   :  { %v9970_v48 = vpop.permute.xlu0 %218 }
 0x178   :  { %8614 = vmatprep.subr.bf16.mxu1 %v8613_v21 }
 0x179   :  { %8616 = vmatpush3.bf16.msra.mxu1 %v8613_v21 }
 0x17a   :  { %8622 = vmatprep.subr.bf16.mxu1 %v8621_v24 }
 0x17c   :  { %7891 = vmatmul.mubr.msk.f32.vlgmr.msra.gmra.mrb[2].mxu1 %vm31_vm0, %v9928_v4 }
 0x17d   :  { %7913 = vmatprep.mubr.msk.f32.mxu1 %vm31_vm0, %v25_v2  ;;  %8624 = vmatpush3.bf16.msra.mxu1 %v8621_v24 }
 0x180   :  { %7914 = vmatmul.mubr.msk.f32.vlgmr.msra.gmra.mrb[4].mxu1 %vm31_vm0, %v9928_v4 }
 0x181   :  { %7920 = vmatprep.mubr.msk.f32.mxu1 %vm31_vm0, %v25_v2 }
 0x24f   :  { %v7892_v25 = vpop.f32.mrb[2].mxu1 }
 0x250   :  { %v193_v26 = vpop.f32.mrb[3].mxu1  ;;  %v205_v27 = vsel %vm113_vm1, %v7892_v25, 0.0 }
 0x251   :  { %206 = vadd.xlane.f32.xlu1 %v205_v27  ;;  %v202_v28 = vsel %vm113_vm1, %v193_v26, 0.0 }
 0x253   :  { %v7915_v30 = vpop.f32.mrb[4].mxu1 }
 0x254   :  { %v474_v31 = vpop.f32.mrb[5].mxu1  ;;  %v486_v55 = vsel %vm113_vm1, %v7915_v30, 0.0 }
 0x255   :  { %203 = vadd.xlane.f32.xlu1 %v202_v28  ;;  %v483_v32 = vsel %vm113_vm1, %v474_v31, 0.0 }
 0x256   :  { %484 = vadd.xlane.f32.xlu0 %v483_v32 }
 0x266   :  { %233 = vperm.xlu1 %9086, %v28_v10   ;;  %v10000_v10 = vld [vmem:[%s12949_s4] ss:$0 sm:$0xff] }
 0x26a   :  { %9088 = vrot.lane.b32.xlu1 %v9087_v29, %s9866_s17 }
 0x2de   :  { %v207_v35 = vpop.xlane.xlu1 %206 }
 0x2df   :  { %v209_v36 = vmul.f32 0.015625, %v207_v35 }
 0x2e1   :  { %v211_v37 = vadd.f32 1e-06, %v209_v36 }
 0x2e2   :  { %v204_v38 = vpop.xlane.xlu1 %203 }
 0x2e3   :  { %v208_v39 = vmul.f32 0.015625, %v204_v38  ;;  %9434 = vrsqrt.f32 %v211_v37  ;;  %v485_v0 = vpop.xlane.xlu0 %484 }
 0x2e4   :  { %v489_v1 = vmul.f32 0.015625, %v485_v0 }
 0x2e5   :  { %v210_v40 = vadd.f32 1e-06, %v208_v39 }
 0x2e6   :  { %v9968_v41 = vpop.permute.xlu1 %233  ;;  %v9986_v2 = vsub.f32 %v9947_v22, %v489_v1 }
 0x2e7   :  { %9436 = vrsqrt.f32 %v210_v40 }
 0x2e8   :  { %v493_v6 = vmul.f32 %v9986_v2, %v9986_v2 }
 0x2ea   :  { %v9089_v42 = vpop.permute.xlu1 %9088 }
 0x2eb   :  { %v9091_v43 = vunpack.i.h.bf16 %v9089_v42  ;;  %v9090_v44 = vunpack.i.l.bf16 %v9089_v42 }
 0x2ed   :  { %v8617_v45 = vpack.c.bf16 %v9091_v43, %v9090_v44  ;;  %v9435_v46 = vpop.eup %9434 }
 0x2ee   :  { %v215_v49 = vmul.f32 %v9435_v46, %v124_v18 }
 0x2ef   :  { %8618 = vmatprep.subr.bf16.mxu0 %v8617_v45 }
 0x2f0   :  { %8620 = vmatpush3.bf16.msra.mxu0 %v8617_v45  ;;  %v227_v52 = vmul.f32 %v9964_v33, %v215_v49 }
 0x2f1   :  { %v9437_v47 = vpop.eup %9436 }
 0x2f2   :  { %v214_v50 = vmul.f32 %v9437_v47, %v123_v16  ;;  %v237_v54 = vadd.f32 %v9968_v41, %v227_v52 }
 0x2f4   :  { %v226_v51 = vmul.f32 %v9970_v48, %v214_v50 }
 0x2f6   :  { %v236_v53 = vadd.f32 %v9966_v34, %v226_v51 }
 0x2f8   :  { %238 = vxpose.xlu1.b32.start [1/2] (short) (narrow) %v236_v53, 64 }
 0x2fc   :  { %239 = vxpose.xlu1.b32.end [2/2] (short) (narrow) %v237_v54, 64 }
 0x33b   :  { %487 = vadd.xlane.f32.xlu1 %v486_v55 }
 0x378   :  { %v254_v56 = vpop.trf.xlu1 }
 0x379   :  { %7897 = vmatprep.mubr.msk.f32.mxu0 %vm31_vm0, %v254_v56 }
 0x37c   :  { %v255_v57 = vpop.trf.xlu1 }
 0x37d   :  { %7898 = vmatmul.mubr.msk.f32.vlgmr.msra.gmra.mrb[0].mxu0 %vm31_vm0, %v255_v57 }
 0x380   :  { %v256_v58 = vpop.trf.xlu1 }
 0x381   :  { %7900 = vmatprep.mubr.msk.f32.mxu0 %vm31_vm0, %v256_v58 }
 0x384   :  { %v257_v59 = vpop.trf.xlu1 }
 0x385   :  { %7901 = vmatmul.mubr.msk.f32.gmra.mrb[2].mxu0 %vm31_vm0, %v257_v59 }
 0x388   :  { %v258_v60 = vpop.trf.xlu1 }
 0x389   :  { %7903 = vmatprep.mubr.msk.f32.mxu0 %vm31_vm0, %v258_v60 }
 0x38c   :  { %v259_v61 = vpop.trf.xlu1 }
 0x38d   :  { %7904 = vmatmul.mubr.msk.f32.gmra.mrb[4].mxu0 %vm31_vm0, %v259_v61 }
 0x390   :  { %v260_v62 = vpop.trf.xlu1 }
 0x391   :  { %7906 = vmatprep.mubr.msk.f32.mxu0 %vm31_vm0, %v260_v62 }
 0x394   :  { %v261_v63 = vpop.trf.xlu1 }
 0x395   :  { %7907 = vmatmul.mubr.msk.f32.gmra.mrb[6].mxu0 %vm31_vm0, %v261_v63 }
 0x3c8   :  { %v488_v3 = vpop.xlane.xlu1 %487 }
 0x3c9   :  { %v490_v5 = vmul.f32 0.015625, %v488_v3 }
 0x3cb   :  { %v9991_v7 = vsub.f32 %v9952_v23, %v490_v5 }
 0x3cd   :  { %v494_v8 = vmul.f32 %v9991_v7, %v9991_v7 }
 0x3cf   :  { %v8625_v9 = vpack.c.bf16 %v494_v8, %v493_v6 }
 0x3d1   :  { %8626 = vmatprep.subr.bf16.mxu1 %v8625_v9 }
 0x3d2   :  { %8628 = vmatpush3.bf16.msra.mxu1 %v8625_v9 }
 0x3d3   :  { %8630 = vmatprep.subr.bf16.mxu1 %v8617_v45 }
 0x3d5   :  { %7921 = vmatmul.mubr.msk.f32.vlgmr.msra.gmra.mrb[6].mxu1 %vm31_vm0, %v9928_v4 }
 0x3d6   :  { %8632 = vmatpush3.bf16.msra.mxu1 %v8617_v45 }
 0x450   :  { %v7899_v11 = vpop.f32.mrb[0].mxu0 }
 0x451   :  { %v366_v12 = vpop.f32.mrb[1].mxu0  ;;  %v10003_v13 = vadd.f32 %v7899_v11, %v10000_v10 }
 0x452   :  { %v10006_v14 = vadd.f32 %v10000_v10, %v366_v12 }
 0x453   :  { %v776_v4 = vsel %vm772_vm2, %v10003_v13, 0.0 }
 0x454   :  { %v773_v15 = vsel %vm772_vm2, %v10006_v14, 0.0 }
 0x455   :  { %774 = vadd.xlane.f32.xlu0 %v773_v15 }
 0x458   :  { %v7902_v16 = vpop.f32.mrb[2].mxu0 }
 0x459   :  { %777 = vadd.xlane.f32.xlu0 %v776_v4  ;;  %v376_v17 = vpop.f32.mrb[3].mxu0  ;;  %v10013_v18 = vadd.f32 %v7902_v16, %v10000_v10 }
 0x45a   :  { %v10016_v19 = vadd.f32 %v10000_v10, %v376_v17 }
 0x45b   :  { %12990 = vst [vmem:[#allocation2_spill] sm:$0xff] %v10013_v18  ;;  %v782_v21 = vsel %vm772_vm2, %v10013_v18, 0.0 }
 0x45c   :  { %12991 = vst [vmem:[#allocation3_spill] sm:$0xff] %v10016_v19  ;;  %v779_v20 = vsel %vm772_vm2, %v10016_v19, 0.0 }
 0x45d   :  { %780 = vadd.xlane.f32.xlu0 %v779_v20 }
 0x460   :  { %v7905_v22 = vpop.f32.mrb[4].mxu0 }
 0x461   :  { %783 = vadd.xlane.f32.xlu0 %v782_v21  ;;  %v386_v23 = vpop.f32.mrb[5].mxu0  ;;  %v10023_v24 = vadd.f32 %v7905_v22, %v10000_v10 }
 0x462   :  { %v10026_v25 = vadd.f32 %v10000_v10, %v386_v23 }
 0x463   :  { %12992 = vst [vmem:[#allocation4_spill] sm:$0xff] %v10023_v24  ;;  %v788_v27 = vsel %vm772_vm2, %v10023_v24, 0.0 }
 0x464   :  { %12993 = vst [vmem:[#allocation5_spill] sm:$0xff] %v10026_v25  ;;  %v785_v26 = vsel %vm772_vm2, %v10026_v25, 0.0 }
 0x465   :  { %786 = vadd.xlane.f32.xlu0 %v785_v26 }
 0x468   :  { %v7908_v28 = vpop.f32.mrb[6].mxu0 }
 0x469   :  { %789 = vadd.xlane.f32.xlu0 %v788_v27  ;;  %v396_v29 = vpop.f32.mrb[7].mxu0  ;;  %v10033_v30 = vadd.f32 %v7908_v28, %v10000_v10  ;;  %v10097_v27 = vld [vmem:[%s12950_s2] sm:$0xff] }
 0x46a   :  { %v10036_v31 = vadd.f32 %v10000_v10, %v396_v29  ;;  %v10102_v28 = vld [vmem:[%s12950_s2 + $0x20] sm:$0xff] }
 0x46b   :  { %12994 = vst [vmem:[#allocation6_spill] sm:$0xff] %v10033_v30  ;;  %v794_v35 = vsel %vm772_vm2, %v10033_v30, 0.0  ;;  %v8633_v29 = vpack.c.bf16 %v10102_v28, %v10097_v27 }
 0x46c   :  { %12995 = vst [vmem:[#allocation7_spill] sm:$0xff] %v10036_v31  ;;  %v791_v32 = vsel %vm772_vm2, %v10036_v31, 0.0 }
 0x46d   :  { %792 = vadd.xlane.f32.xlu0 %v791_v32  ;;  %8634 = vmatprep.subr.bf16.mxu0 %v8633_v29  ;;  %v10109_v32 = vld [vmem:[%s12950_s2 + $0x40] sm:$0xff] }
 0x46e   :  { %8636 = vmatpush3.bf16.msra.mxu0 %v8633_v29 }
 0x471   :  { %795 = vadd.xlane.f32.xlu0 %v794_v35  ;;  %v10114_v35 = vld [vmem:[%s12950_s2 + $0x60] sm:$0xff] }
 0x4a8   :  { %v7922_v36 = vpop.f32.mrb[6].mxu1 }
 0x4a9   :  { %v561_v37 = vpop.f32.mrb[7].mxu1  ;;  %v573_v39 = vsel %vm113_vm1, %v7922_v36, 0.0  ;;  %v8637_v36 = vpack.c.bf16 %v10114_v35, %v10109_v32 }
 0x4aa   :  { %v570_v38 = vsel %vm113_vm1, %v561_v37, 0.0 }
 0x4ab   :  { %571 = vadd.xlane.f32.xlu1 %v570_v38  ;;  %8638 = vmatprep.subr.bf16.mxu0 %v8637_v36 }
 0x4ac   :  { %8640 = vmatpush3.bf16.msra.mxu0 %v8637_v36 }
 0x4af   :  { %574 = vadd.xlane.f32.xlu1 %v573_v39 }
 0x4c0   :  { %1001 = vrot.lane.b32.xlu1 %v10000_v10, %s9867_s20 }
 0x4e2   :  { %v775_v40 = vpop.xlane.xlu0 %774 }
 0x4e3   :  { %v822_v42 = vmul.f32 0.03125, %v775_v40 }
 0x4e5   :  { %v10047_v45 = vsub.f32 %v10006_v14, %v822_v42 }
 0x4e6   :  { %v778_v43 = vpop.xlane.xlu0 %777 }
 0x4e7   :  { %v823_v44 = vmul.f32 0.03125, %v778_v43  ;;  %v854_v52 = vmul.f32 %v10047_v45, %v10047_v45 }
 0x4e9   :  { %v10050_v46 = vsub.f32 %v10003_v13, %v823_v44  ;;  %v870_v57 = vsel %vm772_vm2, %v854_v52, 0.0 }
 0x4ea   :  { %v781_v47 = vpop.xlane.xlu0 %780 }
 0x4eb   :  { %v855_v49 = vmul.f32 %v10050_v46, %v10050_v46  ;;  %v824_v50 = vmul.f32 0.03125, %v781_v47 }
 0x4ed   :  { %v873_v51 = vsel %vm772_vm2, %v855_v49, 0.0  ;;  %v10058_v55 = vsub.f32 %v10016_v19, %v824_v50 }
 0x4ee   :  { %874 = vadd.xlane.f32.xlu0 %v873_v51  ;;  %v784_v53 = vpop.xlane.xlu0 %783 }
 0x4ef   :  { %v825_v54 = vmul.f32 0.03125, %v784_v53  ;;  %v856_v62 = vmul.f32 %v10058_v55, %v10058_v55 }
 0x4f1   :  { %v10061_v56 = vsub.f32 %v10013_v18, %v825_v54  ;;  %v876_v5 = vsel %vm772_vm2, %v856_v62, 0.0 }
 0x4f2   :  { %871 = vadd.xlane.f32.xlu0 %v870_v57  ;;  %v787_v58 = vpop.xlane.xlu0 %786 }
 0x4f3   :  { %v857_v59 = vmul.f32 %v10061_v56, %v10061_v56  ;;  %v826_v60 = vmul.f32 0.03125, %v787_v58 }
 0x4f5   :  { %v879_v61 = vsel %vm772_vm2, %v857_v59, 0.0  ;;  %v10070_v1 = vsub.f32 %v10026_v25, %v826_v60 }
 0x4f6   :  { %880 = vadd.xlane.f32.xlu0 %v879_v61  ;;  %v790_v63 = vpop.xlane.xlu0 %789 }
 0x4f7   :  { %v827_v0 = vmul.f32 0.03125, %v790_v63  ;;  %v858_v12 = vmul.f32 %v10070_v1, %v10070_v1 }
 0x4f9   :  { %v10073_v3 = vsub.f32 %v10023_v24, %v827_v0  ;;  %v882_v20 = vsel %vm772_vm2, %v858_v12, 0.0 }
 0x4fa   :  { %877 = vadd.xlane.f32.xlu0 %v876_v5  ;;  %v793_v6 = vpop.xlane.xlu0 %792 }
 0x4fb   :  { %v859_v8 = vmul.f32 %v10073_v3, %v10073_v3  ;;  %v828_v9 = vmul.f32 0.03125, %v793_v6 }
 0x4fd   :  { %v885_v11 = vsel %vm772_vm2, %v859_v8, 0.0  ;;  %v10082_v16 = vsub.f32 %v10036_v31, %v828_v9 }
 0x4fe   :  { %886 = vadd.xlane.f32.xlu0 %v885_v11  ;;  %v796_v15 = vpop.xlane.xlu0 %795 }
 0x4ff   :  { %v829_v4 = vmul.f32 0.03125, %v796_v15  ;;  %v860_v23 = vmul.f32 %v10082_v16, %v10082_v16 }
 0x501   :  { %v10085_v17 = vsub.f32 %v10033_v30, %v829_v4  ;;  %v888_v26 = vsel %vm772_vm2, %v860_v23, 0.0 }
 0x502   :  { %883 = vadd.xlane.f32.xlu0 %v882_v20 }
 0x503   :  { %v861_v21 = vmul.f32 %v10085_v17, %v10085_v17 }
 0x505   :  { %v891_v22 = vsel %vm772_vm2, %v861_v21, 0.0 }
 0x506   :  { %892 = vadd.xlane.f32.xlu0 %v891_v22 }
 0x50a   :  { %889 = vadd.xlane.f32.xlu0 %v888_v26 }
 0x520   :  { %982 = vrot.lane.b32.xlu0 %v10000_v10, %s9868_s29 }
 0x538   :  { %v572_v39 = vpop.xlane.xlu1 %571 }
 0x539   :  { %v576_v40 = vmul.f32 0.015625, %v572_v39 }
 0x53b   :  { %v578_v42 = vadd.f32 1e-06, %v576_v40 }
 0x53c   :  { %v575_v43 = vpop.xlane.xlu1 %574 }
 0x53d   :  { %9438 = vrsqrt.f32 %v578_v42  ;;  %v577_v44 = vmul.f32 0.015625, %v575_v43 }
 0x53f   :  { %v579_v47 = vadd.f32 1e-06, %v577_v44 }
 0x541   :  { %9440 = vrsqrt.f32 %v579_v47  ;;  %v10135_v47 = vpop.permute.xlu1 %1001 }
 0x547   :  { %v9439_v49 = vpop.eup %9438 }
 0x548   :  { %v582_v50 = vmul.f32 %v9439_v49, %v9986_v2 }
 0x54a   :  { %v584_v51 = vmul.f32 %v582_v50, %v9970_v48 }
 0x54b   :  { %v9441_v52 = vpop.eup %9440 }
 0x54c   :  { %v586_v53 = vadd.f32 %v584_v51, %v9966_v34  ;;  %v583_v54 = vmul.f32 %v9441_v52, %v9991_v7 }
 0x54e   :  { %588 = vxpose.xlu0.b32.start [1/2] (short) (narrow) %v586_v53, 64  ;;  %v585_v57 = vmul.f32 %v583_v54, %v9964_v33 }
 0x550   :  { %v587_v58 = vadd.f32 %v585_v57, %v9968_v41 }
 0x552   :  { %589 = vxpose.xlu0.b32.end [2/2] (short) (narrow) %v587_v58, 64 }
 0x57b   :  { %v875_v59 = vpop.xlane.xlu0 %874 }
 0x57c   :  { %v919_v61 = vmul.f32 0.03125, %v875_v59 }
 0x57e   :  { %v935_v0 = vadd.f32 1e-05, %v919_v61 }
 0x57f   :  { %v872_v60 = vpop.xlane.xlu0 %871 }
 0x580   :  { %v918_v63 = vmul.f32 0.03125, %v872_v60  ;;  %9442 = vrsqrt.f32 %v935_v0 }
 0x582   :  { %v934_v5 = vadd.f32 1e-05, %v918_v63 }
 0x583   :  { %v881_v62 = vpop.xlane.xlu0 %880 }
 0x584   :  { %v921_v48 = vmul.f32 0.03125, %v881_v62  ;;  %9444 = vrsqrt.f32 %v934_v5 }
 0x586   :  { %v937_v7 = vadd.f32 1e-05, %v921_v48 }
 0x587   :  { %v878_v2 = vpop.xlane.xlu0 %877 }
 0x588   :  { %v920_v6 = vmul.f32 0.03125, %v878_v2 }
 0x58a   :  { %v936_v8 = vadd.f32 1e-05, %v920_v6  ;;  %v9443_v20 = vpop.eup %9442 }
 0x58b   :  { %v887_v34 = vpop.xlane.xlu0 %886  ;;  %v967_v39 = vmul.f32 %v9443_v20, %v10050_v46 }
 0x58c   :  { %v923_v9 = vmul.f32 0.03125, %v887_v34  ;;  %9446 = vrsqrt.f32 %v936_v8 }
 0x58d   :  { %9448 = vrsqrt.f32 %v937_v7 }
 0x58e   :  { %v939_v33 = vadd.f32 1e-05, %v923_v9  ;;  %v9445_v21 = vpop.eup %9444 }
 0x58f   :  { %v884_v41 = vpop.xlane.xlu0 %883  ;;  %v966_v42 = vmul.f32 %v9445_v21, %v10047_v45 }
 0x590   :  { %v922_v11 = vmul.f32 0.03125, %v884_v41  ;;  %9450 = vrsqrt.f32 %v939_v33 }
 0x592   :  { %v938_v12 = vadd.f32 1e-05, %v922_v11 }
 0x593   :  { %v893_v15 = vpop.xlane.xlu0 %892 }
 0x594   :  { %9452 = vrsqrt.f32 %v938_v12  ;;  %v925_v4 = vmul.f32 0.03125, %v893_v15 }
 0x596   :  { %v941_v22 = vadd.f32 1e-05, %v925_v4  ;;  %v9447_v23 = vpop.eup %9446 }
 0x597   :  { %v890_v26 = vpop.xlane.xlu0 %889  ;;  %v9449_v36 = vpop.eup %9448  ;;  %v968_v43 = vmul.f32 %v9447_v23, %v10058_v55 }
 0x598   :  { %9454 = vrsqrt.f32 %v941_v22  ;;  %v924_v29 = vmul.f32 0.03125, %v890_v26  ;;  %v969_v53 = vmul.f32 %v9449_v36, %v10061_v56 }
 0x59a   :  { %v940_v40 = vadd.f32 1e-05, %v924_v29  ;;  %v9451_v49 = vpop.eup %9450 }
 0x59b   :  { %v10133_v44 = vpop.permute.xlu0 %982  ;;  %v971_v58 = vmul.f32 %v9451_v49, %v10073_v3 }
 0x59c   :  { %9456 = vrsqrt.f32 %v940_v40  ;;  %v985_v50 = vmul.f32 %v10133_v44, %v966_v42  ;;  %v986_v51 = vmul.f32 %v10133_v44, %v967_v39  ;;  %v987_v52 = vmul.f32 %v10133_v44, %v968_v43 }
 0x59d   :  { %v988_v55 = vmul.f32 %v10133_v44, %v969_v53  ;;  %v990_v63 = vmul.f32 %v10133_v44, %v971_v58 }
 0x59e   :  { %v9453_v46 = vpop.eup %9452  ;;  %v1004_v54 = vadd.f32 %v10135_v47, %v985_v50  ;;  %v1005_v45 = vadd.f32 %v10135_v47, %v986_v51  ;;  %v1006_v59 = vadd.f32 %v10135_v47, %v987_v52 }
 0x59f   :  { %v970_v57 = vmul.f32 %v9453_v46, %v10070_v1  ;;  %v1007_v61 = vadd.f32 %v10135_v47, %v988_v55  ;;  %v1009_v0 = vadd.f32 %v10135_v47, %v990_v63 }
 0x5a0   :  { %7947 = vmatprep.mubr.msk.f32.mxu0 %vm772_vm2, %v1004_v54 }
 0x5a1   :  { %7948 = vmatmul.mubr.msk.f32.vlgmr.msra.gmra.mrb[8].mxu0 %vm772_vm2, %v1005_v45  ;;  %v989_v60 = vmul.f32 %v10133_v44, %v970_v57 }
 0x5a2   :  { %v9455_v56 = vpop.eup %9454  ;;  %7950 = vmatprep.mubr.msk.f32.mxu0 %vm772_vm2, %v1006_v59 }
 0x5a3   :  { %v1008_v62 = vadd.f32 %v10135_v47, %v989_v60  ;;  %v973_v1 = vmul.f32 %v9455_v56, %v10085_v17 }
 0x5a5   :  { %7951 = vmatmul.mubr.msk.f32.gmra.mrb[10].mxu0 %vm772_vm2, %v1007_v61  ;;  %v992_v5 = vmul.f32 %v10133_v44, %v973_v1 }
 0x5a6   :  { %v9457_v3 = vpop.eup %9456  ;;  %7953 = vmatprep.mubr.msk.f32.mxu0 %vm772_vm2, %v1008_v62 }
 0x5a7   :  { %v972_v2 = vmul.f32 %v9457_v3, %v10082_v16  ;;  %v1011_v8 = vadd.f32 %v10135_v47, %v992_v5 }
 0x5a9   :  { %7954 = vmatmul.mubr.msk.f32.gmra.mrb[12].mxu0 %vm772_vm2, %v1009_v0  ;;  %v991_v48 = vmul.f32 %v10133_v44, %v972_v2 }
 0x5ab   :  { %v1010_v6 = vadd.f32 %v10135_v47, %v991_v48 }
 0x5ad   :  { %7956 = vmatprep.mubr.msk.f32.mxu0 %vm772_vm2, %v1010_v6 }
 0x5ae   :  { %7957 = vmatmul.mubr.msk.f32.gmra.mrb[14].mxu0 %vm772_vm2, %v1011_v8 }
 0x5ce   :  { %v604_v17 = vpop.trf.xlu0 }
 0x5cf   :  { %7927 = vmatprep.mubr.msk.f32.mxu1 %vm31_vm0, %v604_v17 }
 0x5d2   :  { %v605_v34 = vpop.trf.xlu0 }
 0x5d3   :  { %7928 = vmatmul.mubr.msk.f32.vlgmr.msra.gmra.mrb[8].mxu1 %vm31_vm0, %v605_v34 }
 0x5d6   :  { %v606_v16 = vpop.trf.xlu0 }
 0x5d7   :  { %7930 = vmatprep.mubr.msk.f32.mxu1 %vm31_vm0, %v606_v16 }
 0x5da   :  { %v607_v7 = vpop.trf.xlu0 }
 0x5db   :  { %7931 = vmatmul.mubr.msk.f32.gmra.mrb[10].mxu1 %vm31_vm0, %v607_v7 }
 0x5de   :  { %v608_v9 = vpop.trf.xlu0 }
 0x5df   :  { %7933 = vmatprep.mubr.msk.f32.mxu1 %vm31_vm0, %v608_v9 }
 0x5e2   :  { %v609_v33 = vpop.trf.xlu0 }
 0x5e3   :  { %7934 = vmatmul.mubr.msk.f32.gmra.mrb[12].mxu1 %vm31_vm0, %v609_v33 }
 0x5e6   :  { %v610_v41 = vpop.trf.xlu0 }
 0x5e7   :  { %7936 = vmatprep.mubr.msk.f32.mxu1 %vm31_vm0, %v610_v41 }
 0x5ea   :  { %v611_v11 = vpop.trf.xlu0 }
 0x5eb   :  { %7937 = vmatmul.mubr.msk.f32.gmra.mrb[14].mxu1 %vm31_vm0, %v611_v11 }
 0x674   :  { %v10174_v12 = vpop.f32.mrb[8].mxu0 }
 0x675   :  { %1645 = vrot.lane.b32.xlu0 %v10174_v12, %s9866_s17  ;;  %v1138_v15 = vpop.f32.mrb[9].mxu0 }
 0x676   :  { %7987 = vmatprep.mubr.msk.f32.mxu1 %vm31_vm0, %v1138_v15  ;;  %v10180_v4 = vpack.i.bf16 %v10174_v12, %v1138_v15 }
 0x678   :  { %v10182_v20 = vpop.f32.mrb[10].mxu0 }
 0x679   :  { %1649 = vrot.lane.b32.xlu0 %v10182_v20, %s9866_s17  ;;  %v10186_v21 = vpop.f32.mrb[11].mxu0 }
 0x67a   :  { %v10190_v22 = vpack.i.bf16 %v10182_v20, %v10186_v21 }
 0x67c   :  { %v10192_v23 = vpop.f32.mrb[12].mxu0 }
 0x67d   :  { %v10194_v26 = vpop.f32.mrb[13].mxu0 }
 0x67e   :  { %v10198_v29 = vpack.i.bf16 %v10192_v23, %v10194_v26 }
 0x681   :  { %v10200_v36 = vpop.f32.mrb[14].mxu0 }
 0x682   :  { %v10202_v39 = vpop.f32.mrb[15].mxu0 }
 0x683   :  { %v10206_v40 = vpack.i.bf16 %v10200_v36, %v10202_v39 }
 0x6a6   :  { %v7929_v42 = vpop.f32.mrb[8].mxu1 }
 0x6a7   :  { %v10209_v43 = vadd.f32 %v7929_v42, %v10000_v10  ;;  %v710_v49 = vpop.f32.mrb[9].mxu1 }
 0x6a8   :  { %v10212_v50 = vadd.f32 %v10000_v10, %v710_v49 }
 0x6a9   :  { %12996 = vst [vmem:[#allocation8_spill] sm:$0xff] %v10209_v43  ;;  %v800_v51 = vsel %vm772_vm2, %v10209_v43, 0.0 }
 0x6aa   :  { %12997 = vst [vmem:[#allocation9_spill] sm:$0xff] %v10212_v50  ;;  %801 = vadd.xlane.f32.xlu1 %v800_v51  ;;  %v797_v52 = vsel %vm772_vm2, %v10212_v50, 0.0 }
 0x6ae   :  { %798 = vadd.xlane.f32.xlu1 %v797_v52  ;;  %v7932_v53 = vpop.f32.mrb[10].mxu1 }
 0x6af   :  { %v10219_v46 = vadd.f32 %v7932_v53, %v10000_v10  ;;  %v720_v54 = vpop.f32.mrb[11].mxu1 }
 0x6b0   :  { %v10222_v45 = vadd.f32 %v10000_v10, %v720_v54 }
 0x6b1   :  { %12998 = vst [vmem:[#allocation10_spill] sm:$0xff] %v10219_v46  ;;  %v806_v55 = vsel %vm772_vm2, %v10219_v46, 0.0 }
 0x6b2   :  { %12999 = vst [vmem:[#allocation11_spill] sm:$0xff] %v10222_v45  ;;  %807 = vadd.xlane.f32.xlu1 %v806_v55  ;;  %v803_v57 = vsel %vm772_vm2, %v10222_v45, 0.0 }
 0x6b6   :  { %804 = vadd.xlane.f32.xlu1 %v803_v57  ;;  %v7935_v58 = vpop.f32.mrb[12].mxu1 }
 0x6b7   :  { %v10229_v59 = vadd.f32 %v7935_v58, %v10000_v10  ;;  %v730_v60 = vpop.f32.mrb[13].mxu1 }
 0x6b8   :  { %v10262_v3 = vadd.f32 %v10000_v10, %v730_v60 }
 0x6b9   :  { %13000 = vst [vmem:[#allocation12_spill] sm:$0xff] %v10229_v59  ;;  %v812_v56 = vsel %vm772_vm2, %v10229_v59, 0.0 }
 0x6ba   :  { %813 = vadd.xlane.f32.xlu0 %v812_v56  ;;  %13002 = vst [vmem:[#allocation14_spill] sm:$0xff] %v10262_v3  ;;  %v809_v0 = vsel %vm772_vm2, %v10262_v3, 0.0 }
 0x6be   :  { %v7938_v61 = vpop.f32.mrb[14].mxu1 }
 0x6bf   :  { %v740_v62 = vpop.f32.mrb[15].mxu1  ;;  %v10257_v63 = vadd.f32 %v7938_v61, %v10000_v10 }
 0x6c0   :  { %v10281_v33 = vadd.f32 %v10000_v10, %v740_v62 }
 0x6c1   :  { %13001 = vst [vmem:[#allocation13_spill] sm:$0xff] %v10257_v63  ;;  %v818_v1 = vsel %vm772_vm2, %v10257_v63, 0.0 }
 0x6c2   :  { %13003 = vst [vmem:[#allocation15_spill] sm:$0xff] %v10281_v33  ;;  %v815_v52 = vsel %vm772_vm2, %v10281_v33, 0.0 }
 0x6c7   :  { %9093 = vrot.lane.b32.xlu1 %v10180_v4, %s9868_s29 }
 0x6cb   :  { %9098 = vrot.lane.b32.xlu1 %v10180_v4, %s9869_s30 }
 0x6cf   :  { %1643 = vrot.lane.b32.xlu1 %v1138_v15, %s9866_s17 }
 0x6d0   :  { %1651 = vrot.lane.b32.xlu0 %v10194_v26, %s9866_s17 }
 0x6d3   :  { %9103 = vrot.lane.b32.xlu1 %v10190_v22, %s9868_s29 }
 0x6d4   :  { %1657 = vrot.lane.b32.xlu0 %v10200_v36, %s9866_s17 }
 0x6d7   :  { %9108 = vrot.lane.b32.xlu1 %v10190_v22, %s9869_s30 }
 0x6db   :  { %1647 = vrot.lane.b32.xlu1 %v10186_v21, %s9866_s17 }
 0x6df   :  { %9113 = vrot.lane.b32.xlu1 %v10198_v29, %s9868_s29 }
 0x6e3   :  { %9118 = vrot.lane.b32.xlu1 %v10198_v29, %s9869_s30 }
 0x6e7   :  { %9123 = vrot.lane.b32.xlu1 %v10206_v40, %s9868_s29  ;;  %v10270_v8 = vpop.permute.xlu0 %1645 }
 0x6eb   :  { %9128 = vrot.lane.b32.xlu1 %v10206_v40, %s9869_s30  ;;  %v10289_v42 = vpop.permute.xlu0 %1649 }
 0x6f3   :  { %819 = vadd.xlane.f32.xlu0 %v818_v1 }
 0x70f   :  { %810 = vadd.xlane.f32.xlu1 %v809_v0 }
 0x720   :  { %1653 = vrot.lane.b32.xlu1 %v10192_v23, %s9866_s17 }
 0x724   :  { %1655 = vrot.lane.b32.xlu1 %v10202_v39, %s9866_s17 }
 0x737   :  { %v802_v2 = vpop.xlane.xlu1 %801 }
 0x738   :  { %v831_v5 = vmul.f32 0.03125, %v802_v2 }
 0x73a   :  { %v10273_v17 = vsub.f32 %v10209_v43, %v831_v5 }
 0x73b   :  { %v799_v48 = vpop.xlane.xlu1 %798 }
 0x73c   :  { %v830_v6 = vmul.f32 0.03125, %v799_v48  ;;  %v863_v15 = vmul.f32 %v10273_v17, %v10273_v17 }
 0x73e   :  { %v10276_v34 = vsub.f32 %v10212_v50, %v830_v6  ;;  %v897_v10 = vsel %vm772_vm2, %v863_v15, 0.0 }
 0x73f   :  { %v808_v16 = vpop.xlane.xlu1 %807 }
 0x740   :  { %v833_v7 = vmul.f32 0.03125, %v808_v16  ;;  %v862_v9 = vmul.f32 %v10276_v34, %v10276_v34 }
 0x742   :  { %v10284_v41 = vsub.f32 %v10219_v46, %v833_v7  ;;  %v894_v11 = vsel %vm772_vm2, %v862_v9, 0.0 }
 0x743   :  { %v805_v49 = vpop.xlane.xlu1 %804  ;;  %895 = vadd.xlane.f32.xlu0 %v894_v11 }
 0x744   :  { %v832_v51 = vmul.f32 0.03125, %v805_v49  ;;  %v865_v54 = vmul.f32 %v10284_v41, %v10284_v41 }
 0x746   :  { %v10294_v53 = vsub.f32 %v10222_v45, %v832_v51  ;;  %v903_v2 = vsel %vm772_vm2, %v865_v54, 0.0 }
 0x747   :  { %v9094_v55 = vpop.permute.xlu1 %9093  ;;  %898 = vadd.xlane.f32.xlu0 %v897_v10  ;;  %v814_v57 = vpop.xlane.xlu0 %813 }
 0x748   :  { %v9096_v58 = vunpack.i.h.bf16 %v9094_v55  ;;  %v9095_v60 = vunpack.i.l.bf16 %v9094_v55  ;;  %v835_v56 = vmul.f32 0.03125, %v814_v57  ;;  %816 = vadd.xlane.f32.xlu1 %v815_v52  ;;  %v864_v61 = vmul.f32 %v10294_v53, %v10294_v53 }
 0x74a   :  { %v8641_v1 = vpack.c.bf16 %v9096_v58, %v9095_v60  ;;  %v10308_v0 = vsub.f32 %v10229_v59, %v835_v56  ;;  %v900_v5 = vsel %vm772_vm2, %v864_v61, 0.0 }
 0x74b   :  { %v9099_v48 = vpop.permute.xlu1 %9098  ;;  %904 = vadd.xlane.f32.xlu0 %v903_v2 }
 0x74c   :  { %8643 = vmatprep.subr.msk.bf16.mxu1 %vm10303_vm3, %v8641_v1  ;;  %901 = vadd.xlane.f32.xlu1 %v900_v5  ;;  %v867_v6 = vmul.f32 %v10308_v0, %v10308_v0  ;;  %v9101_v56 = vunpack.i.h.bf16 %v9099_v48  ;;  %v9100_v61 = vunpack.i.l.bf16 %v9099_v48  ;;  %v1652_v48 = vpop.permute.xlu0 %1651 }
 0x74d   :  { %8646 = vmatpush3.bf16.xpose.msk.msra.mxu1 %vm10303_vm3, %v8641_v1 }
 0x74e   :  { %v909_v16 = vsel %vm772_vm2, %v867_v6, 0.0  ;;  %v8681_v6 = vpack.c.bf16 %v9101_v56, %v9100_v61 }
 0x74f   :  { %v1644_v7 = vpop.permute.xlu1 %1643  ;;  %910 = vadd.xlane.f32.xlu0 %v909_v16 }
 0x753   :  { %v9104_v9 = vpop.permute.xlu1 %9103 }
 0x754   :  { %v9106_v11 = vunpack.i.h.bf16 %v9104_v9  ;;  %v9105_v15 = vunpack.i.l.bf16 %v9104_v9 }
 0x756   :  { %v8647_v49 = vpack.c.bf16 %v9106_v11, %v9105_v15 }
 0x757   :  { %v9109_v51 = vpop.permute.xlu1 %9108 }
 0x758   :  { %8649 = vmatprep.subr.msk.bf16.mxu1 %vm10303_vm3, %v8647_v49  ;;  %v9111_v16 = vunpack.i.h.bf16 %v9109_v51  ;;  %v9110_v9 = vunpack.i.l.bf16 %v9109_v51  ;;  %v1658_v51 = vpop.permute.xlu0 %1657 }
 0x759   :  { %8652 = vmatpush3.bf16.xpose.msk.msra.mxu1 %vm10303_vm3, %v8647_v49 }
 0x75a   :  { %v8687_v11 = vpack.c.bf16 %v9111_v16, %v9110_v9 }
 0x75b   :  { %v1648_v52 = vpop.permute.xlu1 %1647 }
 0x75f   :  { %v9114_v10 = vpop.permute.xlu1 %9113 }
 0x760   :  { %v9116_v54 = vunpack.i.h.bf16 %v9114_v10  ;;  %v9115_v55 = vunpack.i.l.bf16 %v9114_v10 }
 0x762   :  { %v8653_v57 = vpack.c.bf16 %v9116_v54, %v9115_v55 }
 0x763   :  { %v9119_v58 = vpop.permute.xlu1 %9118 }
 0x764   :  { %8655 = vmatprep.subr.msk.bf16.mxu1 %vm10303_vm3, %v8653_v57  ;;  %v9121_v15 = vunpack.i.h.bf16 %v9119_v58  ;;  %v9120_v49 = vunpack.i.l.bf16 %v9119_v58 }
 0x765   :  { %8658 = vmatpush3.bf16.xpose.msk.msra.mxu1 %vm10303_vm3, %v8653_v57 }
 0x767   :  { %v9124_v60 = vpop.permute.xlu1 %9123 }
 0x768   :  { %v9126_v1 = vunpack.i.h.bf16 %v9124_v60  ;;  %v9125_v2 = vunpack.i.l.bf16 %v9124_v60 }
 0x76a   :  { %v8659_v5 = vpack.c.bf16 %v9126_v1, %v9125_v2 }
 0x76c   :  { %8661 = vmatprep.subr.msk.bf16.mxu1 %vm10303_vm3, %v8659_v5 }
 0x76d   :  { %8664 = vmatpush3.bf16.xpose.msk.msra.mxu1 %vm10303_vm3, %v8659_v5 }
 0x76e   :  { %8683 = vmatprep.subr.msk.bf16.mxu1 %vm10303_vm3, %v8681_v6 }
 0x774   :  { %7988 = vmatmul.mubr.msk.f32.vlgmr.msra.gmra.mrb[16].mxu1 %vm31_vm0, %v10174_v12  ;;  %v8693_v12 = vpack.c.bf16 %v9121_v15, %v9120_v49 }
 0x775   :  { %7990 = vmatprep.mubr.msk.f32.mxu1 %vm31_vm0, %v10186_v21  ;;  %8686 = vmatpush3.bf16.xpose.msk.msra.mxu1 %vm10303_vm3, %v8681_v6  ;;  %v9129_v21 = vpop.permute.xlu1 %9128 }
 0x776   :  { %8689 = vmatprep.subr.msk.bf16.mxu1 %vm10303_vm3, %v8687_v11  ;;  %v9131_v10 = vunpack.i.h.bf16 %v9129_v21 }
 0x778   :  { %7991 = vmatmul.mubr.msk.f32.gmra.mrb[18].mxu1 %vm31_vm0, %v10182_v20  ;;  %v9130_v20 = vunpack.i.l.bf16 %v9129_v21 }
 0x779   :  { %7993 = vmatprep.mubr.msk.f32.mxu1 %vm31_vm0, %v10194_v26 }
 0x77a   :  { %v8699_v55 = vpack.c.bf16 %v9131_v10, %v9130_v20 }
 0x77c   :  { %7994 = vmatmul.mubr.msk.f32.gmra.mrb[20].mxu1 %vm31_vm0, %v10192_v23 }
 0x77d   :  { %7996 = vmatprep.mubr.msk.f32.mxu1 %vm31_vm0, %v10202_v39  ;;  %8692 = vmatpush3.bf16.xpose.msk.msra.mxu1 %vm10303_vm3, %v8687_v11 }
 0x77e   :  { %8695 = vmatprep.subr.msk.bf16.mxu1 %vm10303_vm3, %v8693_v12 }
 0x780   :  { %7997 = vmatmul.mubr.msk.f32.gmra.mrb[22].mxu1 %vm31_vm0, %v10200_v36  ;;  %v820_v26 = vpop.xlane.xlu0 %819 }
 0x781   :  { %v837_v54 = vmul.f32 0.03125, %v820_v26  ;;  %8043 = vmatprep.mubr.msk.f32.mxu1 %vm31_vm0, %v1644_v7 }
 0x783   :  { %v10357_v23 = vsub.f32 %v10257_v63, %v837_v54 }
 0x785   :  { %8698 = vmatpush3.bf16.xpose.msk.msra.mxu1 %vm10303_vm3, %v8693_v12  ;;  %v869_v39 = vmul.f32 %v10357_v23, %v10357_v23 }
 0x786   :  { %8701 = vmatprep.subr.msk.bf16.mxu1 %vm10303_vm3, %v8699_v55 }
 0x787   :  { %v915_v57 = vsel %vm772_vm2, %v869_v39, 0.0 }
 0x788   :  { %916 = vadd.xlane.f32.xlu0 %v915_v57 }
 0x78d   :  { %8704 = vmatpush3.bf16.xpose.msk.msra.mxu1 %vm10303_vm3, %v8699_v55 }
 0x794   :  { %8044 = vmatmul.mubr.msk.f32.vlgmr.msra.gmra.mrb[24].mxu1 %vm31_vm0, %v10270_v8 }
 0x795   :  { %8046 = vmatprep.mubr.msk.f32.mxu1 %vm31_vm0, %v1648_v52 }
 0x798   :  { %8047 = vmatmul.mubr.msk.f32.gmra.mrb[26].mxu1 %vm31_vm0, %v10289_v42 }
 0x799   :  { %8049 = vmatprep.mubr.msk.f32.mxu1 %vm31_vm0, %v1652_v48 }
 0x79c   :  { %v811_v36 = vpop.xlane.xlu1 %810 }
 0x79d   :  { %v834_v7 = vmul.f32 0.03125, %v811_v36 }
 0x79e   :  { %9138 = vrot.lane.b32.xlu0 %v10190_v22, %s9867_s20 }
 0x79f   :  { %v10377_v58 = vsub.f32 %v10262_v3, %v834_v7 }
 0x7a0   :  { %v1654_v60 = vpop.permute.xlu1 %1653 }
 0x7a1   :  { %8050 = vmatmul.mubr.msk.f32.gmra.mrb[28].mxu1 %vm31_vm0, %v1654_v60  ;;  %v866_v8 = vmul.f32 %v10377_v58, %v10377_v58 }
 0x7a3   :  { %v906_v52 = vsel %vm772_vm2, %v866_v8, 0.0 }
 0x7a4   :  { %v1656_v56 = vpop.permute.xlu1 %1655  ;;  %907 = vadd.xlane.f32.xlu1 %v906_v52 }
 0x7a5   :  { %8052 = vmatprep.mubr.msk.f32.mxu1 %vm31_vm0, %v1656_v56 }
 0x7a6   :  { %8053 = vmatmul.mubr.msk.f32.gmra.mrb[30].mxu1 %vm31_vm0, %v1658_v51 }
 0x7d0   :  { %v896_v42 = vpop.xlane.xlu0 %895 }
 0x7d1   :  { %v926_v61 = vmul.f32 0.03125, %v896_v42 }
 0x7d3   :  { %v942_v1 = vadd.f32 1e-05, %v926_v61 }
 0x7d4   :  { %v899_v2 = vpop.xlane.xlu0 %898 }
 0x7d5   :  { %9458 = vrsqrt.f32 %v942_v1  ;;  %v927_v5 = vmul.f32 0.03125, %v899_v2  ;;  %v817_v6 = vpop.xlane.xlu1 %816 }
 0x7d6   :  { %v836_v16 = vmul.f32 0.03125, %v817_v6 }
 0x7d7   :  { %v943_v9 = vadd.f32 1e-05, %v927_v5 }
 0x7d8   :  { %v10386_v11 = vsub.f32 %v10281_v33, %v836_v16  ;;  %v905_v48 = vpop.xlane.xlu0 %904 }
 0x7d9   :  { %9460 = vrsqrt.f32 %v943_v9  ;;  %v929_v15 = vmul.f32 0.03125, %v905_v48  ;;  %v902_v49 = vpop.xlane.xlu1 %901 }
 0x7da   :  { %v928_v12 = vmul.f32 0.03125, %v902_v49  ;;  %v868_v51 = vmul.f32 %v10386_v11, %v10386_v11 }
 0x7db   :  { %v945_v21 = vadd.f32 1e-05, %v929_v15 }
 0x7dc   :  { %v944_v10 = vadd.f32 1e-05, %v928_v12  ;;  %v912_v20 = vsel %vm772_vm2, %v868_v51, 0.0 }
 0x7dd   :  { %9462 = vrsqrt.f32 %v945_v21  ;;  %913 = vadd.xlane.f32.xlu1 %v912_v20 }
 0x7de   :  { %9464 = vrsqrt.f32 %v944_v10 }
 0x7df   :  { %v9459_v26 = vpop.eup %9458 }
 0x7e0   :  { %v974_v54 = vmul.f32 %v9459_v26, %v10276_v34 }
 0x7e2   :  { %v993_v55 = vmul.f32 %v10133_v44, %v974_v54 }
 0x7e3   :  { %v9461_v39 = vpop.eup %9460 }
 0x7e4   :  { %v1012_v57 = vadd.f32 %v10135_v47, %v993_v55  ;;  %v975_v36 = vmul.f32 %v9461_v39, %v10273_v17 }
 0x7e6   :  { %7959 = vmatprep.mubr.msk.f32.mxu0 %vm772_vm2, %v1012_v57  ;;  %v994_v7 = vmul.f32 %v10133_v44, %v975_v36 }
 0x7e7   :  { %v9463_v60 = vpop.eup %9462 }
 0x7e8   :  { %v9465_v8 = vpop.eup %9464  ;;  %v1013_v52 = vadd.f32 %v10135_v47, %v994_v7  ;;  %v977_v56 = vmul.f32 %v9463_v60, %v10284_v41  ;;  %v911_v41 = vpop.xlane.xlu0 %910 }
 0x7e9   :  { %v976_v42 = vmul.f32 %v9465_v8, %v10294_v53  ;;  %v931_v53 = vmul.f32 0.03125, %v911_v41 }
 0x7ea   :  { %7960 = vmatmul.mubr.msk.f32.gmra.mrb[16].mxu0 %vm772_vm2, %v1013_v52  ;;  %v996_v34 = vmul.f32 %v10133_v44, %v977_v56 }
 0x7eb   :  { %v995_v61 = vmul.f32 %v10133_v44, %v976_v42  ;;  %v947_v2 = vadd.f32 1e-05, %v931_v53 }
 0x7ec   :  { %v1015_v1 = vadd.f32 %v10135_v47, %v996_v34 }
 0x7ed   :  { %v1014_v17 = vadd.f32 %v10135_v47, %v995_v61  ;;  %9466 = vrsqrt.f32 %v947_v2 }
 0x7ee   :  { %9133 = vrot.lane.b32.xlu1 %v10180_v4, %s9867_s20 }
 0x7ef   :  { %7962 = vmatprep.mubr.msk.f32.mxu0 %vm772_vm2, %v1014_v17 }
 0x7f0   :  { %7963 = vmatmul.mubr.msk.f32.gmra.mrb[18].mxu0 %vm772_vm2, %v1015_v1 }
 0x7f2   :  { %9143 = vrot.lane.b32.xlu1 %v10198_v29, %s9867_s20 }
 0x7f7   :  { %v9467_v9 = vpop.eup %9466 }
 0x7f8   :  { %v979_v48 = vmul.f32 %v9467_v9, %v10308_v0 }
 0x7fa   :  { %v998_v12 = vmul.f32 %v10133_v44, %v979_v48 }
 0x7fc   :  { %v1017_v10 = vadd.f32 %v10135_v47, %v998_v12 }
 0x815   :  { %v917_v61 = vpop.xlane.xlu0 %916 }
 0x816   :  { %v933_v17 = vmul.f32 0.03125, %v917_v61 }
 0x818   :  { %v949_v1 = vadd.f32 1e-05, %v933_v17 }
 0x831   :  { %v908_v5 = vpop.xlane.xlu1 %907 }
 0x832   :  { %v930_v6 = vmul.f32 0.03125, %v908_v5 }
 0x834   :  { %v946_v16 = vadd.f32 1e-05, %v930_v6  ;;  %v9139_v6 = vpop.permute.xlu0 %9138 }
 0x835   :  { %v9140_v12 = vunpack.i.l.bf16 %v9139_v6 }
 0x836   :  { %9468 = vrsqrt.f32 %v946_v16 }
 0x837   :  { %9470 = vrsqrt.f32 %v949_v1 }
 0x840   :  { %v9469_v15 = vpop.eup %9468 }
 0x841   :  { %v978_v49 = vmul.f32 %v9469_v15, %v10377_v58  ;;  %v9141_v15 = vunpack.i.h.bf16 %v9139_v6 }
 0x843   :  { %v997_v51 = vmul.f32 %v10133_v44, %v978_v49 }
 0x845   :  { %v1016_v21 = vadd.f32 %v10135_v47, %v997_v51 }
 0x847   :  { %7965 = vmatprep.mubr.msk.f32.mxu0 %vm772_vm2, %v1016_v21  ;;  %v10418_v20 = vpop.f32.mrb[16].mxu1 }
 0x848   :  { %7966 = vmatmul.mubr.msk.f32.gmra.mrb[20].mxu0 %vm772_vm2, %v1017_v10  ;;  %v10421_v26 = vpop.f32.mrb[17].mxu1  ;;  %v1381_v0 = vsel %vm113_vm1, %v10418_v20, -inf }
 0x849   :  { %1382 = vmax.xlane.f32.xlu0 %v1381_v0  ;;  %v1378_v58 = vsel %vm113_vm1, %v10421_v26, -inf }
 0x84a   :  { %1379 = vmax.xlane.f32.xlu1 %v1378_v58 }
 0x84b   :  { %v10427_v54 = vpop.f32.mrb[18].mxu1 }
 0x84c   :  { %v10429_v55 = vpop.f32.mrb[19].mxu1  ;;  %v1387_v39 = vsel %vm113_vm1, %v10427_v54, -inf }
 0x84d   :  { %1388 = vmax.xlane.f32.xlu0 %v1387_v39  ;;  %v1384_v57 = vsel %vm113_vm1, %v10429_v55, -inf }
 0x84e   :  { %1385 = vmax.xlane.f32.xlu1 %v1384_v57  ;;  %v8669_v57 = vpack.c.bf16 %v9141_v15, %v9140_v12 }
 0x84f   :  { %v10435_v36 = vpop.f32.mrb[20].mxu1 }
 0x850   :  { %v10437_v7 = vpop.f32.mrb[21].mxu1  ;;  %v1393_v60 = vsel %vm113_vm1, %v10435_v36, -inf }
 0x851   :  { %1394 = vmax.xlane.f32.xlu0 %v1393_v60  ;;  %v1390_v8 = vsel %vm113_vm1, %v10437_v7, -inf  ;;  %v9471_v60 = vpop.eup %9470 }
 0x852   :  { %1391 = vmax.xlane.f32.xlu1 %v1390_v8 }
 0x853   :  { %v10443_v52 = vpop.f32.mrb[22].mxu1 }
 0x854   :  { %v10445_v56 = vpop.f32.mrb[23].mxu1  ;;  %v1399_v42 = vsel %vm113_vm1, %v10443_v52, -inf }
 0x855   :  { %1400 = vmax.xlane.f32.xlu0 %v1399_v42  ;;  %v1396_v34 = vsel %vm113_vm1, %v10445_v56, -inf }
 0x856   :  { %1397 = vmax.xlane.f32.xlu1 %v1396_v34  ;;  %v981_v34 = vmul.f32 %v9471_v60, %v10357_v23 }
 0x867   :  { %9153 = vrot.lane.b32.xlu1 %v10180_v4, %s9870_s8  ;;  %v10453_v41 = vpop.f32.mrb[24].mxu1 }
 0x868   :  { %v10455_v53 = vpop.f32.mrb[25].mxu1  ;;  %v1815_v2 = vsel %vm113_vm1, %v10453_v41, -inf }
 0x869   :  { %1816 = vmax.xlane.f32.xlu0 %v1815_v2 }
 0x86a   :  { %v914_v5 = vpop.xlane.xlu1 %913 }
 0x86b   :  { %v932_v16 = vmul.f32 0.03125, %v914_v5  ;;  %9158 = vrot.lane.b32.xlu1 %v10190_v22, %s9870_s8  ;;  %v10461_v9 = vpop.f32.mrb[26].mxu1  ;;  %v1000_v5 = vmul.f32 %v10133_v44, %v981_v34 }
 0x86c   :  { %v10463_v48 = vpop.f32.mrb[27].mxu1 }
 0x86d   :  { %v948_v4 = vadd.f32 1e-05, %v932_v16  ;;  %v1019_v23 = vadd.f32 %v10135_v47, %v1000_v5 }
 0x86e   :  { %v9134_v49 = vpop.permute.xlu1 %9133 }
 0x86f   :  { %9472 = vrsqrt.f32 %v948_v4  ;;  %v9136_v51 = vunpack.i.h.bf16 %v9134_v49  ;;  %v9135_v21 = vunpack.i.l.bf16 %v9134_v49  ;;  %v1812_v4 = vsel %vm113_vm1, %v10455_v53, -inf }
 0x871   :  { %v8665_v10 = vpack.c.bf16 %v9136_v51, %v9135_v21 }
 0x872   :  { %v9144_v0 = vpop.permute.xlu1 %9143 }
 0x873   :  { %v9146_v58 = vunpack.i.h.bf16 %v9144_v0  ;;  %v9145_v39 = vunpack.i.l.bf16 %v9144_v0  ;;  %8666 = vmatprep.subr.bf16.mxu0 %v8665_v10 }
 0x874   :  { %8668 = vmatpush3.bf16.msra.mxu0 %v8665_v10  ;;  %v10465_v22 = vpop.f32.mrb[28].mxu1 }
 0x875   :  { %8670 = vmatprep.subr.bf16.mxu0 %v8669_v57  ;;  %v10467_v8 = vpop.f32.mrb[29].mxu1  ;;  %v8673_v42 = vpack.c.bf16 %v9146_v58, %v9145_v39  ;;  %v1827_v49 = vsel %vm113_vm1, %v10465_v22, -inf }
 0x878   :  { %8672 = vmatpush3.bf16.msra.mxu0 %v8669_v57 }
 0x879   :  { %v9473_v61 = vpop.eup %9472  ;;  %8674 = vmatprep.subr.bf16.mxu0 %v8673_v42  ;;  %v10470_v17 = vpop.f32.mrb[30].mxu1 }
 0x87a   :  { %v10472_v1 = vpop.f32.mrb[31].mxu1  ;;  %v980_v2 = vmul.f32 %v9473_v61, %v10386_v11  ;;  %v1818_v11 = vsel %vm113_vm1, %v10463_v48, -inf  ;;  %v1833_v12 = vsel %vm113_vm1, %v10470_v17, -inf }
 0x87b   :  { %v1830_v15 = vsel %vm113_vm1, %v10472_v1, -inf }
 0x87c   :  { %8676 = vmatpush3.bf16.msra.mxu0 %v8673_v42  ;;  %v999_v6 = vmul.f32 %v10133_v44, %v980_v2  ;;  %v1824_v44 = vsel %vm113_vm1, %v10467_v8, -inf }
 0x87e   :  { %v1018_v16 = vadd.f32 %v10135_v47, %v999_v6  ;;  %v1821_v47 = vsel %vm113_vm1, %v10461_v9, -inf }
 0x87f   :  { %9148 = vrot.lane.b32.xlu0 %v10206_v40, %s9867_s20 }
 0x880   :  { %7968 = vmatprep.mubr.msk.f32.mxu0 %vm772_vm2, %v1018_v16 }
 0x881   :  { %7969 = vmatmul.mubr.msk.f32.gmra.mrb[22].mxu0 %vm772_vm2, %v1019_v23 }
 0x88f   :  { %1813 = vmax.xlane.f32.xlu1 %v1812_v4 }
 0x893   :  { %1819 = vmax.xlane.f32.xlu1 %v1818_v11 }
 0x897   :  { %1825 = vmax.xlane.f32.xlu1 %v1824_v44 }
 0x89b   :  { %1831 = vmax.xlane.f32.xlu1 %v1830_v15 }
 0x89e   :  { %1822 = vmax.xlane.f32.xlu0 %v1821_v47 }
 0x8a2   :  { %1828 = vmax.xlane.f32.xlu0 %v1827_v49 }
 0x8a6   :  { %1834 = vmax.xlane.f32.xlu0 %v1833_v12 }
 0x8ac   :  { %9163 = vrot.lane.b32.xlu1 %v10198_v29, %s9870_s8 }
 0x8bd   :  { %v10499_v51 = vpop.f32.mrb[16].mxu0 }
 0x8be   :  { %v10501_v21 = vpop.f32.mrb[17].mxu0 }
 0x8bf   :  { %v10505_v10 = vpack.i.bf16 %v10499_v51, %v10501_v21 }
 0x8c3   :  { %v10507_v0 = vpop.f32.mrb[18].mxu0 }
 0x8c4   :  { %v10509_v58 = vpop.f32.mrb[19].mxu0 }
 0x8c5   :  { %v10513_v39 = vpack.i.bf16 %v10507_v0, %v10509_v58 }
 0x8d6   :  { %v1383_v57 = vpop.xlane.xlu0 %1382 }
 0x8d7   :  { %v1403_v60 = vsub.f32 %v10418_v20, %v1383_v57  ;;  %v1380_v29 = vpop.xlane.xlu1 %1379 }
 0x8d8   :  { %v1402_v42 = vsub.f32 %v10421_v26, %v1380_v29 }
 0x8d9   :  { %v1412_v34 = vmul.f32 1.442695, %v1403_v60 }
 0x8da   :  { %v1410_v61 = vmul.f32 1.442695, %v1402_v42  ;;  %v1389_v2 = vpop.xlane.xlu0 %1388 }
 0x8db   :  { %9474 = vpow2.f32 %v1412_v34  ;;  %v1405_v5 = vsub.f32 %v10427_v54, %v1389_v2  ;;  %v1386_v6 = vpop.xlane.xlu1 %1385 }
 0x8dc   :  { %9476 = vpow2.f32 %v1410_v61  ;;  %v1404_v16 = vsub.f32 %v10429_v55, %v1386_v6 }
 0x8dd   :  { %v1416_v23 = vmul.f32 1.442695, %v1405_v5 }
 0x8de   :  { %v1414_v4 = vmul.f32 1.442695, %v1404_v16  ;;  %v1395_v11 = vpop.xlane.xlu0 %1394 }
 0x8df   :  { %9478 = vpow2.f32 %v1416_v23  ;;  %v1407_v44 = vsub.f32 %v10435_v36, %v1395_v11  ;;  %v1392_v20 = vpop.xlane.xlu1 %1391 }
 0x8e0   :  { %9480 = vpow2.f32 %v1414_v4  ;;  %v1406_v26 = vsub.f32 %v10437_v7, %v1392_v20 }
 0x8e1   :  { %v1420_v15 = vmul.f32 1.442695, %v1407_v44 }
 0x8e2   :  { %v1418_v47 = vmul.f32 1.442695, %v1406_v26  ;;  %v1401_v49 = vpop.xlane.xlu0 %1400 }
 0x8e3   :  { %9482 = vpow2.f32 %v1420_v15  ;;  %v1409_v54 = vsub.f32 %v10443_v52, %v1401_v49  ;;  %v1398_v12 = vpop.xlane.xlu1 %1397 }
 0x8e4   :  { %9484 = vpow2.f32 %v1418_v47  ;;  %v1408_v55 = vsub.f32 %v10445_v56, %v1398_v12 }
 0x8e5   :  { %v10523_v57 = vpop.eup %9474  ;;  %v1424_v60 = vmul.f32 1.442695, %v1409_v54 }
 0x8e6   :  { %v10525_v29 = vpop.eup %9476  ;;  %v1422_v36 = vmul.f32 1.442695, %v1408_v55  ;;  %v1429_v42 = vsel %vm113_vm1, %v10523_v57, 0.0 }
 0x8e7   :  { %9486 = vpow2.f32 %v1424_v60  ;;  %1430 = vadd.xlane.f32.xlu0 %v1429_v42  ;;  %v1426_v7 = vsel %vm113_vm1, %v10525_v29, 0.0  ;;  %v9154_v26 = vpop.permute.xlu1 %9153 }
 0x8e8   :  { %1427 = vadd.xlane.f32.xlu1 %v1426_v7  ;;  %9488 = vpow2.f32 %v1422_v36  ;;  %v9156_v49 = vunpack.i.h.bf16 %v9154_v26  ;;  %v9155_v12 = vunpack.i.l.bf16 %v9154_v26 }
 0x8e9   :  { %v10531_v52 = vpop.eup %9478 }
 0x8ea   :  { %v10533_v34 = vpop.eup %9480  ;;  %v1435_v56 = vsel %vm113_vm1, %v10531_v52, 0.0  ;;  %v10556_v42 = vpack.c.bf16 %v9156_v49, %v9155_v12 }
 0x8eb   :  { %1436 = vadd.xlane.f32.xlu0 %v1435_v56  ;;  %v1432_v61 = vsel %vm113_vm1, %v10533_v34, 0.0  ;;  %v10563_v56 = vpop.permute.xlu1 %9158 }
 0x8ec   :  { %1433 = vadd.xlane.f32.xlu1 %v1432_v61  ;;  %v9161_v31 = vunpack.i.h.bf16 %v10563_v56  ;;  %v9160_v30 = vunpack.i.l.bf16 %v10563_v56 }
 0x8ed   :  { %v10539_v2 = vpop.eup %9482 }
 0x8ee   :  { %v10541_v5 = vpop.eup %9484  ;;  %v1441_v6 = vsel %vm113_vm1, %v10539_v2, 0.0  ;;  %v8709_v56 = vpack.c.bf16 %v9161_v31, %v9160_v30 }
 0x8ef   :  { %1442 = vadd.xlane.f32.xlu0 %v1441_v6  ;;  %v1438_v16 = vsel %vm113_vm1, %v10541_v5, 0.0 }
 0x8f0   :  { %1439 = vadd.xlane.f32.xlu1 %v1438_v16 }
 0x8f1   :  { %v10547_v23 = vpop.eup %9486 }
 0x8f2   :  { %v1447_v4 = vsel %vm113_vm1, %v10547_v23, 0.0  ;;  %v10551_v11 = vpop.eup %9488 }
 0x8f3   :  { %1448 = vadd.xlane.f32.xlu0 %v1447_v4  ;;  %v1444_v20 = vsel %vm113_vm1, %v10551_v11, 0.0 }
 0x8f6   :  { %v1817_v44 = vpop.xlane.xlu0 %1816 }
 0x8f7   :  { %v1837_v15 = vsub.f32 %v10453_v41, %v1817_v44  ;;  %1445 = vadd.xlane.f32.xlu0 %v1444_v20 }
 0x8f9   :  { %v1846_v47 = vmul.f32 1.442695, %v1837_v15 }
 0x8fa   :  { %v9149_v54 = vpop.permute.xlu0 %9148 }
 0x8fb   :  { %9490 = vpow2.f32 %v1846_v47  ;;  %v9151_v55 = vunpack.i.h.bf16 %v9149_v54  ;;  %v9150_v60 = vunpack.i.l.bf16 %v9149_v54 }
 0x8fd   :  { %v8677_v36 = vpack.c.bf16 %v9151_v55, %v9150_v60 }
 0x8ff   :  { %8678 = vmatprep.subr.bf16.mxu0 %v8677_v36 }
 0x900   :  { %8680 = vmatpush3.bf16.msra.mxu0 %v8677_v36 }
 0x901   :  { %8706 = vmatprep.subr.bf16.mxu0 %v10556_v42 }
 0x905   :  { %v10559_v7 = vpop.eup %9490 }
 0x906   :  { %v1863_v41 = vsel %vm113_vm1, %v10559_v7, 0.0 }
 0x907   :  { %1864 = vadd.xlane.f32.xlu0 %v1863_v41 }
 0x91b   :  { %v10565_v61 = vpop.f32.mrb[20].mxu0 }
 0x91c   :  { %v1814_v6 = vpop.xlane.xlu1 %1813  ;;  %v10567_v16 = vpop.f32.mrb[21].mxu0 }
 0x91d   :  { %v1836_v4 = vsub.f32 %v10455_v53, %v1814_v6  ;;  %9168 = vrot.lane.b32.xlu0 %v10206_v40, %s9870_s8  ;;  %v10574_v44 = vpack.i.bf16 %v10565_v61, %v10567_v16 }
 0x91f   :  { %v1844_v20 = vmul.f32 1.442695, %v1836_v4 }
 0x920   :  { %v1820_v26 = vpop.xlane.xlu1 %1819 }
 0x921   :  { %9492 = vpow2.f32 %v1844_v20  ;;  %v1838_v15 = vsub.f32 %v10463_v48, %v1820_v26 }
 0x923   :  { %v1848_v47 = vmul.f32 1.442695, %v1838_v15 }
 0x924   :  { %v1826_v54 = vpop.xlane.xlu1 %1825 }
 0x925   :  { %9494 = vpow2.f32 %v1848_v47  ;;  %v1840_v55 = vsub.f32 %v10467_v8, %v1826_v54 }
 0x927   :  { %v1852_v4 = vmul.f32 1.442695, %v1840_v55 }
 0x92b   :  { %v10577_v49 = vpop.eup %9492  ;;  %v1823_v12 = vpop.xlane.xlu0 %1822 }
 0x92c   :  { %v1839_v53 = vsub.f32 %v10461_v9, %v1823_v12  ;;  %v1860_v40 = vsel %vm113_vm1, %v10577_v49, 0.0  ;;  %v1832_v9 = vpop.xlane.xlu1 %1831 }
 0x92d   :  { %1861 = vadd.xlane.f32.xlu1 %v1860_v40  ;;  %v1842_v8 = vsub.f32 %v10472_v1, %v1832_v9 }
 0x92e   :  { %v1850_v60 = vmul.f32 1.442695, %v1839_v53 }
 0x92f   :  { %v10583_v36 = vpop.eup %9494  ;;  %v1829_v41 = vpop.xlane.xlu0 %1828  ;;  %v1856_v12 = vmul.f32 1.442695, %v1842_v8 }
 0x930   :  { %9496 = vpow2.f32 %v1850_v60  ;;  %v1841_v48 = vsub.f32 %v10465_v22, %v1829_v41  ;;  %v1866_v6 = vsel %vm113_vm1, %v10583_v36, 0.0  ;;  %v9164_v9 = vpop.permute.xlu1 %9163 }
 0x931   :  { %1867 = vadd.xlane.f32.xlu1 %v1866_v6 }
 0x932   :  { %v1854_v20 = vmul.f32 1.442695, %v1841_v48 }
 0x933   :  { %v1835_v26 = vpop.xlane.xlu0 %1834 }
 0x934   :  { %9498 = vpow2.f32 %v1854_v20  ;;  %v1843_v15 = vsub.f32 %v10470_v17, %v1835_v26 }
 0x935   :  { %9500 = vpow2.f32 %v1852_v4 }
 0x936   :  { %v1858_v47 = vmul.f32 1.442695, %v1843_v15 }
 0x938   :  { %9502 = vpow2.f32 %v1858_v47 }
 0x939   :  { %9504 = vpow2.f32 %v1856_v12 }
 0x93a   :  { %v10590_v54 = vpop.eup %9496 }
 0x93b   :  { %v1869_v22 = vsel %vm113_vm1, %v10590_v54, 0.0 }
 0x93c   :  { %1870 = vadd.xlane.f32.xlu0 %v1869_v22 }
 0x93e   :  { %v10594_v53 = vpop.eup %9498 }
 0x93f   :  { %v1875_v40 = vsel %vm113_vm1, %v10594_v53, 0.0  ;;  %v10598_v55 = vpop.eup %9500 }
 0x940   :  { %1876 = vadd.xlane.f32.xlu1 %v1875_v40  ;;  %v1872_v17 = vsel %vm113_vm1, %v10598_v55, 0.0 }
 0x942   :  { %v10602_v1 = vpop.eup %9502 }
 0x943   :  { %v1881_v60 = vsel %vm113_vm1, %v10602_v1, 0.0  ;;  %v10606_v41 = vpop.eup %9504 }
 0x944   :  { %1873 = vadd.xlane.f32.xlu1 %v1872_v17  ;;  %v1878_v48 = vsel %vm113_vm1, %v10606_v41, 0.0 }
 0x948   :  { %1882 = vadd.xlane.f32.xlu1 %v1881_v60 }
 0x94c   :  { %1879 = vadd.xlane.f32.xlu1 %v1878_v48 }
 0x952   :  { %9178 = vrot.lane.b32.xlu0 %v10513_v39, %s9868_s29 }
 0x954   :  { %v10612_v6 = vpop.f32.mrb[22].mxu0 }
 0x955   :  { %v10614_v4 = vpop.f32.mrb[23].mxu0 }
 0x956   :  { %9183 = vrot.lane.b32.xlu0 %v10574_v44, %s9868_s29  ;;  %v10620_v20 = vpack.i.bf16 %v10612_v6, %v10614_v4 }
 0x95a   :  { %9188 = vrot.lane.b32.xlu0 %v10620_v20, %s9868_s29 }
 0x95d   :  { %9173 = vrot.lane.b32.xlu1 %v10505_v10, %s9868_s29 }
 0x974   :  { %v1431_v26 = vpop.xlane.xlu0 %1430 }
 0x975   :  { %9506 = vrcp.f32 %v1431_v26  ;;  %v1428_v15 = vpop.xlane.xlu1 %1427 }
 0x976   :  { %9508 = vrcp.f32 %v1428_v15 }
 0x978   :  { %v1437_v8 = vpop.xlane.xlu0 %1436 }
 0x979   :  { %9510 = vrcp.f32 %v1437_v8  ;;  %v1434_v47 = vpop.xlane.xlu1 %1433 }
 0x97a   :  { %9512 = vrcp.f32 %v1434_v47 }
 0x97c   :  { %v1443_v12 = vpop.xlane.xlu0 %1442 }
 0x97d   :  { %9514 = vrcp.f32 %v1443_v12  ;;  %v1440_v22 = vpop.xlane.xlu1 %1439 }
 0x97e   :  { %9516 = vrcp.f32 %v1440_v22 }
 0x97f   :  { %v9507_v40 = vpop.eup %9506 }
 0x980   :  { %v9509_v17 = vpop.eup %9508  ;;  %v1459_v60 = vmul.f32 %v9507_v40, %v1431_v26  ;;  %v1449_v48 = vpop.xlane.xlu0 %1448 }
 0x981   :  { %v1458_v38 = vmul.f32 %v9509_v17, %v1428_v15  ;;  %9518 = vrcp.f32 %v1449_v48 }
 0x982   :  { %v1467_v37 = vsub.f32 2.0, %v1459_v60 }
 0x983   :  { %v9511_v33 = vpop.eup %9510  ;;  %v1466_v63 = vsub.f32 2.0, %v1458_v38 }
 0x984   :  { %v9513_v59 = vpop.eup %9512  ;;  %v1475_v3 = vmul.f32 %v9507_v40, %v1467_v37  ;;  %v1461_v45 = vmul.f32 %v9511_v33, %v1437_v8  ;;  %v1446_v46 = vpop.xlane.xlu0 %1445 }
 0x985   :  { %v1474_v50 = vmul.f32 %v9509_v17, %v1466_v63  ;;  %v1460_v43 = vmul.f32 %v9513_v59, %v1434_v47  ;;  %9520 = vrcp.f32 %v1446_v46  ;;  %v9166_v63 = vunpack.i.h.bf16 %v9164_v9 }
 0x986   :  { %v1469_v25 = vsub.f32 2.0, %v1461_v45  ;;  %v1483_v60 = vmul.f32 %v10523_v57, %v1475_v3  ;;  %v9165_v47 = vunpack.i.l.bf16 %v9164_v9 }
 0x987   :  { %v9515_v24 = vpop.eup %9514  ;;  %v1468_v26 = vsub.f32 2.0, %v1460_v43  ;;  %v1482_v15 = vmul.f32 %v10525_v29, %v1474_v50 }
 0x988   :  { %v9517_v19 = vpop.eup %9516  ;;  %v1477_v38 = vmul.f32 %v9511_v33, %v1469_v25  ;;  %v1463_v18 = vmul.f32 %v9515_v24, %v1443_v12 }
 0x989   :  { %v1476_v37 = vmul.f32 %v9513_v59, %v1468_v26  ;;  %v1462_v8 = vmul.f32 %v9517_v19, %v1440_v22  ;;  %8015 = vmatprep.mubr.msk.f32.mxu0 %vm113_vm1, %v1482_v15 }
 0x98a   :  { %v1471_v40 = vsub.f32 2.0, %v1463_v18  ;;  %8016 = vmatmul.mubr.msk.f32.vlgmr.msra.gmra.mrb[24].mxu0 %vm113_vm1, %v1483_v60  ;;  %v1485_v25 = vmul.f32 %v10531_v52, %v1477_v38  ;;  %v8713_v18 = vpack.c.bf16 %v9166_v63, %v9165_v47 }
 0x98b   :  { %v9519_v45 = vpop.eup %9518  ;;  %v1470_v17 = vsub.f32 2.0, %v1462_v8  ;;  %8708 = vmatpush3.bf16.msra.mxu0 %v10556_v42  ;;  %v1484_v43 = vmul.f32 %v10533_v34, %v1476_v37 }
 0x98c   :  { %v1479_v50 = vmul.f32 %v9515_v24, %v1471_v40  ;;  %v1465_v3 = vmul.f32 %v9519_v45, %v1449_v48  ;;  %8710 = vmatprep.subr.bf16.mxu0 %v8709_v56 }
 0x98d   :  { %v1478_v59 = vmul.f32 %v9517_v19, %v1470_v17  ;;  %8018 = vmatprep.mubr.msk.f32.mxu0 %vm113_vm1, %v1484_v43 }
 0x98e   :  { %8019 = vmatmul.mubr.msk.f32.gmra.mrb[26].mxu0 %vm113_vm1, %v1485_v25  ;;  %v1473_v57 = vsub.f32 2.0, %v1465_v3  ;;  %v1487_v29 = vmul.f32 %v10539_v2, %v1479_v50 }
 0x98f   :  { %v9521_v33 = vpop.eup %9520  ;;  %8712 = vmatpush3.bf16.msra.mxu0 %v8709_v56  ;;  %v1486_v30 = vmul.f32 %v10541_v5, %v1478_v59 }
 0x990   :  { %v1464_v31 = vmul.f32 %v9521_v33, %v1446_v46  ;;  %8714 = vmatprep.subr.bf16.mxu0 %v8713_v18  ;;  %v1481_v19 = vmul.f32 %v9519_v45, %v1473_v57 }
 0x991   :  { %8021 = vmatprep.mubr.msk.f32.mxu0 %vm113_vm1, %v1486_v30 }
 0x992   :  { %v1472_v24 = vsub.f32 2.0, %v1464_v31  ;;  %8022 = vmatmul.mubr.msk.f32.gmra.mrb[28].mxu0 %vm113_vm1, %v1487_v29  ;;  %v1489_v9 = vmul.f32 %v10547_v23, %v1481_v19 }
 0x993   :  { %8716 = vmatpush3.bf16.msra.mxu0 %v8713_v18 }
 0x994   :  { %v1480_v52 = vmul.f32 %v9521_v33, %v1472_v24  ;;  %v1865_v34 = vpop.xlane.xlu0 %1864 }
 0x995   :  { %9522 = vrcp.f32 %v1865_v34 }
 0x996   :  { %v1488_v42 = vmul.f32 %v10551_v11, %v1480_v52 }
 0x998   :  { %v9169_v12 = vpop.permute.xlu0 %9168  ;;  %8024 = vmatprep.mubr.msk.f32.mxu0 %vm113_vm1, %v1488_v42 }
 0x999   :  { %v9171_v46 = vunpack.i.h.bf16 %v9169_v12  ;;  %v9170_v5 = vunpack.i.l.bf16 %v9169_v12  ;;  %8025 = vmatmul.mubr.msk.f32.gmra.mrb[30].mxu0 %vm113_vm1, %v1489_v9 }
 0x99b   :  { %v8717_v2 = vpack.c.bf16 %v9171_v46, %v9170_v5 }
 0x99d   :  { %8718 = vmatprep.subr.bf16.mxu0 %v8717_v2 }
 0x99e   :  { %8720 = vmatpush3.bf16.msra.mxu0 %v8717_v2 }
 0x99f   :  { %v9523_v48 = vpop.eup %9522 }
 0x9a0   :  { %v1893_v15 = vmul.f32 %v9523_v48, %v1865_v34 }
 0x9a2   :  { %v1901_v60 = vsub.f32 2.0, %v1893_v15 }
 0x9a4   :  { %v1909_v8 = vmul.f32 %v9523_v48, %v1901_v60 }
 0x9a6   :  { %v1917_v17 = vmul.f32 %v10559_v7, %v1909_v8 }
 0x9ba   :  { %v1862_v22 = vpop.xlane.xlu1 %1861 }
 0x9bb   :  { %9524 = vrcp.f32 %v1862_v22 }
 0x9be   :  { %v1868_v26 = vpop.xlane.xlu1 %1867 }
 0x9bf   :  { %9526 = vrcp.f32 %v1868_v26 }
 0x9c5   :  { %v9525_v11 = vpop.eup %9524 }
 0x9c6   :  { %v1892_v23 = vmul.f32 %v9525_v11, %v1862_v22 }
 0x9c8   :  { %v1900_v38 = vsub.f32 2.0, %v1892_v23 }
 0x9c9   :  { %v9527_v37 = vpop.eup %9526  ;;  %v1871_v63 = vpop.xlane.xlu0 %1870 }
 0x9ca   :  { %v1908_v47 = vmul.f32 %v9525_v11, %v1900_v38  ;;  %v1894_v40 = vmul.f32 %v9527_v37, %v1868_v26  ;;  %9528 = vrcp.f32 %v1871_v63 }
 0x9cc   :  { %v1902_v56 = vsub.f32 2.0, %v1894_v40  ;;  %v1916_v45 = vmul.f32 %v10577_v49, %v1908_v47 }
 0x9cd   :  { %v1877_v43 = vpop.xlane.xlu1 %1876  ;;  %v9179_v29 = vpop.permute.xlu0 %9178 }
 0x9ce   :  { %v1910_v50 = vmul.f32 %v9527_v37, %v1902_v56  ;;  %9530 = vrcp.f32 %v1877_v43  ;;  %8071 = vmatprep.mubr.msk.f32.mxu0 %vm113_vm1, %v1916_v45  ;;  %v9181_v42 = vunpack.i.h.bf16 %v9179_v29  ;;  %v9180_v9 = vunpack.i.l.bf16 %v9179_v29 }
 0x9cf   :  { %8072 = vmatmul.mubr.msk.f32.vlgmr.msra.gmra.mrb[32].mxu0 %vm113_vm1, %v1917_v17 }
 0x9d0   :  { %v1918_v3 = vmul.f32 %v10583_v36, %v1910_v50  ;;  %v8727_v11 = vpack.c.bf16 %v9181_v42, %v9180_v9 }
 0x9d1   :  { %v1874_v25 = vpop.xlane.xlu1 %1873 }
 0x9d2   :  { %9532 = vrcp.f32 %v1874_v25  ;;  %8074 = vmatprep.mubr.msk.f32.mxu0 %vm113_vm1, %v1918_v3 }
 0x9d4   :  { %v9529_v59 = vpop.eup %9528 }
 0x9d5   :  { %v1895_v18 = vmul.f32 %v9529_v59, %v1871_v63  ;;  %v1883_v33 = vpop.xlane.xlu1 %1882 }
 0x9d6   :  { %9534 = vrcp.f32 %v1883_v33 }
 0x9d7   :  { %v1903_v49 = vsub.f32 2.0, %v1895_v18 }
 0x9d8   :  { %v9531_v57 = vpop.eup %9530 }
 0x9d9   :  { %v1911_v7 = vmul.f32 %v9529_v59, %v1903_v49  ;;  %v1897_v30 = vmul.f32 %v9531_v57, %v1877_v43  ;;  %v1880_v31 = vpop.xlane.xlu1 %1879 }
 0x9da   :  { %9536 = vrcp.f32 %v1880_v31 }
 0x9db   :  { %v1919_v24 = vmul.f32 %v10590_v54, %v1911_v7  ;;  %v1905_v52 = vsub.f32 2.0, %v1897_v30  ;;  %v9184_v54 = vpop.permute.xlu0 %9183 }
 0x9dc   :  { %v9533_v19 = vpop.eup %9532  ;;  %v9186_v63 = vunpack.i.h.bf16 %v9184_v54  ;;  %v9185_v47 = vunpack.i.l.bf16 %v9184_v54 }
 0x9dd   :  { %v1896_v36 = vmul.f32 %v9533_v19, %v1874_v25  ;;  %v9174_v34 = vpop.permute.xlu1 %9173  ;;  %8075 = vmatmul.mubr.msk.f32.gmra.mrb[34].mxu0 %vm113_vm1, %v1919_v24  ;;  %v1913_v22 = vmul.f32 %v9531_v57, %v1905_v52 }
 0x9de   :  { %v9176_v12 = vunpack.i.h.bf16 %v9174_v34  ;;  %v9175_v46 = vunpack.i.l.bf16 %v9174_v34  ;;  %v8733_v17 = vpack.c.bf16 %v9186_v63, %v9185_v47 }
 0x9df   :  { %v1904_v5 = vsub.f32 2.0, %v1896_v36  ;;  %v1921_v37 = vmul.f32 %v10594_v53, %v1913_v22  ;;  %v9189_v43 = vpop.permute.xlu0 %9188 }
 0x9e0   :  { %v9535_v2 = vpop.eup %9534  ;;  %v8721_v48 = vpack.c.bf16 %v9176_v12, %v9175_v46  ;;  %v9191_v50 = vunpack.i.h.bf16 %v9189_v43  ;;  %v9190_v3 = vunpack.i.l.bf16 %v9189_v43 }
 0x9e1   :  { %v1912_v26 = vmul.f32 %v9533_v19, %v1904_v5  ;;  %v1899_v15 = vmul.f32 %v9535_v2, %v1883_v33 }
 0x9e2   :  { %8723 = vmatprep.subr.msk.bf16.mxu0 %vm10303_vm3, %v8721_v48  ;;  %v8739_v25 = vpack.c.bf16 %v9191_v50, %v9190_v3 }
 0x9e3   :  { %8726 = vmatpush3.bf16.xpose.msk.msra.mxu0 %vm10303_vm3, %v8721_v48  ;;  %v1920_v60 = vmul.f32 %v10598_v55, %v1912_v26  ;;  %v1907_v38 = vsub.f32 2.0, %v1899_v15 }
 0x9e4   :  { %v9537_v23 = vpop.eup %9536  ;;  %8729 = vmatprep.subr.msk.bf16.mxu0 %vm10303_vm3, %v8727_v11 }
 0x9e5   :  { %v1898_v8 = vmul.f32 %v9537_v23, %v1880_v31  ;;  %8077 = vmatprep.mubr.msk.f32.mxu0 %vm113_vm1, %v1920_v60  ;;  %v1915_v56 = vmul.f32 %v9535_v2, %v1907_v38 }
 0x9e6   :  { %8078 = vmatmul.mubr.msk.f32.gmra.mrb[36].mxu0 %vm113_vm1, %v1921_v37 }
 0x9e7   :  { %v1906_v40 = vsub.f32 2.0, %v1898_v8  ;;  %v1923_v53 = vmul.f32 %v10602_v1, %v1915_v56 }
 0x9e9   :  { %v1914_v45 = vmul.f32 %v9537_v23, %v1906_v40 }
 0x9eb   :  { %8732 = vmatpush3.bf16.xpose.msk.msra.mxu0 %vm10303_vm3, %v8727_v11  ;;  %v1922_v55 = vmul.f32 %v10606_v41, %v1914_v45 }
 0x9ec   :  { %8735 = vmatprep.subr.msk.bf16.mxu0 %vm10303_vm3, %v8733_v17 }
 0x9ed   :  { %8080 = vmatprep.mubr.msk.f32.mxu0 %vm113_vm1, %v1922_v55 }
 0x9ee   :  { %8081 = vmatmul.mubr.msk.f32.gmra.mrb[38].mxu0 %vm113_vm1, %v1923_v53 }
 0x9ef   :  { %8099 = vmatprep.mubr.msk.f32.mxu0 %vm31_vm0, %v10501_v21 }
 0x9f3   :  { %8738 = vmatpush3.bf16.xpose.msk.msra.mxu0 %vm10303_vm3, %v8733_v17 }
 0x9f4   :  { %8741 = vmatprep.subr.msk.bf16.mxu0 %vm10303_vm3, %v8739_v25 }
 0x9fb   :  { %8744 = vmatpush3.bf16.xpose.msk.msra.mxu0 %vm10303_vm3, %v8739_v25 }
 0xa02   :  { %8100 = vmatmul.mubr.msk.f32.vlgmr.msra.gmra.mrb[40].mxu0 %vm31_vm0, %v10499_v51 }
 0xa03   :  { %8102 = vmatprep.mubr.msk.f32.mxu0 %vm31_vm0, %v10509_v58 }
 0xa06   :  { %8103 = vmatmul.mubr.msk.f32.gmra.mrb[42].mxu0 %vm31_vm0, %v10507_v0 }
 0xa07   :  { %8105 = vmatprep.mubr.msk.f32.mxu0 %vm31_vm0, %v10567_v16 }
 0xa0a   :  { %8106 = vmatmul.mubr.msk.f32.gmra.mrb[44].mxu0 %vm31_vm0, %v10565_v61 }
 0xa0b   :  { %8108 = vmatprep.mubr.msk.f32.mxu0 %vm31_vm0, %v10614_v4 }
 0xa0e   :  { %8109 = vmatmul.mubr.msk.f32.gmra.mrb[46].mxu0 %vm31_vm0, %v10612_v6 }
 0xa5d   :  { %v10693_v1 = vpop.f32.mrb[24].mxu0 }
 0xa5e   :  { %v10695_v41 = vpop.f32.mrb[25].mxu0 }
 0xa61   :  { %v10697_v59 = vpop.f32.mrb[26].mxu0 }
 0xa62   :  { %v10699_v18 = vpop.f32.mrb[27].mxu0 }
 0xa65   :  { %v10701_v33 = vpop.f32.mrb[28].mxu0 }
 0xa66   :  { %v10703_v49 = vpop.f32.mrb[29].mxu0 }
 0xa6c   :  { %v10705_v57 = vpop.f32.mrb[30].mxu0 }
 0xa6d   :  { %v10707_v7 = vpop.f32.mrb[31].mxu0 }
 0xaa2   :  { %v10709_v30 = vpop.f32.mrb[32].mxu0 }
 0xaa3   :  { %v10711_v31 = vpop.f32.mrb[33].mxu0 }
 0xab0   :  { %v10713_v29 = vpop.f32.mrb[34].mxu0 }
 0xab1   :  { %v10715_v24 = vpop.f32.mrb[35].mxu0 }
 0xab9   :  { %v10717_v19 = vpop.f32.mrb[36].mxu0 }
 0xaba   :  { %v10719_v52 = vpop.f32.mrb[37].mxu0 }
 0xac1   :  { %v10721_v36 = vpop.f32.mrb[38].mxu0 }
 0xac2   :  { %v10723_v34 = vpop.f32.mrb[39].mxu0 }
 0xad5   :  { %v8101_v42 = vpop.f32.mrb[40].mxu0 }
 0xad6   :  { %v2239_v9 = vpop.f32.mrb[41].mxu0  ;;  %v2281_v12 = vsel %vm113_vm1, %v8101_v42, -inf }
 0xad7   :  { %2282 = vmax.xlane.f32.xlu0 %v2281_v12  ;;  %v2278_v46 = vsel %vm113_vm1, %v2239_v9, -inf }
 0xad8   :  { %2279 = vmax.xlane.f32.xlu1 %v2278_v46 }
 0xad9   :  { %v10727_v5 = vpop.f32.mrb[42].mxu0 }
 0xada   :  { %v2249_v2 = vpop.f32.mrb[43].mxu0  ;;  %v2287_v22 = vsel %vm113_vm1, %v10727_v5, -inf }
 0xadb   :  { %2288 = vmax.xlane.f32.xlu0 %v2287_v22  ;;  %v2284_v15 = vsel %vm113_vm1, %v2249_v2, -inf }
 0xadd   :  { %v8107_v48 = vpop.f32.mrb[44].mxu0 }
 0xade   :  { %v10731_v26 = vpop.f32.mrb[45].mxu0  ;;  %v2293_v60 = vsel %vm113_vm1, %v8107_v48, -inf }
 0xadf   :  { %2285 = vmax.xlane.f32.xlu0 %v2284_v15  ;;  %v2290_v38 = vsel %vm113_vm1, %v10731_v26, -inf }
 0xae1   :  { %v8110_v11 = vpop.f32.mrb[46].mxu0 }
 0xae2   :  { %v10734_v54 = vpop.f32.mrb[47].mxu0  ;;  %v2299_v23 = vsel %vm113_vm1, %v8110_v11, -inf }
 0xae3   :  { %2294 = vmax.xlane.f32.xlu0 %v2293_v60  ;;  %v2296_v37 = vsel %vm113_vm1, %v10734_v54, -inf }
 0xae7   :  { %2300 = vmax.xlane.f32.xlu0 %v2299_v23 }
 0xae9   :  { %9193 = vrot.lane.b32.xlu1 %v10505_v10, %s9867_s20 }
 0xafd   :  { %9198 = vrot.lane.b32.xlu0 %v10513_v39, %s9867_s20 }
 0xb0d   :  { %2291 = vmax.xlane.f32.xlu1 %v2290_v38 }
 0xb11   :  { %2297 = vmax.xlane.f32.xlu1 %v2296_v37 }
 0xb22   :  { %9203 = vrot.lane.b32.xlu1 %v10574_v44, %s9867_s20 }
 0xb64   :  { %v2283_v8 = vpop.xlane.xlu0 %2282 }
 0xb65   :  { %v2303_v63 = vsub.f32 %v8101_v42, %v2283_v8  ;;  %v2280_v47 = vpop.xlane.xlu1 %2279 }
 0xb66   :  { %v2302_v40 = vsub.f32 %v2239_v9, %v2280_v47 }
 0xb67   :  { %v2312_v56 = vmul.f32 1.442695, %v2303_v63 }
 0xb68   :  { %v2310_v45 = vmul.f32 1.442695, %v2302_v40  ;;  %v2289_v17 = vpop.xlane.xlu0 %2288 }
 0xb69   :  { %9538 = vpow2.f32 %v2312_v56  ;;  %v9194_v43 = vpop.permute.xlu1 %9193 }
 0xb6a   :  { %9540 = vpow2.f32 %v2310_v45  ;;  %v9196_v55 = vunpack.i.h.bf16 %v9194_v43  ;;  %v9195_v53 = vunpack.i.l.bf16 %v9194_v43  ;;  %v2305_v45 = vsub.f32 %v10727_v5, %v2289_v17 }
 0xb6c   :  { %v2286_v50 = vpop.xlane.xlu0 %2285  ;;  %v8745_v3 = vpack.c.bf16 %v9196_v55, %v9195_v53  ;;  %v2316_v43 = vmul.f32 1.442695, %v2305_v45 }
 0xb6d   :  { %v2304_v25 = vsub.f32 %v2249_v2, %v2286_v50 }
 0xb6e   :  { %8746 = vmatprep.subr.bf16.mxu1 %v8745_v3 }
 0xb6f   :  { %v2314_v12 = vmul.f32 1.442695, %v2304_v25  ;;  %8748 = vmatpush3.bf16.msra.mxu1 %v8745_v3 }
 0xb70   :  { %v2295_v46 = vpop.xlane.xlu0 %2294 }
 0xb71   :  { %9542 = vpow2.f32 %v2314_v12  ;;  %v2307_v22 = vsub.f32 %v8107_v48, %v2295_v46 }
 0xb73   :  { %v10748_v42 = vpop.eup %9538  ;;  %v2320_v9 = vmul.f32 1.442695, %v2307_v22 }
 0xb74   :  { %v10750_v15 = vpop.eup %9540  ;;  %v2301_v60 = vpop.xlane.xlu0 %2300  ;;  %v2329_v23 = vsel %vm113_vm1, %v10748_v42, 0.0 }
 0xb75   :  { %9544 = vpow2.f32 %v2320_v9  ;;  %2330 = vadd.xlane.f32.xlu0 %v2329_v23  ;;  %v2326_v2 = vsel %vm113_vm1, %v10750_v15, 0.0  ;;  %v2309_v55 = vsub.f32 %v8110_v11, %v2301_v60 }
 0xb76   :  { %2327 = vadd.xlane.f32.xlu1 %v2326_v2  ;;  %9546 = vpow2.f32 %v2316_v43 }
 0xb77   :  { %v2324_v3 = vmul.f32 1.442695, %v2309_v55 }
 0xb78   :  { %v9199_v38 = vpop.permute.xlu0 %9198 }
 0xb79   :  { %v9201_v37 = vunpack.i.h.bf16 %v9199_v38  ;;  %v9200_v8 = vunpack.i.l.bf16 %v9199_v38 }
 0xb7b   :  { %v10756_v63 = vpop.eup %9542  ;;  %v8749_v48 = vpack.c.bf16 %v9201_v37, %v9200_v8 }
 0xb7c   :  { %v2332_v47 = vsel %vm113_vm1, %v10756_v63, 0.0 }
 0xb7d   :  { %8750 = vmatprep.subr.bf16.mxu1 %v8749_v48  ;;  %2333 = vadd.xlane.f32.xlu1 %v2332_v47 }
 0xb7e   :  { %8752 = vmatpush3.bf16.msra.mxu1 %v8749_v48 }
 0xb7f   :  { %v10760_v40 = vpop.eup %9544 }
 0xb80   :  { %v2341_v56 = vsel %vm113_vm1, %v10760_v40, 0.0  ;;  %v10769_v5 = vpop.eup %9546 }
 0xb81   :  { %2342 = vadd.xlane.f32.xlu1 %v2341_v56 }
 0xb8b   :  { %9208 = vrot.lane.b32.xlu0 %v10620_v20, %s9867_s20 }
 0xb9a   :  { %v2292_v53 = vpop.xlane.xlu1 %2291 }
 0xb9b   :  { %v2306_v50 = vsub.f32 %v10731_v26, %v2292_v53  ;;  %v2335_v26 = vsel %vm113_vm1, %v10769_v5, 0.0 }
 0xb9d   :  { %v2318_v25 = vmul.f32 1.442695, %v2306_v50 }
 0xb9e   :  { %v2298_v12 = vpop.xlane.xlu1 %2297 }
 0xb9f   :  { %9548 = vpow2.f32 %v2318_v25  ;;  %v2308_v46 = vsub.f32 %v10734_v54, %v2298_v12 }
 0xba0   :  { %9550 = vpow2.f32 %v2324_v3 }
 0xba1   :  { %v2322_v22 = vmul.f32 1.442695, %v2308_v46 }
 0xba2   :  { %v9204_v9 = vpop.permute.xlu1 %9203 }
 0xba3   :  { %v9206_v23 = vunpack.i.h.bf16 %v9204_v9  ;;  %v9205_v2 = vunpack.i.l.bf16 %v9204_v9  ;;  %9552 = vpow2.f32 %v2322_v22 }
 0xba5   :  { %v8753_v38 = vpack.c.bf16 %v9206_v23, %v9205_v2 }
 0xba7   :  { %8754 = vmatprep.subr.bf16.mxu1 %v8753_v38 }
 0xba8   :  { %8756 = vmatpush3.bf16.msra.mxu1 %v8753_v38 }
 0xba9   :  { %v10771_v11 = vpop.eup %9548 }
 0xbaa   :  { %2336 = vadd.xlane.f32.xlu0 %v2335_v26  ;;  %v2338_v54 = vsel %vm113_vm1, %v10771_v11, 0.0  ;;  %v10777_v17 = vpop.eup %9550 }
 0xbab   :  { %2339 = vadd.xlane.f32.xlu1 %v2338_v54  ;;  %v2347_v60 = vsel %vm113_vm1, %v10777_v17, 0.0 }
 0xbad   :  { %v10781_v37 = vpop.eup %9552 }
 0xbae   :  { %v2344_v8 = vsel %vm113_vm1, %v10781_v37, 0.0 }
 0xbaf   :  { %2348 = vadd.xlane.f32.xlu1 %v2347_v60 }
 0xbb3   :  { %2345 = vadd.xlane.f32.xlu1 %v2344_v8 }
 0xbc0   :  { %9218 = vrot.lane.b32.xlu0 %v10513_v39, %s9869_s30 }
 0xbc4   :  { %9223 = vrot.lane.b32.xlu0 %v10574_v44, %s9869_s30  ;;  %9213 = vrot.lane.b32.xlu1 %v10505_v10, %s9869_s30 }
 0xbc8   :  { %9228 = vrot.lane.b32.xlu0 %v10620_v20, %s9869_s30  ;;  %2543 = vrot.lane.b32.xlu1 %v10501_v21, %s9866_s17 }
 0xbcc   :  { %2545 = vrot.lane.b32.xlu0 %v10499_v51, %s9866_s17  ;;  %2547 = vrot.lane.b32.xlu1 %v10509_v58, %s9866_s17 }
 0xbd0   :  { %2549 = vrot.lane.b32.xlu0 %v10507_v0, %s9866_s17  ;;  %2551 = vrot.lane.b32.xlu1 %v10567_v16, %s9866_s17 }
 0xbd4   :  { %2553 = vrot.lane.b32.xlu0 %v10565_v61, %s9866_s17  ;;  %2555 = vrot.lane.b32.xlu1 %v10614_v4, %s9866_s17 }
 0xbd8   :  { %2557 = vrot.lane.b32.xlu0 %v10612_v6, %s9866_s17 }
 0xc02   :  { %v2331_v21 = vpop.xlane.xlu0 %2330 }
 0xc03   :  { %9554 = vrcp.f32 %v2331_v21  ;;  %v2328_v51 = vpop.xlane.xlu1 %2327 }
 0xc04   :  { %9556 = vrcp.f32 %v2328_v51 }
 0xc06   :  { %v9209_v58 = vpop.permute.xlu0 %9208 }
 0xc07   :  { %v9211_v48 = vunpack.i.h.bf16 %v9209_v58  ;;  %v9210_v47 = vunpack.i.l.bf16 %v9209_v58 }
 0xc09   :  { %v8757_v0 = vpack.c.bf16 %v9211_v48, %v9210_v47 }
 0xc0a   :  { %v2334_v56 = vpop.xlane.xlu1 %2333 }
 0xc0b   :  { %9558 = vrcp.f32 %v2334_v56  ;;  %8758 = vmatprep.subr.bf16.mxu1 %v8757_v0 }
 0xc0c   :  { %8760 = vmatpush3.bf16.msra.mxu1 %v8757_v0 }
 0xc0d   :  { %v9555_v16 = vpop.eup %9554 }
 0xc0e   :  { %v9557_v61 = vpop.eup %9556  ;;  %v2359_v45 = vmul.f32 %v9555_v16, %v2331_v21  ;;  %v2343_v23 = vpop.xlane.xlu1 %2342 }
 0xc0f   :  { %v2358_v43 = vmul.f32 %v9557_v61, %v2328_v51  ;;  %9560 = vrcp.f32 %v2343_v23 }
 0xc10   :  { %v2367_v4 = vsub.f32 2.0, %v2359_v45 }
 0xc11   :  { %v2366_v55 = vsub.f32 2.0, %v2358_v43 }
 0xc12   :  { %v2375_v53 = vmul.f32 %v9555_v16, %v2367_v4 }
 0xc13   :  { %v2374_v6 = vmul.f32 %v9557_v61, %v2366_v55 }
 0xc14   :  { %v2383_v25 = vmul.f32 %v10748_v42, %v2375_v53 }
 0xc15   :  { %v9559_v50 = vpop.eup %9558  ;;  %v2382_v3 = vmul.f32 %v10750_v15, %v2374_v6 }
 0xc16   :  { %v2360_v12 = vmul.f32 %v9559_v50, %v2334_v56 }
 0xc17   :  { %8127 = vmatprep.mubr.msk.f32.mxu1 %vm113_vm1, %v2382_v3 }
 0xc18   :  { %v2368_v46 = vsub.f32 2.0, %v2360_v12  ;;  %8128 = vmatmul.mubr.msk.f32.vlgmr.msra.gmra.mrb[32].mxu1 %vm113_vm1, %v2383_v25 }
 0xc19   :  { %v9561_v26 = vpop.eup %9560 }
 0xc1a   :  { %v2376_v22 = vmul.f32 %v9559_v50, %v2368_v46  ;;  %v2363_v42 = vmul.f32 %v9561_v26, %v2343_v23 }
 0xc1c   :  { %v2384_v9 = vmul.f32 %v10756_v63, %v2376_v22  ;;  %v2371_v58 = vsub.f32 2.0, %v2363_v42 }
 0xc1e   :  { %8130 = vmatprep.mubr.msk.f32.mxu1 %vm113_vm1, %v2384_v9  ;;  %v2379_v50 = vmul.f32 %v9561_v26, %v2371_v58 }
 0xc37   :  { %v2337_v2 = vpop.xlane.xlu0 %2336 }
 0xc38   :  { %9562 = vrcp.f32 %v2337_v2  ;;  %v2340_v38 = vpop.xlane.xlu1 %2339 }
 0xc39   :  { %9564 = vrcp.f32 %v2340_v38 }
 0xc3b   :  { %v9219_v60 = vpop.permute.xlu0 %9218 }
 0xc3c   :  { %v2349_v15 = vpop.xlane.xlu1 %2348  ;;  %v9221_v48 = vunpack.i.h.bf16 %v9219_v60  ;;  %v9220_v56 = vunpack.i.l.bf16 %v9219_v60 }
 0xc3d   :  { %9566 = vrcp.f32 %v2349_v15 }
 0xc3e   :  { %v8767_v3 = vpack.c.bf16 %v9221_v48, %v9220_v56 }
 0xc3f   :  { %v9224_v12 = vpop.permute.xlu0 %9223 }
 0xc40   :  { %v2346_v54 = vpop.xlane.xlu1 %2345 }
 0xc41   :  { %9568 = vrcp.f32 %v2346_v54 }
 0xc42   :  { %v9563_v8 = vpop.eup %9562 }
 0xc43   :  { %v9565_v21 = vpop.eup %9564  ;;  %v2361_v51 = vmul.f32 %v9563_v8, %v2337_v2  ;;  %v9226_v2 = vunpack.i.h.bf16 %v9224_v12  ;;  %v9229_v60 = vpop.permute.xlu0 %9228 }
 0xc44   :  { %v2362_v63 = vmul.f32 %v9565_v21, %v2340_v38  ;;  %v9214_v47 = vpop.permute.xlu1 %9213  ;;  %v9225_v38 = vunpack.i.l.bf16 %v9224_v12 }
 0xc45   :  { %v2369_v0 = vsub.f32 2.0, %v2361_v51  ;;  %v9216_v16 = vunpack.i.h.bf16 %v9214_v47  ;;  %v9215_v61 = vunpack.i.l.bf16 %v9214_v47 }
 0xc46   :  { %v2370_v45 = vsub.f32 2.0, %v2362_v63 }
 0xc47   :  { %v9567_v43 = vpop.eup %9566  ;;  %v2377_v4 = vmul.f32 %v9563_v8, %v2369_v0  ;;  %v8761_v55 = vpack.c.bf16 %v9216_v16, %v9215_v61 }
 0xc48   :  { %v2378_v53 = vmul.f32 %v9565_v21, %v2370_v45  ;;  %v2365_v6 = vmul.f32 %v9567_v43, %v2349_v15  ;;  %v9230_v21 = vunpack.i.l.bf16 %v9229_v60  ;;  %v2544_v51 = vpop.permute.xlu1 %2543 }
 0xc49   :  { %8763 = vmatprep.subr.msk.bf16.mxu1 %vm10303_vm3, %v8761_v55  ;;  %v2385_v25 = vmul.f32 %v10769_v5, %v2377_v4  ;;  %v2387_v5 = vmul.f32 %v10760_v40, %v2379_v50  ;;  %v9231_v40 = vunpack.i.h.bf16 %v9229_v60 }
 0xc4a   :  { %8766 = vmatpush3.bf16.xpose.msk.msra.mxu1 %vm10303_vm3, %v8761_v55  ;;  %v2386_v46 = vmul.f32 %v10771_v11, %v2378_v53  ;;  %v2373_v9 = vsub.f32 2.0, %v2365_v6  ;;  %v8773_v11 = vpack.c.bf16 %v9226_v2, %v9225_v38 }
 0xc4b   :  { %v9569_v22 = vpop.eup %9568  ;;  %8131 = vmatmul.mubr.msk.f32.gmra.mrb[34].mxu1 %vm113_vm1, %v2385_v25  ;;  %8769 = vmatprep.subr.msk.bf16.mxu1 %vm10303_vm3, %v8767_v3  ;;  %v8779_v58 = vpack.c.bf16 %v9231_v40, %v9230_v21 }
 0xc4c   :  { %v2364_v23 = vmul.f32 %v9569_v22, %v2346_v54  ;;  %8133 = vmatprep.mubr.msk.f32.mxu1 %vm113_vm1, %v2386_v46  ;;  %v2381_v26 = vmul.f32 %v9567_v43, %v2373_v9 }
 0xc4e   :  { %v2372_v15 = vsub.f32 2.0, %v2364_v23  ;;  %v2389_v54 = vmul.f32 %v10777_v17, %v2381_v26  ;;  %v2548_v17 = vpop.permute.xlu1 %2547 }
 0xc4f   :  { %8134 = vmatmul.mubr.msk.f32.gmra.mrb[36].mxu1 %vm113_vm1, %v2387_v5 }
 0xc50   :  { %v2380_v42 = vmul.f32 %v9569_v22, %v2372_v15 }
 0xc52   :  { %8772 = vmatpush3.bf16.xpose.msk.msra.mxu1 %vm10303_vm3, %v8767_v3  ;;  %v2388_v8 = vmul.f32 %v10781_v37, %v2380_v42  ;;  %v2546_v37 = vpop.permute.xlu0 %2545  ;;  %v2552_v48 = vpop.permute.xlu1 %2551 }
 0xc53   :  { %8775 = vmatprep.subr.msk.bf16.mxu1 %vm10303_vm3, %v8773_v11 }
 0xc54   :  { %8136 = vmatprep.mubr.msk.f32.mxu1 %vm113_vm1, %v2388_v8  ;;  %v13006_v8 = vpack.i.bf16 %v10102_v28, %v10097_v27 }
 0xc55   :  { %8137 = vmatmul.mubr.msk.f32.gmra.mrb[38].mxu1 %vm113_vm1, %v2389_v54 }
 0xc56   :  { %8155 = vmatprep.mubr.msk.f32.mxu1 %vm31_vm0, %v2544_v51  ;;  %v2550_v63 = vpop.permute.xlu0 %2549  ;;  %v2556_v0 = vpop.permute.xlu1 %2555 }
 0xc5a   :  { %8778 = vmatpush3.bf16.xpose.msk.msra.mxu1 %vm10303_vm3, %v8773_v11  ;;  %v2554_v47 = vpop.permute.xlu0 %2553 }
 0xc5b   :  { %8781 = vmatprep.subr.msk.bf16.mxu1 %vm10303_vm3, %v8779_v58 }
 0xc5e   :  { %v2558_v56 = vpop.permute.xlu0 %2557 }
 0xc62   :  { %8784 = vmatpush3.bf16.xpose.msk.msra.mxu1 %vm10303_vm3, %v8779_v58 }
 0xc69   :  { %8156 = vmatmul.mubr.msk.f32.vlgmr.msra.gmra.mrb[40].mxu1 %vm31_vm0, %v2546_v37 }
 0xc6a   :  { %8158 = vmatprep.mubr.msk.f32.mxu1 %vm31_vm0, %v2548_v17 }
 0xc6d   :  { %8159 = vmatmul.mubr.msk.f32.gmra.mrb[42].mxu1 %vm31_vm0, %v2550_v63 }
 0xc6e   :  { %8161 = vmatprep.mubr.msk.f32.mxu1 %vm31_vm0, %v2552_v48 }
 0xc71   :  { %8162 = vmatmul.mubr.msk.f32.gmra.mrb[44].mxu1 %vm31_vm0, %v2554_v47 }
 0xc72   :  { %8164 = vmatprep.mubr.msk.f32.mxu1 %vm31_vm0, %v2556_v0 }
 0xc75   :  { %8165 = vmatmul.mubr.msk.f32.gmra.mrb[46].mxu1 %vm31_vm0, %v2558_v56 }
 0xceb   :  { %v10849_v16 = vpop.f32.mrb[32].mxu1 }
 0xcec   :  { %v10851_v61 = vpop.f32.mrb[33].mxu1 }
 0xd1e   :  { %v10853_v45 = vpop.f32.mrb[34].mxu1 }
 0xd1f   :  { %v10855_v43 = vpop.f32.mrb[35].mxu1 }
 0xd22   :  { %v10857_v4 = vpop.f32.mrb[36].mxu1 }
 0xd23   :  { %v10859_v55 = vpop.f32.mrb[37].mxu1 }
 0xd28   :  { %v10861_v53 = vpop.f32.mrb[38].mxu1 }
 0xd29   :  { %v10863_v6 = vpop.f32.mrb[39].mxu1 }
 0xd3c   :  { %v8157_v50 = vpop.f32.mrb[40].mxu1 }
 0xd3d   :  { %v2673_v3 = vpop.f32.mrb[41].mxu1  ;;  %v2715_v25 = vsel %vm113_vm1, %v8157_v50, -inf }
 0xd3e   :  { %2716 = vmax.xlane.f32.xlu0 %v2715_v25  ;;  %v2712_v12 = vsel %vm113_vm1, %v2673_v3, -inf }
 0xd3f   :  { %2713 = vmax.xlane.f32.xlu1 %v2712_v12 }
 0xd40   :  { %v8160_v46 = vpop.f32.mrb[42].mxu1 }
 0xd41   :  { %v2683_v22 = vpop.f32.mrb[43].mxu1  ;;  %v2721_v38 = vsel %vm113_vm1, %v8160_v46, -inf }
 0xd42   :  { %v2718_v9 = vsel %vm113_vm1, %v2683_v22, -inf }
 0xd43   :  { %2719 = vmax.xlane.f32.xlu0 %v2718_v9 }
 0xd44   :  { %v8163_v23 = vpop.f32.mrb[44].mxu1 }
 0xd45   :  { %v2693_v2 = vpop.f32.mrb[45].mxu1  ;;  %v2727_v42 = vsel %vm113_vm1, %v8163_v23, -inf }
 0xd46   :  { %v2724_v5 = vsel %vm113_vm1, %v2693_v2, -inf }
 0xd47   :  { %2722 = vmax.xlane.f32.xlu0 %v2721_v38  ;;  %2725 = vmax.xlane.f32.xlu1 %v2724_v5 }
 0xd48   :  { %v8166_v15 = vpop.f32.mrb[46].mxu1 }
 0xd49   :  { %v2703_v26 = vpop.f32.mrb[47].mxu1  ;;  %v2733_v60 = vsel %vm113_vm1, %v8166_v15, -inf }
 0xd4a   :  { %v2730_v11 = vsel %vm113_vm1, %v2703_v26, -inf }
 0xd4b   :  { %2728 = vmax.xlane.f32.xlu0 %v2727_v42  ;;  %2731 = vmax.xlane.f32.xlu1 %v2730_v11 }
 0xd4f   :  { %2734 = vmax.xlane.f32.xlu0 %v2733_v60 }
 0xd5c   :  { %9233 = vrot.lane.b32.xlu1 %v10505_v10, %s9870_s8 }
 0xd60   :  { %9243 = vrot.lane.b32.xlu1 %v10574_v44, %s9870_s8 }
 0xd64   :  { %9248 = vrot.lane.b32.xlu1 %v10620_v20, %s9870_s8 }
 0xd65   :  { %9238 = vrot.lane.b32.xlu0 %v10513_v39, %s9870_s8 }
 0xd68   :  { %9253 = vrot.lane.b32.xlu1 %v13006_v8, %s9871_s9 }
 0xdcb   :  { %v2717_v54 = vpop.xlane.xlu0 %2716 }
 0xdcc   :  { %v2737_v40 = vsub.f32 %v8157_v50, %v2717_v54  ;;  %v2714_v21 = vpop.xlane.xlu1 %2713 }
 0xdcd   :  { %v2736_v51 = vsub.f32 %v2673_v3, %v2714_v21 }
 0xdce   :  { %v2746_v10 = vmul.f32 1.442695, %v2737_v40 }
 0xdcf   :  { %v2744_v58 = vmul.f32 1.442695, %v2736_v51 }
 0xdd0   :  { %9570 = vpow2.f32 %v2746_v10  ;;  %v2720_v44 = vpop.xlane.xlu0 %2719 }
 0xdd1   :  { %9572 = vpow2.f32 %v2744_v58  ;;  %v2738_v37 = vsub.f32 %v2683_v22, %v2720_v44 }
 0xdd3   :  { %v2748_v20 = vmul.f32 1.442695, %v2738_v37 }
 0xdd4   :  { %v2723_v17 = vpop.xlane.xlu0 %2722  ;;  %v2726_v63 = vpop.xlane.xlu1 %2725 }
 0xdd5   :  { %9574 = vpow2.f32 %v2748_v20  ;;  %v2739_v39 = vsub.f32 %v8160_v46, %v2723_v17  ;;  %v2740_v48 = vsub.f32 %v2693_v2, %v2726_v63 }
 0xdd7   :  { %v2750_v47 = vmul.f32 1.442695, %v2739_v39  ;;  %v2752_v0 = vmul.f32 1.442695, %v2740_v48 }
 0xdd8   :  { %v2729_v27 = vpop.xlane.xlu0 %2728  ;;  %v2732_v28 = vpop.xlane.xlu1 %2731 }
 0xdd9   :  { %9576 = vpow2.f32 %v2750_v47  ;;  %v2741_v56 = vsub.f32 %v8163_v23, %v2729_v27  ;;  %v2742_v50 = vsub.f32 %v2703_v26, %v2732_v28 }
 0xdda   :  { %v10885_v3 = vpop.eup %9570  ;;  %9578 = vpow2.f32 %v2752_v0 }
 0xddb   :  { %v10887_v25 = vpop.eup %9572  ;;  %v2754_v12 = vmul.f32 1.442695, %v2741_v56  ;;  %v2756_v22 = vmul.f32 1.442695, %v2742_v50  ;;  %v2763_v9 = vsel %vm113_vm1, %v10885_v3, 0.0 }
 0xddc   :  { %2764 = vadd.xlane.f32.xlu0 %v2763_v9  ;;  %v2735_v46 = vpop.xlane.xlu0 %2734  ;;  %v9234_v2 = vpop.permute.xlu1 %9233  ;;  %v2760_v38 = vsel %vm113_vm1, %v10887_v25, 0.0 }
 0xddd   :  { %9580 = vpow2.f32 %v2754_v12  ;;  %v2743_v5 = vsub.f32 %v8166_v15, %v2735_v46  ;;  %v9236_v23 = vunpack.i.h.bf16 %v9234_v2  ;;  %v9235_v26 = vunpack.i.l.bf16 %v9234_v2  ;;  %2761 = vadd.xlane.f32.xlu1 %v2760_v38 }
 0xdde   :  { %9582 = vpow2.f32 %v2756_v22 }
 0xddf   :  { %v10893_v42 = vpop.eup %9574  ;;  %v2758_v11 = vmul.f32 1.442695, %v2743_v5  ;;  %v8785_v60 = vpack.c.bf16 %v9236_v23, %v9235_v26  ;;  %v13007_v5 = vpack.i.bf16 %v10114_v35, %v10109_v32 }
 0xde0   :  { %v9239_v8 = vpop.permute.xlu0 %9238  ;;  %v9244_v54 = vpop.permute.xlu1 %9243  ;;  %v2766_v40 = vsel %vm113_vm1, %v10893_v42, 0.0 }
 0xde1   :  { %9584 = vpow2.f32 %v2758_v11  ;;  %v9241_v21 = vunpack.i.h.bf16 %v9239_v8  ;;  %v9240_v51 = vunpack.i.l.bf16 %v9239_v8  ;;  %v9246_v10 = vunpack.i.h.bf16 %v9244_v54  ;;  %2767 = vadd.xlane.f32.xlu1 %v2766_v40  ;;  %8786 = vmatprep.subr.bf16.mxu0 %v8785_v60 }
 0xde2   :  { %v9245_v15 = vunpack.i.l.bf16 %v9244_v54  ;;  %8788 = vmatpush3.bf16.msra.mxu0 %v8785_v60 }
 0xde3   :  { %v10897_v58 = vpop.eup %9576  ;;  %v8789_v44 = vpack.c.bf16 %v9241_v21, %v9240_v51 }
 0xde4   :  { %v10899_v37 = vpop.eup %9578  ;;  %v9249_v20 = vpop.permute.xlu1 %9248  ;;  %v2769_v17 = vsel %vm113_vm1, %v10897_v58, 0.0  ;;  %v8793_v47 = vpack.c.bf16 %v9246_v10, %v9245_v15 }
 0xde5   :  { %v9251_v63 = vunpack.i.h.bf16 %v9249_v20  ;;  %v9250_v39 = vunpack.i.l.bf16 %v9249_v20  ;;  %2770 = vadd.xlane.f32.xlu0 %v2769_v17  ;;  %v2772_v48 = vsel %vm113_vm1, %v10899_v37, 0.0  ;;  %8790 = vmatprep.subr.bf16.mxu0 %v8789_v44 }
 0xde6   :  { %2773 = vadd.xlane.f32.xlu1 %v2772_v48  ;;  %8792 = vmatpush3.bf16.msra.mxu0 %v8789_v44 }
 0xde7   :  { %v10905_v0 = vpop.eup %9580  ;;  %8794 = vmatprep.subr.bf16.mxu0 %v8793_v47  ;;  %v8797_v12 = vpack.c.bf16 %v9251_v63, %v9250_v39 }
 0xde8   :  { %v10907_v27 = vpop.eup %9582  ;;  %v2775_v28 = vsel %vm113_vm1, %v10905_v0, 0.0  ;;  %v9254_v56 = vpop.permute.xlu1 %9253 }
 0xde9   :  { %2776 = vadd.xlane.f32.xlu0 %v2775_v28  ;;  %v2778_v50 = vsel %vm113_vm1, %v10907_v27, 0.0  ;;  %v9256_v22 = vunpack.i.h.bf16 %v9254_v56  ;;  %v9255_v9 = vunpack.i.l.bf16 %v9254_v56 }
 0xdea   :  { %2779 = vadd.xlane.f32.xlu1 %v2778_v50  ;;  %8796 = vmatpush3.bf16.msra.mxu0 %v8793_v47 }
 0xdeb   :  { %v10913_v46 = vpop.eup %9584  ;;  %8798 = vmatprep.subr.bf16.mxu0 %v8797_v12  ;;  %v8801_v2 = vpack.c.bf16 %v9256_v22, %v9255_v9 }
 0xdec   :  { %v2781_v38 = vsel %vm113_vm1, %v10913_v46, 0.0 }
 0xded   :  { %2782 = vadd.xlane.f32.xlu0 %v2781_v38 }
 0xdee   :  { %8800 = vmatpush3.bf16.msra.mxu0 %v8797_v12 }
 0xdef   :  { %8802 = vmatprep.subr.bf16.mxu0 %v8801_v2 }
 0xdfb   :  { %2085 = vrot.lane.b32.xlu1 %v10711_v31, %s9872_s10  ;;  %v9858_v31 = vld [vmem:[%s12949_s4] ss:$0 sm:$0xff] }
 0xdff   :  { %2089 = vrot.lane.b32.xlu1 %v10715_v24, %s9872_s10 }
 0xe03   :  { %2093 = vrot.lane.b32.xlu1 %v10719_v52, %s9872_s10  ;;  %9258 = vrot.lane.b32.xlu0 %v13007_v5, %s9871_s9 }
 0xe07   :  { %2097 = vrot.lane.b32.xlu1 %v10723_v34, %s9872_s10  ;;  %2087 = vrot.lane.b32.xlu0 %v10709_v30, %s9872_s10 }
 0xe0b   :  { %2091 = vrot.lane.b32.xlu0 %v10713_v29, %s9872_s10  ;;  %3242 = vrot.lane.b32.xlu1 %v9858_v31, %s9871_s9 }
 0xe0f   :  { %2095 = vrot.lane.b32.xlu0 %v10717_v19, %s9872_s10 }
 0xe13   :  { %2099 = vrot.lane.b32.xlu0 %v10721_v36, %s9872_s10 }
 0xe69   :  { %v2765_v32 = vpop.xlane.xlu0 %2764 }
 0xe6a   :  { %9586 = vrcp.f32 %v2765_v32  ;;  %v2762_v35 = vpop.xlane.xlu1 %2761 }
 0xe6b   :  { %9588 = vrcp.f32 %v2762_v35 }
 0xe6e   :  { %v2768_v30 = vpop.xlane.xlu1 %2767 }
 0xe6f   :  { %9590 = vrcp.f32 %v2768_v30 }
 0xe72   :  { %v2771_v24 = vpop.xlane.xlu0 %2770 }
 0xe73   :  { %9592 = vrcp.f32 %v2771_v24  ;;  %v2774_v29 = vpop.xlane.xlu1 %2773 }
 0xe74   :  { %v9587_v52 = vpop.eup %9586  ;;  %9594 = vrcp.f32 %v2774_v29 }
 0xe75   :  { %v9589_v34 = vpop.eup %9588  ;;  %v2793_v23 = vmul.f32 %v9587_v52, %v2765_v32 }
 0xe76   :  { %v2792_v26 = vmul.f32 %v9589_v34, %v2762_v35  ;;  %v2777_v11 = vpop.xlane.xlu0 %2776 }
 0xe77   :  { %v2801_v60 = vsub.f32 2.0, %v2793_v23  ;;  %9596 = vrcp.f32 %v2777_v11  ;;  %v2780_v19 = vpop.xlane.xlu1 %2779 }
 0xe78   :  { %v2800_v8 = vsub.f32 2.0, %v2792_v26  ;;  %9598 = vrcp.f32 %v2780_v19 }
 0xe79   :  { %v9591_v36 = vpop.eup %9590  ;;  %v2809_v54 = vmul.f32 %v9587_v52, %v2801_v60 }
 0xe7a   :  { %v2808_v40 = vmul.f32 %v9589_v34, %v2800_v8  ;;  %v2794_v21 = vmul.f32 %v9591_v36, %v2768_v30  ;;  %v2783_v51 = vpop.xlane.xlu0 %2782 }
 0xe7b   :  { %9600 = vrcp.f32 %v2783_v51  ;;  %v2817_v20 = vmul.f32 %v10885_v3, %v2809_v54 }
 0xe7c   :  { %v2802_v10 = vsub.f32 2.0, %v2794_v21  ;;  %v2816_v15 = vmul.f32 %v10887_v25, %v2808_v40 }
 0xe7d   :  { %v9593_v44 = vpop.eup %9592 }
 0xe7e   :  { %v9595_v17 = vpop.eup %9594  ;;  %v2810_v63 = vmul.f32 %v9591_v36, %v2802_v10  ;;  %v2795_v39 = vmul.f32 %v9593_v44, %v2771_v24  ;;  %v9259_v48 = vpop.permute.xlu0 %9258  ;;  %8183 = vmatprep.mubr.msk.f32.mxu0 %vm113_vm1, %v2816_v15 }
 0xe7f   :  { %v2796_v47 = vmul.f32 %v9595_v17, %v2774_v29  ;;  %v9261_v28 = vunpack.i.h.bf16 %v9259_v48  ;;  %v9260_v56 = vunpack.i.l.bf16 %v9259_v48  ;;  %8184 = vmatmul.mubr.msk.f32.vlgmr.msra.gmra.mrb[48].mxu0 %vm113_vm1, %v2817_v20 }
 0xe80   :  { %v2803_v50 = vsub.f32 2.0, %v2795_v39  ;;  %8804 = vmatpush3.bf16.msra.mxu0 %v8801_v2  ;;  %v2818_v12 = vmul.f32 %v10893_v42, %v2810_v63  ;;  %v2086_v2 = vpop.permute.xlu1 %2085 }
 0xe81   :  { %v9597_v22 = vpop.eup %9596  ;;  %v2804_v25 = vsub.f32 2.0, %v2796_v47  ;;  %v8805_v9 = vpack.c.bf16 %v9261_v28, %v9260_v56  ;;  %v2109_v36 = vsel %vm31_vm0, %v10695_v41, %v2086_v2 }
 0xe82   :  { %v9599_v38 = vpop.eup %9598  ;;  %v2811_v3 = vmul.f32 %v9593_v44, %v2803_v50  ;;  %v2797_v5 = vmul.f32 %v9597_v22, %v2777_v11  ;;  %8186 = vmatprep.mubr.msk.f32.mxu0 %vm113_vm1, %v2818_v12  ;;  %v2088_v11 = vpop.permute.xlu0 %2087 }
 0xe83   :  { %v2812_v31 = vmul.f32 %v9595_v17, %v2804_v25  ;;  %v2798_v32 = vmul.f32 %v9599_v38, %v2780_v19  ;;  %8806 = vmatprep.subr.bf16.mxu0 %v8805_v9 }
 0xe84   :  { %v2805_v35 = vsub.f32 2.0, %v2797_v5  ;;  %v2819_v30 = vmul.f32 %v10897_v58, %v2811_v3  ;;  %8808 = vmatpush3.bf16.msra.mxu0 %v8805_v9  ;;  %v2090_v8 = vpop.permute.xlu1 %2089  ;;  %v13008_v9 = vld [vmem:[#allocation2_spill] sm:$0xff]  ;;  %v13009_v3 = vld [vmem:[#allocation3_spill] sm:$0xff] }
 0xe85   :  { %v9601_v24 = vpop.eup %9600  ;;  %v2806_v29 = vsub.f32 2.0, %v2798_v32  ;;  %v2820_v42 = vmul.f32 %v10899_v37, %v2812_v31  ;;  %v2111_v40 = vsel %vm31_vm0, %v10699_v18, %v2090_v8  ;;  %v13011_v32 = vld [vmem:[#allocation4_spill] sm:$0xff] }
 0xe86   :  { %v2813_v52 = vmul.f32 %v9597_v22, %v2805_v35  ;;  %v2799_v34 = vmul.f32 %v9601_v24, %v2783_v51  ;;  %8187 = vmatmul.mubr.msk.f32.gmra.mrb[50].mxu0 %vm113_vm1, %v2819_v30  ;;  %v2092_v54 = vpop.permute.xlu0 %2091 }
 0xe87   :  { %v2814_v23 = vmul.f32 %v9599_v38, %v2806_v29  ;;  %8189 = vmatprep.mubr.msk.f32.mxu0 %vm113_vm1, %v2820_v42  ;;  %v2112_v41 = vsel %vm31_vm0, %v10697_v59, %v2092_v54  ;;  %v13013_v29 = vld [vmem:[#allocation5_spill] sm:$0xff] }
 0xe88   :  { %v2807_v26 = vsub.f32 2.0, %v2799_v34  ;;  %v2821_v60 = vmul.f32 %v10905_v0, %v2813_v52  ;;  %v2110_v0 = vsel %vm31_vm0, %v10693_v1, %v2088_v11 }
 0xe89   :  { %v2822_v19 = vmul.f32 %v10907_v27, %v2814_v23  ;;  %v2094_v27 = vpop.permute.xlu1 %2093  ;;  %v13015_v23 = vld [vmem:[#allocation6_spill] sm:$0xff] }
 0xe8a   :  { %v2815_v58 = vmul.f32 %v9601_v24, %v2807_v26  ;;  %8190 = vmatmul.mubr.msk.f32.gmra.mrb[52].mxu0 %vm113_vm1, %v2821_v60  ;;  %v2113_v21 = vsel %vm31_vm0, %v10703_v49, %v2094_v27 }
 0xe8b   :  { %8192 = vmatprep.mubr.msk.f32.mxu0 %vm113_vm1, %v2822_v19 }
 0xe8c   :  { %v2823_v37 = vmul.f32 %v10913_v46, %v2815_v58  ;;  %v2096_v46 = vpop.permute.xlu0 %2095  ;;  %v13017_v58 = vld [vmem:[#allocation7_spill] sm:$0xff] }
 0xe8d   :  { %v2098_v51 = vpop.permute.xlu1 %2097  ;;  %v2114_v1 = vsel %vm31_vm0, %v10701_v33, %v2096_v46 }
 0xe8e   :  { %8193 = vmatmul.mubr.msk.f32.gmra.mrb[54].mxu0 %vm113_vm1, %v2823_v37  ;;  %v2115_v18 = vsel %vm31_vm0, %v10707_v7, %v2098_v51 }
 0xe8f   :  { %8203 = vmatprep.mubr.msk.f32.mxu0 %vm772_vm2, %v2109_v36 }
 0xe90   :  { %v2100_v10 = vpop.permute.xlu0 %2099 }
 0xe91   :  { %v2116_v59 = vsel %vm31_vm0, %v10705_v57, %v2100_v10  ;;  %v10997_v57 = vpop.permute.xlu1 %3242 }
 0xe92   :  { %8204 = vmatmul.mubr.msk.f32.vlgmr.msra.gmra.mrb[56].mxu0 %vm772_vm2, %v2110_v0 }
 0xe93   :  { %8206 = vmatprep.mubr.msk.f32.mxu0 %vm772_vm2, %v2111_v40 }
 0xe96   :  { %8207 = vmatmul.mubr.msk.f32.gmra.mrb[58].mxu0 %vm772_vm2, %v2112_v41 }
 0xe97   :  { %8209 = vmatprep.mubr.msk.f32.mxu0 %vm772_vm2, %v2113_v21 }
 0xe9a   :  { %8210 = vmatmul.mubr.msk.f32.gmra.mrb[60].mxu0 %vm772_vm2, %v2114_v1 }
 0xe9b   :  { %8212 = vmatprep.mubr.msk.f32.mxu0 %vm772_vm2, %v2115_v18 }
 0xe9e   :  { %8213 = vmatmul.mubr.msk.f32.gmra.mrb[62].mxu0 %vm772_vm2, %v2116_v59 }
 0xf52   :  { %v10981_v49 = vpop.f32.mrb[48].mxu0 }
 0xf53   :  { %v10983_v15 = vpop.f32.mrb[49].mxu0 }
 0xf59   :  { %v10985_v44 = vpop.f32.mrb[50].mxu0 }
 0xf5a   :  { %v10987_v33 = vpop.f32.mrb[51].mxu0 }
 0xf5d   :  { %v10989_v20 = vpop.f32.mrb[52].mxu0 }
 0xf5e   :  { %v10991_v7 = vpop.f32.mrb[53].mxu0 }
 0xf61   :  { %v10993_v17 = vpop.f32.mrb[54].mxu0 }
 0xf62   :  { %v10995_v63 = vpop.f32.mrb[55].mxu0 }
 0xf65   :  { %v8205_v39 = vpop.f32.mrb[56].mxu0 }
 0xf66   :  { %v3227_v48 = vadd.f32 %v8205_v39, %v10003_v13  ;;  %v3147_v47 = vpop.f32.mrb[57].mxu0 }
 0xf67   :  { %v3226_v28 = vadd.f32 %v3147_v47, %v10006_v14 }
 0xf68   :  { %v11002_v56 = vadd.f32 %v10997_v57, %v3227_v48 }
 0xf69   :  { %v8208_v50 = vpop.f32.mrb[58].mxu0  ;;  %v11005_v12 = vadd.f32 %v10997_v57, %v3226_v28 }
 0xf6a   :  { %v3157_v22 = vpop.f32.mrb[59].mxu0  ;;  %v3264_v25 = vsel %vm772_vm2, %v11002_v56, 0.0  ;;  %v3229_v38 = vadd.f32 %v8208_v50, %v13008_v9 }
 0xf6b   :  { %v3228_v5 = vadd.f32 %v3157_v22, %v13009_v3  ;;  %3265 = vadd.xlane.f32.xlu1 %v3264_v25  ;;  %v3261_v13 = vsel %vm772_vm2, %v11005_v12, 0.0 }
 0xf6c   :  { %3262 = vadd.xlane.f32.xlu0 %v3261_v13  ;;  %v11018_v24 = vadd.f32 %v10997_v57, %v3229_v38 }
 0xf6d   :  { %v11014_v14 = vadd.f32 %v10997_v57, %v3228_v5  ;;  %v8211_v31 = vpop.f32.mrb[60].mxu0 }
 0xf6e   :  { %v3231_v35 = vadd.f32 %v8211_v31, %v13011_v32  ;;  %v3167_v30 = vpop.f32.mrb[61].mxu0  ;;  %13012 = vst [vmem:[#allocation3_spill] sm:$0xff] %v11018_v24  ;;  %v3270_v37 = vsel %vm772_vm2, %v11018_v24, 0.0 }
 0xf6f   :  { %13010 = vst [vmem:[#allocation2_spill] sm:$0xff] %v11014_v14  ;;  %v3230_v2 = vadd.f32 %v3167_v30, %v13013_v29  ;;  %v3267_v42 = vsel %vm772_vm2, %v11014_v14, 0.0 }
 0xf70   :  { %v11024_v52 = vadd.f32 %v10997_v57, %v3231_v35  ;;  %3268 = vadd.xlane.f32.xlu0 %v3267_v42 }
 0xf71   :  { %v8214_v34 = vpop.f32.mrb[62].mxu0  ;;  %v11030_v19 = vadd.f32 %v10997_v57, %v3230_v2 }
 0xf72   :  { %13014 = vst [vmem:[#allocation4_spill] sm:$0xff] %v11024_v52  ;;  %v3233_v26 = vadd.f32 %v8214_v34, %v13015_v23  ;;  %v3177_v11 = vpop.f32.mrb[63].mxu0  ;;  %v3276_v60 = vsel %vm772_vm2, %v11024_v52, 0.0 }
 0xf73   :  { %13016 = vst [vmem:[#allocation5_spill] sm:$0xff] %v11030_v19  ;;  %v3232_v8 = vadd.f32 %v3177_v11, %v13017_v58  ;;  %3277 = vadd.xlane.f32.xlu1 %v3276_v60  ;;  %v3273_v27 = vsel %vm772_vm2, %v11030_v19, 0.0 }
 0xf74   :  { %v11036_v36 = vadd.f32 %v10997_v57, %v3233_v26  ;;  %3271 = vadd.xlane.f32.xlu0 %v3270_v37 }
 0xf75   :  { %v11041_v0 = vadd.f32 %v10997_v57, %v3232_v8 }
 0xf76   :  { %13018 = vst [vmem:[#allocation6_spill] sm:$0xff] %v11036_v36  ;;  %v3282_v54 = vsel %vm772_vm2, %v11036_v36, 0.0 }
 0xf77   :  { %13019 = vst [vmem:[#allocation7_spill] sm:$0xff] %v11041_v0  ;;  %3283 = vadd.xlane.f32.xlu1 %v3282_v54  ;;  %v3279_v40 = vsel %vm772_vm2, %v11041_v0, 0.0 }
 0xf78   :  { %3274 = vadd.xlane.f32.xlu0 %v3273_v27 }
 0xf7c   :  { %3280 = vadd.xlane.f32.xlu0 %v3279_v40 }
 0xff8   :  { %v3266_v46 = vpop.xlane.xlu1 %3265 }
 0xff9   :  { %v3310_v41 = vmul.f32 0.03125, %v3266_v46  ;;  %v3263_v21 = vpop.xlane.xlu0 %3262 }
 0xffa   :  { %v3309_v51 = vmul.f32 0.03125, %v3263_v21  ;;  %v11098_v21 = vld [vmem:[%s12950_s2 + $0x8] sm:$0xff] }
 0xffb   :  { %v11048_v1 = vsub.f32 %v11002_v56, %v3310_v41 }
 0xffc   :  { %v11051_v18 = vsub.f32 %v11005_v12, %v3309_v51  ;;  %v11103_v51 = vld [vmem:[%s12950_s2 + $0x28] sm:$0xff] }
 0xffd   :  { %v3269_v10 = vpop.xlane.xlu0 %3268  ;;  %v3342_v59 = vmul.f32 %v11048_v1, %v11048_v1 }
 0xffe   :  { %v3311_v39 = vmul.f32 0.03125, %v3269_v10  ;;  %v3341_v48 = vmul.f32 %v11051_v18, %v11051_v18  ;;  %v8809_v10 = vpack.c.bf16 %v11103_v51, %v11098_v21 }
 0xfff   :  { %v3360_v47 = vsel %vm772_vm2, %v3342_v59, 0.0 }
0x1000   :  { %v11059_v28 = vsub.f32 %v11014_v14, %v3311_v39  ;;  %v3278_v50 = vpop.xlane.xlu1 %3277  ;;  %3361 = vadd.xlane.f32.xlu1 %v3360_v47  ;;  %v3357_v22 = vsel %vm772_vm2, %v3341_v48, 0.0  ;;  %8810 = vmatprep.subr.bf16.mxu1 %v8809_v10  ;;  %v11112_v39 = vld [vmem:[%s12950_s2 + $0x48] sm:$0xff] }
0x1001   :  { %v3314_v25 = vmul.f32 0.03125, %v3278_v50  ;;  %v3272_v9 = vpop.xlane.xlu0 %3271  ;;  %3358 = vadd.xlane.f32.xlu0 %v3357_v22  ;;  %8812 = vmatpush3.bf16.msra.mxu1 %v8809_v10  ;;  %v11117_v48 = vld [vmem:[%s12950_s2 + $0x68] sm:$0xff]  ;;  %v11126_v50 = vld [vmem:[%s12949_s4 + $0x1] ss:$0 sm:$0xff] }
0x1002   :  { %v3312_v38 = vmul.f32 0.03125, %v3272_v9  ;;  %v3343_v3 = vmul.f32 %v11059_v28, %v11059_v28  ;;  %v8813_v47 = vpack.c.bf16 %v11117_v48, %v11112_v39 }
0x1003   :  { %v11065_v5 = vsub.f32 %v11024_v52, %v3314_v25 }
0x1004   :  { %v11068_v13 = vsub.f32 %v11018_v24, %v3312_v38  ;;  %v3284_v31 = vpop.xlane.xlu1 %3283  ;;  %v3363_v32 = vsel %vm772_vm2, %v3343_v3, 0.0  ;;  %8814 = vmatprep.subr.bf16.mxu1 %v8813_v47 }
0x1005   :  { %v3316_v35 = vmul.f32 0.03125, %v3284_v31  ;;  %v3275_v30 = vpop.xlane.xlu0 %3274  ;;  %3364 = vadd.xlane.f32.xlu0 %v3363_v32  ;;  %v3346_v26 = vmul.f32 %v11065_v5, %v11065_v5  ;;  %8816 = vmatpush3.bf16.msra.mxu1 %v8813_v47 }
0x1006   :  { %v3313_v29 = vmul.f32 0.03125, %v3275_v30  ;;  %v3344_v2 = vmul.f32 %v11068_v13, %v11068_v13 }
0x1007   :  { %v11074_v42 = vsub.f32 %v11036_v36, %v3316_v35  ;;  %v3372_v37 = vsel %vm772_vm2, %v3346_v26, 0.0 }
0x1008   :  { %v11077_v34 = vsub.f32 %v11030_v19, %v3313_v29  ;;  %v3366_v23 = vsel %vm772_vm2, %v3344_v2, 0.0 }
0x1009   :  { %3367 = vadd.xlane.f32.xlu1 %v3366_v23  ;;  %v3281_v11 = vpop.xlane.xlu0 %3280  ;;  %v3348_v27 = vmul.f32 %v11074_v42, %v11074_v42 }
0x100a   :  { %v3315_v60 = vmul.f32 0.03125, %v3281_v11  ;;  %v3345_v58 = vmul.f32 %v11077_v34, %v11077_v34 }
0x100b   :  { %v3378_v46 = vsel %vm772_vm2, %v3348_v27, 0.0 }
0x100c   :  { %v11085_v8 = vsub.f32 %v11041_v0, %v3315_v60  ;;  %v3369_v54 = vsel %vm772_vm2, %v3345_v58, 0.0 }
0x100d   :  { %3373 = vadd.xlane.f32.xlu1 %v3372_v37  ;;  %3370 = vadd.xlane.f32.xlu0 %v3369_v54 }
0x100e   :  { %v3347_v40 = vmul.f32 %v11085_v8, %v11085_v8 }
0x1010   :  { %v3375_v41 = vsel %vm772_vm2, %v3347_v40, 0.0 }
0x1011   :  { %3379 = vadd.xlane.f32.xlu1 %v3378_v46  ;;  %3376 = vadd.xlane.f32.xlu0 %v3375_v41 }
0x1022   :  { %2985 = vrot.lane.b32.xlu1 %v10983_v15, %s9872_s10 }
0x1026   :  { %2987 = vrot.lane.b32.xlu1 %v10981_v49, %s9872_s10 }
0x1027   :  { %3492 = vrot.lane.b32.xlu0 %v11126_v50, %s9868_s29 }
0x102a   :  { %2989 = vrot.lane.b32.xlu1 %v10987_v33, %s9872_s10 }
0x102b   :  { %2991 = vrot.lane.b32.xlu0 %v10985_v44, %s9872_s10 }
0x102e   :  { %2993 = vrot.lane.b32.xlu1 %v10991_v7, %s9872_s10 }
0x102f   :  { %2995 = vrot.lane.b32.xlu0 %v10989_v20, %s9872_s10 }
0x1032   :  { %2997 = vrot.lane.b32.xlu1 %v10995_v63, %s9872_s10 }
0x1033   :  { %2999 = vrot.lane.b32.xlu0 %v10993_v17, %s9872_s10 }
0x108d   :  { %v3362_v49 = vpop.xlane.xlu1 %3361 }
0x108e   :  { %v3406_v15 = vmul.f32 0.03125, %v3362_v49  ;;  %v3359_v25 = vpop.xlane.xlu0 %3358 }
0x108f   :  { %v3405_v9 = vmul.f32 0.03125, %v3359_v25 }
0x1090   :  { %v3422_v33 = vadd.f32 1e-05, %v3406_v15 }
0x1091   :  { %v3421_v38 = vadd.f32 1e-05, %v3405_v9 }
0x1092   :  { %9602 = vrsqrt.f32 %v3422_v33  ;;  %v3365_v44 = vpop.xlane.xlu0 %3364 }
0x1093   :  { %9604 = vrsqrt.f32 %v3421_v38  ;;  %v3407_v3 = vmul.f32 0.03125, %v3365_v44 }
0x1095   :  { %v3423_v7 = vadd.f32 1e-05, %v3407_v3 }
0x1096   :  { %v3368_v31 = vpop.xlane.xlu1 %3367 }
0x1097   :  { %9606 = vrsqrt.f32 %v3423_v7  ;;  %v3408_v20 = vmul.f32 0.03125, %v3368_v31 }
0x1099   :  { %v3424_v32 = vadd.f32 1e-05, %v3408_v20 }
0x109a   :  { %v3374_v35 = vpop.xlane.xlu1 %3373  ;;  %v3371_v63 = vpop.xlane.xlu0 %3370 }
0x109b   :  { %9608 = vrsqrt.f32 %v3424_v32  ;;  %v3410_v30 = vmul.f32 0.03125, %v3374_v35  ;;  %v3409_v17 = vmul.f32 0.03125, %v3371_v63 }
0x109c   :  { %v9603_v29 = vpop.eup %9602 }
0x109d   :  { %v9605_v2 = vpop.eup %9604  ;;  %v3454_v23 = vmul.f32 %v9603_v29, %v11048_v1  ;;  %v3426_v26 = vadd.f32 1e-05, %v3410_v30  ;;  %v3425_v11 = vadd.f32 1e-05, %v3409_v17 }
0x109e   :  { %v3380_v60 = vpop.xlane.xlu1 %3379  ;;  %v3377_v58 = vpop.xlane.xlu0 %3376  ;;  %v3453_v37 = vmul.f32 %v9605_v2, %v11051_v18 }
0x109f   :  { %9610 = vrsqrt.f32 %v3426_v26  ;;  %v3412_v54 = vmul.f32 0.03125, %v3380_v60  ;;  %v3411_v27 = vmul.f32 0.03125, %v3377_v58  ;;  %v3477_v41 = vmul.f32 %v11126_v50, %v3454_v23 }
0x10a0   :  { %9612 = vrsqrt.f32 %v3425_v11  ;;  %v3476_v40 = vmul.f32 %v11126_v50, %v3453_v37 }
0x10a1   :  { %v9607_v46 = vpop.eup %9606  ;;  %v3428_v10 = vadd.f32 1e-05, %v3412_v54  ;;  %v3427_v47 = vadd.f32 1e-05, %v3411_v27 }
0x10a2   :  { %v2986_v49 = vpop.permute.xlu1 %2985  ;;  %v11150_v15 = vpop.permute.xlu0 %3492  ;;  %v3455_v1 = vmul.f32 %v9607_v46, %v11059_v28 }
0x10a3   :  { %9614 = vrsqrt.f32 %v3428_v10  ;;  %v3009_v18 = vsel %vm31_vm0, %v10851_v61, %v2986_v49  ;;  %v3495_v25 = vadd.f32 %v11150_v15, %v3476_v40  ;;  %v3496_v9 = vadd.f32 %v11150_v15, %v3477_v41  ;;  %v13020_v49 = vld [vmem:[#allocation8_spill] sm:$0xff] }
0x10a4   :  { %9616 = vrsqrt.f32 %v3427_v47  ;;  %8215 = vmatprep.mubr.msk.f32.mxu0 %vm772_vm2, %v3009_v18  ;;  %v3478_v33 = vmul.f32 %v11126_v50, %v3455_v1  ;;  %v13021_v18 = vld [vmem:[#allocation9_spill] sm:$0xff] }
0x10a5   :  { %v9609_v38 = vpop.eup %9608  ;;  %8235 = vmatprep.mubr.msk.f32.mxu1 %vm772_vm2, %v3495_v25 }
0x10a6   :  { %v2988_v44 = vpop.permute.xlu1 %2987  ;;  %8236 = vmatmul.mubr.msk.f32.vlgmr.msra.gmra.mrb[48].mxu1 %vm772_vm2, %v3496_v9  ;;  %v2992_v28 = vpop.permute.xlu0 %2991  ;;  %v3497_v3 = vadd.f32 %v11150_v15, %v3478_v33  ;;  %v3456_v61 = vmul.f32 %v9609_v38, %v11068_v13 }
0x10a7   :  { %v3010_v7 = vsel %vm31_vm0, %v10849_v16, %v2988_v44  ;;  %v3012_v16 = vsel %vm31_vm0, %v10853_v45, %v2992_v28 }
0x10a8   :  { %8216 = vmatmul.mubr.msk.f32.gmra.mrb[64].mxu0 %vm772_vm2, %v3010_v7  ;;  %8238 = vmatprep.mubr.msk.f32.mxu1 %vm772_vm2, %v3497_v3  ;;  %v3479_v31 = vmul.f32 %v11126_v50, %v3456_v61  ;;  %v13024_v61 = vld [vmem:[#allocation10_spill] sm:$0xff] }
0x10a9   :  { %v9611_v20 = vpop.eup %9610 }
0x10aa   :  { %v9613_v32 = vpop.eup %9612  ;;  %v2990_v35 = vpop.permute.xlu1 %2989  ;;  %v3498_v63 = vadd.f32 %v11150_v15, %v3479_v31  ;;  %v3458_v30 = vmul.f32 %v9611_v20, %v11065_v5 }
0x10ab   :  { %v3011_v17 = vsel %vm31_vm0, %v10855_v43, %v2990_v35  ;;  %v2996_v13 = vpop.permute.xlu0 %2995  ;;  %v3457_v29 = vmul.f32 %v9613_v32, %v11077_v34  ;;  %v13025_v35 = vld [vmem:[#allocation11_spill] sm:$0xff] }
0x10ac   :  { %8218 = vmatprep.mubr.msk.f32.mxu0 %vm772_vm2, %v3011_v17  ;;  %8239 = vmatmul.mubr.msk.f32.gmra.mrb[50].mxu1 %vm772_vm2, %v3498_v63  ;;  %v3481_v2 = vmul.f32 %v11126_v50, %v3458_v30  ;;  %v3014_v37 = vsel %vm31_vm0, %v10857_v4, %v2996_v13 }
0x10ad   :  { %v9615_v23 = vpop.eup %9614  ;;  %8219 = vmatmul.mubr.msk.f32.gmra.mrb[66].mxu0 %vm772_vm2, %v3012_v16  ;;  %v3480_v5 = vmul.f32 %v11126_v50, %v3457_v29 }
0x10ae   :  { %v9617_v26 = vpop.eup %9616  ;;  %v2994_v11 = vpop.permute.xlu1 %2993  ;;  %v3500_v43 = vadd.f32 %v11150_v15, %v3481_v2  ;;  %v3460_v34 = vmul.f32 %v9615_v23, %v11074_v42 }
0x10af   :  { %v3013_v45 = vsel %vm31_vm0, %v10859_v55, %v2994_v11  ;;  %v3499_v60 = vadd.f32 %v11150_v15, %v3480_v5  ;;  %v3459_v58 = vmul.f32 %v9617_v26, %v11085_v8  ;;  %v3000_v27 = vpop.permute.xlu0 %2999 }
0x10b0   :  { %8221 = vmatprep.mubr.msk.f32.mxu0 %vm772_vm2, %v3013_v45  ;;  %v3483_v54 = vmul.f32 %v11126_v50, %v3460_v34  ;;  %v3016_v46 = vsel %vm31_vm0, %v10861_v53, %v3000_v27  ;;  %v13030_v27 = vld [vmem:[#allocation12_spill] sm:$0xff] }
0x10b1   :  { %8241 = vmatprep.mubr.msk.f32.mxu1 %vm772_vm2, %v3499_v60  ;;  %8222 = vmatmul.mubr.msk.f32.gmra.mrb[68].mxu0 %vm772_vm2, %v3014_v37  ;;  %v3482_v42 = vmul.f32 %v11126_v50, %v3459_v58  ;;  %v13028_v58 = vld [vmem:[#allocation14_spill] sm:$0xff] }
0x10b2   :  { %8242 = vmatmul.mubr.msk.f32.gmra.mrb[52].mxu1 %vm772_vm2, %v3500_v43  ;;  %v2998_v55 = vpop.permute.xlu1 %2997  ;;  %v3502_v40 = vadd.f32 %v11150_v15, %v3483_v54 }
0x10b3   :  { %v3015_v8 = vsel %vm31_vm0, %v10863_v6, %v2998_v55  ;;  %v3501_v4 = vadd.f32 %v11150_v15, %v3482_v42 }
0x10b4   :  { %8224 = vmatprep.mubr.msk.f32.mxu0 %vm772_vm2, %v3015_v8 }
0x10b5   :  { %8244 = vmatprep.mubr.msk.f32.mxu1 %vm772_vm2, %v3501_v4  ;;  %8225 = vmatmul.mubr.msk.f32.gmra.mrb[70].mxu0 %vm772_vm2, %v3016_v46  ;;  %v13032_v4 = vld [vmem:[#allocation13_spill] sm:$0xff] }
0x10b6   :  { %8245 = vmatmul.mubr.msk.f32.gmra.mrb[54].mxu1 %vm772_vm2, %v3502_v40 }
0x1179   :  { %v11204_v41 = vpop.f32.mrb[48].mxu1 }
0x117a   :  { %v3629_v10 = vpop.f32.mrb[49].mxu1 }
0x117b   :  { %v8217_v47 = vpop.f32.mrb[64].mxu0  ;;  %8275 = vmatprep.mubr.msk.f32.mxu0 %vm31_vm0, %v3629_v10  ;;  %v11208_v6 = vpack.i.bf16 %v11204_v41, %v3629_v10 }
0x117c   :  { %v3235_v1 = vadd.f32 %v8217_v47, %v13020_v49  ;;  %v3187_v53 = vpop.f32.mrb[65].mxu0 }
0x117d   :  { %v3234_v25 = vadd.f32 %v3187_v53, %v13021_v18 }
0x117e   :  { %v11213_v9 = vadd.f32 %v10997_v57, %v3235_v1 }
0x117f   :  { %v11216_v33 = vadd.f32 %v10997_v57, %v3234_v25  ;;  %v11218_v38 = vpop.f32.mrb[50].mxu1 }
0x1180   :  { %13022 = vst [vmem:[#allocation8_spill] sm:$0xff] %v11213_v9  ;;  %v8220_v44 = vpop.f32.mrb[66].mxu0  ;;  %v11220_v28 = vpop.f32.mrb[51].mxu1  ;;  %v3288_v3 = vsel %vm772_vm2, %v11213_v9, 0.0 }
0x1181   :  { %13023 = vst [vmem:[#allocation9_spill] sm:$0xff] %v11216_v33  ;;  %v3237_v7 = vadd.f32 %v8220_v44, %v13024_v61  ;;  %3289 = vadd.xlane.f32.xlu0 %v3288_v3  ;;  %v3197_v31 = vpop.f32.mrb[67].mxu0  ;;  %v3285_v20 = vsel %vm772_vm2, %v11216_v33, 0.0  ;;  %v11229_v32 = vpack.i.bf16 %v11218_v38, %v11220_v28 }
0x1182   :  { %v3236_v63 = vadd.f32 %v3197_v31, %v13025_v35  ;;  %3286 = vadd.xlane.f32.xlu1 %v3285_v20 }
0x1183   :  { %v11233_v30 = vadd.f32 %v10997_v57, %v3237_v7 }
0x1184   :  { %v8223_v17 = vpop.f32.mrb[68].mxu0  ;;  %v11236_v13 = vadd.f32 %v10997_v57, %v3236_v63 }
0x1185   :  { %13026 = vst [vmem:[#allocation10_spill] sm:$0xff] %v11233_v30  ;;  %v11238_v29 = vpop.f32.mrb[52].mxu1  ;;  %v3207_v16 = vpop.f32.mrb[69].mxu0  ;;  %v3294_v2 = vsel %vm772_vm2, %v11233_v30, 0.0  ;;  %v3239_v42 = vadd.f32 %v8223_v17, %v13030_v27 }
0x1186   :  { %13027 = vst [vmem:[#allocation11_spill] sm:$0xff] %v11236_v13  ;;  %v11242_v23 = vpop.f32.mrb[53].mxu1  ;;  %3295 = vadd.xlane.f32.xlu0 %v3294_v2  ;;  %v3291_v34 = vsel %vm772_vm2, %v11236_v13, 0.0  ;;  %v3238_v37 = vadd.f32 %v3207_v16, %v13028_v58 }
0x1187   :  { %v11246_v5 = vpack.i.bf16 %v11238_v29, %v11242_v23  ;;  %v11289_v40 = vadd.f32 %v10997_v57, %v3239_v42 }
0x1188   :  { %v8226_v26 = vpop.f32.mrb[70].mxu0  ;;  %v11283_v54 = vadd.f32 %v10997_v57, %v3238_v37 }
0x1189   :  { %v11248_v11 = vpop.f32.mrb[54].mxu1  ;;  %v3217_v43 = vpop.f32.mrb[71].mxu0  ;;  %13031 = vst [vmem:[#allocation12_spill] sm:$0xff] %v11289_v40  ;;  %v3300_v8 = vsel %vm772_vm2, %v11289_v40, 0.0  ;;  %v3241_v46 = vadd.f32 %v8226_v26, %v13032_v4 }
0x118a   :  { %v11252_v45 = vpop.f32.mrb[55].mxu1  ;;  %3292 = vadd.xlane.f32.xlu0 %v3291_v34  ;;  %13029 = vst [vmem:[#allocation14_spill] sm:$0xff] %v11283_v54  ;;  %v3297_v55 = vsel %vm772_vm2, %v11283_v54, 0.0 }
0x118b   :  { %v11256_v60 = vpack.i.bf16 %v11248_v11, %v11252_v45  ;;  %v11304_v49 = vadd.f32 %v10997_v57, %v3241_v46 }
0x118d   :  { %13034 = vst [vmem:[#allocation13_spill] sm:$0xff] %v11304_v49  ;;  %v3306_v53 = vsel %vm772_vm2, %v11304_v49, 0.0 }
0x1193   :  { %9263 = vrot.lane.b32.xlu1 %v11208_v6, %s9868_s29 }
0x1197   :  { %9268 = vrot.lane.b32.xlu1 %v11208_v6, %s9869_s30 }
0x119b   :  { %4134 = vrot.lane.b32.xlu1 %v3629_v10, %s9866_s17  ;;  %v13033_v10 = vld [vmem:[#allocation15_spill] sm:$0xff] }
0x119c   :  { %v3240_v47 = vadd.f32 %v3217_v43, %v13033_v10 }
0x119e   :  { %v11307_v1 = vadd.f32 %v10997_v57, %v3240_v47 }
0x119f   :  { %4138 = vrot.lane.b32.xlu1 %v11220_v28, %s9866_s17 }
0x11a0   :  { %4136 = vrot.lane.b32.xlu0 %v11204_v41, %s9866_s17  ;;  %13035 = vst [vmem:[#allocation15_spill] sm:$0xff] %v11307_v1  ;;  %v3303_v18 = vsel %vm772_vm2, %v11307_v1, 0.0 }
0x11a3   :  { %9283 = vrot.lane.b32.xlu1 %v11246_v5, %s9868_s29 }
0x11a4   :  { %9273 = vrot.lane.b32.xlu0 %v11229_v32, %s9868_s29 }
0x11a7   :  { %9288 = vrot.lane.b32.xlu1 %v11246_v5, %s9869_s30 }
0x11a8   :  { %4140 = vrot.lane.b32.xlu0 %v11218_v38, %s9866_s17 }
0x11ac   :  { %9278 = vrot.lane.b32.xlu0 %v11229_v32, %s9869_s30 }
0x11b0   :  { %9293 = vrot.lane.b32.xlu0 %v11256_v60, %s9868_s29 }
0x11b4   :  { %9298 = vrot.lane.b32.xlu0 %v11256_v60, %s9869_s30 }
0x11cb   :  { %3298 = vadd.xlane.f32.xlu1 %v3297_v55 }
0x11d3   :  { %3301 = vadd.xlane.f32.xlu0 %v3300_v8 }
0x11dc   :  { %4142 = vrot.lane.b32.xlu1 %v11242_v23, %s9866_s17 }
0x11e0   :  { %4148 = vrot.lane.b32.xlu1 %v11248_v11, %s9866_s17 }
0x11e4   :  { %4146 = vrot.lane.b32.xlu1 %v11252_v45, %s9866_s17 }
0x11e9   :  { %4144 = vrot.lane.b32.xlu0 %v11238_v29, %s9866_s17 }
0x1208   :  { %3307 = vadd.xlane.f32.xlu0 %v3306_v53  ;;  %3304 = vadd.xlane.f32.xlu1 %v3303_v18 }
0x120e   :  { %v3290_v25 = vpop.xlane.xlu0 %3289 }
0x120f   :  { %v3318_v44 = vmul.f32 0.03125, %v3290_v25  ;;  %v3287_v3 = vpop.xlane.xlu1 %3286 }
0x1210   :  { %v3317_v61 = vmul.f32 0.03125, %v3287_v3 }
0x1211   :  { %v11314_v7 = vsub.f32 %v11213_v9, %v3318_v44 }
0x1212   :  { %v11317_v31 = vsub.f32 %v11216_v33, %v3317_v61 }
0x1213   :  { %v9264_v57 = vpop.permute.xlu1 %9263  ;;  %v3296_v20 = vpop.xlane.xlu0 %3295  ;;  %v3350_v34 = vmul.f32 %v11314_v7, %v11314_v7 }
0x1214   :  { %v9266_v35 = vunpack.i.h.bf16 %v9264_v57  ;;  %v9265_v63 = vunpack.i.l.bf16 %v9264_v57  ;;  %v3320_v17 = vmul.f32 0.03125, %v3296_v20  ;;  %v3349_v16 = vmul.f32 %v11317_v31, %v11317_v31 }
0x1215   :  { %v3384_v55 = vsel %vm772_vm2, %v3350_v34, 0.0 }
0x1216   :  { %v8817_v2 = vpack.c.bf16 %v9266_v35, %v9265_v63  ;;  %v11322_v26 = vsub.f32 %v11233_v30, %v3320_v17  ;;  %v3381_v43 = vsel %vm772_vm2, %v3349_v16, 0.0 }
0x1217   :  { %v9269_v58 = vpop.permute.xlu1 %9268  ;;  %v3293_v37 = vpop.xlane.xlu0 %3292  ;;  %3382 = vadd.xlane.f32.xlu0 %v3381_v43 }
0x1218   :  { %v3319_v27 = vmul.f32 0.03125, %v3293_v37  ;;  %8819 = vmatprep.subr.msk.bf16.mxu0 %vm10303_vm3, %v8817_v2  ;;  %v3352_v8 = vmul.f32 %v11322_v26, %v11322_v26 }
0x1219   :  { %8822 = vmatpush3.bf16.xpose.msk.msra.mxu0 %vm10303_vm3, %v8817_v2 }
0x121a   :  { %v11332_v42 = vsub.f32 %v11236_v13, %v3319_v27  ;;  %v3390_v47 = vsel %vm772_vm2, %v3352_v8, 0.0  ;;  %v9271_v27 = vunpack.i.h.bf16 %v9269_v58 }
0x121b   :  { %v4135_v4 = vpop.permute.xlu1 %4134  ;;  %v4137_v46 = vpop.permute.xlu0 %4136  ;;  %3385 = vadd.xlane.f32.xlu0 %v3384_v55  ;;  %v9270_v55 = vunpack.i.l.bf16 %v9269_v58 }
0x121c   :  { %v3351_v10 = vmul.f32 %v11332_v42, %v11332_v42 }
0x121d   :  { %v8857_v8 = vpack.c.bf16 %v9271_v27, %v9270_v55 }
0x121e   :  { %v3387_v53 = vsel %vm772_vm2, %v3351_v10, 0.0 }
0x121f   :  { %v4139_v18 = vpop.permute.xlu1 %4138  ;;  %v9274_v25 = vpop.permute.xlu0 %9273  ;;  %3391 = vadd.xlane.f32.xlu0 %v3390_v47  ;;  %3388 = vadd.xlane.f32.xlu1 %v3387_v53 }
0x1220   :  { %v9276_v44 = vunpack.i.h.bf16 %v9274_v25  ;;  %v9275_v3 = vunpack.i.l.bf16 %v9274_v25 }
0x1222   :  { %v8823_v61 = vpack.c.bf16 %v9276_v44, %v9275_v3 }
0x1223   :  { %v9284_v57 = vpop.permute.xlu1 %9283  ;;  %v4141_v20 = vpop.permute.xlu0 %4140 }
0x1224   :  { %v9286_v35 = vunpack.i.h.bf16 %v9284_v57  ;;  %v9285_v63 = vunpack.i.l.bf16 %v9284_v57  ;;  %8825 = vmatprep.subr.msk.bf16.mxu0 %vm10303_vm3, %v8823_v61 }
0x1225   :  { %8828 = vmatpush3.bf16.xpose.msk.msra.mxu0 %vm10303_vm3, %v8823_v61 }
0x1226   :  { %v8829_v17 = vpack.c.bf16 %v9286_v35, %v9285_v63 }
0x1227   :  { %v9279_v16 = vpop.permute.xlu0 %9278  ;;  %v9289_v25 = vpop.permute.xlu1 %9288 }
0x1228   :  { %8831 = vmatprep.subr.msk.bf16.mxu0 %vm10303_vm3, %v8829_v17  ;;  %v9281_v10 = vunpack.i.h.bf16 %v9279_v16  ;;  %v9280_v47 = vunpack.i.l.bf16 %v9279_v16  ;;  %v9291_v58 = vunpack.i.h.bf16 %v9289_v25  ;;  %v9290_v44 = vunpack.i.l.bf16 %v9289_v25 }
0x122a   :  { %v8863_v53 = vpack.c.bf16 %v9281_v10, %v9280_v47  ;;  %v8869_v3 = vpack.c.bf16 %v9291_v58, %v9290_v44 }
0x122b   :  { %v9294_v2 = vpop.permute.xlu0 %9293 }
0x122c   :  { %v9296_v43 = vunpack.i.h.bf16 %v9294_v2  ;;  %v9295_v34 = vunpack.i.l.bf16 %v9294_v2 }
0x122d   :  { %8834 = vmatpush3.bf16.xpose.msk.msra.mxu0 %vm10303_vm3, %v8829_v17 }
0x122e   :  { %v8835_v37 = vpack.c.bf16 %v9296_v43, %v9295_v34 }
0x1230   :  { %8837 = vmatprep.subr.msk.bf16.mxu0 %vm10303_vm3, %v8835_v37 }
0x1235   :  { %8840 = vmatpush3.bf16.xpose.msk.msra.mxu0 %vm10303_vm3, %v8835_v37 }
0x1236   :  { %8859 = vmatprep.subr.msk.bf16.mxu0 %vm10303_vm3, %v8857_v8 }
0x123c   :  { %8276 = vmatmul.mubr.msk.f32.vlgmr.msra.gmra.mrb[72].mxu0 %vm31_vm0, %v11204_v41  ;;  %v9299_v41 = vpop.permute.xlu0 %9298 }
0x123d   :  { %8278 = vmatprep.mubr.msk.f32.mxu0 %vm31_vm0, %v11220_v28  ;;  %8862 = vmatpush3.bf16.xpose.msk.msra.mxu0 %vm10303_vm3, %v8857_v8  ;;  %v9301_v28 = vunpack.i.h.bf16 %v9299_v41  ;;  %v9300_v61 = vunpack.i.l.bf16 %v9299_v41 }
0x123e   :  { %8865 = vmatprep.subr.msk.bf16.mxu0 %vm10303_vm3, %v8863_v53 }
0x1240   :  { %8279 = vmatmul.mubr.msk.f32.gmra.mrb[74].mxu0 %vm31_vm0, %v11218_v38  ;;  %v8875_v38 = vpack.c.bf16 %v9301_v28, %v9300_v61 }
0x1241   :  { %8281 = vmatprep.mubr.msk.f32.mxu0 %vm31_vm0, %v11242_v23 }
0x1244   :  { %8282 = vmatmul.mubr.msk.f32.gmra.mrb[76].mxu0 %vm31_vm0, %v11238_v29 }
0x1245   :  { %8284 = vmatprep.mubr.msk.f32.mxu0 %vm31_vm0, %v11252_v45  ;;  %8868 = vmatpush3.bf16.xpose.msk.msra.mxu0 %vm10303_vm3, %v8863_v53 }
0x1246   :  { %8871 = vmatprep.subr.msk.bf16.mxu0 %vm10303_vm3, %v8869_v3 }
0x1248   :  { %8285 = vmatmul.mubr.msk.f32.gmra.mrb[78].mxu0 %vm31_vm0, %v11248_v11 }
0x1249   :  { %8331 = vmatprep.mubr.msk.f32.mxu0 %vm31_vm0, %v4135_v4 }
0x124d   :  { %8874 = vmatpush3.bf16.xpose.msk.msra.mxu0 %vm10303_vm3, %v8869_v3 }
0x124e   :  { %8877 = vmatprep.subr.msk.bf16.mxu0 %vm10303_vm3, %v8875_v38 }
0x1255   :  { %8880 = vmatpush3.bf16.xpose.msk.msra.mxu0 %vm10303_vm3, %v8875_v38 }
0x1258   :  { %v3299_v29 = vpop.xlane.xlu1 %3298 }
0x1259   :  { %v3321_v23 = vmul.f32 0.03125, %v3299_v29 }
0x125b   :  { %v11385_v45 = vsub.f32 %v11283_v54, %v3321_v23 }
0x125c   :  { %8332 = vmatmul.mubr.msk.f32.vlgmr.msra.gmra.mrb[80].mxu0 %vm31_vm0, %v4137_v46  ;;  %v4143_v11 = vpop.permute.xlu1 %4142 }
0x125d   :  { %8334 = vmatprep.mubr.msk.f32.mxu0 %vm31_vm0, %v4139_v18  ;;  %v3353_v4 = vmul.f32 %v11385_v45, %v11385_v45 }
0x125f   :  { %v3393_v57 = vsel %vm772_vm2, %v3353_v4, 0.0 }
0x1260   :  { %8335 = vmatmul.mubr.msk.f32.gmra.mrb[82].mxu0 %vm31_vm0, %v4141_v20  ;;  %v3302_v35 = vpop.xlane.xlu0 %3301  ;;  %v4149_v63 = vpop.permute.xlu1 %4148  ;;  %3394 = vadd.xlane.f32.xlu1 %v3393_v57 }
0x1261   :  { %v3322_v17 = vmul.f32 0.03125, %v3302_v35  ;;  %8337 = vmatprep.mubr.msk.f32.mxu0 %vm31_vm0, %v4143_v11 }
0x1263   :  { %v11395_v16 = vsub.f32 %v11289_v40, %v3322_v17 }
0x1264   :  { %v4145_v46 = vpop.permute.xlu0 %4144  ;;  %v4147_v2 = vpop.permute.xlu1 %4146 }
0x1265   :  { %8338 = vmatmul.mubr.msk.f32.gmra.mrb[84].mxu0 %vm31_vm0, %v4145_v46  ;;  %v3354_v18 = vmul.f32 %v11395_v16, %v11395_v16 }
0x1266   :  { %8340 = vmatprep.mubr.msk.f32.mxu0 %vm31_vm0, %v4147_v2 }
0x1267   :  { %v3396_v20 = vsel %vm772_vm2, %v3354_v18, 0.0 }
0x1268   :  { %3397 = vadd.xlane.f32.xlu0 %v3396_v20 }
0x1269   :  { %8341 = vmatmul.mubr.msk.f32.gmra.mrb[86].mxu0 %vm31_vm0, %v4149_v63 }
0x1295   :  { %v3308_v43 = vpop.xlane.xlu0 %3307  ;;  %v3305_v34 = vpop.xlane.xlu1 %3304 }
0x1296   :  { %v3324_v37 = vmul.f32 0.03125, %v3308_v43  ;;  %v3323_v27 = vmul.f32 0.03125, %v3305_v34 }
0x1298   :  { %v11404_v55 = vsub.f32 %v11304_v49, %v3324_v37  ;;  %v11407_v8 = vsub.f32 %v11307_v1, %v3323_v27 }
0x129a   :  { %v3356_v10 = vmul.f32 %v11404_v55, %v11404_v55  ;;  %v3355_v47 = vmul.f32 %v11407_v8, %v11407_v8 }
0x129c   :  { %v3402_v53 = vsel %vm772_vm2, %v3356_v10, 0.0  ;;  %v3399_v25 = vsel %vm772_vm2, %v3355_v47, 0.0 }
0x129d   :  { %3403 = vadd.xlane.f32.xlu0 %v3402_v53  ;;  %3400 = vadd.xlane.f32.xlu1 %v3399_v25 }
0x12a4   :  { %v3383_v58 = vpop.xlane.xlu0 %3382 }
0x12a5   :  { %v3413_v44 = vmul.f32 0.03125, %v3383_v58 }
0x12a7   :  { %v3429_v3 = vadd.f32 1e-05, %v3413_v44 }
0x12a8   :  { %v3386_v41 = vpop.xlane.xlu0 %3385 }
0x12a9   :  { %9618 = vrsqrt.f32 %v3429_v3  ;;  %v3414_v28 = vmul.f32 0.03125, %v3386_v41 }
0x12ab   :  { %v3430_v61 = vadd.f32 1e-05, %v3414_v28 }
0x12ac   :  { %v3392_v38 = vpop.xlane.xlu0 %3391  ;;  %v3389_v29 = vpop.xlane.xlu1 %3388 }
0x12ad   :  { %9620 = vrsqrt.f32 %v3430_v61  ;;  %v3416_v23 = vmul.f32 0.03125, %v3392_v38  ;;  %v3415_v11 = vmul.f32 0.03125, %v3389_v29 }
0x12ae   :  { %9303 = vrot.lane.b32.xlu1 %v11208_v6, %s9867_s20 }
0x12af   :  { %v3432_v4 = vadd.f32 1e-05, %v3416_v23  ;;  %v3431_v57 = vadd.f32 1e-05, %v3415_v11 }
0x12b1   :  { %9622 = vrsqrt.f32 %v3432_v4 }
0x12b2   :  { %9624 = vrsqrt.f32 %v3431_v57  ;;  %9313 = vrot.lane.b32.xlu1 %v11246_v5, %s9867_s20 }
0x12b3   :  { %v9619_v35 = vpop.eup %9618  ;;  %9308 = vrot.lane.b32.xlu0 %v11229_v32, %s9867_s20 }
0x12b4   :  { %v3461_v63 = vmul.f32 %v9619_v35, %v11317_v31 }
0x12b6   :  { %v3484_v17 = vmul.f32 %v11126_v50, %v3461_v63 }
0x12b7   :  { %v9621_v46 = vpop.eup %9620 }
0x12b8   :  { %v3503_v2 = vadd.f32 %v11150_v15, %v3484_v17  ;;  %v3462_v18 = vmul.f32 %v9621_v46, %v11314_v7 }
0x12ba   :  { %8247 = vmatprep.mubr.msk.f32.mxu1 %vm772_vm2, %v3503_v2  ;;  %v3485_v20 = vmul.f32 %v11126_v50, %v3462_v18 }
0x12bb   :  { %v9623_v43 = vpop.eup %9622 }
0x12bc   :  { %v9625_v34 = vpop.eup %9624  ;;  %v3504_v37 = vadd.f32 %v11150_v15, %v3485_v20  ;;  %v3464_v27 = vmul.f32 %v9623_v43, %v11322_v26 }
0x12bd   :  { %v3463_v10 = vmul.f32 %v9625_v34, %v11332_v42 }
0x12be   :  { %8248 = vmatmul.mubr.msk.f32.gmra.mrb[56].mxu1 %vm772_vm2, %v3504_v37  ;;  %v3487_v31 = vmul.f32 %v11126_v50, %v3464_v27 }
0x12bf   :  { %v3486_v47 = vmul.f32 %v11126_v50, %v3463_v10 }
0x12c0   :  { %v3506_v7 = vadd.f32 %v11150_v15, %v3487_v31 }
0x12c1   :  { %v3505_v53 = vadd.f32 %v11150_v15, %v3486_v47 }
0x12c3   :  { %8250 = vmatprep.mubr.msk.f32.mxu1 %vm772_vm2, %v3505_v53 }
0x12c4   :  { %8251 = vmatmul.mubr.msk.f32.gmra.mrb[58].mxu1 %vm772_vm2, %v3506_v7 }
0x12ed   :  { %v3395_v25 = vpop.xlane.xlu1 %3394 }
0x12ee   :  { %v3417_v58 = vmul.f32 0.03125, %v3395_v25 }
0x12f0   :  { %v3433_v44 = vadd.f32 1e-05, %v3417_v58 }
0x12f2   :  { %9626 = vrsqrt.f32 %v3433_v44 }
0x12f5   :  { %v3398_v26 = vpop.xlane.xlu0 %3397 }
0x12f6   :  { %v3418_v42 = vmul.f32 0.03125, %v3398_v26 }
0x12f8   :  { %v3434_v3 = vadd.f32 1e-05, %v3418_v42 }
0x12fa   :  { %9628 = vrsqrt.f32 %v3434_v3 }
0x12fc   :  { %v9627_v41 = vpop.eup %9626 }
0x12fd   :  { %v3465_v28 = vmul.f32 %v9627_v41, %v11385_v45 }
0x12ff   :  { %v3488_v61 = vmul.f32 %v11126_v50, %v3465_v28 }
0x1301   :  { %v3507_v38 = vadd.f32 %v11150_v15, %v3488_v61 }
0x1303   :  { %8253 = vmatprep.mubr.msk.f32.mxu1 %vm772_vm2, %v3507_v38 }
0x1304   :  { %v9629_v29 = vpop.eup %9628 }
0x1305   :  { %v3466_v23 = vmul.f32 %v9629_v29, %v11395_v16 }
0x1307   :  { %v3489_v11 = vmul.f32 %v11126_v50, %v3466_v23 }
0x1309   :  { %v3508_v4 = vadd.f32 %v11150_v15, %v3489_v11 }
0x130b   :  { %8254 = vmatmul.mubr.msk.f32.gmra.mrb[60].mxu1 %vm772_vm2, %v3508_v4 }
0x130f   :  { %v11445_v57 = vpop.f32.mrb[72].mxu0 }
0x1310   :  { %v11447_v35 = vpop.f32.mrb[73].mxu0  ;;  %v3872_v45 = vsel %vm113_vm1, %v11445_v57, -inf }
0x1311   :  { %3873 = vmax.xlane.f32.xlu0 %v3872_v45  ;;  %v3869_v63 = vsel %vm113_vm1, %v11447_v35, -inf }
0x1312   :  { %3870 = vmax.xlane.f32.xlu1 %v3869_v63 }
0x1313   :  { %v11453_v17 = vpop.f32.mrb[74].mxu0 }
0x1314   :  { %v11455_v16 = vpop.f32.mrb[75].mxu0  ;;  %v3878_v46 = vsel %vm113_vm1, %v11453_v17, -inf }
0x1315   :  { %3879 = vmax.xlane.f32.xlu0 %v3878_v46  ;;  %v3875_v2 = vsel %vm113_vm1, %v11455_v16, -inf }
0x1316   :  { %3876 = vmax.xlane.f32.xlu1 %v3875_v2 }
0x1317   :  { %v11461_v18 = vpop.f32.mrb[76].mxu0 }
0x1318   :  { %v11463_v20 = vpop.f32.mrb[77].mxu0  ;;  %v3884_v43 = vsel %vm113_vm1, %v11461_v18, -inf }
0x1319   :  { %3885 = vmax.xlane.f32.xlu0 %v3884_v43  ;;  %v3881_v34 = vsel %vm113_vm1, %v11463_v20, -inf }
0x131a   :  { %3882 = vmax.xlane.f32.xlu1 %v3881_v34 }
0x131b   :  { %v11469_v37 = vpop.f32.mrb[78].mxu0 }
0x131c   :  { %v11471_v27 = vpop.f32.mrb[79].mxu0  ;;  %v3890_v10 = vsel %vm113_vm1, %v11469_v37, -inf }
0x131d   :  { %3891 = vmax.xlane.f32.xlu0 %v3890_v10  ;;  %v3887_v31 = vsel %vm113_vm1, %v11471_v27, -inf }
0x131e   :  { %3888 = vmax.xlane.f32.xlu1 %v3887_v31 }
0x132a   :  { %v3404_v47 = vpop.xlane.xlu0 %3403  ;;  %v3401_v7 = vpop.xlane.xlu1 %3400 }
0x132b   :  { %v3420_v53 = vmul.f32 0.03125, %v3404_v47  ;;  %v3419_v25 = vmul.f32 0.03125, %v3401_v7 }
0x132d   :  { %v3436_v58 = vadd.f32 1e-05, %v3420_v53  ;;  %v3435_v44 = vadd.f32 1e-05, %v3419_v25 }
0x132e   :  { %v9309_v26 = vpop.permute.xlu0 %9308  ;;  %v9304_v42 = vpop.permute.xlu1 %9303 }
0x132f   :  { %9630 = vrsqrt.f32 %v3436_v58  ;;  %v9311_v3 = vunpack.i.h.bf16 %v9309_v26  ;;  %v9306_v41 = vunpack.i.h.bf16 %v9304_v42  ;;  %v11477_v28 = vpop.f32.mrb[80].mxu0  ;;  %9323 = vrot.lane.b32.xlu1 %v11208_v6, %s9870_s8  ;;  %v9310_v61 = vunpack.i.l.bf16 %v9309_v26 }
0x1330   :  { %9632 = vrsqrt.f32 %v3435_v44  ;;  %v9305_v38 = vunpack.i.l.bf16 %v9304_v42  ;;  %v11481_v29 = vpop.f32.mrb[81].mxu0  ;;  %v4306_v23 = vsel %vm113_vm1, %v11477_v28, -inf }
0x1331   :  { %4307 = vmax.xlane.f32.xlu0 %v4306_v23  ;;  %v8845_v2 = vpack.c.bf16 %v9311_v3, %v9310_v61 }
0x1332   :  { %v9314_v11 = vpop.permute.xlu1 %9313  ;;  %v8841_v4 = vpack.c.bf16 %v9306_v41, %v9305_v38 }
0x1333   :  { %v11485_v45 = vpop.f32.mrb[82].mxu0  ;;  %9328 = vrot.lane.b32.xlu1 %v11229_v32, %s9870_s8  ;;  %v9316_v63 = vunpack.i.h.bf16 %v9314_v11  ;;  %v9315_v46 = vunpack.i.l.bf16 %v9314_v11 }
0x1334   :  { %8842 = vmatprep.subr.bf16.mxu1 %v8841_v4  ;;  %v11489_v6 = vpop.f32.mrb[83].mxu0  ;;  %v4312_v3 = vsel %vm113_vm1, %v11485_v45, -inf }
0x1335   :  { %8844 = vmatpush3.bf16.msra.mxu1 %v8841_v4  ;;  %v8849_v34 = vpack.c.bf16 %v9316_v63, %v9315_v46 }
0x1336   :  { %8846 = vmatprep.subr.bf16.mxu1 %v8845_v2 }
0x1338   :  { %v11491_v43 = vpop.f32.mrb[84].mxu0 }
0x1339   :  { %v9631_v10 = vpop.eup %9630  ;;  %8848 = vmatpush3.bf16.msra.mxu1 %v8845_v2  ;;  %v11493_v31 = vpop.f32.mrb[85].mxu0  ;;  %v4318_v41 = vsel %vm113_vm1, %v11491_v43, -inf }
0x133a   :  { %v9633_v47 = vpop.eup %9632  ;;  %8850 = vmatprep.subr.bf16.mxu1 %v8849_v34  ;;  %v3468_v7 = vmul.f32 %v9631_v10, %v11404_v55  ;;  %v4303_v55 = vsel %vm113_vm1, %v11481_v29, -inf }
0x133b   :  { %v3467_v32 = vmul.f32 %v9633_v47, %v11407_v8  ;;  %v4309_v8 = vsel %vm113_vm1, %v11489_v6, -inf }
0x133c   :  { %v11497_v53 = vpop.f32.mrb[86].mxu0  ;;  %v3491_v25 = vmul.f32 %v11126_v50, %v3468_v7 }
0x133d   :  { %8852 = vmatpush3.bf16.msra.mxu1 %v8849_v34  ;;  %v11500_v58 = vpop.f32.mrb[87].mxu0  ;;  %v3490_v44 = vmul.f32 %v11126_v50, %v3467_v32  ;;  %v4315_v50 = vsel %vm113_vm1, %v11493_v31, -inf  ;;  %v4324_v61 = vsel %vm113_vm1, %v11497_v53, -inf }
0x133e   :  { %v3510_v26 = vadd.f32 %v11150_v15, %v3491_v25 }
0x133f   :  { %v3509_v42 = vadd.f32 %v11150_v15, %v3490_v44  ;;  %v4321_v15 = vsel %vm113_vm1, %v11500_v58, -inf }
0x1341   :  { %8256 = vmatprep.mubr.msk.f32.mxu1 %vm772_vm2, %v3509_v42 }
0x1342   :  { %8257 = vmatmul.mubr.msk.f32.gmra.mrb[62].mxu1 %vm772_vm2, %v3510_v26 }
0x1347   :  { %9318 = vrot.lane.b32.xlu0 %v11256_v60, %s9867_s20 }
0x1357   :  { %4304 = vmax.xlane.f32.xlu1 %v4303_v55 }
0x135b   :  { %4310 = vmax.xlane.f32.xlu1 %v4309_v8 }
0x135f   :  { %4316 = vmax.xlane.f32.xlu1 %v4315_v50 }
0x1363   :  { %4322 = vmax.xlane.f32.xlu1 %v4321_v15 }
0x1366   :  { %4313 = vmax.xlane.f32.xlu0 %v4312_v3 }
0x136a   :  { %4319 = vmax.xlane.f32.xlu0 %v4318_v41 }
0x136e   :  { %4325 = vmax.xlane.f32.xlu0 %v4324_v61 }
0x1374   :  { %9333 = vrot.lane.b32.xlu1 %v11246_v5, %s9870_s8 }
0x1391   :  { %v11525_v38 = vpop.f32.mrb[56].mxu1 }
0x1392   :  { %v11527_v23 = vpop.f32.mrb[57].mxu1 }
0x1393   :  { %v11531_v11 = vpack.i.bf16 %v11525_v38, %v11527_v23 }
0x1397   :  { %v11533_v4 = vpop.f32.mrb[58].mxu1 }
0x1398   :  { %v11535_v63 = vpop.f32.mrb[59].mxu1 }
0x1399   :  { %v11539_v46 = vpack.i.bf16 %v11533_v4, %v11535_v63 }
0x139e   :  { %v3874_v2 = vpop.xlane.xlu0 %3873 }
0x139f   :  { %v3894_v34 = vsub.f32 %v11445_v57, %v3874_v2  ;;  %v3871_v5 = vpop.xlane.xlu1 %3870 }
0x13a0   :  { %v3893_v10 = vsub.f32 %v11447_v35, %v3871_v5 }
0x13a1   :  { %v3903_v47 = vmul.f32 1.442695, %v3894_v34 }
0x13a2   :  { %v3901_v7 = vmul.f32 1.442695, %v3893_v10  ;;  %v3880_v32 = vpop.xlane.xlu0 %3879 }
0x13a3   :  { %9634 = vpow2.f32 %v3903_v47  ;;  %v3896_v25 = vsub.f32 %v11453_v17, %v3880_v32  ;;  %v3877_v44 = vpop.xlane.xlu1 %3876 }
0x13a4   :  { %9636 = vpow2.f32 %v3901_v7  ;;  %v3895_v26 = vsub.f32 %v11455_v16, %v3877_v44 }
0x13a5   :  { %v3907_v42 = vmul.f32 1.442695, %v3896_v25 }
0x13a6   :  { %v3905_v55 = vmul.f32 1.442695, %v3895_v26  ;;  %v3886_v8 = vpop.xlane.xlu0 %3885 }
0x13a7   :  { %9638 = vpow2.f32 %v3907_v42  ;;  %v3898_v50 = vsub.f32 %v11461_v18, %v3886_v8  ;;  %v3883_v57 = vpop.xlane.xlu1 %3882 }
0x13a8   :  { %9640 = vpow2.f32 %v3905_v55  ;;  %v3897_v35 = vsub.f32 %v11463_v20, %v3883_v57 }
0x13a9   :  { %v3911_v15 = vmul.f32 1.442695, %v3898_v50 }
0x13aa   :  { %v3909_v3 = vmul.f32 1.442695, %v3897_v35  ;;  %v3892_v41 = vpop.xlane.xlu0 %3891 }
0x13ab   :  { %9642 = vpow2.f32 %v3911_v15  ;;  %v3900_v17 = vsub.f32 %v11469_v37, %v3892_v41  ;;  %v3889_v61 = vpop.xlane.xlu1 %3888 }
0x13ac   :  { %9644 = vpow2.f32 %v3909_v3  ;;  %v3899_v16 = vsub.f32 %v11471_v27, %v3889_v61 }
0x13ad   :  { %v11549_v2 = vpop.eup %9634  ;;  %v3915_v34 = vmul.f32 1.442695, %v3900_v17 }
0x13ae   :  { %v11551_v5 = vpop.eup %9636  ;;  %v3913_v18 = vmul.f32 1.442695, %v3899_v16  ;;  %v3920_v10 = vsel %vm113_vm1, %v11549_v2, 0.0 }
0x13af   :  { %9646 = vpow2.f32 %v3915_v34  ;;  %3921 = vadd.xlane.f32.xlu0 %v3920_v10  ;;  %v3917_v20 = vsel %vm113_vm1, %v11551_v5, 0.0  ;;  %v9324_v35 = vpop.permute.xlu1 %9323 }
0x13b0   :  { %3918 = vadd.xlane.f32.xlu1 %v3917_v20  ;;  %9648 = vpow2.f32 %v3913_v18  ;;  %v9326_v41 = vunpack.i.h.bf16 %v9324_v35  ;;  %v9325_v61 = vunpack.i.l.bf16 %v9324_v35 }
0x13b1   :  { %v11557_v37 = vpop.eup %9638 }
0x13b2   :  { %v11559_v47 = vpop.eup %9640  ;;  %v3926_v27 = vsel %vm113_vm1, %v11557_v37, 0.0  ;;  %v11582_v10 = vpack.c.bf16 %v9326_v41, %v9325_v61 }
0x13b3   :  { %3927 = vadd.xlane.f32.xlu0 %v3926_v27  ;;  %v3923_v7 = vsel %vm113_vm1, %v11559_v47, 0.0 }
0x13b4   :  { %3924 = vadd.xlane.f32.xlu1 %v3923_v7 }
0x13b5   :  { %v11565_v32 = vpop.eup %9642 }
0x13b6   :  { %v11567_v25 = vpop.eup %9644  ;;  %v3932_v44 = vsel %vm113_vm1, %v11565_v32, 0.0 }
0x13b7   :  { %3933 = vadd.xlane.f32.xlu0 %v3932_v44  ;;  %v3929_v26 = vsel %vm113_vm1, %v11567_v25, 0.0  ;;  %v11593_v44 = vpop.permute.xlu1 %9328 }
0x13b8   :  { %3930 = vadd.xlane.f32.xlu1 %v3929_v26  ;;  %v9331_v0 = vunpack.i.h.bf16 %v11593_v44  ;;  %v9330_v19 = vunpack.i.l.bf16 %v11593_v44 }
0x13b9   :  { %v11573_v42 = vpop.eup %9646 }
0x13ba   :  { %v3938_v55 = vsel %vm113_vm1, %v11573_v42, 0.0  ;;  %v11577_v8 = vpop.eup %9648  ;;  %v8885_v44 = vpack.c.bf16 %v9331_v0, %v9330_v19 }
0x13bb   :  { %3939 = vadd.xlane.f32.xlu0 %v3938_v55  ;;  %v3935_v57 = vsel %vm113_vm1, %v11577_v8, 0.0 }
0x13be   :  { %v4308_v50 = vpop.xlane.xlu0 %4307 }
0x13bf   :  { %v4328_v15 = vsub.f32 %v11477_v28, %v4308_v50  ;;  %3936 = vadd.xlane.f32.xlu0 %v3935_v57 }
0x13c1   :  { %v4337_v3 = vmul.f32 1.442695, %v4328_v15 }
0x13c2   :  { %v9319_v17 = vpop.permute.xlu0 %9318 }
0x13c3   :  { %9650 = vpow2.f32 %v4337_v3  ;;  %v9321_v16 = vunpack.i.h.bf16 %v9319_v17  ;;  %v9320_v34 = vunpack.i.l.bf16 %v9319_v17 }
0x13c5   :  { %v8853_v18 = vpack.c.bf16 %v9321_v16, %v9320_v34 }
0x13c7   :  { %8854 = vmatprep.subr.bf16.mxu1 %v8853_v18 }
0x13c8   :  { %8856 = vmatpush3.bf16.msra.mxu1 %v8853_v18 }
0x13c9   :  { %8882 = vmatprep.subr.bf16.mxu1 %v11582_v10 }
0x13cd   :  { %v11585_v20 = vpop.eup %9650 }
0x13ce   :  { %v4354_v28 = vsel %vm113_vm1, %v11585_v20, 0.0 }
0x13cf   :  { %4355 = vadd.xlane.f32.xlu0 %v4354_v28 }
0x13de   :  { %v11589_v27 = vpop.f32.mrb[60].mxu1 }
0x13df   :  { %v11591_v7 = vpop.f32.mrb[61].mxu1 }
0x13e0   :  { %v11597_v26 = vpack.i.bf16 %v11589_v27, %v11591_v7 }
0x13e4   :  { %v4305_v55 = vpop.xlane.xlu1 %4304 }
0x13e5   :  { %v4327_v50 = vsub.f32 %v11481_v29, %v4305_v55  ;;  %9338 = vrot.lane.b32.xlu0 %v11256_v60, %s9870_s8 }
0x13e7   :  { %v4335_v57 = vmul.f32 1.442695, %v4327_v50 }
0x13e8   :  { %v4311_v35 = vpop.xlane.xlu1 %4310 }
0x13e9   :  { %9652 = vpow2.f32 %v4335_v57  ;;  %v4329_v15 = vsub.f32 %v11489_v6, %v4311_v35 }
0x13eb   :  { %v4339_v3 = vmul.f32 1.442695, %v4329_v15 }
0x13ec   :  { %v4317_v17 = vpop.xlane.xlu1 %4316 }
0x13ed   :  { %9654 = vpow2.f32 %v4339_v3  ;;  %v4331_v29 = vsub.f32 %v11493_v31, %v4317_v17 }
0x13ef   :  { %v4343_v50 = vmul.f32 1.442695, %v4331_v29 }
0x13f3   :  { %v11603_v41 = vpop.eup %9652  ;;  %v4314_v61 = vpop.xlane.xlu0 %4313 }
0x13f4   :  { %v4330_v16 = vsub.f32 %v11485_v45, %v4314_v61  ;;  %v4351_v34 = vsel %vm113_vm1, %v11603_v41, 0.0  ;;  %v4323_v45 = vpop.xlane.xlu1 %4322 }
0x13f5   :  { %4352 = vadd.xlane.f32.xlu1 %v4351_v34  ;;  %v4333_v31 = vsub.f32 %v11500_v58, %v4323_v45 }
0x13f6   :  { %v4341_v60 = vmul.f32 1.442695, %v4330_v16 }
0x13f7   :  { %v11609_v18 = vpop.eup %9654  ;;  %v4320_v28 = vpop.xlane.xlu0 %4319  ;;  %v4347_v61 = vmul.f32 1.442695, %v4333_v31 }
0x13f8   :  { %9656 = vpow2.f32 %v4341_v60  ;;  %v4332_v6 = vsub.f32 %v11491_v43, %v4320_v28  ;;  %v4357_v55 = vsel %vm113_vm1, %v11609_v18, 0.0  ;;  %v9334_v45 = vpop.permute.xlu1 %9333 }
0x13f9   :  { %4358 = vadd.xlane.f32.xlu1 %v4357_v55 }
0x13fa   :  { %v4345_v57 = vmul.f32 1.442695, %v4332_v6 }
0x13fb   :  { %v4326_v35 = vpop.xlane.xlu0 %4325 }
0x13fc   :  { %9658 = vpow2.f32 %v4345_v57  ;;  %v4334_v15 = vsub.f32 %v11497_v53, %v4326_v35 }
0x13fd   :  { %9660 = vpow2.f32 %v4343_v50 }
0x13fe   :  { %v4349_v3 = vmul.f32 1.442695, %v4334_v15 }
0x1400   :  { %9662 = vpow2.f32 %v4349_v3 }
0x1401   :  { %9664 = vpow2.f32 %v4347_v61 }
0x1402   :  { %v11616_v17 = vpop.eup %9656 }
0x1403   :  { %v4360_v43 = vsel %vm113_vm1, %v11616_v17, 0.0 }
0x1404   :  { %4361 = vadd.xlane.f32.xlu0 %v4360_v43 }
0x1406   :  { %v11620_v16 = vpop.eup %9658 }
0x1407   :  { %v4366_v34 = vsel %vm113_vm1, %v11620_v16, 0.0  ;;  %v11624_v29 = vpop.eup %9660 }
0x1408   :  { %4367 = vadd.xlane.f32.xlu1 %v4366_v34  ;;  %v4363_v53 = vsel %vm113_vm1, %v11624_v29, 0.0 }
0x140a   :  { %v11628_v58 = vpop.eup %9662 }
0x140b   :  { %v4372_v60 = vsel %vm113_vm1, %v11628_v58, 0.0  ;;  %v11632_v28 = vpop.eup %9664 }
0x140c   :  { %4364 = vadd.xlane.f32.xlu1 %v4363_v53  ;;  %v4369_v6 = vsel %vm113_vm1, %v11632_v28, 0.0 }
0x1410   :  { %4373 = vadd.xlane.f32.xlu1 %v4372_v60 }
0x1414   :  { %4370 = vadd.xlane.f32.xlu1 %v4369_v6 }
0x1415   :  { %v11636_v55 = vpop.f32.mrb[62].mxu1 }
0x1416   :  { %v11638_v50 = vpop.f32.mrb[63].mxu1 }
0x1417   :  { %v11642_v57 = vpack.i.bf16 %v11636_v55, %v11638_v50 }
0x141a   :  { %9348 = vrot.lane.b32.xlu0 %v11539_v46, %s9868_s29 }
0x141e   :  { %9353 = vrot.lane.b32.xlu0 %v11597_v26, %s9868_s29 }
0x1422   :  { %9358 = vrot.lane.b32.xlu0 %v11642_v57, %s9868_s29 }
0x1425   :  { %9343 = vrot.lane.b32.xlu1 %v11531_v11, %s9868_s29 }
0x143c   :  { %v3922_v35 = vpop.xlane.xlu0 %3921 }
0x143d   :  { %9666 = vrcp.f32 %v3922_v35  ;;  %v3919_v15 = vpop.xlane.xlu1 %3918 }
0x143e   :  { %9668 = vrcp.f32 %v3919_v15 }
0x1440   :  { %v3928_v31 = vpop.xlane.xlu0 %3927 }
0x1441   :  { %9670 = vrcp.f32 %v3928_v31  ;;  %v3925_v3 = vpop.xlane.xlu1 %3924 }
0x1442   :  { %9672 = vrcp.f32 %v3925_v3 }
0x1444   :  { %v3934_v61 = vpop.xlane.xlu0 %3933 }
0x1445   :  { %9674 = vrcp.f32 %v3934_v61  ;;  %v3931_v43 = vpop.xlane.xlu1 %3930 }
0x1446   :  { %9676 = vrcp.f32 %v3931_v43 }
0x1447   :  { %v9667_v34 = vpop.eup %9666 }
0x1448   :  { %v9669_v53 = vpop.eup %9668  ;;  %v3950_v60 = vmul.f32 %v9667_v34, %v3922_v35  ;;  %v3940_v6 = vpop.xlane.xlu0 %3939 }
0x1449   :  { %v3949_v22 = vmul.f32 %v9669_v53, %v3919_v15  ;;  %9678 = vrcp.f32 %v3940_v6 }
0x144a   :  { %v3958_v59 = vsub.f32 2.0, %v3950_v60 }
0x144b   :  { %v9671_v1 = vpop.eup %9670  ;;  %v3957_v49 = vsub.f32 2.0, %v3949_v22 }
0x144c   :  { %v9673_v54 = vpop.eup %9672  ;;  %v3966_v40 = vmul.f32 %v9667_v34, %v3958_v59  ;;  %v3952_v13 = vmul.f32 %v9671_v1, %v3928_v31  ;;  %v3937_v30 = vpop.xlane.xlu0 %3936 }
0x144d   :  { %v3965_v33 = vmul.f32 %v9669_v53, %v3957_v49  ;;  %v3951_v9 = vmul.f32 %v9673_v54, %v3925_v3  ;;  %9680 = vrcp.f32 %v3937_v30  ;;  %v9336_v49 = vunpack.i.h.bf16 %v9334_v45 }
0x144e   :  { %v3960_v36 = vsub.f32 2.0, %v3952_v13  ;;  %v3974_v60 = vmul.f32 %v11549_v2, %v3966_v40  ;;  %v9335_v3 = vunpack.i.l.bf16 %v9334_v45 }
0x144f   :  { %v9675_v24 = vpop.eup %9674  ;;  %v3959_v35 = vsub.f32 2.0, %v3951_v9  ;;  %v3973_v15 = vmul.f32 %v11551_v5, %v3965_v33 }
0x1450   :  { %v9677_v52 = vpop.eup %9676  ;;  %v3968_v22 = vmul.f32 %v9671_v1, %v3960_v36  ;;  %v3954_v14 = vmul.f32 %v9675_v24, %v3934_v61 }
0x1451   :  { %v3967_v59 = vmul.f32 %v9673_v54, %v3959_v35  ;;  %v3953_v31 = vmul.f32 %v9677_v52, %v3931_v43  ;;  %8303 = vmatprep.mubr.msk.f32.mxu1 %vm113_vm1, %v3973_v15 }
0x1452   :  { %v3962_v34 = vsub.f32 2.0, %v3954_v14  ;;  %8304 = vmatmul.mubr.msk.f32.vlgmr.msra.gmra.mrb[64].mxu1 %vm113_vm1, %v3974_v60  ;;  %v3976_v36 = vmul.f32 %v11557_v37, %v3968_v22  ;;  %v8889_v14 = vpack.c.bf16 %v9336_v49, %v9335_v3 }
0x1453   :  { %v9679_v13 = vpop.eup %9678  ;;  %v3961_v53 = vsub.f32 2.0, %v3953_v31  ;;  %8884 = vmatpush3.bf16.msra.mxu1 %v11582_v10  ;;  %v3975_v9 = vmul.f32 %v11559_v47, %v3967_v59 }
0x1454   :  { %v3970_v33 = vmul.f32 %v9675_v24, %v3962_v34  ;;  %v3956_v40 = vmul.f32 %v9679_v13, %v3940_v6  ;;  %8886 = vmatprep.subr.bf16.mxu1 %v8885_v44 }
0x1455   :  { %v3969_v54 = vmul.f32 %v9677_v52, %v3961_v53  ;;  %8306 = vmatprep.mubr.msk.f32.mxu1 %vm113_vm1, %v3975_v9 }
0x1456   :  { %8307 = vmatmul.mubr.msk.f32.gmra.mrb[66].mxu1 %vm113_vm1, %v3976_v36  ;;  %v3964_v2 = vsub.f32 2.0, %v3956_v40  ;;  %v3978_v5 = vmul.f32 %v11565_v32, %v3970_v33 }
0x1457   :  { %v9681_v1 = vpop.eup %9680  ;;  %8888 = vmatpush3.bf16.msra.mxu1 %v8885_v44  ;;  %v3977_v19 = vmul.f32 %v11567_v25, %v3969_v54 }
0x1458   :  { %v3955_v0 = vmul.f32 %v9681_v1, %v3937_v30  ;;  %8890 = vmatprep.subr.bf16.mxu1 %v8889_v14  ;;  %v3972_v52 = vmul.f32 %v9679_v13, %v3964_v2 }
0x1459   :  { %8309 = vmatprep.mubr.msk.f32.mxu1 %vm113_vm1, %v3977_v19 }
0x145a   :  { %v3963_v24 = vsub.f32 2.0, %v3955_v0  ;;  %8310 = vmatmul.mubr.msk.f32.gmra.mrb[68].mxu1 %vm113_vm1, %v3978_v5  ;;  %v3980_v45 = vmul.f32 %v11573_v42, %v3972_v52 }
0x145b   :  { %8892 = vmatpush3.bf16.msra.mxu1 %v8889_v14 }
0x145c   :  { %v3971_v37 = vmul.f32 %v9681_v1, %v3963_v24  ;;  %v4356_v47 = vpop.xlane.xlu0 %4355 }
0x145d   :  { %9682 = vrcp.f32 %v4356_v47 }
0x145e   :  { %v3979_v10 = vmul.f32 %v11577_v8, %v3971_v37 }
0x1460   :  { %v9339_v61 = vpop.permute.xlu0 %9338  ;;  %8312 = vmatprep.mubr.msk.f32.mxu1 %vm113_vm1, %v3979_v10 }
0x1461   :  { %v9341_v30 = vunpack.i.h.bf16 %v9339_v61  ;;  %v9340_v25 = vunpack.i.l.bf16 %v9339_v61  ;;  %8313 = vmatmul.mubr.msk.f32.gmra.mrb[70].mxu1 %vm113_vm1, %v3980_v45 }
0x1463   :  { %v8893_v32 = vpack.c.bf16 %v9341_v30, %v9340_v25 }
0x1465   :  { %8894 = vmatprep.subr.bf16.mxu1 %v8893_v32 }
0x1466   :  { %8896 = vmatpush3.bf16.msra.mxu1 %v8893_v32 }
0x1467   :  { %v9683_v6 = vpop.eup %9682 }
0x1468   :  { %v4384_v15 = vmul.f32 %v9683_v6, %v4356_v47 }
0x146a   :  { %v4392_v60 = vsub.f32 2.0, %v4384_v15 }
0x146c   :  { %v4400_v31 = vmul.f32 %v9683_v6, %v4392_v60 }
0x146e   :  { %v4408_v53 = vmul.f32 %v11585_v20, %v4400_v31 }
0x1482   :  { %v4353_v43 = vpop.xlane.xlu1 %4352 }
0x1483   :  { %9684 = vrcp.f32 %v4353_v43 }
0x1486   :  { %v4359_v35 = vpop.xlane.xlu1 %4358 }
0x1487   :  { %9686 = vrcp.f32 %v4359_v35 }
0x148d   :  { %v9685_v8 = vpop.eup %9684 }
0x148e   :  { %v4383_v42 = vmul.f32 %v9685_v8, %v4353_v43 }
0x1490   :  { %v4391_v22 = vsub.f32 2.0, %v4383_v42 }
0x1491   :  { %v9687_v59 = vpop.eup %9686  ;;  %v4362_v49 = vpop.xlane.xlu0 %4361 }
0x1492   :  { %v4399_v3 = vmul.f32 %v9685_v8, %v4391_v22  ;;  %v4385_v34 = vmul.f32 %v9687_v59, %v4359_v35  ;;  %9688 = vrcp.f32 %v4362_v49 }
0x1494   :  { %v4393_v44 = vsub.f32 2.0, %v4385_v34  ;;  %v4407_v13 = vmul.f32 %v11603_v41, %v4399_v3 }
0x1495   :  { %v4368_v9 = vpop.xlane.xlu1 %4367  ;;  %v9349_v5 = vpop.permute.xlu0 %9348 }
0x1496   :  { %v4401_v33 = vmul.f32 %v9687_v59, %v4393_v44  ;;  %9690 = vrcp.f32 %v4368_v9  ;;  %8359 = vmatprep.mubr.msk.f32.mxu1 %vm113_vm1, %v4407_v13  ;;  %v9351_v10 = vunpack.i.h.bf16 %v9349_v5  ;;  %v9350_v45 = vunpack.i.l.bf16 %v9349_v5 }
0x1497   :  { %8360 = vmatmul.mubr.msk.f32.vlgmr.msra.gmra.mrb[72].mxu1 %vm113_vm1, %v4408_v53 }
0x1498   :  { %v4409_v40 = vmul.f32 %v11609_v18, %v4401_v33  ;;  %v8903_v8 = vpack.c.bf16 %v9351_v10, %v9350_v45 }
0x1499   :  { %v4365_v36 = vpop.xlane.xlu1 %4364 }
0x149a   :  { %9692 = vrcp.f32 %v4365_v36  ;;  %8362 = vmatprep.mubr.msk.f32.mxu1 %vm113_vm1, %v4409_v40 }
0x149c   :  { %v9689_v54 = vpop.eup %9688 }
0x149d   :  { %v4386_v14 = vmul.f32 %v9689_v54, %v4362_v49  ;;  %v4374_v1 = vpop.xlane.xlu1 %4373 }
0x149e   :  { %9694 = vrcp.f32 %v4374_v1 }
0x149f   :  { %v4394_v41 = vsub.f32 2.0, %v4386_v14 }
0x14a0   :  { %v9691_v2 = vpop.eup %9690 }
0x14a1   :  { %v4402_v20 = vmul.f32 %v9689_v54, %v4394_v41  ;;  %v4388_v19 = vmul.f32 %v9691_v2, %v4368_v9  ;;  %v4371_v0 = vpop.xlane.xlu1 %4370 }
0x14a2   :  { %9696 = vrcp.f32 %v4371_v0 }
0x14a3   :  { %v4410_v24 = vmul.f32 %v11616_v17, %v4402_v20  ;;  %v4396_v37 = vsub.f32 2.0, %v4388_v19  ;;  %v9354_v17 = vpop.permute.xlu0 %9353 }
0x14a4   :  { %v9693_v52 = vpop.eup %9692  ;;  %v9356_v49 = vunpack.i.h.bf16 %v9354_v17  ;;  %v9355_v3 = vunpack.i.l.bf16 %v9354_v17 }
0x14a5   :  { %v4387_v18 = vmul.f32 %v9693_v52, %v4365_v36  ;;  %v9344_v47 = vpop.permute.xlu1 %9343  ;;  %8363 = vmatmul.mubr.msk.f32.gmra.mrb[74].mxu1 %vm113_vm1, %v4410_v24  ;;  %v4404_v43 = vmul.f32 %v9691_v2, %v4396_v37 }
0x14a6   :  { %v9346_v61 = vunpack.i.h.bf16 %v9344_v47  ;;  %v9345_v30 = vunpack.i.l.bf16 %v9344_v47  ;;  %v8909_v53 = vpack.c.bf16 %v9356_v49, %v9355_v3 }
0x14a7   :  { %v4395_v25 = vsub.f32 2.0, %v4387_v18  ;;  %v4412_v59 = vmul.f32 %v11620_v16, %v4404_v43  ;;  %v9359_v9 = vpop.permute.xlu0 %9358 }
0x14a8   :  { %v9695_v32 = vpop.eup %9694  ;;  %v8897_v6 = vpack.c.bf16 %v9346_v61, %v9345_v30  ;;  %v9361_v33 = vunpack.i.h.bf16 %v9359_v9  ;;  %v9360_v40 = vunpack.i.l.bf16 %v9359_v9 }
0x14a9   :  { %v4403_v35 = vmul.f32 %v9693_v52, %v4395_v25  ;;  %v4390_v15 = vmul.f32 %v9695_v32, %v4374_v1 }
0x14aa   :  { %8899 = vmatprep.subr.msk.bf16.mxu1 %vm10303_vm3, %v8897_v6  ;;  %v8915_v36 = vpack.c.bf16 %v9361_v33, %v9360_v40 }
0x14ab   :  { %8902 = vmatpush3.bf16.xpose.msk.msra.mxu1 %vm10303_vm3, %v8897_v6  ;;  %v4411_v60 = vmul.f32 %v11624_v29, %v4403_v35  ;;  %v4398_v22 = vsub.f32 2.0, %v4390_v15 }
0x14ac   :  { %v9697_v42 = vpop.eup %9696  ;;  %8905 = vmatprep.subr.msk.bf16.mxu1 %vm10303_vm3, %v8903_v8 }
0x14ad   :  { %v4389_v31 = vmul.f32 %v9697_v42, %v4371_v0  ;;  %8365 = vmatprep.mubr.msk.f32.mxu1 %vm113_vm1, %v4411_v60  ;;  %v4406_v44 = vmul.f32 %v9695_v32, %v4398_v22 }
0x14ae   :  { %8366 = vmatmul.mubr.msk.f32.gmra.mrb[76].mxu1 %vm113_vm1, %v4412_v59 }
0x14af   :  { %v4397_v34 = vsub.f32 2.0, %v4389_v31  ;;  %v4414_v16 = vmul.f32 %v11628_v58, %v4406_v44 }
0x14b1   :  { %v4405_v13 = vmul.f32 %v9697_v42, %v4397_v34 }
0x14b3   :  { %8908 = vmatpush3.bf16.xpose.msk.msra.mxu1 %vm10303_vm3, %v8903_v8  ;;  %v4413_v29 = vmul.f32 %v11632_v28, %v4405_v13 }
0x14b4   :  { %8911 = vmatprep.subr.msk.bf16.mxu1 %vm10303_vm3, %v8909_v53 }
0x14b5   :  { %8368 = vmatprep.mubr.msk.f32.mxu1 %vm113_vm1, %v4413_v29 }
0x14b6   :  { %8369 = vmatmul.mubr.msk.f32.gmra.mrb[78].mxu1 %vm113_vm1, %v4414_v16 }
0x14b7   :  { %8387 = vmatprep.mubr.msk.f32.mxu1 %vm31_vm0, %v11527_v23 }
0x14bb   :  { %8914 = vmatpush3.bf16.xpose.msk.msra.mxu1 %vm10303_vm3, %v8909_v53 }
0x14bc   :  { %8917 = vmatprep.subr.msk.bf16.mxu1 %vm10303_vm3, %v8915_v36 }
0x14c3   :  { %8920 = vmatpush3.bf16.xpose.msk.msra.mxu1 %vm10303_vm3, %v8915_v36 }
0x14ca   :  { %8388 = vmatmul.mubr.msk.f32.vlgmr.msra.gmra.mrb[80].mxu1 %vm31_vm0, %v11525_v38 }
0x14cb   :  { %8390 = vmatprep.mubr.msk.f32.mxu1 %vm31_vm0, %v11535_v63 }
0x14ce   :  { %8391 = vmatmul.mubr.msk.f32.gmra.mrb[82].mxu1 %vm31_vm0, %v11533_v4 }
0x14cf   :  { %8393 = vmatprep.mubr.msk.f32.mxu1 %vm31_vm0, %v11591_v7 }
0x14d2   :  { %8394 = vmatmul.mubr.msk.f32.gmra.mrb[84].mxu1 %vm31_vm0, %v11589_v27 }
0x14d3   :  { %8396 = vmatprep.mubr.msk.f32.mxu1 %vm31_vm0, %v11638_v50 }
0x14d6   :  { %8397 = vmatmul.mubr.msk.f32.gmra.mrb[86].mxu1 %vm31_vm0, %v11636_v55 }
0x1525   :  { %v11719_v58 = vpop.f32.mrb[64].mxu1 }
0x1526   :  { %v11721_v28 = vpop.f32.mrb[65].mxu1 }
0x1529   :  { %v11723_v54 = vpop.f32.mrb[66].mxu1 }
0x152a   :  { %v11725_v14 = vpop.f32.mrb[67].mxu1 }
0x152d   :  { %v11727_v1 = vpop.f32.mrb[68].mxu1 }
0x152e   :  { %v11729_v41 = vpop.f32.mrb[69].mxu1 }
0x1534   :  { %v11731_v2 = vpop.f32.mrb[70].mxu1 }
0x1535   :  { %v11733_v20 = vpop.f32.mrb[71].mxu1 }
0x156a   :  { %v11735_v19 = vpop.f32.mrb[72].mxu1 }
0x156b   :  { %v11737_v0 = vpop.f32.mrb[73].mxu1 }
0x1578   :  { %v11739_v5 = vpop.f32.mrb[74].mxu1 }
0x1579   :  { %v11741_v24 = vpop.f32.mrb[75].mxu1 }
0x1581   :  { %v11743_v52 = vpop.f32.mrb[76].mxu1 }
0x1582   :  { %v11745_v37 = vpop.f32.mrb[77].mxu1 }
0x1589   :  { %v11747_v18 = vpop.f32.mrb[78].mxu1 }
0x158a   :  { %v11749_v47 = vpop.f32.mrb[79].mxu1 }
0x159d   :  { %v8389_v10 = vpop.f32.mrb[80].mxu1 }
0x159e   :  { %v4730_v45 = vpop.f32.mrb[81].mxu1  ;;  %v4772_v61 = vsel %vm113_vm1, %v8389_v10, -inf }
0x159f   :  { %4773 = vmax.xlane.f32.xlu0 %v4772_v61  ;;  %v4769_v30 = vsel %vm113_vm1, %v4730_v45, -inf }
0x15a0   :  { %4770 = vmax.xlane.f32.xlu1 %v4769_v30 }
0x15a1   :  { %v11753_v25 = vpop.f32.mrb[82].mxu1 }
0x15a2   :  { %v4740_v32 = vpop.f32.mrb[83].mxu1  ;;  %v4778_v43 = vsel %vm113_vm1, %v11753_v25, -inf }
0x15a3   :  { %4779 = vmax.xlane.f32.xlu0 %v4778_v43  ;;  %v4775_v15 = vsel %vm113_vm1, %v4740_v32, -inf }
0x15a5   :  { %v8395_v6 = vpop.f32.mrb[84].mxu1 }
0x15a6   :  { %v11757_v35 = vpop.f32.mrb[85].mxu1  ;;  %v4784_v60 = vsel %vm113_vm1, %v8395_v6, -inf }
0x15a7   :  { %4776 = vmax.xlane.f32.xlu0 %v4775_v15  ;;  %v4781_v22 = vsel %vm113_vm1, %v11757_v35, -inf }
0x15a9   :  { %v8398_v8 = vpop.f32.mrb[86].mxu1 }
0x15aa   :  { %v11760_v17 = vpop.f32.mrb[87].mxu1  ;;  %v4790_v42 = vsel %vm113_vm1, %v8398_v8, -inf }
0x15ab   :  { %4785 = vmax.xlane.f32.xlu0 %v4784_v60  ;;  %v4787_v59 = vsel %vm113_vm1, %v11760_v17, -inf }
0x15af   :  { %4791 = vmax.xlane.f32.xlu0 %v4790_v42 }
0x15b1   :  { %9363 = vrot.lane.b32.xlu1 %v11531_v11, %s9867_s20 }
0x15c5   :  { %9368 = vrot.lane.b32.xlu0 %v11539_v46, %s9867_s20 }
0x15d5   :  { %4782 = vmax.xlane.f32.xlu1 %v4781_v22 }
0x15d9   :  { %4788 = vmax.xlane.f32.xlu1 %v4787_v59 }
0x15ea   :  { %9373 = vrot.lane.b32.xlu1 %v11597_v26, %s9867_s20 }
0x162c   :  { %v4774_v31 = vpop.xlane.xlu0 %4773 }
0x162d   :  { %v4794_v49 = vsub.f32 %v8389_v10, %v4774_v31  ;;  %v4771_v3 = vpop.xlane.xlu1 %4770 }
0x162e   :  { %v4793_v34 = vsub.f32 %v4730_v45, %v4771_v3 }
0x162f   :  { %v4803_v44 = vmul.f32 1.442695, %v4794_v49 }
0x1630   :  { %v4801_v13 = vmul.f32 1.442695, %v4793_v34  ;;  %v4780_v53 = vpop.xlane.xlu0 %4779 }
0x1631   :  { %9698 = vpow2.f32 %v4803_v44  ;;  %v9364_v9 = vpop.permute.xlu1 %9363 }
0x1632   :  { %9700 = vpow2.f32 %v4801_v13  ;;  %v9366_v29 = vunpack.i.h.bf16 %v9364_v9  ;;  %v9365_v16 = vunpack.i.l.bf16 %v9364_v9  ;;  %v4796_v13 = vsub.f32 %v11753_v25, %v4780_v53 }
0x1634   :  { %v4777_v33 = vpop.xlane.xlu0 %4776  ;;  %v8921_v40 = vpack.c.bf16 %v9366_v29, %v9365_v16  ;;  %v4807_v9 = vmul.f32 1.442695, %v4796_v13 }
0x1635   :  { %v4795_v36 = vsub.f32 %v4740_v32, %v4777_v33 }
0x1636   :  { %8922 = vmatprep.subr.bf16.mxu0 %v8921_v40 }
0x1637   :  { %v4805_v61 = vmul.f32 1.442695, %v4795_v36  ;;  %8924 = vmatpush3.bf16.msra.mxu0 %v8921_v40 }
0x1638   :  { %v4786_v30 = vpop.xlane.xlu0 %4785 }
0x1639   :  { %9702 = vpow2.f32 %v4805_v61  ;;  %v4798_v43 = vsub.f32 %v8395_v6, %v4786_v30 }
0x163b   :  { %v11774_v10 = vpop.eup %9698  ;;  %v4811_v45 = vmul.f32 1.442695, %v4798_v43 }
0x163c   :  { %v11776_v15 = vpop.eup %9700  ;;  %v4792_v60 = vpop.xlane.xlu0 %4791  ;;  %v4820_v42 = vsel %vm113_vm1, %v11774_v10, 0.0 }
0x163d   :  { %9704 = vpow2.f32 %v4811_v45  ;;  %4821 = vadd.xlane.f32.xlu0 %v4820_v42  ;;  %v4817_v32 = vsel %vm113_vm1, %v11776_v15, 0.0  ;;  %v4800_v29 = vsub.f32 %v8398_v8, %v4792_v60 }
0x163e   :  { %4818 = vadd.xlane.f32.xlu1 %v4817_v32  ;;  %9706 = vpow2.f32 %v4807_v9 }
0x163f   :  { %v4815_v40 = vmul.f32 1.442695, %v4800_v29 }
0x1640   :  { %v9369_v22 = vpop.permute.xlu0 %9368 }
0x1641   :  { %v9371_v59 = vunpack.i.h.bf16 %v9369_v22  ;;  %v9370_v31 = vunpack.i.l.bf16 %v9369_v22 }
0x1643   :  { %v11782_v49 = vpop.eup %9702  ;;  %v8925_v6 = vpack.c.bf16 %v9371_v59, %v9370_v31 }
0x1644   :  { %v4823_v3 = vsel %vm113_vm1, %v11782_v49, 0.0 }
0x1645   :  { %8926 = vmatprep.subr.bf16.mxu0 %v8925_v6  ;;  %4824 = vadd.xlane.f32.xlu1 %v4823_v3 }
0x1646   :  { %8928 = vmatpush3.bf16.msra.mxu0 %v8925_v6 }
0x1647   :  { %v11786_v34 = vpop.eup %9704 }
0x1648   :  { %v4832_v44 = vsel %vm113_vm1, %v11786_v34, 0.0  ;;  %v11795_v25 = vpop.eup %9706 }
0x1649   :  { %4833 = vadd.xlane.f32.xlu1 %v4832_v44 }
0x1653   :  { %9378 = vrot.lane.b32.xlu0 %v11642_v57, %s9867_s20 }
0x1662   :  { %v4783_v16 = vpop.xlane.xlu1 %4782 }
0x1663   :  { %v4797_v33 = vsub.f32 %v11757_v35, %v4783_v16  ;;  %v4826_v35 = vsel %vm113_vm1, %v11795_v25, 0.0 }
0x1665   :  { %v4809_v36 = vmul.f32 1.442695, %v4797_v33 }
0x1666   :  { %v4789_v61 = vpop.xlane.xlu1 %4788 }
0x1667   :  { %9708 = vpow2.f32 %v4809_v36  ;;  %v4799_v30 = vsub.f32 %v11760_v17, %v4789_v61 }
0x1668   :  { %9710 = vpow2.f32 %v4815_v40 }
0x1669   :  { %v4813_v43 = vmul.f32 1.442695, %v4799_v30 }
0x166a   :  { %v9374_v45 = vpop.permute.xlu1 %9373 }
0x166b   :  { %v9376_v42 = vunpack.i.h.bf16 %v9374_v45  ;;  %v9375_v32 = vunpack.i.l.bf16 %v9374_v45  ;;  %9712 = vpow2.f32 %v4813_v43 }
0x166d   :  { %v8929_v22 = vpack.c.bf16 %v9376_v42, %v9375_v32 }
0x166f   :  { %8930 = vmatprep.subr.bf16.mxu0 %v8929_v22 }
0x1670   :  { %8932 = vmatpush3.bf16.msra.mxu0 %v8929_v22 }
0x1671   :  { %v11797_v8 = vpop.eup %9708 }
0x1672   :  { %4827 = vadd.xlane.f32.xlu0 %v4826_v35  ;;  %v4829_v17 = vsel %vm113_vm1, %v11797_v8, 0.0  ;;  %v11803_v53 = vpop.eup %9710 }
0x1673   :  { %4830 = vadd.xlane.f32.xlu1 %v4829_v17  ;;  %v4838_v60 = vsel %vm113_vm1, %v11803_v53, 0.0 }
0x1675   :  { %v11807_v59 = vpop.eup %9712 }
0x1676   :  { %v4835_v31 = vsel %vm113_vm1, %v11807_v59, 0.0 }
0x1677   :  { %4839 = vadd.xlane.f32.xlu1 %v4838_v60 }
0x167b   :  { %4836 = vadd.xlane.f32.xlu1 %v4835_v31 }
0x1688   :  { %9388 = vrot.lane.b32.xlu0 %v11539_v46, %s9869_s30 }
0x168c   :  { %9393 = vrot.lane.b32.xlu0 %v11597_v26, %s9869_s30  ;;  %9383 = vrot.lane.b32.xlu1 %v11531_v11, %s9869_s30 }
0x1690   :  { %9398 = vrot.lane.b32.xlu0 %v11642_v57, %s9869_s30  ;;  %5034 = vrot.lane.b32.xlu1 %v11527_v23, %s9866_s17 }
0x1694   :  { %5036 = vrot.lane.b32.xlu0 %v11525_v38, %s9866_s17  ;;  %5038 = vrot.lane.b32.xlu1 %v11535_v63, %s9866_s17 }
0x1698   :  { %5040 = vrot.lane.b32.xlu0 %v11533_v4, %s9866_s17  ;;  %5042 = vrot.lane.b32.xlu1 %v11591_v7, %s9866_s17 }
0x169c   :  { %5044 = vrot.lane.b32.xlu0 %v11589_v27, %s9866_s17  ;;  %5046 = vrot.lane.b32.xlu1 %v11638_v50, %s9866_s17 }
0x16a0   :  { %5048 = vrot.lane.b32.xlu0 %v11636_v55, %s9866_s17 }
0x16ca   :  { %v4822_v23 = vpop.xlane.xlu0 %4821 }
0x16cb   :  { %9714 = vrcp.f32 %v4822_v23  ;;  %v4819_v38 = vpop.xlane.xlu1 %4818 }
0x16cc   :  { %9716 = vrcp.f32 %v4819_v38 }
0x16ce   :  { %v9379_v63 = vpop.permute.xlu0 %9378 }
0x16cf   :  { %v9381_v6 = vunpack.i.h.bf16 %v9379_v63  ;;  %v9380_v3 = vunpack.i.l.bf16 %v9379_v63 }
0x16d1   :  { %v8933_v4 = vpack.c.bf16 %v9381_v6, %v9380_v3 }
0x16d2   :  { %v4825_v44 = vpop.xlane.xlu1 %4824 }
0x16d3   :  { %9718 = vrcp.f32 %v4825_v44  ;;  %8934 = vmatprep.subr.bf16.mxu0 %v8933_v4 }
0x16d4   :  { %8936 = vmatpush3.bf16.msra.mxu0 %v8933_v4 }
0x16d5   :  { %v9715_v7 = vpop.eup %9714 }
0x16d6   :  { %v9717_v27 = vpop.eup %9716  ;;  %v4850_v13 = vmul.f32 %v9715_v7, %v4822_v23  ;;  %v4834_v42 = vpop.xlane.xlu1 %4833 }
0x16d7   :  { %v4849_v9 = vmul.f32 %v9717_v27, %v4819_v38  ;;  %9720 = vrcp.f32 %v4834_v42 }
0x16d8   :  { %v4858_v50 = vsub.f32 2.0, %v4850_v13 }
0x16d9   :  { %v4857_v29 = vsub.f32 2.0, %v4849_v9 }
0x16da   :  { %v4866_v16 = vmul.f32 %v9715_v7, %v4858_v50 }
0x16db   :  { %v4865_v55 = vmul.f32 %v9717_v27, %v4857_v29 }
0x16dc   :  { %v4874_v36 = vmul.f32 %v11774_v10, %v4866_v16 }
0x16dd   :  { %v9719_v33 = vpop.eup %9718  ;;  %v4873_v40 = vmul.f32 %v11776_v15, %v4865_v55 }
0x16de   :  { %v4851_v61 = vmul.f32 %v9719_v33, %v4825_v44 }
0x16df   :  { %8415 = vmatprep.mubr.msk.f32.mxu0 %vm113_vm1, %v4873_v40 }
0x16e0   :  { %v4859_v30 = vsub.f32 2.0, %v4851_v61  ;;  %8416 = vmatmul.mubr.msk.f32.vlgmr.msra.gmra.mrb[88].mxu0 %vm113_vm1, %v4874_v36 }
0x16e1   :  { %v9721_v35 = vpop.eup %9720 }
0x16e2   :  { %v4867_v43 = vmul.f32 %v9719_v33, %v4859_v30  ;;  %v4854_v10 = vmul.f32 %v9721_v35, %v4834_v42 }
0x16e4   :  { %v4875_v45 = vmul.f32 %v11782_v49, %v4867_v43  ;;  %v4862_v63 = vsub.f32 2.0, %v4854_v10 }
0x16e6   :  { %8418 = vmatprep.mubr.msk.f32.mxu0 %vm113_vm1, %v4875_v45  ;;  %v4870_v33 = vmul.f32 %v9721_v35, %v4862_v63 }
0x16ff   :  { %v4828_v32 = vpop.xlane.xlu0 %4827 }
0x1700   :  { %9722 = vrcp.f32 %v4828_v32  ;;  %v4831_v22 = vpop.xlane.xlu1 %4830 }
0x1701   :  { %9724 = vrcp.f32 %v4831_v22 }
0x1703   :  { %v9389_v60 = vpop.permute.xlu0 %9388 }
0x1704   :  { %v4840_v15 = vpop.xlane.xlu1 %4839  ;;  %v9391_v6 = vunpack.i.h.bf16 %v9389_v60  ;;  %v9390_v44 = vunpack.i.l.bf16 %v9389_v60 }
0x1705   :  { %9726 = vrcp.f32 %v4840_v15 }
0x1706   :  { %v8943_v36 = vpack.c.bf16 %v9391_v6, %v9390_v44 }
0x1707   :  { %v9394_v61 = vpop.permute.xlu0 %9393 }
0x1708   :  { %v4837_v17 = vpop.xlane.xlu1 %4836 }
0x1709   :  { %9728 = vrcp.f32 %v4837_v17 }
0x170a   :  { %v9723_v31 = vpop.eup %9722 }
0x170b   :  { %v9725_v23 = vpop.eup %9724  ;;  %v4852_v38 = vmul.f32 %v9723_v31, %v4828_v32  ;;  %v9395_v32 = vunpack.i.l.bf16 %v9394_v61  ;;  %v9399_v60 = vpop.permute.xlu0 %9398 }
0x170c   :  { %v4853_v49 = vmul.f32 %v9725_v23, %v4831_v22  ;;  %v9384_v3 = vpop.permute.xlu1 %9383  ;;  %v4878_v22 = vmul.f32 %v11786_v34, %v4870_v33  ;;  %v9401_v34 = vunpack.i.h.bf16 %v9399_v60 }
0x170d   :  { %v4860_v4 = vsub.f32 2.0, %v4852_v38  ;;  %v9386_v7 = vunpack.i.h.bf16 %v9384_v3  ;;  %v9385_v27 = vunpack.i.l.bf16 %v9384_v3 }
0x170e   :  { %v4861_v13 = vsub.f32 2.0, %v4853_v49 }
0x170f   :  { %v9727_v9 = vpop.eup %9726  ;;  %v4868_v50 = vmul.f32 %v9723_v31, %v4860_v4  ;;  %v8937_v29 = vpack.c.bf16 %v9386_v7, %v9385_v27 }
0x1710   :  { %v4869_v16 = vmul.f32 %v9725_v23, %v4861_v13  ;;  %v4856_v55 = vmul.f32 %v9727_v9, %v4840_v15  ;;  %v9400_v23 = vunpack.i.l.bf16 %v9399_v60  ;;  %v5035_v38 = vpop.permute.xlu1 %5034 }
0x1711   :  { %v4876_v40 = vmul.f32 %v11795_v25, %v4868_v50  ;;  %8939 = vmatprep.subr.msk.bf16.mxu0 %vm10303_vm3, %v8937_v29  ;;  %v9396_v25 = vunpack.i.h.bf16 %v9394_v61 }
0x1712   :  { %8942 = vmatpush3.bf16.xpose.msk.msra.mxu0 %vm10303_vm3, %v8937_v29  ;;  %v4877_v30 = vmul.f32 %v11797_v8, %v4869_v16  ;;  %v4864_v45 = vsub.f32 2.0, %v4856_v55  ;;  %v8955_v63 = vpack.c.bf16 %v9401_v34, %v9400_v23 }
0x1713   :  { %v9729_v43 = vpop.eup %9728  ;;  %8419 = vmatmul.mubr.msk.f32.gmra.mrb[90].mxu0 %vm113_vm1, %v4876_v40  ;;  %8945 = vmatprep.subr.msk.bf16.mxu0 %vm10303_vm3, %v8943_v36  ;;  %v8949_v8 = vpack.c.bf16 %v9396_v25, %v9395_v32 }
0x1714   :  { %v4855_v42 = vmul.f32 %v9729_v43, %v4837_v17  ;;  %8421 = vmatprep.mubr.msk.f32.mxu0 %vm113_vm1, %v4877_v30  ;;  %v4872_v35 = vmul.f32 %v9727_v9, %v4864_v45 }
0x1716   :  { %v4863_v15 = vsub.f32 2.0, %v4855_v42  ;;  %v4880_v17 = vmul.f32 %v11803_v53, %v4872_v35  ;;  %v5039_v53 = vpop.permute.xlu1 %5038 }
0x1717   :  { %8422 = vmatmul.mubr.msk.f32.gmra.mrb[92].mxu0 %vm113_vm1, %v4878_v22 }
0x1718   :  { %v4871_v10 = vmul.f32 %v9729_v43, %v4863_v15 }
0x171a   :  { %8948 = vmatpush3.bf16.xpose.msk.msra.mxu0 %vm10303_vm3, %v8943_v36  ;;  %v4879_v31 = vmul.f32 %v11807_v59, %v4871_v10  ;;  %v5037_v59 = vpop.permute.xlu0 %5036  ;;  %v5043_v6 = vpop.permute.xlu1 %5042 }
0x171b   :  { %8951 = vmatprep.subr.msk.bf16.mxu0 %vm10303_vm3, %v8949_v8 }
0x171c   :  { %8424 = vmatprep.mubr.msk.f32.mxu0 %vm113_vm1, %v4879_v31 }
0x171d   :  { %8425 = vmatmul.mubr.msk.f32.gmra.mrb[94].mxu0 %vm113_vm1, %v4880_v17 }
0x171e   :  { %8443 = vmatprep.mubr.msk.f32.mxu0 %vm31_vm0, %v5035_v38  ;;  %v5041_v49 = vpop.permute.xlu0 %5040  ;;  %v5047_v4 = vpop.permute.xlu1 %5046 }
0x1722   :  { %8954 = vmatpush3.bf16.xpose.msk.msra.mxu0 %vm10303_vm3, %v8949_v8  ;;  %v5045_v3 = vpop.permute.xlu0 %5044 }
0x1723   :  { %8957 = vmatprep.subr.msk.bf16.mxu0 %vm10303_vm3, %v8955_v63 }
0x1726   :  { %v5049_v44 = vpop.permute.xlu0 %5048 }
0x172a   :  { %8960 = vmatpush3.bf16.xpose.msk.msra.mxu0 %vm10303_vm3, %v8955_v63 }
0x1731   :  { %8444 = vmatmul.mubr.msk.f32.vlgmr.msra.gmra.mrb[96].mxu0 %vm31_vm0, %v5037_v59 }
0x1732   :  { %8446 = vmatprep.mubr.msk.f32.mxu0 %vm31_vm0, %v5039_v53 }
0x1735   :  { %8447 = vmatmul.mubr.msk.f32.gmra.mrb[98].mxu0 %vm31_vm0, %v5041_v49 }
0x1736   :  { %8449 = vmatprep.mubr.msk.f32.mxu0 %vm31_vm0, %v5043_v6 }
0x1739   :  { %8450 = vmatmul.mubr.msk.f32.gmra.mrb[100].mxu0 %vm31_vm0, %v5045_v3 }
0x173a   :  { %8452 = vmatprep.mubr.msk.f32.mxu0 %vm31_vm0, %v5047_v4 }
0x173d   :  { %8453 = vmatmul.mubr.msk.f32.gmra.mrb[102].mxu0 %vm31_vm0, %v5049_v44 }
0x17b3   :  { %v11875_v62 = vpop.f32.mrb[88].mxu0 }
0x17b4   :  { %v11877_v7 = vpop.f32.mrb[89].mxu0 }
0x17e6   :  { %v11879_v27 = vpop.f32.mrb[90].mxu0 }
0x17e7   :  { %v11881_v13 = vpop.f32.mrb[91].mxu0 }
0x17ea   :  { %v11883_v9 = vpop.f32.mrb[92].mxu0 }
0x17eb   :  { %v11885_v50 = vpop.f32.mrb[93].mxu0 }
0x17f0   :  { %v11887_v29 = vpop.f32.mrb[94].mxu0 }
0x17f1   :  { %v11889_v16 = vpop.f32.mrb[95].mxu0 }
0x1804   :  { %v8445_v55 = vpop.f32.mrb[96].mxu0 }
0x1805   :  { %v5164_v33 = vpop.f32.mrb[97].mxu0  ;;  %v5206_v40 = vsel %vm113_vm1, %v8445_v55, -inf }
0x1806   :  { %5207 = vmax.xlane.f32.xlu0 %v5206_v40  ;;  %v5203_v36 = vsel %vm113_vm1, %v5164_v33, -inf }
0x1807   :  { %5204 = vmax.xlane.f32.xlu1 %v5203_v36 }
0x1808   :  { %v8448_v61 = vpop.f32.mrb[98].mxu0 }
0x1809   :  { %v5174_v30 = vpop.f32.mrb[99].mxu0  ;;  %v5212_v43 = vsel %vm113_vm1, %v8448_v61, -inf }
0x180a   :  { %5213 = vmax.xlane.f32.xlu0 %v5212_v43  ;;  %v5209_v25 = vsel %vm113_vm1, %v5174_v30, -inf }
0x180c   :  { %v8451_v45 = vpop.f32.mrb[100].mxu0 }
0x180d   :  { %v5184_v42 = vpop.f32.mrb[101].mxu0  ;;  %v5218_v35 = vsel %vm113_vm1, %v8451_v45, -inf }
0x180e   :  { %5210 = vmax.xlane.f32.xlu0 %v5209_v25  ;;  %v5215_v32 = vsel %vm113_vm1, %v5184_v42, -inf }
0x180f   :  { %5216 = vmax.xlane.f32.xlu1 %v5215_v32 }
0x1810   :  { %v8454_v22 = vpop.f32.mrb[102].mxu0 }
0x1811   :  { %v11896_v15 = vpop.f32.mrb[103].mxu0  ;;  %v5224_v8 = vsel %vm113_vm1, %v8454_v22, -inf }
0x1812   :  { %5219 = vmax.xlane.f32.xlu0 %v5218_v35  ;;  %v5221_v10 = vsel %vm113_vm1, %v11896_v15, -inf }
0x1813   :  { %5222 = vmax.xlane.f32.xlu1 %v5221_v10 }
0x1816   :  { %5225 = vmax.xlane.f32.xlu0 %v5224_v8 }
0x182c   :  { %9403 = vrot.lane.b32.xlu0 %v11531_v11, %s9870_s8 }
0x1893   :  { %v5208_v60 = vpop.xlane.xlu0 %5207 }
0x1894   :  { %v5228_v31 = vsub.f32 %v8445_v55, %v5208_v60  ;;  %v5205_v17 = vpop.xlane.xlu1 %5204 }
0x1895   :  { %v5227_v34 = vsub.f32 %v5164_v33, %v5205_v17 }
0x1896   :  { %v5237_v23 = vmul.f32 1.442695, %v5228_v31 }
0x1897   :  { %v5235_v38 = vmul.f32 1.442695, %v5227_v34  ;;  %v5214_v63 = vpop.xlane.xlu0 %5213 }
0x1898   :  { %9730 = vpow2.f32 %v5237_v23  ;;  %v5230_v59 = vsub.f32 %v8448_v61, %v5214_v63 }
0x1899   :  { %9732 = vpow2.f32 %v5235_v38 }
0x189a   :  { %v5241_v53 = vmul.f32 1.442695, %v5230_v59 }
0x189b   :  { %v5211_v49 = vpop.xlane.xlu0 %5210 }
0x189c   :  { %9734 = vpow2.f32 %v5241_v53  ;;  %v5229_v6 = vsub.f32 %v5174_v30, %v5211_v49  ;;  %v5217_v3 = vpop.xlane.xlu1 %5216 }
0x189d   :  { %v5231_v44 = vsub.f32 %v5184_v42, %v5217_v3 }
0x189e   :  { %v5239_v4 = vmul.f32 1.442695, %v5229_v6 }
0x189f   :  { %v5220_v40 = vpop.xlane.xlu0 %5219  ;;  %v5243_v55 = vmul.f32 1.442695, %v5231_v44 }
0x18a0   :  { %9736 = vpow2.f32 %v5239_v4  ;;  %v5232_v11 = vsub.f32 %v8451_v45, %v5220_v40  ;;  %v5223_v53 = vpop.xlane.xlu1 %5222 }
0x18a1   :  { %v5233_v49 = vsub.f32 %v11896_v15, %v5223_v53 }
0x18a2   :  { %v11904_v36 = vpop.eup %9730  ;;  %v5245_v33 = vmul.f32 1.442695, %v5232_v11 }
0x18a3   :  { %v11906_v43 = vpop.eup %9732  ;;  %v5226_v25 = vpop.xlane.xlu0 %5225  ;;  %v5254_v61 = vsel %vm113_vm1, %v11904_v36, 0.0  ;;  %v5247_v6 = vmul.f32 1.442695, %v5233_v49 }
0x18a4   :  { %9738 = vpow2.f32 %v5245_v33  ;;  %5255 = vadd.xlane.f32.xlu0 %v5254_v61  ;;  %v5251_v30 = vsel %vm113_vm1, %v11906_v43, 0.0  ;;  %v5234_v63 = vsub.f32 %v8454_v22, %v5226_v25  ;;  %v13037_v22 = vpack.i.bf16 %v11117_v48, %v11112_v39 }
0x18a5   :  { %5252 = vadd.xlane.f32.xlu1 %v5251_v30  ;;  %9740 = vpow2.f32 %v5243_v55 }
0x18a6   :  { %v11912_v42 = vpop.eup %9734  ;;  %v5249_v59 = vmul.f32 1.442695, %v5234_v63 }
0x18a7   :  { %v9404_v45 = vpop.permute.xlu0 %9403  ;;  %v5260_v32 = vsel %vm113_vm1, %v11912_v42, 0.0 }
0x18a8   :  { %v9406_v35 = vunpack.i.h.bf16 %v9404_v45  ;;  %v9405_v10 = vunpack.i.l.bf16 %v9404_v45  ;;  %5261 = vadd.xlane.f32.xlu0 %v5260_v32  ;;  %9742 = vpow2.f32 %v5249_v59 }
0x18a9   :  { %9744 = vpow2.f32 %v5247_v6 }
0x18aa   :  { %v11916_v8 = vpop.eup %9736  ;;  %v8961_v60 = vpack.c.bf16 %v9406_v35, %v9405_v10 }
0x18ab   :  { %v5257_v31 = vsel %vm113_vm1, %v11916_v8, 0.0 }
0x18ac   :  { %8962 = vmatprep.subr.bf16.mxu1 %v8961_v60  ;;  %5258 = vadd.xlane.f32.xlu1 %v5257_v31 }
0x18ad   :  { %8964 = vmatpush3.bf16.msra.mxu1 %v8961_v60 }
0x18ae   :  { %v11920_v17 = vpop.eup %9738 }
0x18af   :  { %v5266_v34 = vsel %vm113_vm1, %v11920_v17, 0.0  ;;  %v11924_v23 = vpop.eup %9740 }
0x18b0   :  { %5267 = vadd.xlane.f32.xlu1 %v5266_v34  ;;  %v5263_v38 = vsel %vm113_vm1, %v11924_v23, 0.0 }
0x18b2   :  { %v11933_v3 = vpop.eup %9742 }
0x18b3   :  { %v5272_v4 = vsel %vm113_vm1, %v11933_v3, 0.0  ;;  %v11937_v44 = vpop.eup %9744 }
0x18b4   :  { %5264 = vadd.xlane.f32.xlu1 %v5263_v38 }
0x18be   :  { %9413 = vrot.lane.b32.xlu0 %v11597_v26, %s9870_s8  ;;  %v5269_v26 = vsel %vm113_vm1, %v11937_v44, 0.0 }
0x18c5   :  { %9408 = vrot.lane.b32.xlu1 %v11539_v46, %s9870_s8  ;;  %v13036_v46 = vpack.i.bf16 %v11103_v51, %v11098_v21 }
0x18dd   :  { %5273 = vadd.xlane.f32.xlu0 %v5272_v4 }
0x18e9   :  { %5270 = vadd.xlane.f32.xlu1 %v5269_v26 }
0x18f3   :  { %9418 = vrot.lane.b32.xlu0 %v11642_v57, %s9870_s8 }
0x18f7   :  { %4578 = vrot.lane.b32.xlu0 %v11735_v19, %s9872_s10 }
0x18fa   :  { %9423 = vrot.lane.b32.xlu1 %v13036_v46, %s9871_s9 }
0x18fb   :  { %4582 = vrot.lane.b32.xlu0 %v11739_v5, %s9872_s10 }
0x18fe   :  { %9428 = vrot.lane.b32.xlu1 %v13037_v22, %s9871_s9 }
0x18ff   :  { %4586 = vrot.lane.b32.xlu0 %v11743_v52, %s9872_s10 }
0x1902   :  { %4576 = vrot.lane.b32.xlu1 %v11737_v0, %s9872_s10 }
0x1903   :  { %4590 = vrot.lane.b32.xlu0 %v11747_v18, %s9872_s10 }
0x1906   :  { %4580 = vrot.lane.b32.xlu1 %v11741_v24, %s9872_s10 }
0x190a   :  { %4584 = vrot.lane.b32.xlu1 %v11745_v37, %s9872_s10 }
0x190e   :  { %4588 = vrot.lane.b32.xlu1 %v11749_v47, %s9872_s10 }
0x1931   :  { %v5256_v51 = vpop.xlane.xlu0 %5255 }
0x1932   :  { %v5253_v21 = vpop.xlane.xlu1 %5252 }
0x1933   :  { %9746 = vrcp.f32 %v5253_v21 }
0x1934   :  { %9748 = vrcp.f32 %v5256_v51 }
0x1935   :  { %v5262_v57 = vpop.xlane.xlu0 %5261 }
0x1939   :  { %v5259_v39 = vpop.xlane.xlu1 %5258  ;;  %v9414_v15 = vpop.permute.xlu0 %9413 }
0x193a   :  { %v9416_v11 = vunpack.i.h.bf16 %v9414_v15  ;;  %v9415_v37 = vunpack.i.l.bf16 %v9414_v15  ;;  %9750 = vrcp.f32 %v5259_v39 }
0x193b   :  { %9752 = vrcp.f32 %v5262_v57 }
0x193c   :  { %v8969_v25 = vpack.c.bf16 %v9416_v11, %v9415_v37 }
0x193d   :  { %v9747_v48 = vpop.eup %9746  ;;  %v5268_v19 = vpop.xlane.xlu1 %5267 }
0x193e   :  { %v5283_v0 = vmul.f32 %v9747_v48, %v5253_v21  ;;  %v9749_v61 = vpop.eup %9748 }
0x193f   :  { %v5284_v30 = vmul.f32 %v9749_v61, %v5256_v51 }
0x1940   :  { %v5291_v5 = vsub.f32 2.0, %v5283_v0 }
0x1941   :  { %v5265_v52 = vpop.xlane.xlu1 %5264  ;;  %v5292_v60 = vsub.f32 2.0, %v5284_v30 }
0x1942   :  { %v5299_v18 = vmul.f32 %v9747_v48, %v5291_v5  ;;  %9754 = vrcp.f32 %v5265_v52 }
0x1943   :  { %9756 = vrcp.f32 %v5268_v19  ;;  %v5300_v6 = vmul.f32 %v9749_v61, %v5292_v60 }
0x1944   :  { %v5307_v24 = vmul.f32 %v11906_v43, %v5299_v18  ;;  %v9751_v43 = vpop.eup %9750 }
0x1945   :  { %v9409_v40 = vpop.permute.xlu1 %9408  ;;  %v9753_v45 = vpop.eup %9752  ;;  %v5285_v32 = vmul.f32 %v9751_v43, %v5259_v39  ;;  %v5308_v51 = vmul.f32 %v11904_v36, %v5300_v6 }
0x1946   :  { %v9411_v55 = vunpack.i.h.bf16 %v9409_v40  ;;  %v9410_v33 = vunpack.i.l.bf16 %v9409_v40  ;;  %8471 = vmatprep.mubr.msk.f32.mxu1 %vm113_vm1, %v5307_v24  ;;  %v5286_v31 = vmul.f32 %v9753_v45, %v5262_v57 }
0x1947   :  { %v5293_v38 = vsub.f32 2.0, %v5285_v32 }
0x1948   :  { %v8965_v47 = vpack.c.bf16 %v9411_v55, %v9410_v33  ;;  %v5294_v4 = vsub.f32 2.0, %v5286_v31 }
0x1949   :  { %v5301_v22 = vmul.f32 %v9751_v43, %v5293_v38 }
0x194a   :  { %8966 = vmatprep.subr.bf16.mxu1 %v8965_v47  ;;  %v5302_v39 = vmul.f32 %v9753_v45, %v5294_v4 }
0x194b   :  { %8968 = vmatpush3.bf16.msra.mxu1 %v8965_v47  ;;  %v5309_v57 = vmul.f32 %v11916_v8, %v5301_v22 }
0x194c   :  { %8970 = vmatprep.subr.bf16.mxu1 %v8969_v25  ;;  %v9755_v10 = vpop.eup %9754 }
0x194d   :  { %v9757_v34 = vpop.eup %9756  ;;  %v5287_v63 = vmul.f32 %v9755_v10, %v5265_v52 }
0x194e   :  { %v5288_v26 = vmul.f32 %v9757_v34, %v5268_v19  ;;  %v5310_v19 = vmul.f32 %v11912_v42, %v5302_v39 }
0x194f   :  { %8972 = vmatpush3.bf16.msra.mxu1 %v8969_v25  ;;  %v5295_v21 = vsub.f32 2.0, %v5287_v63 }
0x1950   :  { %v5296_v48 = vsub.f32 2.0, %v5288_v26 }
0x1951   :  { %v5303_v0 = vmul.f32 %v9755_v10, %v5295_v21 }
0x1952   :  { %v5304_v52 = vmul.f32 %v9757_v34, %v5296_v48 }
0x1953   :  { %v5311_v15 = vmul.f32 %v11924_v23, %v5303_v0 }
0x1954   :  { %v5312_v8 = vmul.f32 %v11920_v17, %v5304_v52 }
0x196a   :  { %v5274_v35 = vpop.xlane.xlu0 %5273 }
0x196b   :  { %9758 = vrcp.f32 %v5274_v35 }
0x196e   :  { %v9419_v59 = vpop.permute.xlu0 %9418 }
0x196f   :  { %v9421_v53 = vunpack.i.h.bf16 %v9419_v59  ;;  %v9420_v49 = vunpack.i.l.bf16 %v9419_v59 }
0x1971   :  { %v8973_v46 = vpack.c.bf16 %v9421_v53, %v9420_v49 }
0x1972   :  { %v4579_v32 = vpop.permute.xlu0 %4578 }
0x1973   :  { %8974 = vmatprep.subr.bf16.mxu1 %v8973_v46  ;;  %v4601_v38 = vsel %vm31_vm0, %v11719_v58, %v4579_v32  ;;  %v13040_v32 = vld [vmem:[#allocation3_spill] sm:$0xff] }
0x1974   :  { %8976 = vmatpush3.bf16.msra.mxu1 %v8973_v46 }
0x1975   :  { %v9759_v18 = vpop.eup %9758 }
0x1976   :  { %v5271_v5 = vpop.xlane.xlu1 %5270  ;;  %v5290_v11 = vmul.f32 %v9759_v18, %v5274_v35  ;;  %v4583_v31 = vpop.permute.xlu0 %4582 }
0x1977   :  { %9760 = vrcp.f32 %v5271_v5  ;;  %8472 = vmatmul.mubr.msk.f32.vlgmr.msra.gmra.mrb[88].mxu1 %vm113_vm1, %v5308_v51  ;;  %v4603_v59 = vsel %vm31_vm0, %v11723_v54, %v4583_v31  ;;  %v12018_v51 = vld [vmem:[%s12949_s4 + $0x1] ss:$0 sm:$0xff] }
0x1978   :  { %8474 = vmatprep.mubr.msk.f32.mxu1 %vm113_vm1, %v5309_v57  ;;  %v5298_v23 = vsub.f32 2.0, %v5290_v11 }
0x197a   :  { %v9424_v24 = vpop.permute.xlu1 %9423  ;;  %v5306_v45 = vmul.f32 %v9759_v18, %v5298_v23  ;;  %v13038_v23 = vld [vmem:[#allocation2_spill] sm:$0xff] }
0x197b   :  { %v9426_v40 = vunpack.i.h.bf16 %v9424_v24  ;;  %v9425_v36 = vunpack.i.l.bf16 %v9424_v24  ;;  %8475 = vmatmul.mubr.msk.f32.gmra.mrb[90].mxu1 %vm113_vm1, %v5310_v19 }
0x197c   :  { %8477 = vmatprep.mubr.msk.f32.mxu1 %vm113_vm1, %v5311_v15  ;;  %v5314_v60 = vmul.f32 %v11933_v3, %v5306_v45  ;;  %v4587_v3 = vpop.permute.xlu0 %4586 }
0x197d   :  { %v8977_v37 = vpack.c.bf16 %v9426_v40, %v9425_v36  ;;  %v4605_v58 = vsel %vm31_vm0, %v11727_v1, %v4587_v3 }
0x197e   :  { %v9429_v55 = vpop.permute.xlu1 %9428 }
0x197f   :  { %v9431_v33 = vunpack.i.h.bf16 %v9429_v55  ;;  %v9430_v47 = vunpack.i.l.bf16 %v9429_v55  ;;  %8478 = vmatmul.mubr.msk.f32.gmra.mrb[92].mxu1 %vm113_vm1, %v5312_v8  ;;  %8978 = vmatprep.subr.bf16.mxu1 %v8977_v37 }
0x1980   :  { %8980 = vmatpush3.bf16.msra.mxu1 %v8977_v37 }
0x1981   :  { %v9761_v42 = vpop.eup %9760  ;;  %v8981_v25 = vpack.c.bf16 %v9431_v33, %v9430_v47 }
0x1982   :  { %v5289_v61 = vmul.f32 %v9761_v42, %v5271_v5  ;;  %v4577_v43 = vpop.permute.xlu1 %4576 }
0x1983   :  { %8982 = vmatprep.subr.bf16.mxu1 %v8981_v25  ;;  %v4600_v34 = vsel %vm31_vm0, %v11721_v28, %v4577_v43 }
0x1984   :  { %v5297_v30 = vsub.f32 2.0, %v5289_v61  ;;  %8984 = vmatpush3.bf16.msra.mxu1 %v8981_v25  ;;  %v13039_v61 = vld [vmem:[#allocation4_spill] sm:$0xff] }
0x1986   :  { %v5305_v17 = vmul.f32 %v9761_v42, %v5297_v30  ;;  %v4581_v10 = vpop.permute.xlu1 %4580 }
0x1988   :  { %v5313_v35 = vmul.f32 %v11937_v44, %v5305_v17  ;;  %v4602_v44 = vsel %vm31_vm0, %v11725_v14, %v4581_v10  ;;  %v4591_v14 = vpop.permute.xlu0 %4590 }
0x1989   :  { %v4607_v54 = vsel %vm31_vm0, %v11731_v2, %v4591_v14 }
0x198a   :  { %8480 = vmatprep.mubr.msk.f32.mxu1 %vm113_vm1, %v5313_v35  ;;  %v4585_v63 = vpop.permute.xlu1 %4584  ;;  %v13041_v35 = vld [vmem:[#allocation6_spill] sm:$0xff] }
0x198b   :  { %8481 = vmatmul.mubr.msk.f32.gmra.mrb[94].mxu1 %vm113_vm1, %v5314_v60  ;;  %v4604_v28 = vsel %vm31_vm0, %v11729_v41, %v4585_v63  ;;  %v13042_v63 = vld [vmem:[#allocation5_spill] sm:$0xff] }
0x198c   :  { %8491 = vmatprep.mubr.msk.f32.mxu1 %vm772_vm2, %v4600_v34 }
0x198e   :  { %v4589_v53 = vpop.permute.xlu1 %4588 }
0x198f   :  { %8492 = vmatmul.mubr.msk.f32.vlgmr.msra.gmra.mrb[96].mxu1 %vm772_vm2, %v4601_v38  ;;  %v4606_v49 = vsel %vm31_vm0, %v11733_v20, %v4589_v53  ;;  %v13043_v53 = vld [vmem:[#allocation7_spill] sm:$0xff] }
0x1990   :  { %8494 = vmatprep.mubr.msk.f32.mxu1 %vm772_vm2, %v4602_v44 }
0x1993   :  { %8495 = vmatmul.mubr.msk.f32.gmra.mrb[98].mxu1 %vm772_vm2, %v4603_v59 }
0x1994   :  { %8497 = vmatprep.mubr.msk.f32.mxu1 %vm772_vm2, %v4604_v28 }
0x1997   :  { %8498 = vmatmul.mubr.msk.f32.gmra.mrb[100].mxu1 %vm772_vm2, %v4605_v58 }
0x1998   :  { %8500 = vmatprep.mubr.msk.f32.mxu1 %vm772_vm2, %v4606_v49 }
0x199b   :  { %8501 = vmatmul.mubr.msk.f32.gmra.mrb[102].mxu1 %vm772_vm2, %v4607_v54 }
0x1a4a   :  { %v8473_v41 = vpop.f32.mrb[88].mxu1 }
0x1a4b   :  { %5478 = vrot.lane.b32.xlu0 %v8473_v41, %s9872_s10  ;;  %v5429_v6 = vpop.f32.mrb[89].mxu1 }
0x1a4c   :  { %5476 = vrot.lane.b32.xlu1 %v5429_v6, %s9872_s10  ;;  %v13044_v6 = vld [vmem:[#allocation8_spill] sm:$0xff] }
0x1a4e   :  { %v8476_v1 = vpop.f32.mrb[90].mxu1 }
0x1a4f   :  { %5482 = vrot.lane.b32.xlu0 %v8476_v1, %s9872_s10  ;;  %v5439_v4 = vpop.f32.mrb[91].mxu1 }
0x1a50   :  { %5480 = vrot.lane.b32.xlu1 %v5439_v4, %s9872_s10 }
0x1a52   :  { %v8479_v20 = vpop.f32.mrb[92].mxu1 }
0x1a53   :  { %5486 = vrot.lane.b32.xlu0 %v8479_v20, %s9872_s10  ;;  %v5449_v26 = vpop.f32.mrb[93].mxu1  ;;  %v13045_v20 = vld [vmem:[#allocation9_spill] sm:$0xff] }
0x1a54   :  { %5484 = vrot.lane.b32.xlu1 %v5449_v26, %s9872_s10 }
0x1a5e   :  { %v8482_v2 = vpop.f32.mrb[94].mxu1 }
0x1a5f   :  { %5490 = vrot.lane.b32.xlu0 %v8482_v2, %s9872_s10  ;;  %v5459_v46 = vpop.f32.mrb[95].mxu1 }
0x1a60   :  { %5488 = vrot.lane.b32.xlu1 %v5459_v46, %s9872_s10 }
0x1a62   :  { %v8493_v22 = vpop.f32.mrb[96].mxu1 }
0x1a63   :  { %v5638_v21 = vpop.f32.mrb[97].mxu1  ;;  %v5718_v42 = vadd.f32 %v8493_v22, %v11002_v56 }
0x1a64   :  { %5733 = vrot.lane.b32.xlu1 %v12018_v51, %s9867_s20 }
0x1a66   :  { %v8496_v39 = vpop.f32.mrb[98].mxu1 }
0x1a67   :  { %v5648_v48 = vpop.f32.mrb[99].mxu1  ;;  %v5720_v17 = vadd.f32 %v8496_v39, %v13040_v32  ;;  %v13048_v39 = vld [vmem:[#allocation10_spill] sm:$0xff] }
0x1a68   :  { %v5719_v25 = vadd.f32 %v5648_v48, %v13038_v23 }
0x1a6a   :  { %v8499_v57 = vpop.f32.mrb[100].mxu1 }
0x1a6b   :  { %v5658_v0 = vpop.f32.mrb[101].mxu1  ;;  %v5722_v43 = vadd.f32 %v8499_v57, %v13039_v61 }
0x1a6c   :  { %v5721_v44 = vadd.f32 %v5658_v0, %v13042_v63  ;;  %v13057_v63 = vld [vmem:[#allocation15_spill] sm:$0xff] }
0x1a6e   :  { %v8502_v5 = vpop.f32.mrb[102].mxu1 }
0x1a6f   :  { %v5668_v19 = vpop.f32.mrb[103].mxu1  ;;  %v5724_v10 = vadd.f32 %v8502_v5, %v13041_v35  ;;  %v13049_v5 = vld [vmem:[#allocation11_spill] sm:$0xff] }
0x1a70   :  { %v5723_v58 = vadd.f32 %v5668_v19, %v13043_v53 }
0x1abd   :  { %v5479_v52 = vpop.permute.xlu0 %5478 }
0x1abe   :  { %v5477_v18 = vpop.permute.xlu1 %5476  ;;  %v5501_v24 = vsel %vm31_vm0, %v11875_v62, %v5479_v52 }
0x1abf   :  { %v5500_v15 = vsel %vm31_vm0, %v11877_v7, %v5477_v18 }
0x1ac0   :  { %8503 = vmatprep.mubr.msk.f32.mxu1 %vm772_vm2, %v5500_v15 }
0x1ac1   :  { %8504 = vmatmul.mubr.msk.f32.gmra.mrb[104].mxu1 %vm772_vm2, %v5501_v24  ;;  %v5483_v40 = vpop.permute.xlu0 %5482 }
0x1ac2   :  { %v5481_v36 = vpop.permute.xlu1 %5480  ;;  %v5503_v11 = vsel %vm31_vm0, %v11879_v27, %v5483_v40 }
0x1ac3   :  { %v5502_v8 = vsel %vm31_vm0, %v11881_v13, %v5481_v36  ;;  %v13052_v36 = vld [vmem:[#allocation12_spill] sm:$0xff] }
0x1ac4   :  { %8506 = vmatprep.mubr.msk.f32.mxu1 %vm772_vm2, %v5502_v8 }
0x1ac5   :  { %8507 = vmatmul.mubr.msk.f32.gmra.mrb[106].mxu1 %vm772_vm2, %v5503_v11  ;;  %v5487_v7 = vpop.permute.xlu0 %5486 }
0x1ac6   :  { %v5485_v37 = vpop.permute.xlu1 %5484  ;;  %v5505_v55 = vsel %vm31_vm0, %v11883_v9, %v5487_v7 }
0x1ac7   :  { %v5504_v62 = vsel %vm31_vm0, %v11885_v50, %v5485_v37  ;;  %v5717_v50 = vadd.f32 %v5638_v21, %v11005_v12  ;;  %v13053_v37 = vld [vmem:[#allocation14_spill] sm:$0xff] }
0x1ac8   :  { %8509 = vmatprep.mubr.msk.f32.mxu1 %vm772_vm2, %v5504_v62 }
0x1ac9   :  { %8510 = vmatmul.mubr.msk.f32.gmra.mrb[108].mxu1 %vm772_vm2, %v5505_v55 }
0x1ad1   :  { %v5491_v13 = vpop.permute.xlu0 %5490 }
0x1ad2   :  { %v5489_v33 = vpop.permute.xlu1 %5488  ;;  %v5507_v47 = vsel %vm31_vm0, %v11887_v29, %v5491_v13 }
0x1ad3   :  { %v5506_v27 = vsel %vm31_vm0, %v11889_v16, %v5489_v33 }
0x1ad4   :  { %8512 = vmatprep.mubr.msk.f32.mxu1 %vm772_vm2, %v5506_v27 }
0x1ad5   :  { %8513 = vmatmul.mubr.msk.f32.gmra.mrb[110].mxu1 %vm772_vm2, %v5507_v47 }
0x1ad6   :  { %v12048_v9 = vpop.permute.xlu1 %5733 }
0x1ad7   :  { %v12053_v30 = vadd.f32 %v12048_v9, %v5718_v42  ;;  %v12056_v16 = vadd.f32 %v12048_v9, %v5717_v50  ;;  %v12063_v12 = vadd.f32 %v12048_v9, %v5719_v25  ;;  %v12066_v45 = vadd.f32 %v12048_v9, %v5722_v43 }
0x1ad8   :  { %v12075_v34 = vadd.f32 %v12048_v9, %v5720_v17  ;;  %v12078_v38 = vadd.f32 %v12048_v9, %v5724_v10  ;;  %v12086_v28 = vadd.f32 %v12048_v9, %v5721_v44  ;;  %v12092_v49 = vadd.f32 %v12048_v9, %v5723_v58  ;;  %v13056_v17 = vld [vmem:[#allocation13_spill] sm:$0xff] }
0x1ad9   :  { %v5755_v29 = vsel %vm772_vm2, %v12053_v30, 0.0  ;;  %v5752_v56 = vsel %vm772_vm2, %v12056_v16, 0.0  ;;  %v5758_v60 = vsel %vm772_vm2, %v12063_v12, 0.0  ;;  %v5767_v31 = vsel %vm772_vm2, %v12066_v45, 0.0 }
0x1ada   :  { %5756 = vadd.xlane.f32.xlu1 %v5755_v29  ;;  %5753 = vadd.xlane.f32.xlu0 %v5752_v56  ;;  %v5761_v3 = vsel %vm772_vm2, %v12075_v34, 0.0  ;;  %v5773_v59 = vsel %vm772_vm2, %v12078_v38, 0.0  ;;  %v5764_v14 = vsel %vm772_vm2, %v12086_v28, 0.0  ;;  %v5770_v54 = vsel %vm772_vm2, %v12092_v49, 0.0 }
0x1ade   :  { %5759 = vadd.xlane.f32.xlu0 %v5758_v60  ;;  %5768 = vadd.xlane.f32.xlu1 %v5767_v31 }
0x1ae2   :  { %5762 = vadd.xlane.f32.xlu0 %v5761_v3  ;;  %5774 = vadd.xlane.f32.xlu1 %v5773_v59 }
0x1ae6   :  { %5765 = vadd.xlane.f32.xlu0 %v5764_v14 }
0x1aea   :  { %5771 = vadd.xlane.f32.xlu0 %v5770_v54 }
0x1b67   :  { %v5754_v2 = vpop.xlane.xlu0 %5753  ;;  %v5757_v47 = vpop.xlane.xlu1 %5756 }
0x1b68   :  { %v5801_v23 = vmul.f32 0.03125, %v5757_v47  ;;  %v5800_v25 = vmul.f32 0.03125, %v5754_v2  ;;  %v6003_v47 = vld [vmem:[%s12950_s2 + $0x18] sm:$0xff] }
0x1b6a   :  { %v12133_v29 = vsub.f32 %v12053_v30, %v5801_v23  ;;  %v12137_v60 = vsub.f32 %v12056_v16, %v5800_v25  ;;  %v6002_v23 = vld [vmem:[%s12950_s2 + $0x10] sm:$0xff] }
0x1b6b   :  { %v5760_v40 = vpop.xlane.xlu0 %5759  ;;  %v5769_v61 = vpop.xlane.xlu1 %5768  ;;  %v6004_v25 = vld [vmem:[%s12950_s2 + $0x30] sm:$0xff] }
0x1b6c   :  { %v5802_v31 = vmul.f32 0.03125, %v5760_v40  ;;  %v5805_v53 = vmul.f32 0.03125, %v5769_v61  ;;  %v5833_v54 = vmul.f32 %v12133_v29, %v12133_v29  ;;  %v8987_v61 = vpack.c.bf16 %v6004_v25, %v6002_v23 }
0x1b6f   :  { %v5763_v50 = vpop.xlane.xlu0 %5762 }
0x1b70   :  { %v5803_v56 = vmul.f32 0.03125, %v5763_v50 }
0x1b72   :  { %v12147_v58 = vsub.f32 %v12075_v34, %v5803_v56  ;;  %v6009_v56 = vld [vmem:[%s12950_s2 + $0x78] sm:$0xff] }
0x1b73   :  { %v5766_v32 = vpop.xlane.xlu0 %5765 }
0x1b94   :  { %v8505_v41 = vpop.f32.mrb[104].mxu1 }
0x1b95   :  { %v5726_v1 = vadd.f32 %v8505_v41, %v13044_v6  ;;  %v5678_v4 = vpop.f32.mrb[105].mxu1  ;;  %v12154_v41 = vsub.f32 %v12063_v12, %v5802_v31  ;;  %v5775_v6 = vpop.xlane.xlu1 %5774 }
0x1b96   :  { %v5725_v26 = vadd.f32 %v5678_v4, %v13045_v20  ;;  %v5832_v4 = vmul.f32 %v12137_v60, %v12137_v60  ;;  %v5772_v20 = vpop.xlane.xlu0 %5771  ;;  %v5807_v2 = vmul.f32 0.03125, %v5775_v6 }
0x1b97   :  { %v12099_v46 = vadd.f32 %v12048_v9, %v5726_v1  ;;  %v5804_v1 = vmul.f32 0.03125, %v5766_v32  ;;  %v6006_v32 = vld [vmem:[%s12950_s2 + $0x50] sm:$0xff] }
0x1b98   :  { %v12102_v22 = vadd.f32 %v12048_v9, %v5725_v26  ;;  %v8508_v21 = vpop.f32.mrb[106].mxu1  ;;  %v12161_v26 = vsub.f32 %v12066_v45, %v5805_v53 }
0x1b99   :  { %13046 = vst [vmem:[#allocation2_spill] sm:$0xff] %v12099_v46  ;;  %v5728_v48 = vadd.f32 %v8508_v21, %v13048_v39  ;;  %v5688_v57 = vpop.f32.mrb[107].mxu1  ;;  %v5779_v0 = vsel %vm772_vm2, %v12099_v46, 0.0  ;;  %v5851_v21 = vsel %vm772_vm2, %v5833_v54, 0.0  ;;  %v5835_v39 = vmul.f32 %v12147_v58, %v12147_v58 }
0x1b9a   :  { %13047 = vst [vmem:[#allocation4_spill] sm:$0xff] %v12102_v22  ;;  %v5727_v19 = vadd.f32 %v5688_v57, %v13049_v5  ;;  %5780 = vadd.xlane.f32.xlu1 %v5779_v0  ;;  %v5776_v52 = vsel %vm772_vm2, %v12102_v22, 0.0  ;;  %v5806_v57 = vmul.f32 0.03125, %v5772_v20  ;;  %v5848_v0 = vsel %vm772_vm2, %v5832_v4, 0.0 }
0x1b9b   :  { %v12111_v18 = vadd.f32 %v12048_v9, %v5728_v48  ;;  %5777 = vadd.xlane.f32.xlu0 %v5776_v52  ;;  %v12167_v48 = vsub.f32 %v12086_v28, %v5804_v1  ;;  %v5834_v5 = vmul.f32 %v12154_v41, %v12154_v41  ;;  %v5857_v52 = vsel %vm772_vm2, %v5835_v39, 0.0 }
0x1b9c   :  { %v12114_v15 = vadd.f32 %v12048_v9, %v5727_v19  ;;  %v8511_v24 = vpop.f32.mrb[108].mxu1  ;;  %v12173_v19 = vsub.f32 %v12078_v38, %v5807_v2  ;;  %v12179_v40 = vsub.f32 %v12092_v49, %v5806_v57 }
0x1b9d   :  { %13050 = vst [vmem:[#allocation3_spill] sm:$0xff] %v12111_v18  ;;  %v5730_v8 = vadd.f32 %v8511_v24, %v13052_v36  ;;  %v5698_v11 = vpop.f32.mrb[109].mxu1  ;;  %v5785_v7 = vsel %vm772_vm2, %v12111_v18, 0.0  ;;  %v5837_v24 = vmul.f32 %v12161_v26, %v12161_v26  ;;  %v5854_v36 = vsel %vm772_vm2, %v5834_v5, 0.0 }
0x1b9e   :  { %13051 = vst [vmem:[#allocation6_spill] sm:$0xff] %v12114_v15  ;;  %v5729_v62 = vadd.f32 %v5698_v11, %v13053_v37  ;;  %5786 = vadd.xlane.f32.xlu1 %v5785_v7  ;;  %v5782_v55 = vsel %vm772_vm2, %v12114_v15, 0.0  ;;  %v5839_v7 = vmul.f32 %v12173_v19, %v12173_v19 }
0x1b9f   :  { %v12123_v13 = vadd.f32 %v12048_v9, %v5730_v8  ;;  %5783 = vadd.xlane.f32.xlu0 %v5782_v55  ;;  %v5836_v8 = vmul.f32 %v12167_v48, %v12167_v48  ;;  %v5863_v11 = vsel %vm772_vm2, %v5837_v24, 0.0 }
0x1ba0   :  { %v12126_v33 = vadd.f32 %v12048_v9, %v5729_v62  ;;  %v5838_v62 = vmul.f32 %v12179_v40, %v12179_v40  ;;  %v5869_v55 = vsel %vm772_vm2, %v5839_v7, 0.0 }
0x1ba1   :  { %13054 = vst [vmem:[#allocation5_spill] sm:$0xff] %v12123_v13  ;;  %v5791_v27 = vsel %vm772_vm2, %v12123_v13, 0.0  ;;  %v5860_v37 = vsel %vm772_vm2, %v5836_v8, 0.0 }
0x1ba2   :  { %13055 = vst [vmem:[#allocation7_spill] sm:$0xff] %v12126_v33  ;;  %5792 = vadd.xlane.f32.xlu1 %v5791_v27  ;;  %v5788_v42 = vsel %vm772_vm2, %v12126_v33, 0.0  ;;  %v5866_v27 = vsel %vm772_vm2, %v5838_v62, 0.0 }
0x1ba3   :  { %5789 = vadd.xlane.f32.xlu0 %v5788_v42  ;;  %v6005_v42 = vld [vmem:[%s12950_s2 + $0x38] sm:$0xff] }
0x1ba4   :  { %v8985_v50 = vpack.c.bf16 %v6005_v42, %v6003_v47 }
0x1ba6   :  { %8986 = vmatprep.subr.bf16.mxu0 %v8985_v50 }
0x1ba7   :  { %8988 = vmatpush1.bf16.msra.mxu0 %v8987_v61 }
0x1ba8   :  { %v8514_v43 = vpop.f32.mrb[110].mxu1 }
0x1ba9   :  { %v5732_v35 = vadd.f32 %v8514_v43, %v13056_v17  ;;  %v5708_v10 = vpop.f32.mrb[111].mxu1  ;;  %v6007_v43 = vld [vmem:[%s12950_s2 + $0x58] sm:$0xff] }
0x1baa   :  { %v5731_v44 = vadd.f32 %v5708_v10, %v13057_v63  ;;  %v8989_v17 = vpack.c.bf16 %v6009_v56, %v6007_v43  ;;  %v9873_v10 = vmov 0.0  }
0x1bab   :  { %v12141_v3 = vadd.f32 %v12048_v9, %v5732_v35  ;;  %v6008_v35 = vld [vmem:[%s12950_s2 + $0x70] sm:$0xff]  ;;  %6147 = vmatprep.mubr.f32.mxu0 %v9873_v10 }
0x1bac   :  { %v12144_v59 = vadd.f32 %v12048_v9, %v5731_v44  ;;  %v8991_v31 = vpack.c.bf16 %v6008_v35, %v6006_v32  ;;  %8990 = vmatprep.subr.bf16.mxu0 %v8989_v17 }
0x1bad   :  { %13058 = vst [vmem:[#allocation8_spill] sm:$0xff] %v12141_v3  ;;  %v5797_v14 = vsel %vm772_vm2, %v12141_v3, 0.0 }
0x1bae   :  { %13059 = vst [vmem:[#allocation9_spill] sm:$0xff] %v12144_v59  ;;  %5798 = vadd.xlane.f32.xlu1 %v5797_v14  ;;  %v5794_v9 = vsel %vm772_vm2, %v12144_v59, 0.0  ;;  %8992 = vmatpush1.bf16.msra.mxu0 %v8991_v31 }
0x1baf   :  { %5795 = vadd.xlane.f32.xlu0 %v5794_v9 }
0x1bb2   :  { %5852 = vadd.xlane.f32.xlu1 %v5851_v21 }
0x1bb3   :  { %5849 = vadd.xlane.f32.xlu0 %v5848_v0 }
0x1bb6   :  { %5858 = vadd.xlane.f32.xlu1 %v5857_v52 }
0x1bb7   :  { %5855 = vadd.xlane.f32.xlu0 %v5854_v36 }
0x1bba   :  { %5864 = vadd.xlane.f32.xlu1 %v5863_v11 }
0x1bbb   :  { %5861 = vadd.xlane.f32.xlu0 %v5860_v37 }
0x1bbe   :  { %5870 = vadd.xlane.f32.xlu1 %v5869_v55 }
0x1bbf   :  { %5867 = vadd.xlane.f32.xlu0 %v5866_v27 }
0x1bd5   :  { %5960 = vrot.lane.b32.xlu0 %v12018_v51, %s9871_s9 }
0x1c27   :  { %v5781_v63 = vpop.xlane.xlu1 %5780 }
0x1c28   :  { %v5809_v44 = vmul.f32 0.03125, %v5781_v63  ;;  %v5778_v53 = vpop.xlane.xlu0 %5777 }
0x1c29   :  { %v5808_v14 = vmul.f32 0.03125, %v5778_v53 }
0x1c2a   :  { %v12220_v54 = vsub.f32 %v12099_v46, %v5809_v44 }
0x1c2b   :  { %v12223_v6 = vsub.f32 %v12102_v22, %v5808_v14  ;;  %v5787_v1 = vpop.xlane.xlu1 %5786 }
0x1c2c   :  { %v5784_v9 = vpop.xlane.xlu0 %5783  ;;  %v5811_v2 = vmul.f32 0.03125, %v5787_v1  ;;  %v5841_v39 = vmul.f32 %v12220_v54, %v12220_v54 }
0x1c2d   :  { %v5810_v4 = vmul.f32 0.03125, %v5784_v9  ;;  %v5840_v20 = vmul.f32 %v12223_v6, %v12223_v6 }
0x1c2e   :  { %v12234_v0 = vsub.f32 %v12111_v18, %v5811_v2  ;;  %v5875_v52 = vsel %vm772_vm2, %v5841_v39, 0.0 }
0x1c2f   :  { %v12228_v51 = vsub.f32 %v12114_v15, %v5810_v4  ;;  %v5872_v21 = vsel %vm772_vm2, %v5840_v20, 0.0  ;;  %v5793_v36 = vpop.xlane.xlu1 %5792 }
0x1c30   :  { %v5790_v57 = vpop.xlane.xlu0 %5789  ;;  %5873 = vadd.xlane.f32.xlu1 %v5872_v21  ;;  %v5813_v8 = vmul.f32 0.03125, %v5793_v36  ;;  %v5843_v37 = vmul.f32 %v12234_v0, %v12234_v0 }
0x1c31   :  { %v5812_v5 = vmul.f32 0.03125, %v5790_v57  ;;  %v5842_v24 = vmul.f32 %v12228_v51, %v12228_v51 }
0x1c32   :  { %v12246_v62 = vsub.f32 %v12123_v13, %v5813_v8  ;;  %v5881_v27 = vsel %vm772_vm2, %v5843_v37, 0.0  ;;  %v6012_v8 = vlaneseq }
0x1c33   :  { %v12240_v11 = vsub.f32 %v12126_v33, %v5812_v5  ;;  %v5878_v7 = vsel %vm772_vm2, %v5842_v24, 0.0 }
0x1c34   :  { %5876 = vadd.xlane.f32.xlu1 %v5875_v52  ;;  %v5845_v32 = vmul.f32 %v12246_v62, %v12246_v62 }
0x1c35   :  { %v5844_v47 = vmul.f32 %v12240_v11, %v12240_v11 }
0x1c36   :  { %v5887_v1 = vsel %vm772_vm2, %v5845_v32, 0.0 }
0x1c37   :  { %v5884_v56 = vsel %vm772_vm2, %v5844_v47, 0.0 }
0x1c38   :  { %5879 = vadd.xlane.f32.xlu1 %v5878_v7 }
0x1c3b   :  { %v5799_v55 = vpop.xlane.xlu1 %5798 }
0x1c3c   :  { %v5815_v42 = vmul.f32 0.03125, %v5799_v55  ;;  %5882 = vadd.xlane.f32.xlu1 %v5881_v27  ;;  %v5796_v50 = vpop.xlane.xlu0 %5795  ;;  %v6013_v27 = vshrl.u32 %v6012_v8, 7 }
0x1c3d   :  { %v5814_v23 = vmul.f32 0.03125, %v5796_v50 }
0x1c3e   :  { %v12252_v25 = vsub.f32 %v12141_v3, %v5815_v42 }
0x1c3f   :  { %v12255_v61 = vsub.f32 %v12144_v59, %v5814_v23  ;;  %v5853_v43 = vpop.xlane.xlu1 %5852 }
0x1c40   :  { %v5897_v17 = vmul.f32 0.03125, %v5853_v43  ;;  %5885 = vadd.xlane.f32.xlu1 %v5884_v56  ;;  %v5850_v35 = vpop.xlane.xlu0 %5849  ;;  %v5847_v4 = vmul.f32 %v12252_v25, %v12252_v25 }
0x1c41   :  { %v5896_v31 = vmul.f32 0.03125, %v5850_v35  ;;  %v5846_v63 = vmul.f32 %v12255_v61, %v12255_v61  ;;  %v12274_v35 = vld [vmem:[%s12949_s4 + $0x2] ss:$0 sm:$0xff] }
0x1c42   :  { %v5913_v44 = vadd.f32 1e-05, %v5897_v17  ;;  %v5893_v5 = vsel %vm772_vm2, %v5847_v4, 0.0 }
0x1c43   :  { %v5912_v53 = vadd.f32 1e-05, %v5896_v31  ;;  %v5859_v14 = vpop.xlane.xlu1 %5858  ;;  %v5890_v9 = vsel %vm772_vm2, %v5846_v63, 0.0  ;;  %v6018_v31 = vsub.s32 1, %v6013_v27 }
0x1c44   :  { %9762 = vrsqrt.f32 %v5913_v44  ;;  %v5899_v20 = vmul.f32 0.03125, %v5859_v14  ;;  %5888 = vadd.xlane.f32.xlu1 %v5887_v1  ;;  %5891 = vadd.xlane.f32.xlu0 %v5890_v9  ;;  %v5856_v2 = vpop.xlane.xlu0 %5855  ;;  %v6010_v44 = vld [vmem:[%s12949_s4 + $0x2] sm:$0x7] }
0x1c45   :  { %9764 = vrsqrt.f32 %v5912_v53  ;;  %v5898_v21 = vmul.f32 0.03125, %v5856_v2  ;;  %v6022_v2 = vsub.s32 2, %v6013_v27 }
0x1c46   :  { %v5915_v39 = vadd.f32 1e-05, %v5899_v20  ;;  %v6019_v20 = vrot.slane %v6010_v44, %v6018_v31 }
0x1c47   :  { %v5914_v57 = vadd.f32 1e-05, %v5898_v21  ;;  %v5865_v52 = vpop.xlane.xlu1 %5864 }
0x1c48   :  { %5894 = vadd.xlane.f32.xlu1 %v5893_v5  ;;  %v5862_v24 = vpop.xlane.xlu0 %5861  ;;  %v5901_v7 = vmul.f32 0.03125, %v5865_v52 }
0x1c49   :  { %9766 = vrsqrt.f32 %v5914_v57  ;;  %v5900_v36 = vmul.f32 0.03125, %v5862_v24  ;;  %v6023_v24 = vrot.slane %v6010_v44, %v6022_v2 }
0x1c4a   :  { %9768 = vrsqrt.f32 %v5915_v39  ;;  %v5917_v50 = vadd.f32 1e-05, %v5901_v7 }
0x1c4b   :  { %v5916_v37 = vadd.f32 1e-05, %v5900_v36  ;;  %v5871_v56 = vpop.xlane.xlu1 %5870 }
0x1c4c   :  { %v5868_v55 = vpop.xlane.xlu0 %5867 }
0x1c4d   :  { %9770 = vrsqrt.f32 %v5916_v37  ;;  %v5902_v23 = vmul.f32 0.03125, %v5868_v55 }
0x1c4e   :  { %v9763_v47 = vpop.eup %9762  ;;  %9772 = vrsqrt.f32 %v5917_v50 }
0x1c4f   :  { %v9765_v42 = vpop.eup %9764  ;;  %v5945_v17 = vmul.f32 %v9763_v47, %v12133_v29  ;;  %v5918_v14 = vadd.f32 1e-05, %v5902_v23 }
0x1c50   :  { %v5944_v43 = vmul.f32 %v9765_v42, %v12137_v60  ;;  %v12268_v32 = vpop.permute.xlu0 %5960  ;;  %v5903_v60 = vmul.f32 0.03125, %v5871_v56  ;;  %v9860_v56 = vld [vmem:[%s12947_s1] sm:$0xff] }
0x1c51   :  { %v5964_v29 = vmul.f32 %v12268_v32, %v5945_v17  ;;  %9774 = vrsqrt.f32 %v5918_v14 }
0x1c52   :  { %v5963_v63 = vmul.f32 %v12268_v32, %v5944_v43  ;;  %v5919_v21 = vadd.f32 1e-05, %v5903_v60 }
0x1c53   :  { %v9767_v53 = vpop.eup %9766  ;;  %v5987_v39 = vadd.f32 %v12274_v35, %v5964_v29 }
0x1c54   :  { %v5986_v1 = vadd.f32 %v12274_v35, %v5963_v63  ;;  %v5946_v9 = vmul.f32 %v9767_v53, %v12154_v41  ;;  %v9769_v4 = vpop.eup %9768  ;;  %v6014_v41 = vsub.s32 0, %v6013_v27  ;;  %9776 = vrsqrt.f32 %v5919_v21 }
0x1c55   :  { %v5947_v5 = vmul.f32 %v9769_v4, %v12147_v58  ;;  %v6693_v4 = vld [vmem:[%s12951_s3 + $0x8] sm:$0xff] }
0x1c56   :  { %7414 = vmatmul.mubr.msk.f32.vlgmr.msra.gmra.mrb[104].mxu0 %vm772_vm2, %v5986_v1  ;;  %v5965_v57 = vmul.f32 %v12268_v32, %v5946_v9  ;;  %v6015_v58 = vrot.slane %v6010_v44, %v6014_v41  ;;  %v6692_v9 = vld [vmem:[%s12951_s3] sm:$0xff] }
0x1c57   :  { %6153 = vmatprep.mubr.f32.mxu0 %v9873_v10  ;;  %v9771_v52 = vpop.eup %9770  ;;  %v5966_v8 = vmul.f32 %v12268_v32, %v5947_v5 }
0x1c58   :  { %v5988_v36 = vadd.f32 %v12274_v35, %v5965_v57  ;;  %v5948_v7 = vmul.f32 %v9771_v52, %v12167_v48  ;;  %v9773_v37 = vpop.eup %9772 }
0x1c59   :  { %6026 = vrot.lane.b32.xlu1 %v6019_v20, %s9868_s29  ;;  %v5989_v55 = vadd.f32 %v12274_v35, %v5966_v8  ;;  %v5949_v47 = vmul.f32 %v9773_v37, %v12161_v26  ;;  %v8993_v20 = vpack.c.bf16 %v6693_v4, %v6692_v9  ;;  %v6695_v8 = vld [vmem:[%s12951_s3 + $0x18] sm:$0xff] }
0x1c5a   :  { %7415 = vmatmul.mubr.msk.f32.gmra.mrb[106].mxu0 %vm772_vm2, %v5987_v39  ;;  %v5967_v27 = vmul.f32 %v12268_v32, %v5948_v7 }
0x1c5b   :  { %6159 = vmatprep.mubr.f32.mxu0 %v9873_v10  ;;  %v9775_v42 = vpop.eup %9774  ;;  %v5968_v50 = vmul.f32 %v12268_v32, %v5949_v47  ;;  %8994 = vmatprep.subr.bf16.mxu1 %v8993_v20 }
0x1c5c   :  { %v5990_v48 = vadd.f32 %v12274_v35, %v5967_v27  ;;  %v5950_v23 = vmul.f32 %v9775_v42, %v12179_v40  ;;  %v9861_v40 = vld [vmem:[%s12947_s1 + $0x8] sm:$0xff]  ;;  %8996 = vmatpush3.bf16.msra.mxu1 %v8993_v20 }
0x1c5d   :  { %6028 = vrot.lane.b32.xlu1 %v6023_v24, %s9868_s29  ;;  %v5991_v26 = vadd.f32 %v12274_v35, %v5968_v50  ;;  %v6697_v50 = vld [vmem:[%s12951_s3 + $0x28] sm:$0xff] }
0x1c5e   :  { %7416 = vmatmul.mubr.msk.f32.gmra.mrb[108].mxu0 %vm772_vm2, %v5988_v36  ;;  %v9777_v43 = vpop.eup %9776  ;;  %v5969_v17 = vmul.f32 %v12268_v32, %v5950_v23  ;;  %v6694_v36 = vld [vmem:[%s12951_s3 + $0x10] sm:$0xff] }
0x1c5f   :  { %6165 = vmatprep.mubr.f32.mxu0 %v9873_v10  ;;  %v5951_v31 = vmul.f32 %v9777_v43, %v12173_v19 }
0x1c60   :  { %v5992_v63 = vadd.f32 %v12274_v35, %v5969_v17 }
0x1c61   :  { %6024 = vrot.lane.b32.xlu1 %v6015_v58, %s9868_s29  ;;  %v5970_v44 = vmul.f32 %v12268_v32, %v5951_v31  ;;  %v8997_v58 = vpack.c.bf16 %v6695_v8, %v6694_v36  ;;  %v6703_v36 = vld [vmem:[%s12951_s3 + $0x58] sm:$0xff] }
0x1c62   :  { %7417 = vmatmul.mubr.msk.f32.gmra.mrb[110].mxu0 %vm772_vm2, %v5989_v55 }
0x1c63   :  { %6171 = vmatprep.mubr.f32.mxu0 %v9873_v10  ;;  %v5993_v19 = vadd.f32 %v12274_v35, %v5970_v44  ;;  %8998 = vmatprep.subr.bf16.mxu1 %v8997_v58 }
0x1c64   :  { %9000 = vmatpush3.bf16.msra.mxu1 %v8997_v58 }
0x1c65   :  { %6902 = vrot.lane.b32.xlu1 %v9860_v56, %s9869_s30 }
0x1c66   :  { %7418 = vmatmul.mubr.msk.f32.gmra.mrb[112].mxu0 %vm772_vm2, %v5990_v48  ;;  %v6696_v48 = vld [vmem:[%s12951_s3 + $0x20] sm:$0xff] }
0x1c67   :  { %6177 = vmatprep.mubr.f32.mxu0 %v9873_v10 }
0x1c69   :  { %6904 = vrot.lane.b32.xlu1 %v9861_v40, %s9869_s30 }
0x1c6a   :  { %7419 = vmatmul.mubr.msk.f32.gmra.mrb[114].mxu0 %vm772_vm2, %v5991_v26  ;;  %v9001_v26 = vpack.c.bf16 %v6697_v50, %v6696_v48 }
0x1c6b   :  { %6183 = vmatprep.mubr.f32.mxu0 %v9873_v10 }
0x1c6c   :  { %9002 = vmatprep.subr.bf16.mxu1 %v9001_v26 }
0x1c6d   :  { %9004 = vmatpush3.bf16.msra.mxu1 %v9001_v26 }
0x1c6e   :  { %7420 = vmatmul.mubr.msk.f32.gmra.mrb[116].mxu0 %vm772_vm2, %v5992_v63 }
0x1c6f   :  { %6189 = vmatprep.mubr.f32.mxu0 %v9873_v10 }
0x1c72   :  { %7421 = vmatmul.mubr.msk.f32.gmra.mrb[118].mxu0 %vm772_vm2, %v5993_v19 }
0x1c73   :  { %6195 = vmatprep.mubr.f32.mxu0 %v9873_v10 }
0x1cbd   :  { %v5874_v53 = vpop.xlane.xlu1 %5873 }
0x1cbe   :  { %v5904_v60 = vmul.f32 0.03125, %v5874_v53  ;;  %v6698_v53 = vld [vmem:[%s12951_s3 + $0x30] sm:$0xff] }
0x1cc0   :  { %v5920_v14 = vadd.f32 1e-05, %v5904_v60 }
0x1cc1   :  { %v5877_v1 = vpop.xlane.xlu1 %5876 }
0x1cc2   :  { %9778 = vrsqrt.f32 %v5920_v14  ;;  %v5905_v29 = vmul.f32 0.03125, %v5877_v1 }
0x1cc4   :  { %v5921_v2 = vadd.f32 1e-05, %v5905_v29 }
0x1cc5   :  { %v5880_v21 = vpop.xlane.xlu1 %5879 }
0x1cc6   :  { %9780 = vrsqrt.f32 %v5921_v2  ;;  %v5906_v39 = vmul.f32 0.03125, %v5880_v21  ;;  %v6700_v21 = vld [vmem:[%s12951_s3 + $0x40] sm:$0xff] }
0x1cc8   :  { %v5922_v57 = vadd.f32 1e-05, %v5906_v39 }
0x1cc9   :  { %v5883_v5 = vpop.xlane.xlu1 %5882 }
0x1cca   :  { %9782 = vrsqrt.f32 %v5922_v57  ;;  %v5907_v52 = vmul.f32 0.03125, %v5883_v5 }
0x1ccc   :  { %v9779_v24 = vpop.eup %9778  ;;  %v5923_v41 = vadd.f32 1e-05, %v5907_v52 }
0x1ccd   :  { %v5886_v7 = vpop.xlane.xlu1 %5885  ;;  %v5952_v37 = vmul.f32 %v9779_v24, %v12223_v6 }
0x1cce   :  { %9784 = vrsqrt.f32 %v5923_v41  ;;  %v5908_v55 = vmul.f32 0.03125, %v5886_v7  ;;  %v6702_v41 = vld [vmem:[%s12951_s3 + $0x50] sm:$0xff] }
0x1ccf   :  { %v5971_v27 = vmul.f32 %v12268_v32, %v5952_v37  ;;  %v9013_v7 = vpack.c.bf16 %v6703_v36, %v6702_v41 }
0x1cd0   :  { %v9781_v47 = vpop.eup %9780  ;;  %v5924_v42 = vadd.f32 1e-05, %v5908_v55  ;;  %v6704_v55 = vld [vmem:[%s12951_s3 + $0x60] sm:$0xff] }
0x1cd1   :  { %v5889_v23 = vpop.xlane.xlu1 %5888  ;;  %v5892_v43 = vpop.xlane.xlu0 %5891  ;;  %v5994_v6 = vadd.f32 %v12274_v35, %v5971_v27  ;;  %v5953_v56 = vmul.f32 %v9781_v47, %v12220_v54  ;;  %v6699_v54 = vld [vmem:[%s12951_s3 + $0x38] sm:$0xff]  ;;  %v6705_v27 = vld [vmem:[%s12951_s3 + $0x68] sm:$0xff] }
0x1cd2   :  { %9786 = vrsqrt.f32 %v5924_v42  ;;  %v5909_v17 = vmul.f32 0.03125, %v5889_v23  ;;  %v5910_v31 = vmul.f32 0.03125, %v5892_v43  ;;  %v9005_v29 = vpack.c.bf16 %v6699_v54, %v6698_v53 }
0x1cd3   :  { %7422 = vmatmul.mubr.msk.f32.gmra.mrb[120].mxu0 %vm772_vm2, %v5994_v6  ;;  %v5972_v40 = vmul.f32 %v12268_v32, %v5953_v56  ;;  %v9017_v48 = vpack.c.bf16 %v6705_v27, %v6704_v55  ;;  %v6706_v6 = vld [vmem:[%s12951_s3 + $0x70] sm:$0xff] }
0x1cd4   :  { %v9783_v63 = vpop.eup %9782  ;;  %v5925_v44 = vadd.f32 1e-05, %v5909_v17  ;;  %v5926_v19 = vadd.f32 1e-05, %v5910_v31  ;;  %6201 = vmatprep.mubr.f32.mxu0 %v9873_v10  ;;  %9006 = vmatprep.subr.bf16.mxu1 %v9005_v29 }
0x1cd5   :  { %v5895_v60 = vpop.xlane.xlu1 %5894  ;;  %v5995_v14 = vadd.f32 %v12274_v35, %v5972_v40  ;;  %v5954_v1 = vmul.f32 %v9783_v63, %v12228_v51  ;;  %9008 = vmatpush3.bf16.msra.mxu1 %v9005_v29  ;;  %v6701_v51 = vld [vmem:[%s12951_s3 + $0x48] sm:$0xff] }
0x1cd6   :  { %9788 = vrsqrt.f32 %v5925_v44  ;;  %v5911_v9 = vmul.f32 0.03125, %v5895_v60  ;;  %v9009_v5 = vpack.c.bf16 %v6701_v51, %v6700_v21 }
0x1cd7   :  { %9790 = vrsqrt.f32 %v5926_v19  ;;  %7423 = vmatmul.mubr.msk.f32.gmra.mrb[122].mxu0 %vm772_vm2, %v5995_v14  ;;  %v5973_v4 = vmul.f32 %v12268_v32, %v5954_v1 }
0x1cd8   :  { %v9785_v20 = vpop.eup %9784  ;;  %v5927_v2 = vadd.f32 1e-05, %v5911_v9  ;;  %6207 = vmatprep.mubr.f32.mxu0 %v9873_v10  ;;  %9010 = vmatprep.subr.bf16.mxu1 %v9009_v5 }
0x1cd9   :  { %v5996_v39 = vadd.f32 %v12274_v35, %v5973_v4  ;;  %v5955_v57 = vmul.f32 %v9785_v20, %v12234_v0  ;;  %9012 = vmatpush3.bf16.msra.mxu1 %v9009_v5 }
0x1cda   :  { %9792 = vrsqrt.f32 %v5927_v2  ;;  %9014 = vmatprep.subr.bf16.mxu1 %v9013_v7 }
0x1cdb   :  { %7424 = vmatmul.mubr.msk.f32.gmra.mrb[124].mxu0 %vm772_vm2, %v5996_v39  ;;  %v5974_v52 = vmul.f32 %v12268_v32, %v5955_v57 }
0x1cdc   :  { %v9787_v24 = vpop.eup %9786  ;;  %6213 = vmatprep.mubr.f32.mxu0 %v9873_v10 }
0x1cdd   :  { %v5997_v0 = vadd.f32 %v12274_v35, %v5974_v52  ;;  %v5956_v8 = vmul.f32 %v9787_v24, %v12240_v11  ;;  %9016 = vmatpush3.bf16.msra.mxu1 %v9013_v7 }
0x1cde   :  { %9018 = vmatprep.subr.bf16.mxu1 %v9017_v48 }
0x1cdf   :  { %7425 = vmatmul.mubr.msk.f32.gmra.mrb[126].mxu0 %vm772_vm2, %v5997_v0  ;;  %v5975_v37 = vmul.f32 %v12268_v32, %v5956_v8 }
0x1ce0   :  { %v9789_v58 = vpop.eup %9788  ;;  %6219 = vmatprep.mubr.f32.mxu0 %v9873_v10 }
0x1ce1   :  { %v9791_v47 = vpop.eup %9790  ;;  %v5998_v11 = vadd.f32 %v12274_v35, %v5975_v37  ;;  %v5957_v42 = vmul.f32 %v9789_v58, %v12246_v62  ;;  %9020 = vmatpush3.bf16.msra.mxu1 %v9017_v48  ;;  %v6707_v62 = vld [vmem:[%s12951_s3 + $0x78] sm:$0xff] }
0x1ce2   :  { %v5958_v50 = vmul.f32 %v9791_v47, %v12255_v61  ;;  %v9021_v17 = vpack.c.bf16 %v6707_v62, %v6706_v6 }
0x1ce3   :  { %7426 = vmatmul.mubr.msk.f32.gmra.mrb[128].mxu0 %vm772_vm2, %v5998_v11  ;;  %v5976_v23 = vmul.f32 %v12268_v32, %v5957_v42 }
0x1ce4   :  { %v9793_v43 = vpop.eup %9792  ;;  %6225 = vmatprep.mubr.f32.mxu0 %v9873_v10  ;;  %v5977_v61 = vmul.f32 %v12268_v32, %v5958_v50  ;;  %9022 = vmatprep.subr.bf16.mxu1 %v9021_v17 }
0x1ce5   :  { %v5999_v56 = vadd.f32 %v12274_v35, %v5976_v23  ;;  %v5959_v26 = vmul.f32 %v9793_v43, %v12252_v25  ;;  %9024 = vmatpush3.bf16.msra.mxu1 %v9021_v17  ;;  %v6027_v25 = vpop.permute.xlu1 %6026 }
0x1ce6   :  { %v6000_v31 = vadd.f32 %v12274_v35, %v5977_v61 }
0x1ce7   :  { %7427 = vmatmul.mubr.msk.f32.gmra.mrb[130].mxu0 %vm772_vm2, %v5999_v56  ;;  %v5978_v40 = vmul.f32 %v12268_v32, %v5959_v26 }
0x1ce8   :  { %6231 = vmatprep.mubr.f32.mxu0 %v9873_v10 }
0x1ce9   :  { %v6001_v63 = vadd.f32 %v12274_v35, %v5978_v40  ;;  %v6029_v44 = vpop.permute.xlu1 %6028 }
0x1cea   :  { %v12416_v19 = vsel %vm6030_vm4, %v6027_v25, %v6029_v44 }
0x1ceb   :  { %7428 = vmatmul.mubr.msk.f32.gmra.mrb[132].mxu0 %vm772_vm2, %v6000_v31 }
0x1cec   :  { %6237 = vmatprep.mubr.f32.mxu0 %v9873_v10 }
0x1ced   :  { %v6025_v47 = vpop.permute.xlu1 %6024 }
0x1cee   :  { %v12457_v62 = vsel %vm6030_vm4, %v6025_v47, %v6027_v25 }
0x1cef   :  { %7429 = vmatmul.mubr.msk.f32.gmra.mrb[134].mxu0 %vm772_vm2, %v6001_v63 }
0x1d29   :  { %v6149_v53 = vpop.f32.mrb[104].mxu0 }
0x1d2a   :  { %v6151_v54 = vpop.f32.mrb[105].mxu0 }
0x1d2b   :  { %v6152_v60 = vadd.f32 %v6151_v54, %v12416_v19 }
0x1d2d   :  { %v12419_v14 = vmul.f32 0.70710677, %v6152_v60  ;;  %v6155_v32 = vpop.f32.mrb[106].mxu0 }
0x1d2e   :  { %v6157_v1 = vpop.f32.mrb[107].mxu0 }
0x1d2f   :  { %v6260_v10 = vand.u32 2147483647, %v12419_v14  ;;  %v6158_v35 = vadd.f32 %v6157_v1, %v12416_v19  ;;  %vm6580_vm5 = vcmp.ge.f32.partialorder %v12419_v14, 0.0 }
0x1d31   :  { %v6276_v29 = vmul.f32 0.3275911, %v6260_v10  ;;  %v12423_v9 = vmul.f32 0.70710677, %v6158_v35  ;;  %v12425_v4 = vpop.f32.mrb[108].mxu0  ;;  %v6484_v0 = vsub.f32 0.0, %v6260_v10 }
0x1d32   :  { %v6163_v21 = vpop.f32.mrb[109].mxu0 }
0x1d33   :  { %v6292_v20 = vadd.f32 1.0, %v6276_v29  ;;  %v6261_v2 = vand.u32 2147483647, %v12423_v9  ;;  %v12429_v51 = vadd.f32 %v6163_v21, %v12416_v19  ;;  %v6500_v42 = vmul.f32 %v6484_v0, %v6260_v10 }
0x1d34   :  { %v12467_v10 = vadd.f32 %v6149_v53, %v12457_v62  ;;  %v12469_v29 = vmul.f32 0.5, %v6152_v60  ;;  %v12481_v53 = vadd.f32 %v6155_v32, %v12457_v62  ;;  %vm6581_vm6 = vcmp.ge.f32.partialorder %v12423_v9, 0.0 }
0x1d35   :  { %9794 = vrcp.f32 %v6292_v20  ;;  %v6277_v39 = vmul.f32 0.3275911, %v6261_v2  ;;  %v12431_v57 = vpop.f32.mrb[110].mxu0  ;;  %v12434_v5 = vmul.f32 0.70710677, %v12429_v51  ;;  %v6485_v48 = vsub.f32 0.0, %v6261_v2 }
0x1d36   :  { %v6169_v52 = vpop.f32.mrb[111].mxu0  ;;  %v6516_v63 = vmul.f32 1.442695, %v6500_v42 }
0x1d37   :  { %v6293_v24 = vadd.f32 1.0, %v6277_v39  ;;  %v12437_v41 = vadd.f32 %v6169_v52, %v12416_v19  ;;  %v6262_v36 = vand.u32 2147483647, %v12434_v5  ;;  %v6501_v44 = vmul.f32 %v6485_v48, %v6261_v2 }
0x1d38   :  { %vm6582_vm7 = vcmp.ge.f32.partialorder %v12434_v5, 0.0 }
0x1d39   :  { %9796 = vrcp.f32 %v6293_v24  ;;  %v12441_v8 = vmul.f32 0.70710677, %v12437_v41  ;;  %v12443_v7 = vpop.f32.mrb[112].mxu0  ;;  %v6278_v37 = vmul.f32 0.3275911, %v6262_v36  ;;  %v6486_v56 = vsub.f32 0.0, %v6262_v36 }
0x1d3a   :  { %v6175_v58 = vpop.f32.mrb[113].mxu0  ;;  %v6518_v47 = vmul.f32 1.442695, %v6501_v44 }
0x1d3b   :  { %v6263_v55 = vand.u32 2147483647, %v12441_v8  ;;  %v12447_v27 = vadd.f32 %v6175_v58, %v12416_v19  ;;  %v6294_v11 = vadd.f32 1.0, %v6278_v37  ;;  %v6502_v52 = vmul.f32 %v6486_v56, %v6262_v36 }
0x1d3c   :  { %v12494_v56 = vadd.f32 %v12425_v4, %v12457_v62  ;;  %vm6583_vm8 = vcmp.ge.f32.partialorder %v12441_v8, 0.0  ;;  %v6168_v8 = vadd.f32 %v12431_v57, %v12457_v62 }
0x1d3d   :  { %v6279_v50 = vmul.f32 0.3275911, %v6263_v55  ;;  %v12450_v23 = vmul.f32 0.70710677, %v12447_v27  ;;  %9798 = vrcp.f32 %v6294_v11  ;;  %v12452_v43 = vpop.f32.mrb[114].mxu0  ;;  %v6487_v24 = vsub.f32 0.0, %v6263_v55 }
0x1d3e   :  { %v6181_v17 = vpop.f32.mrb[115].mxu0  ;;  %v12485_v11 = vmul.f32 0.5, %v6158_v35 }
0x1d3f   :  { %v12454_v6 = vpop.eup %9794  ;;  %v6295_v61 = vadd.f32 1.0, %v6279_v50  ;;  %v6264_v26 = vand.u32 2147483647, %v12450_v23  ;;  %v12462_v40 = vadd.f32 %v6181_v17, %v12416_v19  ;;  %v6503_v17 = vmul.f32 %v6487_v24, %v6263_v55 }
0x1d40   :  { %v6340_v31 = vmul.f32 1.0614054, %v12454_v6  ;;  %vm6584_vm9 = vcmp.ge.f32.partialorder %v12450_v23, 0.0 }
0x1d41   :  { %9800 = vrcp.f32 %v6295_v61  ;;  %v6280_v54 = vmul.f32 0.3275911, %v6264_v26  ;;  %v12464_v1 = vpop.f32.mrb[116].mxu0  ;;  %v12472_v20 = vmul.f32 0.70710677, %v12462_v40 }
0x1d42   :  { %v6356_v25 = vadd.f32 -1.4531521, %v6340_v31  ;;  %v6187_v21 = vpop.f32.mrb[117].mxu0  ;;  %v6520_v61 = vmul.f32 1.442695, %v6502_v52 }
0x1d43   :  { %v12474_v39 = vpop.eup %9796  ;;  %v6296_v0 = vadd.f32 1.0, %v6280_v54  ;;  %v12477_v2 = vadd.f32 %v6187_v21, %v12416_v19  ;;  %v6265_v58 = vand.u32 2147483647, %v12472_v20  ;;  %v6522_v59 = vmul.f32 1.442695, %v6503_v17 }
0x1d44   :  { %v6372_v37 = vmul.f32 %v12454_v6, %v6356_v25  ;;  %v6341_v60 = vmul.f32 1.0614054, %v12474_v39  ;;  %vm6585_vm10 = vcmp.ge.f32.partialorder %v12472_v20, 0.0 }
0x1d45   :  { %9802 = vrcp.f32 %v6296_v0  ;;  %v12488_v36 = vmul.f32 0.70710677, %v12477_v2  ;;  %v12490_v42 = vpop.f32.mrb[118].mxu0  ;;  %v6281_v32 = vmul.f32 0.3275911, %v6265_v58 }
0x1d46   :  { %v6388_v48 = vadd.f32 1.4214138, %v6372_v37  ;;  %v6357_v50 = vadd.f32 -1.4531521, %v6341_v60  ;;  %9804 = vpow2.f32 %v6516_v63  ;;  %v6193_v35 = vpop.f32.mrb[119].mxu0  ;;  %v6488_v37 = vsub.f32 0.0, %v6264_v26 }
0x1d47   :  { %v6266_v31 = vand.u32 2147483647, %v12488_v36  ;;  %v12497_v44 = vpop.eup %9798  ;;  %v6297_v21 = vadd.f32 1.0, %v6281_v32  ;;  %v12502_v0 = vadd.f32 %v6193_v35, %v12416_v19  ;;  %9806 = vpow2.f32 %v6518_v47 }
0x1d48   :  { %v6404_v54 = vmul.f32 %v12454_v6, %v6388_v48  ;;  %v6373_v25 = vmul.f32 %v12474_v39, %v6357_v50  ;;  %v6342_v4 = vmul.f32 1.0614054, %v12497_v44  ;;  %v6489_v50 = vsub.f32 0.0, %v6265_v58 }
0x1d49   :  { %v6282_v63 = vmul.f32 0.3275911, %v6266_v31  ;;  %9808 = vrcp.f32 %v6297_v21  ;;  %v12506_v24 = vmul.f32 0.70710677, %v12502_v0  ;;  %v6504_v21 = vmul.f32 %v6488_v37, %v6264_v26 }
0x1d4a   :  { %v6420_v52 = vadd.f32 -0.28449672, %v6404_v54  ;;  %v6389_v55 = vadd.f32 1.4214138, %v6373_v25  ;;  %v6358_v48 = vadd.f32 -1.4531521, %v6342_v4  ;;  %9810 = vpow2.f32 %v6520_v61 }
0x1d4b   :  { %v12508_v60 = vpop.eup %9800  ;;  %v6298_v32 = vadd.f32 1.0, %v6282_v63  ;;  %v12514_v33 = vand.u32 2147483647, %v12506_v24  ;;  %v7430_v54 = vld [vmem:[%s12949_s4 + $0x4] ss:$0 sm:$0xff]  ;;  %v6490_v17 = vsub.f32 0.0, %v6266_v31  ;;  %v6505_v15 = vmul.f32 %v6489_v50, %v6265_v58 }
0x1d4c   :  { %v6436_v35 = vmul.f32 %v12454_v6, %v6420_v52  ;;  %v6405_v47 = vmul.f32 %v12474_v39, %v6389_v55  ;;  %v6343_v3 = vmul.f32 1.0614054, %v12508_v60  ;;  %v6374_v25 = vmul.f32 %v12497_v44, %v6358_v48  ;;  %6714 = vrot.lane.b32.xlu0 %v7430_v54, %s9868_s29 }
0x1d4d   :  { %9812 = vrcp.f32 %v6298_v32  ;;  %v6283_v18 = vmul.f32 0.3275911, %v12514_v33  ;;  %v6524_v32 = vmul.f32 1.442695, %v6504_v21  ;;  %vm6586_vm11 = vcmp.ge.f32.partialorder %v12488_v36, 0.0 }
0x1d4e   :  { %v6452_v4 = vadd.f32 0.2548296, %v6436_v35  ;;  %v6421_v63 = vadd.f32 -0.28449672, %v6405_v47  ;;  %v6359_v52 = vadd.f32 -1.4531521, %v6343_v3  ;;  %9814 = vpow2.f32 %v6522_v59 }
0x1d4f   :  { %v12521_v55 = vpop.eup %9802  ;;  %v6390_v13 = vadd.f32 1.4214138, %v6374_v25  ;;  %v6506_v47 = vmul.f32 %v6490_v17, %v6266_v31  ;;  %v6299_v54 = vadd.f32 1.0, %v6283_v18  ;;  %vm6587_vm12 = vcmp.ge.f32.partialorder %v12506_v24, 0.0 }
0x1d50   :  { %v6468_v48 = vmul.f32 %v12454_v6, %v6452_v4  ;;  %v6437_v26 = vmul.f32 %v12474_v39, %v6421_v63  ;;  %v6375_v61 = vmul.f32 %v12508_v60, %v6359_v52  ;;  %v6344_v37 = vmul.f32 1.0614054, %v12521_v55  ;;  %v9805_v35 = vpop.eup %9804 }
0x1d51   :  { %v6406_v3 = vmul.f32 %v12497_v44, %v6390_v13  ;;  %v9807_v50 = vpop.eup %9806  ;;  %v12532_v4 = vmul.f32 0.5, %v12429_v51  ;;  %v6526_v63 = vmul.f32 1.442695, %v6505_v15  ;;  %9816 = vrcp.f32 %v6299_v54 }
0x1d52   :  { %v6548_v22 = vmul.f32 %v9805_v35, %v6468_v48  ;;  %v6453_v25 = vadd.f32 0.2548296, %v6437_v26  ;;  %v6391_v59 = vadd.f32 1.4214138, %v6375_v61  ;;  %v6360_v58 = vadd.f32 -1.4531521, %v6344_v37 }
0x1d53   :  { %v6422_v6 = vadd.f32 -0.28449672, %v6406_v3  ;;  %v12534_v52 = vpop.eup %9808  ;;  %9818 = vpow2.f32 %v6524_v32  ;;  %v6528_v48 = vmul.f32 1.442695, %v6506_v47 }
0x1d54   :  { %v6564_v46 = vsub.f32 1.0, %v6548_v22  ;;  %v6469_v13 = vmul.f32 %v12474_v39, %v6453_v25  ;;  %v6407_v18 = vmul.f32 %v12508_v60, %v6391_v59  ;;  %v6376_v31 = vmul.f32 %v12521_v55, %v6360_v58  ;;  %v9811_v37 = vpop.eup %9810 }
0x1d55   :  { %v6438_v21 = vmul.f32 %v12497_v44, %v6422_v6  ;;  %v6345_v17 = vmul.f32 1.0614054, %v12534_v52  ;;  %9820 = vpow2.f32 %v6526_v63  ;;  %v6491_v22 = vsub.f32 0.0, %v12514_v33 }
0x1d56   :  { %v6596_v26 = vsub.f32 0.0, %v6564_v46  ;;  %v6549_v51 = vmul.f32 %v9807_v50, %v6469_v13  ;;  %v6423_v61 = vadd.f32 -0.28449672, %v6407_v18  ;;  %v6392_v15 = vadd.f32 1.4214138, %v6376_v31 }
0x1d57   :  { %v6454_v35 = vadd.f32 0.2548296, %v6438_v21  ;;  %v6361_v3 = vadd.f32 -1.4531521, %v6345_v17  ;;  %v12542_v39 = vpop.eup %9812  ;;  %9822 = vpow2.f32 %v6528_v48 }
0x1d58   :  { %v6612_v54 = vsel %vm6580_vm5, %v6564_v46, %v6596_v26  ;;  %v6565_v25 = vsub.f32 1.0, %v6549_v51  ;;  %v6439_v32 = vmul.f32 %v12508_v60, %v6423_v61  ;;  %v6408_v47 = vmul.f32 %v12521_v55, %v6392_v15  ;;  %v9815_v59 = vpop.eup %9814 }
0x1d59   :  { %v6644_v58 = vadd.f32 1.0, %v6612_v54  ;;  %v6470_v50 = vmul.f32 %v12497_v44, %v6454_v35  ;;  %v6377_v6 = vmul.f32 %v12534_v52, %v6361_v3  ;;  %v6346_v63 = vmul.f32 1.0614054, %v12542_v39 }
0x1d5a   :  { %v6597_v13 = vsub.f32 0.0, %v6565_v25  ;;  %v6455_v18 = vadd.f32 0.2548296, %v6439_v32  ;;  %v6424_v31 = vadd.f32 -0.28449672, %v6408_v47  ;;  %v6507_v61 = vmul.f32 %v6491_v22, %v12514_v33 }
0x1d5b   :  { %v6660_v46 = vmul.f32 %v6644_v58, %v12469_v29  ;;  %v6550_v14 = vmul.f32 %v9811_v37, %v6470_v50  ;;  %v6393_v21 = vadd.f32 1.4214138, %v6377_v6  ;;  %v6362_v17 = vadd.f32 -1.4531521, %v6346_v63  ;;  %v12558_v15 = vpop.eup %9816 }
0x1d5c   :  { %v6613_v26 = vsel %vm6581_vm6, %v6565_v25, %v6597_v13  ;;  %v6471_v51 = vmul.f32 %v12508_v60, %v6455_v18  ;;  %v6440_v44 = vmul.f32 %v12521_v55, %v6424_v31  ;;  %v6347_v32 = vmul.f32 1.0614054, %v12558_v15 }
0x1d5d   :  { %v6645_v35 = vadd.f32 1.0, %v6613_v26  ;;  %v6566_v3 = vsub.f32 1.0, %v6550_v14  ;;  %v6409_v48 = vmul.f32 %v12534_v52, %v6393_v21  ;;  %v6378_v29 = vmul.f32 %v12542_v39, %v6362_v17  ;;  %v9819_v25 = vpop.eup %9818 }
0x1d5e   :  { %v6551_v37 = vmul.f32 %v9815_v59, %v6471_v51  ;;  %v6456_v54 = vadd.f32 0.2548296, %v6440_v44  ;;  %v6676_v9 = vmul.f32 %v6660_v46, %v12467_v10  ;;  %v6363_v6 = vadd.f32 -1.4531521, %v6347_v32 }
0x1d5f   :  { %v6661_v60 = vmul.f32 %v6645_v35, %v12485_v11  ;;  %v6598_v47 = vsub.f32 0.0, %v6566_v3  ;;  %v6425_v58 = vadd.f32 -0.28449672, %v6409_v48  ;;  %v6394_v33 = vadd.f32 1.4214138, %v6378_v29  ;;  %v9821_v13 = vpop.eup %9820 }
0x1d60   :  { %v6567_v22 = vsub.f32 1.0, %v6551_v37  ;;  %v6472_v50 = vmul.f32 %v12521_v55, %v6456_v54  ;;  %v6530_v63 = vmul.f32 1.442695, %v6507_v61  ;;  %8547 = vmatprep.mubr.f32.mxu1 %v6676_v9  ;;  %v6379_v21 = vmul.f32 %v12558_v15, %v6363_v6 }
0x1d61   :  { %v6677_v59 = vmul.f32 %v6661_v60, %v12481_v53  ;;  %v6614_v18 = vsel %vm6582_vm7, %v6566_v3, %v6598_v47  ;;  %v6441_v10 = vmul.f32 %v12534_v52, %v6425_v58  ;;  %v6410_v31 = vmul.f32 %v12542_v39, %v6394_v33  ;;  %v9823_v53 = vpop.eup %9822  ;;  %vm12784_vm7 = vmpackc.low %vm772_vm2, %vm772_vm2 }
0x1d62   :  { %v6646_v11 = vadd.f32 1.0, %v6614_v18  ;;  %v6599_v46 = vsub.f32 0.0, %v6567_v22  ;;  %v6552_v14 = vmul.f32 %v9819_v25, %v6472_v50  ;;  %v6631_v55 = vmul.f32 0.5, %v12437_v41 }
0x1d63   :  { %v6457_v17 = vadd.f32 0.2548296, %v6441_v10  ;;  %v6426_v26 = vadd.f32 -0.28449672, %v6410_v31  ;;  %8548 = vmatmul.mubr.f32.vlgmr.msra.gmra.mrb[112].mxu1 %v6677_v59  ;;  %v6395_v61 = vadd.f32 1.4214138, %v6379_v21  ;;  %9824 = vpow2.f32 %v6530_v63 }
0x1d64   :  { %v6662_v5 = vmul.f32 %v6646_v11, %v12532_v4  ;;  %v6615_v51 = vsel %vm6583_vm8, %v6567_v22, %v6599_v46  ;;  %v6568_v44 = vsub.f32 1.0, %v6552_v14  ;;  %v6632_v25 = vmul.f32 0.5, %v12447_v27 }
0x1d65   :  { %v6647_v35 = vadd.f32 1.0, %v6615_v51  ;;  %v6473_v3 = vmul.f32 %v12534_v52, %v6457_v17  ;;  %v6442_v48 = vmul.f32 %v12542_v39, %v6426_v26  ;;  %v6411_v41 = vmul.f32 %v12558_v15, %v6395_v61 }
0x1d66   :  { %v6600_v29 = vsub.f32 0.0, %v6568_v44  ;;  %v6678_v37 = vmul.f32 %v6662_v5, %v12494_v56  ;;  %v6174_v56 = vadd.f32 %v12443_v7, %v12457_v62  ;;  %v6633_v59 = vmul.f32 0.5, %v12462_v40 }
0x1d67   :  { %v6663_v54 = vmul.f32 %v6647_v35, %v6631_v55  ;;  %v6553_v4 = vmul.f32 %v9821_v13, %v6473_v3  ;;  %v6458_v32 = vadd.f32 0.2548296, %v6442_v48  ;;  %v6427_v52 = vadd.f32 -0.28449672, %v6411_v41 }
0x1d68   :  { %v6616_v9 = vsel %vm6584_vm9, %v6568_v44, %v6600_v29  ;;  %8550 = vmatprep.mubr.f32.mxu1 %v6678_v37  ;;  %v6180_v7 = vadd.f32 %v12452_v43, %v12457_v62  ;;  %v6634_v14 = vmul.f32 0.5, %v12477_v2  ;;  %v6186_v40 = vadd.f32 %v12464_v1, %v12457_v62 }
0x1d69   :  { %v6648_v60 = vadd.f32 1.0, %v6616_v9  ;;  %v6569_v47 = vsub.f32 1.0, %v6553_v4  ;;  %v6474_v58 = vmul.f32 %v12542_v39, %v6458_v32  ;;  %v6679_v57 = vmul.f32 %v6663_v54, %v6168_v8 }
0x1d6a   :  { %v6443_v33 = vmul.f32 %v12558_v15, %v6427_v52  ;;  %v6635_v5 = vmul.f32 0.5, %v12502_v0  ;;  %v6192_v2 = vadd.f32 %v12490_v42, %v12457_v62 }
0x1d6b   :  { %v6664_v22 = vmul.f32 %v6648_v60, %v6632_v25  ;;  %v6601_v50 = vsub.f32 0.0, %v6569_v47  ;;  %v6554_v23 = vmul.f32 %v9823_v53, %v6474_v58  ;;  %8551 = vmatmul.mubr.f32.gmra.mrb[114].mxu1 %v6679_v57 }
0x1d6c   :  { %v6459_v6 = vadd.f32 0.2548296, %v6443_v33 }
0x1d6d   :  { %v6617_v27 = vsel %vm6585_vm10, %v6569_v47, %v6601_v50  ;;  %v6570_v63 = vsub.f32 1.0, %v6554_v23  ;;  %v6680_v13 = vmul.f32 %v6664_v22, %v6174_v56  ;;  %v9825_v10 = vpop.eup %9824 }
0x1d6e   :  { %v6649_v18 = vadd.f32 1.0, %v6617_v27  ;;  %v6475_v39 = vmul.f32 %v12558_v15, %v6459_v6 }
0x1d6f   :  { %v6602_v31 = vsub.f32 0.0, %v6570_v63  ;;  %8553 = vmatprep.mubr.f32.mxu1 %v6680_v13 }
0x1d70   :  { %v6665_v11 = vmul.f32 %v6649_v18, %v6633_v59  ;;  %v6555_v46 = vmul.f32 %v9825_v10, %v6475_v39 }
0x1d71   :  { %v6618_v20 = vsel %vm6586_vm11, %v6570_v63, %v6602_v31 }
0x1d72   :  { %v6650_v21 = vadd.f32 1.0, %v6618_v20  ;;  %v6571_v55 = vsub.f32 1.0, %v6555_v46  ;;  %v6681_v17 = vmul.f32 %v6665_v11, %v6180_v7 }
0x1d74   :  { %v6666_v15 = vmul.f32 %v6650_v21, %v6634_v14  ;;  %v6603_v26 = vsub.f32 0.0, %v6571_v55  ;;  %8554 = vmatmul.mubr.f32.gmra.mrb[116].mxu1 %v6681_v17 }
0x1d76   :  { %v6619_v53 = vsel %vm6587_vm12, %v6571_v55, %v6603_v26  ;;  %v6682_v43 = vmul.f32 %v6666_v15, %v6186_v40 }
0x1d77   :  { %v6651_v36 = vadd.f32 1.0, %v6619_v53 }
0x1d78   :  { %8556 = vmatprep.mubr.f32.mxu1 %v6682_v43 }
0x1d79   :  { %v6667_v51 = vmul.f32 %v6651_v36, %v6635_v5 }
0x1d7b   :  { %v6683_v44 = vmul.f32 %v6667_v51, %v6192_v2 }
0x1d7d   :  { %8557 = vmatmul.mubr.f32.gmra.mrb[118].mxu1 %v6683_v44 }
0x1da6   :  { %v6197_v61 = vpop.f32.mrb[120].mxu0 }
0x1da7   :  { %v6199_v35 = vpop.f32.mrb[121].mxu0  ;;  %v12644_v26 = vadd.f32 %v6197_v61, %v12457_v62 }
0x1da8   :  { %v6200_v1 = vadd.f32 %v6199_v35, %v12416_v19 }
0x1daa   :  { %v12601_v3 = vmul.f32 0.70710677, %v6200_v1  ;;  %v6203_v48 = vpop.f32.mrb[122].mxu0  ;;  %v12646_v43 = vmul.f32 0.5, %v6200_v1 }
0x1dab   :  { %v6205_v24 = vpop.f32.mrb[123].mxu0  ;;  %v12658_v61 = vadd.f32 %v6203_v48, %v12457_v62 }
0x1dac   :  { %v6268_v8 = vand.u32 2147483647, %v12601_v3  ;;  %v6206_v0 = vadd.f32 %v6205_v24, %v12416_v19  ;;  %vm6588_vm13 = vcmp.ge.f32.partialorder %v12601_v3, 0.0 }
0x1dae   :  { %v6284_v29 = vmul.f32 0.3275911, %v6268_v8  ;;  %v12605_v41 = vmul.f32 0.70710677, %v6206_v0  ;;  %v6209_v37 = vpop.f32.mrb[124].mxu0  ;;  %v6492_v33 = vsub.f32 0.0, %v6268_v8 }
0x1daf   :  { %v6211_v4 = vpop.f32.mrb[125].mxu0 }
0x1db0   :  { %v6300_v42 = vadd.f32 1.0, %v6284_v29  ;;  %v6269_v54 = vand.u32 2147483647, %v12605_v41  ;;  %v12609_v32 = vadd.f32 %v6211_v4, %v12416_v19  ;;  %v6508_v13 = vmul.f32 %v6492_v33, %v6268_v8 }
0x1db1   :  { %vm6589_vm14 = vcmp.ge.f32.partialorder %v12605_v41, 0.0 }
0x1db2   :  { %9826 = vrcp.f32 %v6300_v42  ;;  %v6285_v9 = vmul.f32 0.3275911, %v6269_v54  ;;  %v12611_v25 = vpop.f32.mrb[126].mxu0  ;;  %v12614_v52 = vmul.f32 0.70710677, %v12609_v32  ;;  %v6493_v59 = vsub.f32 0.0, %v6269_v54 }
0x1db3   :  { %v6217_v60 = vpop.f32.mrb[127].mxu0  ;;  %v6532_v55 = vmul.f32 1.442695, %v6508_v13 }
0x1db4   :  { %v6301_v47 = vadd.f32 1.0, %v6285_v9  ;;  %v12617_v58 = vadd.f32 %v6217_v60, %v12416_v19  ;;  %v6270_v57 = vand.u32 2147483647, %v12614_v52  ;;  %v6509_v17 = vmul.f32 %v6493_v59, %v6269_v54 }
0x1db5   :  { %v12662_v54 = vmul.f32 0.5, %v6206_v0  ;;  %vm6590_vm15 = vcmp.ge.f32.partialorder %v12614_v52, 0.0 }
0x1db6   :  { %9828 = vrcp.f32 %v6301_v47  ;;  %v12621_v56 = vmul.f32 0.70710677, %v12617_v58  ;;  %v12623_v22 = vpop.f32.mrb[128].mxu0  ;;  %v6286_v50 = vmul.f32 0.3275911, %v6270_v57  ;;  %v6494_v7 = vsub.f32 0.0, %v6270_v57 }
0x1db7   :  { %v6223_v23 = vpop.f32.mrb[129].mxu0  ;;  %v6534_v42 = vmul.f32 1.442695, %v6509_v17 }
0x1db8   :  { %v6271_v6 = vand.u32 2147483647, %v12621_v56  ;;  %v12627_v27 = vadd.f32 %v6223_v23, %v12416_v19  ;;  %v6302_v63 = vadd.f32 1.0, %v6286_v50  ;;  %v6510_v51 = vmul.f32 %v6494_v7, %v6270_v57 }
0x1db9   :  { %v12670_v57 = vadd.f32 %v6209_v37, %v12457_v62  ;;  %vm6591_vm0 = vcmp.ge.f32.partialorder %v12621_v56, 0.0  ;;  %v6216_v56 = vadd.f32 %v12611_v25, %v12457_v62 }
0x1dba   :  { %v6287_v18 = vmul.f32 0.3275911, %v6271_v6  ;;  %v12630_v39 = vmul.f32 0.70710677, %v12627_v27  ;;  %9830 = vrcp.f32 %v6302_v63  ;;  %v12632_v10 = vpop.f32.mrb[130].mxu0  ;;  %v6495_v44 = vsub.f32 0.0, %v6271_v6 }
0x1dbb   :  { %v6229_v20 = vpop.f32.mrb[131].mxu0  ;;  %v6536_v33 = vmul.f32 1.442695, %v6510_v51 }
0x1dbc   :  { %v12634_v31 = vpop.eup %9826  ;;  %v6303_v11 = vadd.f32 1.0, %v6287_v18  ;;  %v6272_v46 = vand.u32 2147483647, %v12630_v39  ;;  %v12639_v21 = vadd.f32 %v6229_v20, %v12416_v19  ;;  %v6511_v50 = vmul.f32 %v6495_v44, %v6271_v6 }
0x1dbd   :  { %v6348_v14 = vmul.f32 1.0614054, %v12634_v31  ;;  %vm6592_vm3 = vcmp.ge.f32.partialorder %v12630_v39, 0.0 }
0x1dbe   :  { %9832 = vrcp.f32 %v6303_v11  ;;  %v6288_v40 = vmul.f32 0.3275911, %v6272_v46  ;;  %v12641_v15 = vpop.f32.mrb[132].mxu0  ;;  %v12649_v5 = vmul.f32 0.70710677, %v12639_v21  ;;  %v6496_v11 = vsub.f32 0.0, %v6272_v46 }
0x1dbf   :  { %v6364_v53 = vadd.f32 -1.4531521, %v6348_v14  ;;  %v6235_v36 = vpop.f32.mrb[133].mxu0 }
0x1dc0   :  { %v12651_v2 = vpop.eup %9828  ;;  %v6304_v35 = vadd.f32 1.0, %v6288_v40  ;;  %v12654_v24 = vadd.f32 %v6235_v36, %v12416_v19  ;;  %v6273_v29 = vand.u32 2147483647, %v12649_v5  ;;  %vm6593_vm4 = vcmp.ge.f32.partialorder %v12649_v5, 0.0 }
0x1dc1   :  { %v6380_v8 = vmul.f32 %v12634_v31, %v6364_v53  ;;  %v6349_v1 = vmul.f32 1.0614054, %v12651_v2  ;;  %v6538_v53 = vmul.f32 1.442695, %v6511_v50 }
0x1dc2   :  { %9834 = vrcp.f32 %v6304_v35  ;;  %v12665_v4 = vmul.f32 0.70710677, %v12654_v24  ;;  %v12667_v9 = vpop.f32.mrb[134].mxu0  ;;  %v6289_v48 = vmul.f32 0.3275911, %v6273_v29  ;;  %v6497_v36 = vsub.f32 0.0, %v6273_v29 }
0x1dc3   :  { %v6396_v60 = vadd.f32 1.4214138, %v6380_v8  ;;  %v6365_v47 = vadd.f32 -1.4531521, %v6349_v1  ;;  %9836 = vpow2.f32 %v6532_v55  ;;  %v6241_v63 = vpop.f32.mrb[135].mxu0 }
0x1dc4   :  { %v6274_v23 = vand.u32 2147483647, %v12665_v4  ;;  %v12673_v0 = vpop.eup %9830  ;;  %v6305_v18 = vadd.f32 1.0, %v6289_v48  ;;  %v12678_v7 = vadd.f32 %v6241_v63, %v12416_v19  ;;  %9838 = vpow2.f32 %v6534_v42 }
0x1dc5   :  { %v6412_v13 = vmul.f32 %v12634_v31, %v6396_v60  ;;  %v6381_v59 = vmul.f32 %v12651_v2, %v6365_v47  ;;  %v6350_v37 = vmul.f32 1.0614054, %v12673_v0  ;;  %v6512_v42 = vmul.f32 %v6496_v11, %v6272_v46 }
0x1dc6   :  { %v6290_v20 = vmul.f32 0.3275911, %v6274_v23  ;;  %9840 = vrcp.f32 %v6305_v18  ;;  %v12682_v55 = vmul.f32 0.70710677, %v12678_v7  ;;  %v6498_v60 = vsub.f32 0.0, %v6274_v23 }
0x1dc7   :  { %v6428_v14 = vadd.f32 -0.28449672, %v6412_v13  ;;  %v6397_v6 = vadd.f32 1.4214138, %v6381_v59  ;;  %v6366_v40 = vadd.f32 -1.4531521, %v6350_v37  ;;  %9842 = vpow2.f32 %v6536_v33 }
0x1dc8   :  { %v12684_v17 = vpop.eup %9832  ;;  %v6306_v51 = vadd.f32 1.0, %v6290_v20  ;;  %v12690_v8 = vand.u32 2147483647, %v12682_v55  ;;  %v6513_v59 = vmul.f32 %v6497_v36, %v6273_v29  ;;  %vm6594_vm5 = vcmp.ge.f32.partialorder %v12665_v4, 0.0 }
0x1dc9   :  { %v6444_v19 = vmul.f32 %v12634_v31, %v6428_v14  ;;  %v6413_v44 = vmul.f32 %v12651_v2, %v6397_v6  ;;  %v6351_v35 = vmul.f32 1.0614054, %v12684_v17  ;;  %v6382_v1 = vmul.f32 %v12673_v0, %v6366_v40 }
0x1dca   :  { %9844 = vrcp.f32 %v6306_v51  ;;  %v6291_v18 = vmul.f32 0.3275911, %v12690_v8  ;;  %v6540_v6 = vmul.f32 1.442695, %v6512_v42  ;;  %v6514_v40 = vmul.f32 %v6498_v60, %v6274_v23 }
0x1dcb   :  { %v6460_v47 = vadd.f32 0.2548296, %v6444_v19  ;;  %v6429_v48 = vadd.f32 -0.28449672, %v6413_v44  ;;  %v6367_v63 = vadd.f32 -1.4531521, %v6351_v35  ;;  %9846 = vpow2.f32 %v6538_v53 }
0x1dcc   :  { %v12693_v50 = vpop.eup %9834  ;;  %v6398_v13 = vadd.f32 1.4214138, %v6382_v1  ;;  %v6307_v51 = vadd.f32 1.0, %v6291_v18  ;;  %v12704_v35 = vmul.f32 0.5, %v12609_v32  ;;  %v6542_v1 = vmul.f32 1.442695, %v6513_v59 }
0x1dcd   :  { %v6476_v37 = vmul.f32 %v12634_v31, %v6460_v47  ;;  %v6445_v20 = vmul.f32 %v12651_v2, %v6429_v48  ;;  %v6383_v46 = vmul.f32 %v12684_v17, %v6367_v63  ;;  %v6352_v33 = vmul.f32 1.0614054, %v12693_v50  ;;  %v9837_v11 = vpop.eup %9836 }
0x1dce   :  { %v6414_v14 = vmul.f32 %v12673_v0, %v6398_v13  ;;  %v9839_v36 = vpop.eup %9838  ;;  %9848 = vrcp.f32 %v6307_v51  ;;  %v6544_v18 = vmul.f32 1.442695, %v6514_v40  ;;  %vm6595_vm6 = vcmp.ge.f32.partialorder %v12682_v55, 0.0 }
0x1dcf   :  { %v6556_v19 = vmul.f32 %v9837_v11, %v6476_v37  ;;  %v6461_v44 = vadd.f32 0.2548296, %v6445_v20  ;;  %v6399_v53 = vadd.f32 1.4214138, %v6383_v46  ;;  %v6368_v29 = vadd.f32 -1.4531521, %v6352_v33 }
0x1dd0   :  { %v6430_v31 = vadd.f32 -0.28449672, %v6414_v14  ;;  %v12706_v47 = vpop.eup %9840  ;;  %9850 = vpow2.f32 %v6540_v6 }
0x1dd1   :  { %v6572_v48 = vsub.f32 1.0, %v6556_v19  ;;  %v6477_v42 = vmul.f32 %v12651_v2, %v6461_v44  ;;  %v6415_v23 = vmul.f32 %v12684_v17, %v6399_v53  ;;  %v6384_v60 = vmul.f32 %v12693_v50, %v6368_v29  ;;  %v9843_v46 = vpop.eup %9842 }
0x1dd2   :  { %v6446_v63 = vmul.f32 %v12673_v0, %v6430_v31  ;;  %v6353_v13 = vmul.f32 1.0614054, %v12706_v47  ;;  %9852 = vpow2.f32 %v6542_v1  ;;  %v6499_v2 = vsub.f32 0.0, %v12690_v8 }
0x1dd3   :  { %v6604_v37 = vsub.f32 0.0, %v6572_v48  ;;  %v6557_v32 = vmul.f32 %v9839_v36, %v6477_v42  ;;  %v6431_v20 = vadd.f32 -0.28449672, %v6415_v23  ;;  %v6400_v59 = vadd.f32 1.4214138, %v6384_v60 }
0x1dd4   :  { %v6462_v33 = vadd.f32 0.2548296, %v6446_v63  ;;  %v6369_v11 = vadd.f32 -1.4531521, %v6353_v13  ;;  %v12714_v14 = vpop.eup %9844  ;;  %9854 = vpow2.f32 %v6544_v18 }
0x1dd5   :  { %v6620_v51 = vsel %vm6588_vm13, %v6572_v48, %v6604_v37  ;;  %v6573_v19 = vsub.f32 1.0, %v6557_v32  ;;  %v6447_v6 = vmul.f32 %v12684_v17, %v6431_v20  ;;  %v6416_v40 = vmul.f32 %v12693_v50, %v6400_v59  ;;  %v9847_v44 = vpop.eup %9846 }
0x1dd6   :  { %v6652_v53 = vadd.f32 1.0, %v6620_v51  ;;  %v6478_v29 = vmul.f32 %v12673_v0, %v6462_v33  ;;  %v6385_v36 = vmul.f32 %v12706_v47, %v6369_v11  ;;  %v6354_v31 = vmul.f32 1.0614054, %v12714_v14 }
0x1dd7   :  { %v6605_v1 = vsub.f32 0.0, %v6573_v19  ;;  %v6463_v42 = vadd.f32 0.2548296, %v6447_v6  ;;  %v6432_v23 = vadd.f32 -0.28449672, %v6416_v40  ;;  %v6515_v32 = vmul.f32 %v6499_v2, %v12690_v8 }
0x1dd8   :  { %v6668_v3 = vmul.f32 %v6652_v53, %v12646_v43  ;;  %v6558_v48 = vmul.f32 %v9843_v46, %v6478_v29  ;;  %v6401_v60 = vadd.f32 1.4214138, %v6385_v36  ;;  %v6370_v63 = vadd.f32 -1.4531521, %v6354_v31  ;;  %v12730_v20 = vpop.eup %9848 }
0x1dd9   :  { %v6621_v13 = vsel %vm6589_vm14, %v6573_v19, %v6605_v1  ;;  %v6479_v37 = vmul.f32 %v12684_v17, %v6463_v42  ;;  %v6448_v0 = vmul.f32 %v12693_v50, %v6432_v23  ;;  %v6355_v51 = vmul.f32 1.0614054, %v12730_v20 }
0x1dda   :  { %v6653_v59 = vadd.f32 1.0, %v6621_v13  ;;  %v6574_v33 = vsub.f32 1.0, %v6558_v48  ;;  %v6417_v18 = vmul.f32 %v12706_v47, %v6401_v60  ;;  %v6386_v43 = vmul.f32 %v12714_v14, %v6370_v63  ;;  %v9851_v19 = vpop.eup %9850 }
0x1ddb   :  { %v6559_v46 = vmul.f32 %v9847_v44, %v6479_v37  ;;  %v6464_v11 = vadd.f32 0.2548296, %v6448_v0  ;;  %v6684_v41 = vmul.f32 %v6668_v3, %v12644_v26  ;;  %v6371_v29 = vadd.f32 -1.4531521, %v6355_v51 }
0x1ddc   :  { %v6669_v17 = vmul.f32 %v6653_v59, %v12662_v54  ;;  %v6606_v6 = vsub.f32 0.0, %v6574_v33  ;;  %v6433_v40 = vadd.f32 -0.28449672, %v6417_v18  ;;  %v6402_v8 = vadd.f32 1.4214138, %v6386_v43  ;;  %v9853_v31 = vpop.eup %9852 }
0x1ddd   :  { %v6575_v2 = vsub.f32 1.0, %v6559_v46  ;;  %v6480_v53 = vmul.f32 %v12693_v50, %v6464_v11  ;;  %v6546_v36 = vmul.f32 1.442695, %v6515_v32  ;;  %8559 = vmatprep.mubr.f32.mxu1 %v6684_v41  ;;  %v6387_v48 = vmul.f32 %v12730_v20, %v6371_v29 }
0x1dde   :  { %v6622_v44 = vsel %vm6590_vm15, %v6574_v33, %v6606_v6  ;;  %v6449_v1 = vmul.f32 %v12706_v47, %v6433_v40  ;;  %v6418_v26 = vmul.f32 %v12714_v14, %v6402_v8  ;;  %v6685_v42 = vmul.f32 %v6669_v17, %v12658_v61  ;;  %v9855_v52 = vpop.eup %9854 }
0x1ddf   :  { %v6654_v54 = vadd.f32 1.0, %v6622_v44  ;;  %v6607_v23 = vsub.f32 0.0, %v6575_v2  ;;  %v6560_v3 = vmul.f32 %v9851_v19, %v6480_v53  ;;  %v6639_v50 = vmul.f32 0.5, %v12617_v58 }
0x1de0   :  { %v6465_v60 = vadd.f32 0.2548296, %v6449_v1  ;;  %v6434_v63 = vadd.f32 -0.28449672, %v6418_v26  ;;  %8560 = vmatmul.mubr.f32.gmra.mrb[120].mxu1 %v6685_v42  ;;  %v6403_v32 = vadd.f32 1.4214138, %v6387_v48  ;;  %9856 = vpow2.f32 %v6546_v36 }
0x1de1   :  { %v6670_v13 = vmul.f32 %v6654_v54, %v12704_v35  ;;  %v6623_v37 = vsel %vm6591_vm0, %v6575_v2, %v6607_v23  ;;  %v6576_v0 = vsub.f32 1.0, %v6560_v3  ;;  %v6640_v41 = vmul.f32 0.5, %v12627_v27 }
0x1de2   :  { %v6655_v59 = vadd.f32 1.0, %v6623_v37  ;;  %v6481_v61 = vmul.f32 %v12706_v47, %v6465_v60  ;;  %v6450_v33 = vmul.f32 %v12714_v14, %v6434_v63  ;;  %v6419_v58 = vmul.f32 %v12730_v20, %v6403_v32 }
0x1de3   :  { %v6608_v18 = vsub.f32 0.0, %v6576_v0  ;;  %v6686_v43 = vmul.f32 %v6670_v13, %v12670_v57  ;;  %v6222_v57 = vadd.f32 %v12623_v22, %v12457_v62  ;;  %v6228_v22 = vadd.f32 %v12632_v10, %v12457_v62 }
0x1de4   :  { %v6671_v46 = vmul.f32 %v6655_v59, %v6639_v50  ;;  %v6561_v35 = vmul.f32 %v9853_v31, %v6481_v61  ;;  %v6466_v11 = vadd.f32 0.2548296, %v6450_v33  ;;  %v6435_v47 = vadd.f32 -0.28449672, %v6419_v58 }
0x1de5   :  { %v6624_v51 = vsel %vm6592_vm3, %v6576_v0, %v6608_v18  ;;  %8562 = vmatprep.mubr.f32.mxu1 %v6686_v43  ;;  %v6641_v31 = vmul.f32 0.5, %v12639_v21  ;;  %v6642_v23 = vmul.f32 0.5, %v12654_v24  ;;  %v6234_v21 = vadd.f32 %v12641_v15, %v12457_v62  ;;  %v12772_v0 = vpop.permute.xlu0 %6714 }
0x1de6   :  { %v6656_v19 = vadd.f32 1.0, %v6624_v51  ;;  %v6577_v17 = vsub.f32 1.0, %v6561_v35  ;;  %v6482_v6 = vmul.f32 %v12714_v14, %v6466_v11  ;;  %v6687_v25 = vmul.f32 %v6671_v46, %v6216_v56 }
0x1de7   :  { %v6451_v40 = vmul.f32 %v12730_v20, %v6435_v47  ;;  %v6240_v24 = vadd.f32 %v12667_v9, %v12457_v62 }
0x1de8   :  { %v6672_v8 = vmul.f32 %v6656_v19, %v6640_v41  ;;  %v6609_v2 = vsub.f32 0.0, %v6577_v17  ;;  %v6562_v39 = vmul.f32 %v9855_v52, %v6482_v6  ;;  %8563 = vmatmul.mubr.f32.gmra.mrb[122].mxu1 %v6687_v25  ;;  %v6643_v52 = vmul.f32 0.5, %v12678_v7 }
0x1de9   :  { %v6467_v53 = vadd.f32 0.2548296, %v6451_v40  ;;  %v6903_v40 = vpop.permute.xlu1 %6902 }
0x1dea   :  { %v6625_v27 = vsel %vm6593_vm4, %v6577_v17, %v6609_v2  ;;  %v6578_v29 = vsub.f32 1.0, %v6562_v39  ;;  %v6688_v36 = vmul.f32 %v6672_v8, %v6222_v57  ;;  %v9857_v1 = vpop.eup %9856  ;;  %8606 = vmatprep.mubr.msk.f32.mxu0 %vm772_vm2, %v6903_v40  ;;  %v9862_v57 = vld [vmem:[%s12948_s5] sm:$0xff]  ;;  %v9863_v8 = vld [vmem:[%s12948_s5 + $0x8] sm:$0xff] }
0x1deb   :  { %v6657_v44 = vadd.f32 1.0, %v6625_v27  ;;  %v6483_v14 = vmul.f32 %v12730_v20, %v6467_v53 }
0x1dec   :  { %v6610_v26 = vsub.f32 0.0, %v6578_v29  ;;  %8565 = vmatprep.mubr.f32.mxu1 %v6688_v36 }
0x1ded   :  { %v6673_v42 = vmul.f32 %v6657_v44, %v6641_v31  ;;  %v6563_v54 = vmul.f32 %v9857_v1, %v6483_v14  ;;  %v13063_v31 = vld [vmem:[#allocation4_spill] sm:$0xff] }
0x1dee   :  { %v6626_v5 = vsel %vm6594_vm5, %v6578_v29, %v6610_v26  ;;  %v13062_v29 = vld [vmem:[#allocation2_spill] sm:$0xff] }
0x1def   :  { %v6658_v3 = vadd.f32 1.0, %v6626_v5  ;;  %v6579_v48 = vsub.f32 1.0, %v6563_v54  ;;  %v6689_v50 = vmul.f32 %v6673_v42, %v6228_v22  ;;  %v13064_v54 = vld [vmem:[#allocation3_spill] sm:$0xff] }
0x1df1   :  { %v6674_v20 = vmul.f32 %v6658_v3, %v6642_v23  ;;  %v6611_v60 = vsub.f32 0.0, %v6579_v48  ;;  %8566 = vmatmul.mubr.f32.gmra.mrb[124].mxu1 %v6689_v50  ;;  %v13065_v23 = vld [vmem:[#allocation6_spill] sm:$0xff] }
0x1df3   :  { %v6627_v63 = vsel %vm6595_vm6, %v6579_v48, %v6611_v60  ;;  %v6690_v10 = vmul.f32 %v6674_v20, %v6234_v21 }
0x1df4   :  { %v6659_v4 = vadd.f32 1.0, %v6627_v63  ;;  %v13066_v63 = vld [vmem:[#allocation5_spill] sm:$0xff] }
0x1df5   :  { %8568 = vmatprep.mubr.f32.mxu1 %v6690_v10 }
0x1df6   :  { %v6675_v13 = vmul.f32 %v6659_v4, %v6643_v52  ;;  %v13067_v52 = vld [vmem:[#allocation7_spill] sm:$0xff] }
0x1df8   :  { %v6691_v37 = vmul.f32 %v6675_v13, %v6240_v24 }
0x1dfa   :  { %8569 = vmatmul.mubr.f32.gmra.mrb[126].mxu1 %v6691_v37 }
0x1dfb   :  { %8587 = vmatprep.mubr.msk.f32.mxu1 %vm772_vm2, %v6903_v40 }
0x1e36   :  { %v8549_v15 = vpop.f32.mrb[112].mxu1 }
0x1e37   :  { %v6783_v32 = vpop.f32.mrb[113].mxu1  ;;  %v6789_v59 = vadd.f32 %v8549_v15, %v12772_v0 }
0x1e38   :  { %v6784_v55 = vadd.f32 %v6783_v32, %v12772_v0 }
0x1e39   :  { %v6863_v61 = vadd.f32 %v6789_v59, %v12053_v30  ;;  %v13068_v59 = vld [vmem:[#allocation8_spill] sm:$0xff] }
0x1e3a   :  { %v6862_v7 = vadd.f32 %v6784_v55, %v12056_v16 }
0x1e3b   :  { %6879 = vst.msk [vmem:[%s12952_s7 + $0x8] sm:$0xff] %vm772_vm2, %v6863_v61 }
0x1e3c   :  { %6878 = vst.msk [vmem:[%s12952_s7] sm:$0xff] %vm772_vm2, %v6862_v7  ;;  %v9025_v9 = vpack.c.bf16 %v6863_v61, %v6862_v7  ;;  %v13069_v61 = vld [vmem:[#allocation9_spill] sm:$0xff] }
0x1e3e   :  { %v8552_v30 = vpop.f32.mrb[114].mxu1  ;;  %9027 = vmatprep.subr.msk.bf16.mxu1 %vm12784_vm7, %v9025_v9 }
0x1e3f   :  { %v6799_v16 = vadd.f32 %v8552_v30, %v12772_v0  ;;  %v6793_v33 = vpop.f32.mrb[115].mxu1  ;;  %9030 = vmatpush3.bf16.xpose.msk.msra.mxu1 %vm12784_vm7, %v9025_v9 }
0x1e40   :  { %v6794_v56 = vadd.f32 %v6793_v33, %v12772_v0  ;;  %v7010_v33 = vld [vmem:[%s12946_s0 + $0x8] sm:$0xff] }
0x1e41   :  { %v6865_v18 = vadd.f32 %v6799_v16, %v12075_v34 }
0x1e42   :  { %v6864_v58 = vadd.f32 %v6794_v56, %v12063_v12 }
0x1e43   :  { %6881 = vst.msk [vmem:[%s12952_s7 + $0x18] sm:$0xff] %vm772_vm2, %v6865_v18 }
0x1e44   :  { %6880 = vst.msk [vmem:[%s12952_s7 + $0x10] sm:$0xff] %vm772_vm2, %v6864_v58  ;;  %v9031_v43 = vpack.c.bf16 %v6865_v18, %v6864_v58 }
0x1e46   :  { %9033 = vmatprep.subr.msk.bf16.mxu1 %vm12784_vm7, %v9031_v43 }
0x1e47   :  { %v8555_v46 = vpop.f32.mrb[116].mxu1  ;;  %9036 = vmatpush3.bf16.xpose.msk.msra.mxu1 %vm12784_vm7, %v9031_v43  ;;  %v7009_v43 = vld [vmem:[%s12946_s0] sm:$0xff] }
0x1e48   :  { %v6809_v12 = vadd.f32 %v8555_v46, %v12772_v0  ;;  %v6803_v34 = vpop.f32.mrb[117].mxu1 }
0x1e49   :  { %v6804_v35 = vadd.f32 %v6803_v34, %v12772_v0  ;;  %v7452_v34 = vld [vmem:[%s12946_s0 + $0x18] sm:$0xff] }
0x1e4a   :  { %v6867_v11 = vadd.f32 %v6809_v12, %v12066_v45 }
0x1e4b   :  { %v6866_v51 = vadd.f32 %v6804_v35, %v12086_v28 }
0x1e4c   :  { %6883 = vst.msk [vmem:[%s12952_s7 + $0x28] sm:$0xff] %vm772_vm2, %v6867_v11 }
0x1e4d   :  { %6882 = vst.msk [vmem:[%s12952_s7 + $0x20] sm:$0xff] %vm772_vm2, %v6866_v51  ;;  %v9037_v41 = vpack.c.bf16 %v6867_v11, %v6866_v51  ;;  %v7451_v51 = vld [vmem:[%s12946_s0 + $0x10] sm:$0xff] }
0x1e4f   :  { %9039 = vmatprep.subr.msk.bf16.mxu1 %vm12784_vm7, %v9037_v41 }
0x1e50   :  { %v8558_v47 = vpop.f32.mrb[118].mxu1  ;;  %9042 = vmatpush3.bf16.xpose.msk.msra.mxu1 %vm12784_vm7, %v9037_v41 }
0x1e51   :  { %v6819_v45 = vadd.f32 %v8558_v47, %v12772_v0  ;;  %v6813_v28 = vpop.f32.mrb[119].mxu1 }
0x1e52   :  { %v6814_v19 = vadd.f32 %v6813_v28, %v12772_v0 }
0x1e53   :  { %v6869_v17 = vadd.f32 %v6819_v45, %v12078_v38  ;;  %v6905_v38 = vpop.permute.xlu1 %6904 }
0x1e54   :  { %v6868_v6 = vadd.f32 %v6814_v19, %v12092_v49  ;;  %v9874_v49 = vmov 2  }
0x1e55   :  { %6885 = vst.msk [vmem:[%s12952_s7 + $0x38] sm:$0xff] %vm772_vm2, %v6869_v17  ;;  %9432 = vset.pattern.permute.xlu1 %v9874_v49  ;;  %9433 = vset.pattern.permute.xlu0 %v9874_v49 }
0x1e56   :  { %6884 = vst.msk [vmem:[%s12952_s7 + $0x30] sm:$0xff] %vm772_vm2, %v6868_v6  ;;  %v9043_v25 = vpack.c.bf16 %v6869_v17, %v6868_v6  ;;  %6895 = vperm.xlu1 %9432, %v9862_v57  }
0x1e58   :  { %9045 = vmatprep.subr.msk.bf16.mxu1 %vm12784_vm7, %v9043_v25 }
0x1e59   :  { %9048 = vmatpush3.bf16.xpose.msk.msra.mxu1 %vm12784_vm7, %v9043_v25 }
0x1e5a   :  { %6899 = vperm.xlu1 %9432, %v9863_v8  }
0x1e60   :  { %8588 = vmatmul.mubr.msk.f32.vlgmr.msra.gmra.mrb[128].mxu1 %vm772_vm2, %v6905_v38 }
0x1eb3   :  { %v8561_v2 = vpop.f32.mrb[120].mxu1 }
0x1eb4   :  { %v6829_v39 = vadd.f32 %v8561_v2, %v12772_v0  ;;  %v6823_v53 = vpop.f32.mrb[121].mxu1 }
0x1eb5   :  { %v6824_v27 = vadd.f32 %v6823_v53, %v12772_v0 }
0x1eb6   :  { %v6871_v36 = vadd.f32 %v6829_v39, %v13062_v29 }
0x1eb7   :  { %v6870_v44 = vadd.f32 %v6824_v27, %v13063_v31 }
0x1eb8   :  { %6887 = vst.msk [vmem:[%s12952_s7 + $0x48] sm:$0xff] %vm772_vm2, %v6871_v36 }
0x1eb9   :  { %6886 = vst.msk [vmem:[%s12952_s7 + $0x40] sm:$0xff] %vm772_vm2, %v6870_v44  ;;  %v9049_v14 = vpack.c.bf16 %v6871_v36, %v6870_v44 }
0x1ebb   :  { %v8564_v1 = vpop.f32.mrb[122].mxu1  ;;  %9051 = vmatprep.subr.msk.bf16.mxu0 %vm12784_vm7, %v9049_v14 }
0x1ebc   :  { %v6839_v26 = vadd.f32 %v8564_v1, %v12772_v0  ;;  %v6833_v22 = vpop.f32.mrb[123].mxu1  ;;  %9054 = vmatpush3.bf16.xpose.msk.msra.mxu0 %vm12784_vm7, %v9049_v14 }
0x1ebd   :  { %v6834_v42 = vadd.f32 %v6833_v22, %v12772_v0 }
0x1ebe   :  { %v6873_v5 = vadd.f32 %v6839_v26, %v13064_v54 }
0x1ebf   :  { %v6872_v3 = vadd.f32 %v6834_v42, %v13065_v23 }
0x1ec0   :  { %6889 = vst.msk [vmem:[%s12952_s7 + $0x58] sm:$0xff] %vm772_vm2, %v6873_v5 }
0x1ec1   :  { %6888 = vst.msk [vmem:[%s12952_s7 + $0x50] sm:$0xff] %vm772_vm2, %v6872_v3  ;;  %v9055_v48 = vpack.c.bf16 %v6873_v5, %v6872_v3 }
0x1ec3   :  { %9057 = vmatprep.subr.msk.bf16.mxu0 %vm12784_vm7, %v9055_v48 }
0x1ec4   :  { %v8567_v50 = vpop.f32.mrb[124].mxu1  ;;  %9060 = vmatpush3.bf16.xpose.msk.msra.mxu0 %vm12784_vm7, %v9055_v48 }
0x1ec5   :  { %v6849_v21 = vadd.f32 %v8567_v50, %v12772_v0  ;;  %v6843_v20 = vpop.f32.mrb[125].mxu1 }
0x1ec6   :  { %v6844_v60 = vadd.f32 %v6843_v20, %v12772_v0 }
0x1ec7   :  { %v6875_v10 = vadd.f32 %v6849_v21, %v13066_v63 }
0x1ec8   :  { %v6874_v4 = vadd.f32 %v6844_v60, %v13067_v52 }
0x1ec9   :  { %6891 = vst.msk [vmem:[%s12952_s7 + $0x68] sm:$0xff] %vm772_vm2, %v6875_v10 }
0x1eca   :  { %6890 = vst.msk [vmem:[%s12952_s7 + $0x60] sm:$0xff] %vm772_vm2, %v6874_v4  ;;  %v9061_v24 = vpack.c.bf16 %v6875_v10, %v6874_v4 }
0x1ecc   :  { %9063 = vmatprep.subr.msk.bf16.mxu0 %vm12784_vm7, %v9061_v24 }
0x1ecd   :  { %v8570_v13 = vpop.f32.mrb[126].mxu1  ;;  %9066 = vmatpush3.bf16.xpose.msk.msra.mxu0 %vm12784_vm7, %v9061_v24 }
0x1ece   :  { %v6859_v37 = vadd.f32 %v8570_v13, %v12772_v0  ;;  %v6853_v15 = vpop.f32.mrb[127].mxu1 }
0x1ecf   :  { %v6854_v32 = vadd.f32 %v6853_v15, %v12772_v0 }
0x1ed0   :  { %v6877_v55 = vadd.f32 %v6859_v37, %v13068_v59 }
0x1ed1   :  { %v6876_v7 = vadd.f32 %v6854_v32, %v13069_v61 }
0x1ed2   :  { %6893 = vst.msk [vmem:[%s12952_s7 + $0x78] sm:$0xff] %vm772_vm2, %v6877_v55 }
0x1ed3   :  { %6892 = vst.msk [vmem:[%s12952_s7 + $0x70] sm:$0xff] %vm772_vm2, %v6876_v7  ;;  %v9067_v9 = vpack.c.bf16 %v6877_v55, %v6876_v7 }
0x1ed5   :  { %9069 = vmatprep.subr.msk.bf16.mxu0 %vm12784_vm7, %v9067_v9  ;;  %v6896_v0 = vpop.permute.xlu1 %6895 }
0x1ed6   :  { %9072 = vmatpush3.bf16.xpose.msk.msra.mxu0 %vm12784_vm7, %v9067_v9 }
0x1ed9   :  { %v6900_v30 = vpop.permute.xlu1 %6899 }
0x1edd   :  { %8607 = vmatmul.mubr.msk.f32.vlgmr.msra.gmra.mrb[136].mxu0 %vm772_vm2, %v6905_v38 }
0x1f33   :  { %v8589_v16 = vpop.f32.mrb[128].mxu1 }
0x1f34   :  { %v7006_v56 = vadd.f32 %v8589_v16, %v6900_v30  ;;  %v7000_v18 = vpop.f32.mrb[129].mxu1 }
0x1f35   :  { %v7001_v58 = vadd.f32 %v7000_v18, %v6896_v0 }
0x1f36   :  { %v7012_v46 = vadd.f32 %v7010_v33, %v7006_v56 }
0x1f37   :  { %v7011_v12 = vadd.f32 %v7009_v43, %v7001_v58 }
0x1f38   :  { %7014 = vst.msk [vmem:[%s12953_s6 + $0x8] sm:$0xff] %vm113_vm1, %v7012_v46 }
0x1f39   :  { %7013 = vst.msk [vmem:[%s12953_s6] sm:$0xff] %vm113_vm1, %v7011_v12 }
0x1fb0   :  { %v8608_v62 = vpop.f32.mrb[136].mxu0 }
0x1fb1   :  { %v7111_v35 = vadd.f32 %v8608_v62, %v6900_v30  ;;  %v7105_v11 = vpop.f32.mrb[137].mxu0 }
0x1fb2   :  { %v7106_v41 = vadd.f32 %v7105_v11, %v6896_v0 }
0x1fb3   :  { %v7117_v47 = vadd.f32 %v7452_v34, %v7111_v35 }
0x1fb4   :  { %v7116_v45 = vadd.f32 %v7451_v51, %v7106_v41 }
0x1fb5   :  { %7454 = vst.msk [vmem:[%s12953_s6 + $0x18] sm:$0xff] %vm113_vm1, %v7117_v47 }
0x1fb6   :  { %7453 = vst.msk [vmem:[%s12953_s6 + $0x10] sm:$0xff] %vm113_vm1, %v7116_v45 }

</bundles_post_ra>
